<compile_context>
chip_gen: v7x
topology: tpu7x:2x2x1
jax: 0.10.0
libtpu: 0.0.40
codegen_flags: <defaults>
</compile_context>

<pallas_src>
import functools

import numpy as np
import jax
import jax.numpy as jnp
from jax.experimental import pallas as pl
from jax.experimental.pallas import tpu as pltpu


# ----------------------- constant selection matrices ------------------------

def _conv3x3_select_np(H, W):
    """(9*HW, HW) 0/1 matrix: row t*HW+p selects pixel p's tap-t neighbour
    (zero row == zero padding)."""
    HW = H * W
    g = np.zeros((9 * HW, HW), np.float32)
    for t in range(9):
        dy, dx = t // 3 - 1, t % 3 - 1
        for y in range(H):
            yy = y + dy
            if yy < 0 or yy >= H:
                continue
            for x in range(W):
                xx = x + dx
                if xx < 0 or xx >= W:
                    continue
                g[t * HW + y * W + x, yy * W + xx] = 1.0
    return g


def _pool3x3s2_select_np(H, W):
    """(9*HWo, HWi) selection for MaxPool2d(3, stride=2, padding=1)."""
    Ho, Wo = (H - 1) // 2 + 1, (W - 1) // 2 + 1
    HWo, HWi = Ho * Wo, H * W
    g = np.zeros((9 * HWo, HWi), np.float32)
    for t in range(9):
        ky, kx = t // 3, t % 3
        for yo in range(Ho):
            yi = 2 * yo - 1 + ky
            if yi < 0 or yi >= H:
                continue
            for xo in range(Wo):
                xi = 2 * xo - 1 + kx
                if xi < 0 or xi >= W:
                    continue
                g[t * HWo + yo * Wo + xo, yi * W + xi] = 1.0
    return g, Ho, Wo


def _blockdiag_taps(sel, B):
    """Per-image tap-stacked select (9*R, C) -> per-batch block-diag (9*B*R, B*C)."""
    R, C = sel.shape[0] // 9, sel.shape[1]
    out = np.zeros((9 * B * R, B * C), np.float32)
    for t in range(9):
        for b in range(B):
            out[t * B * R + b * R: t * B * R + (b + 1) * R,
                b * C:(b + 1) * C] = sel[t * R:(t + 1) * R]
    return out


def _expand_select(cin, cout):
    """(Cin, Cout) 0/1 matrix duplicating channel o//mult into output o."""
    m = cout // cin
    e = np.zeros((cin, cout), np.float32)
    e[np.arange(cout) // m, np.arange(cout)] = 1.0
    return jnp.asarray(e, jnp.bfloat16)


# ----------------------------- weight reshaping ------------------------------

def _fold_bn(bn, eps=1e-5):
    """Fold BN running stats into (2, 1, C) f32 [scale; bias]."""
    scale = bn["gamma"] / jnp.sqrt(bn["var"] + eps)
    bias = bn["beta"] - bn["mean"] * scale
    return jnp.stack([scale, bias], axis=0)[:, None, :].astype(jnp.float32)


def _merged_3x3(w_oihw):            # (Cout, Cin, 3, 3) -> (9*Cin, Cout) bf16, tap-major
    taps = [w_oihw[:, :, t // 3, t % 3].T for t in range(9)]
    return jnp.concatenate(taps, axis=0).astype(jnp.bfloat16)


def _center_3x3(w_oihw):            # (Cout, Cin, 3, 3) -> (Cin, Cout) bf16
    return w_oihw[:, :, 1, 1].T.astype(jnp.bfloat16)


def _dw_taps(w_o1hw):               # (Cout, 1, 3, 3) -> (9, 1, Cout) f32
    taps = [w_o1hw[:, 0, t // 3, t % 3] for t in range(9)]
    return jnp.stack(taps, axis=0)[:, None, :].astype(jnp.float32)


def _dw_center(w_o1hw):             # (Cout, 1, 3, 3) -> (1, Cout) f32
    return w_o1hw[:, 0, 1, 1][None, :].astype(jnp.float32)


def _pw(w_oi11):                    # (Cout, Cin, 1, 1) -> (Cin, Cout) bf16
    return w_oi11[:, :, 0, 0].T.astype(jnp.bfloat16)


# -------------------------------- parameters ---------------------------------

def _bn_params(key, c):
    k1, k2, k3, k4 = jax.random.split(key, 4)
    return {"gamma": 1.0 + 0.1 * jax.random.normal(k1, (c,), jnp.float32),
            "beta": 0.1 * jax.random.normal(k2, (c,), jnp.float32),
            "mean": 0.1 * jax.random.normal(k3, (c,), jnp.float32),
            "var": 1.0 + 0.1 * jnp.abs(jax.random.normal(k4, (c,), jnp.float32))}


def _conv_w(key, cout, cin, k):
    std = float(np.sqrt(2.0 / (cin * k * k)))
    return std * jax.random.normal(key, (cout, cin, k, k), jnp.float32)


def init_params(key, n_classes):
    """PyTorch-layout weights (OIHW convs, (out,in) Linear, BN stats)."""
    ks = iter(jax.random.split(key, 64))
    p = {"conv1_w": _conv_w(next(ks), 64, 1, 3), "conv1_bn": _bn_params(next(ks), 64),
         "conv2_w": _conv_w(next(ks), 64, 64, 3), "conv2_bn": _bn_params(next(ks), 64)}
    for name, cin, cout in (("sep1", 64, 128), ("sep2", 128, 128),
                            ("sep3", 128, 256), ("sep4", 256, 256)):
        p[name] = {
            "dw1_w": _conv_w(next(ks), cout, 1, 3),    # groups=cin -> (cout,1,3,3)
            "pw1_w": _conv_w(next(ks), cout, cout, 1),
            "bn1": _bn_params(next(ks), cout),
            "dw2_w": _conv_w(next(ks), cout, 1, 3),    # groups=cout
            "pw2_w": _conv_w(next(ks), cout, cout, 1),
            "bn2": _bn_params(next(ks), cout),
        }
    p["exit_w"] = _conv_w(next(ks), 512, 256, 3)
    p["exit_bn"] = _bn_params(next(ks), 512)
    p["fc_w"] = (1.0 / np.sqrt(512.0)) * jax.random.normal(next(ks), (n_classes, 512),
                                                           jnp.float32)
    p["fc_b"] = 0.01 * jax.random.normal(next(ks), (n_classes,), jnp.float32)
    return p


# --------------------------- inference preparation ---------------------------
# Builds (a) the flat list of kernel operands (bf16 weights / selection
# constants, f32 scale-bias) and (b) a static "plan" the kernel walks, with
# operand indices baked into each step (shared selects are deduplicated).

def prepare_inference(params, B, H, W, n_classes):
    operands, plan, cache = [], [], {}

    def add(x):
        operands.append(x)
        return len(operands) - 1

    def add_cached(key, build):
        if key not in cache:
            cache[key] = add(build())
        return cache[key]

    def conv_sel(h, w):
        """3x3 same-spatial tap gather select; per-image when bf16-tile aligned."""
        hw = h * w
        if hw % 16 == 0:                          # per-image: batch-independent
            idx = add_cached(("ci", h, w), lambda: jnp.asarray(
                _conv3x3_select_np(h, w), jnp.bfloat16))
            return idx, B, hw
        idx = add_cached(("cb", h, w), lambda: jnp.asarray(   # tiny 2x2 stages
            _blockdiag_taps(_conv3x3_select_np(h, w), B), jnp.bfloat16))
        return idx, 1, B * hw

    def dense(w_bf16, sb, relu):
        plan.append(("dense", dict(w=add(w_bf16), sb=add(sb), relu=relu)))

    def conv_block(w_oihw, bn, relu, h, w):
        sb = _fold_bn(bn)
        if h == 1 and w == 1:                     # only the centre tap sees data
            dense(_center_3x3(w_oihw), sb, relu)
            return
        sel, nb, hw = conv_sel(h, w)
        plan.append(("conv3x3", dict(sel=sel, w=add(_merged_3x3(w_oihw)),
                                     sb=add(sb), relu=relu, nb=nb, hw=hw,
                                     cin=int(w_oihw.shape[1]))))

    def depthwise(w_o1hw, cin, cout, h, w):
        spatial = not (h == 1 and w == 1)
        cfg = dict(spatial=spatial, expand=cout != cin)
        if cfg["expand"]:
            cfg["e"] = add_cached(("e", cin, cout),
                                  lambda: _expand_select(cin, cout))
        if spatial:
            cfg["wdw"] = add(_dw_taps(w_o1hw))
            cfg["sel"], cfg["nb"], cfg["hw"] = conv_sel(h, w)
        else:                                     # 1x1: centre tap only
            cfg["wdw"] = add(_dw_center(w_o1hw))
        plan.append(("dw", cfg))

    def pool(h, w, relu):
        if h == 1 and w == 1:                     # 1x1 pool is identity (+ReLU)
            plan.append(("pool", dict(spatial=False, relu=relu)))
            return 1, 1
        sel_np, ho, wo = _pool3x3s2_select_np(h, w)
        hwi, hwo = h * w, ho * wo
        if hwi % 16 == 0:                         # per-image
            cfg = dict(sel=add(jnp.asarray(sel_np, jnp.bfloat16)),
                       nb=B, hwi=hwi, hwo=hwo)
        else:                                     # tiny: block-diag per-batch
            cfg = dict(sel=add(jnp.asarray(_blockdiag_taps(sel_np, B),
                                           jnp.bfloat16)),
                       nb=1, hwi=B * hwi, hwo=B * hwo)
        cfg.update(spatial=True, relu=relu)
        plan.append(("pool", cfg))
        return ho, wo

    h, w = H, W
    # conv1: the (B*H*W, 9) bf16 patch matrix (Cin=1 im2col) is the kernel's
    # initial activation, so conv1 is one K=9 matmul + fused BN/ReLU.
    dense(_merged_3x3(params["conv1_w"]), _fold_bn(params["conv1_bn"]), True)
    h, w = pool(h, w, relu=False)
    conv_block(params["conv2_w"], params["conv2_bn"], True, h, w)
    h, w = pool(h, w, relu=False)

    for name, cin, cout in (("sep1", 64, 128), ("sep2", 128, 128),
                            ("sep3", 128, 256), ("sep4", 256, 256)):
        sp = params[name]
        depthwise(sp["dw1_w"], cin, cout, h, w)
        dense(_pw(sp["pw1_w"]), _fold_bn(sp["bn1"]), True)
        depthwise(sp["dw2_w"], cout, cout, h, w)
        dense(_pw(sp["pw2_w"]), _fold_bn(sp["bn2"]), False)
        h, w = pool(h, w, relu=True)

    conv_block(params["exit_w"], params["exit_bn"], True, h, w)   # no pool

    if h * w > 1:                                 # generic GAP (identity at 1x1)
        plan.append(("gap", dict(hw=h * w)))

    # Dropout(0.15) is identity in eval mode.  FC = dense with scale=1, bias=b.
    sb_fc = jnp.stack([jnp.ones((n_classes,), jnp.float32),
                       params["fc_b"].astype(jnp.float32)], 0)[:, None, :]
    dense(params["fc_w"].T.astype(jnp.bfloat16), sb_fc, False)
    return operands, plan


# --------------------------------- the kernel --------------------------------

def _tree(vals, op):
    """Pairwise-tree reduction so MXU result pops overlap the VPU combines."""
    vals = list(vals)
    while len(vals) > 1:
        nxt = [op(vals[i], vals[i + 1]) for i in range(0, len(vals) - 1, 2)]
        if len(vals) % 2:
            nxt.append(vals[-1])
        vals = nxt
    return vals[0]


def make_kernel(plan):
    """Single fused kernel: walks `plan`, addressing operand refs by index."""

    def kernel(*refs):
        x_ref, wrefs, out_ref = refs[0], refs[1:-1], refs[-1]
        act = x_ref[...]                          # (B*H*W, 9) bf16 conv1 patches
        logits = None

        for kind, cfg in plan:
            if kind == "dense":                   # matmul + folded BN (+ ReLU)
                sb = wrefs[cfg["sb"]][...]
                y = jnp.dot(act, wrefs[cfg["w"]][...],
                            preferred_element_type=jnp.float32)
                y = y * sb[0] + sb[1]
                if cfg["relu"]:
                    y = jnp.maximum(y, 0.0)
                logits = y                        # the final dense (fc) is consumed
                act = y.astype(jnp.bfloat16)

            elif kind == "conv3x3":               # 3x3 conv: stacked gather + 9 tap dots
                sel = wrefs[cfg["sel"]][...]      # (9*hw, hw) bf16
                wm = wrefs[cfg["w"]][...]         # (9*Cin, Cout) bf16, tap-major
                sb = wrefs[cfg["sb"]][...]
                nb, hw, cin = cfg["nb"], cfg["hw"], cfg["cin"]
                gs = [jnp.dot(sel, act[b * hw:(b + 1) * hw],
                              preferred_element_type=jnp.float32
                              ).astype(jnp.bfloat16)       # exact: 0/1 gather of bf16
                      for b in range(nb)]
                taps = []
                for t in range(9):
                    a_t = (jnp.concatenate([g[t * hw:(t + 1) * hw] for g in gs],
                                           axis=0)
                           if nb > 1 else gs[0][t * hw:(t + 1) * hw])
                    taps.append(jnp.dot(a_t, wm[t * cin:(t + 1) * cin],
                                        preferred_element_type=jnp.float32))
                y = _tree(taps, lambda u, v: u + v)
                y = y * sb[0] + sb[1]
                if cfg["relu"]:
                    y = jnp.maximum(y, 0.0)
                act = y.astype(jnp.bfloat16)

            elif kind == "dw":                    # depthwise (grouped) 3x3 conv
                if cfg["expand"]:                 # channel duplication o -> o//mult
                    act = jnp.dot(act, wrefs[cfg["e"]][...],
                                  preferred_element_type=jnp.float32
                                  ).astype(jnp.bfloat16)
                wdw = wrefs[cfg["wdw"]][...]      # (9,1,C) f32 taps or (1,C) centre
                if cfg["spatial"]:
                    sel = wrefs[cfg["sel"]][...]
                    nb, hw = cfg["nb"], cfg["hw"]
                    c = act.shape[-1]
                    pieces = []
                    for b in range(nb):
                        g = jnp.dot(sel, act[b * hw:(b + 1) * hw],
                                    preferred_element_type=jnp.float32
                                    ).reshape(9, hw, c)
                        pieces.append(_tree([g[t] * wdw[t] for t in range(9)],
                                            lambda u, v: u + v))
                    y = jnp.concatenate(pieces, axis=0) if nb > 1 else pieces[0]
                else:                             # 1x1 spatial: centre tap only
                    y = act.astype(jnp.float32) * wdw
                act = y.astype(jnp.bfloat16)

            elif kind == "pool":                  # MaxPool(3,2,1) (+ fused ReLU)
                if cfg["spatial"]:
                    sel = wrefs[cfg["sel"]][...]  # (9*hwo, hwi) bf16
                    nb, hwi, hwo = cfg["nb"], cfg["hwi"], cfg["hwo"]
                    c = act.shape[-1]
                    pieces = []
                    for b in range(nb):
                        g = jnp.dot(sel, act[b * hwi:(b + 1) * hwi],
                                    preferred_element_type=jnp.float32
                                    ).reshape(9, hwo, c)
                        pieces.append(_tree([g[t] for t in range(9)], jnp.maximum))
                    y = jnp.concatenate(pieces, axis=0) if nb > 1 else pieces[0]
                    if cfg["relu"]:
                        y = jnp.maximum(y, 0.0)
                    act = y.astype(jnp.bfloat16)
                elif cfg["relu"]:                 # 1x1 pool == identity (+ReLU)
                    act = jnp.maximum(act, 0.0)

            elif kind == "gap":                   # global average pool (if HW > 1)
                x3 = act.reshape(-1, cfg["hw"], act.shape[-1]).astype(jnp.float32)
                act = jnp.mean(x3, axis=1).astype(jnp.bfloat16)

            else:
                raise ValueError(kind)

        out_ref[...] = logits.astype(out_ref.dtype)

    return kernel


# --------------------------------- forward -----------------------------------

def _conv1_patches(x_nchw):
    """Input im2col (Cin=1): (B,1,H,W) -> (B*H*W, 9) bf16; taps on the K axis."""
    x = x_nchw[:, 0, :, :].astype(jnp.float32)
    B, H, W = x.shape
    xp = jnp.pad(x, ((0, 0), (1, 1), (1, 1)))
    cols = [xp[:, ky:ky + H, kx:kx + W] for ky in range(3) for kx in range(3)]
    return jnp.stack(cols, axis=-1).reshape(B * H * W, 9).astype(jnp.bfloat16)


def atcnet_forward(kernel, n_classes, weights, x_nchw):
    B = x_nchw.shape[0]
    p1 = _conv1_patches(x_nchw)
    # Single TensorCore, no grid: at B=2 a megacore split only adds overhead.
    # For larger batches on v7x, add grid=(num_blocks,) over batch blocks with
    # dimension_semantics=("parallel",) -- the per-image selects make batch
    # blocks fully independent.
    return pl.pallas_call(
        kernel,
        out_shape=jax.ShapeDtypeStruct((B, n_classes), jnp.float32),
        compiler_params=pltpu.CompilerParams(
            vmem_limit_bytes=32 * 1024 * 1024),
    )(p1, *weights)


# ----------------------------------- main -------------------------------------

if __name__ == "__main__":
    n_classes = 10
    B, H, W = 2, 16, 16

    x = jax.random.normal(jax.random.PRNGKey(0), (B, 1, H, W), jnp.float32)
    params = init_params(jax.random.PRNGKey(1), n_classes)

    weights, plan = prepare_inference(params, B, H, W, n_classes)
    kernel = make_kernel(plan)

    fwd = jax.jit(functools.partial(atcnet_forward, kernel, n_classes))
    logits = fwd(weights, x)
    jax.block_until_ready(logits)

    assert logits.shape == (B, n_classes), logits.shape
    assert bool(jnp.all(jnp.isfinite(logits)))
    print("KERNEL_OK")
</pallas_src>

<mosaic_0001>
module attributes {stable_mosaic.version = 11 : i64} {
  func.func @kernel(%arg0: memref<512x9xbf16, #tpu.memory_space<vmem>>, %arg1: memref<9x64xbf16, #tpu.memory_space<vmem>>, %arg2: memref<2x1x64xf32, #tpu.memory_space<vmem>>, %arg3: memref<576x256xbf16, #tpu.memory_space<vmem>>, %arg4: memref<576x64xbf16, #tpu.memory_space<vmem>>, %arg5: memref<576x64xbf16, #tpu.memory_space<vmem>>, %arg6: memref<2x1x64xf32, #tpu.memory_space<vmem>>, %arg7: memref<144x64xbf16, #tpu.memory_space<vmem>>, %arg8: memref<64x128xbf16, #tpu.memory_space<vmem>>, %arg9: memref<9x1x128xf32, #tpu.memory_space<vmem>>, %arg10: memref<144x16xbf16, #tpu.memory_space<vmem>>, %arg11: memref<128x128xbf16, #tpu.memory_space<vmem>>, %arg12: memref<2x1x128xf32, #tpu.memory_space<vmem>>, %arg13: memref<9x1x128xf32, #tpu.memory_space<vmem>>, %arg14: memref<128x128xbf16, #tpu.memory_space<vmem>>, %arg15: memref<2x1x128xf32, #tpu.memory_space<vmem>>, %arg16: memref<36x16xbf16, #tpu.memory_space<vmem>>, %arg17: memref<9x1x128xf32, #tpu.memory_space<vmem>>, %arg18: memref<72x8xbf16, #tpu.memory_space<vmem>>, %arg19: memref<128x128xbf16, #tpu.memory_space<vmem>>, %arg20: memref<2x1x128xf32, #tpu.memory_space<vmem>>, %arg21: memref<9x1x128xf32, #tpu.memory_space<vmem>>, %arg22: memref<128x128xbf16, #tpu.memory_space<vmem>>, %arg23: memref<2x1x128xf32, #tpu.memory_space<vmem>>, %arg24: memref<18x8xbf16, #tpu.memory_space<vmem>>, %arg25: memref<128x256xbf16, #tpu.memory_space<vmem>>, %arg26: memref<1x256xf32, #tpu.memory_space<vmem>>, %arg27: memref<256x256xbf16, #tpu.memory_space<vmem>>, %arg28: memref<2x1x256xf32, #tpu.memory_space<vmem>>, %arg29: memref<1x256xf32, #tpu.memory_space<vmem>>, %arg30: memref<256x256xbf16, #tpu.memory_space<vmem>>, %arg31: memref<2x1x256xf32, #tpu.memory_space<vmem>>, %arg32: memref<1x256xf32, #tpu.memory_space<vmem>>, %arg33: memref<256x256xbf16, #tpu.memory_space<vmem>>, %arg34: memref<2x1x256xf32, #tpu.memory_space<vmem>>, %arg35: memref<1x256xf32, #tpu.memory_space<vmem>>, %arg36: memref<256x256xbf16, #tpu.memory_space<vmem>>, %arg37: memref<2x1x256xf32, #tpu.memory_space<vmem>>, %arg38: memref<256x512xbf16, #tpu.memory_space<vmem>>, %arg39: memref<2x1x512xf32, #tpu.memory_space<vmem>>, %arg40: memref<512x10xbf16, #tpu.memory_space<vmem>>, %arg41: memref<2x1x10xf32, #tpu.memory_space<vmem>>, %arg42: memref<2x10xf32, #tpu.memory_space<vmem>>) attributes {dimension_semantics = [], scalar_prefetch = 0 : i64, scratch_operands = 0 : i64, tpu.core_type = #tpu.core_type<tc>} {
    %c0 = arith.constant 0 : index
    %c0_0 = arith.constant 0 : index
    %0 = vector.load %arg0[%c0, %c0_0] : memref<512x9xbf16, #tpu.memory_space<vmem>>, vector<512x9xbf16>
    %c0_1 = arith.constant 0 : index
    %c0_2 = arith.constant 0 : index
    %c0_3 = arith.constant 0 : index
    %1 = vector.load %arg2[%c0_1, %c0_2, %c0_3] : memref<2x1x64xf32, #tpu.memory_space<vmem>>, vector<2x1x64xf32>
    %c0_4 = arith.constant 0 : index
    %c0_5 = arith.constant 0 : index
    %2 = vector.load %arg1[%c0_4, %c0_5] : memref<9x64xbf16, #tpu.memory_space<vmem>>, vector<9x64xbf16>
    %cst = arith.constant dense<0.000000e+00> : vector<512x64xf32>
    %3 = tpu.matmul %0, %2, %cst {dimension_numbers = #tpu.dot_dimension_numbers<[1], [0], [0], [1], [0, 0, 1, 1], [], []>} : vector<512x9xbf16>, vector<9x64xbf16>, vector<512x64xf32> -> vector<512x64xf32>
    %4 = vector.extract_strided_slice %1 {offsets = [0, 0, 0], sizes = [1, 1, 64], strides = [1, 1, 1]} : vector<2x1x64xf32> to vector<1x1x64xf32>
    %5 = vector.shape_cast %4 : vector<1x1x64xf32> to vector<1x64xf32>
    %6 = vector.broadcast %5 : vector<1x64xf32> to vector<512x64xf32>
    %7 = arith.mulf %3, %6 : vector<512x64xf32>
    %8 = vector.extract_strided_slice %1 {offsets = [1, 0, 0], sizes = [1, 1, 64], strides = [1, 1, 1]} : vector<2x1x64xf32> to vector<1x1x64xf32>
    %9 = vector.shape_cast %8 : vector<1x1x64xf32> to vector<1x64xf32>
    %10 = vector.broadcast %9 : vector<1x64xf32> to vector<512x64xf32>
    %11 = arith.addf %7, %10 : vector<512x64xf32>
    %cst_6 = arith.constant 0.000000e+00 : f32
    %12 = vector.broadcast %cst_6 : f32 to vector<512x64xf32>
    %13 = arith.maximumf %11, %12 : vector<512x64xf32>
    %14 = arith.truncf %13 : vector<512x64xf32> to vector<512x64xbf16>
    %c0_7 = arith.constant 0 : index
    %c0_8 = arith.constant 0 : index
    %15 = vector.load %arg3[%c0_7, %c0_8] : memref<576x256xbf16, #tpu.memory_space<vmem>>, vector<576x256xbf16>
    %16 = vector.extract_strided_slice %14 {offsets = [0, 0], sizes = [256, 64], strides = [1, 1]} : vector<512x64xbf16> to vector<256x64xbf16>
    %cst_9 = arith.constant dense<0.000000e+00> : vector<576x64xf32>
    %17 = tpu.matmul %15, %16, %cst_9 {dimension_numbers = #tpu.dot_dimension_numbers<[1], [0], [0], [1], [0, 0, 1, 1], [], []>} : vector<576x256xbf16>, vector<256x64xbf16>, vector<576x64xf32> -> vector<576x64xf32>
    %18 = vector.shape_cast %17 : vector<576x64xf32> to vector<9x64x64xf32>
    %19 = vector.extract_strided_slice %18 {offsets = [0, 0, 0], sizes = [1, 64, 64], strides = [1, 1, 1]} : vector<9x64x64xf32> to vector<1x64x64xf32>
    %20 = vector.shape_cast %19 : vector<1x64x64xf32> to vector<64x64xf32>
    %21 = vector.extract_strided_slice %18 {offsets = [1, 0, 0], sizes = [1, 64, 64], strides = [1, 1, 1]} : vector<9x64x64xf32> to vector<1x64x64xf32>
    %22 = vector.shape_cast %21 : vector<1x64x64xf32> to vector<64x64xf32>
    %23 = vector.extract_strided_slice %18 {offsets = [2, 0, 0], sizes = [1, 64, 64], strides = [1, 1, 1]} : vector<9x64x64xf32> to vector<1x64x64xf32>
    %24 = vector.shape_cast %23 : vector<1x64x64xf32> to vector<64x64xf32>
    %25 = vector.extract_strided_slice %18 {offsets = [3, 0, 0], sizes = [1, 64, 64], strides = [1, 1, 1]} : vector<9x64x64xf32> to vector<1x64x64xf32>
    %26 = vector.shape_cast %25 : vector<1x64x64xf32> to vector<64x64xf32>
    %27 = vector.extract_strided_slice %18 {offsets = [4, 0, 0], sizes = [1, 64, 64], strides = [1, 1, 1]} : vector<9x64x64xf32> to vector<1x64x64xf32>
    %28 = vector.shape_cast %27 : vector<1x64x64xf32> to vector<64x64xf32>
    %29 = vector.extract_strided_slice %18 {offsets = [5, 0, 0], sizes = [1, 64, 64], strides = [1, 1, 1]} : vector<9x64x64xf32> to vector<1x64x64xf32>
    %30 = vector.shape_cast %29 : vector<1x64x64xf32> to vector<64x64xf32>
    %31 = vector.extract_strided_slice %18 {offsets = [6, 0, 0], sizes = [1, 64, 64], strides = [1, 1, 1]} : vector<9x64x64xf32> to vector<1x64x64xf32>
    %32 = vector.shape_cast %31 : vector<1x64x64xf32> to vector<64x64xf32>
    %33 = vector.extract_strided_slice %18 {offsets = [7, 0, 0], sizes = [1, 64, 64], strides = [1, 1, 1]} : vector<9x64x64xf32> to vector<1x64x64xf32>
    %34 = vector.shape_cast %33 : vector<1x64x64xf32> to vector<64x64xf32>
    %35 = vector.extract_strided_slice %18 {offsets = [8, 0, 0], sizes = [1, 64, 64], strides = [1, 1, 1]} : vector<9x64x64xf32> to vector<1x64x64xf32>
    %36 = vector.shape_cast %35 : vector<1x64x64xf32> to vector<64x64xf32>
    %37 = arith.maximumf %20, %22 : vector<64x64xf32>
    %38 = arith.maximumf %24, %26 : vector<64x64xf32>
    %39 = arith.maximumf %28, %30 : vector<64x64xf32>
    %40 = arith.maximumf %32, %34 : vector<64x64xf32>
    %41 = arith.maximumf %37, %38 : vector<64x64xf32>
    %42 = arith.maximumf %39, %40 : vector<64x64xf32>
    %43 = arith.maximumf %41, %42 : vector<64x64xf32>
    %44 = arith.maximumf %43, %36 : vector<64x64xf32>
    %45 = vector.extract_strided_slice %14 {offsets = [256, 0], sizes = [256, 64], strides = [1, 1]} : vector<512x64xbf16> to vector<256x64xbf16>
    %cst_10 = arith.constant dense<0.000000e+00> : vector<576x64xf32>
    %46 = tpu.matmul %15, %45, %cst_10 {dimension_numbers = #tpu.dot_dimension_numbers<[1], [0], [0], [1], [0, 0, 1, 1], [], []>} : vector<576x256xbf16>, vector<256x64xbf16>, vector<576x64xf32> -> vector<576x64xf32>
    %47 = vector.shape_cast %46 : vector<576x64xf32> to vector<9x64x64xf32>
    %48 = vector.extract_strided_slice %47 {offsets = [0, 0, 0], sizes = [1, 64, 64], strides = [1, 1, 1]} : vector<9x64x64xf32> to vector<1x64x64xf32>
    %49 = vector.shape_cast %48 : vector<1x64x64xf32> to vector<64x64xf32>
    %50 = vector.extract_strided_slice %47 {offsets = [1, 0, 0], sizes = [1, 64, 64], strides = [1, 1, 1]} : vector<9x64x64xf32> to vector<1x64x64xf32>
    %51 = vector.shape_cast %50 : vector<1x64x64xf32> to vector<64x64xf32>
    %52 = vector.extract_strided_slice %47 {offsets = [2, 0, 0], sizes = [1, 64, 64], strides = [1, 1, 1]} : vector<9x64x64xf32> to vector<1x64x64xf32>
    %53 = vector.shape_cast %52 : vector<1x64x64xf32> to vector<64x64xf32>
    %54 = vector.extract_strided_slice %47 {offsets = [3, 0, 0], sizes = [1, 64, 64], strides = [1, 1, 1]} : vector<9x64x64xf32> to vector<1x64x64xf32>
    %55 = vector.shape_cast %54 : vector<1x64x64xf32> to vector<64x64xf32>
    %56 = vector.extract_strided_slice %47 {offsets = [4, 0, 0], sizes = [1, 64, 64], strides = [1, 1, 1]} : vector<9x64x64xf32> to vector<1x64x64xf32>
    %57 = vector.shape_cast %56 : vector<1x64x64xf32> to vector<64x64xf32>
    %58 = vector.extract_strided_slice %47 {offsets = [5, 0, 0], sizes = [1, 64, 64], strides = [1, 1, 1]} : vector<9x64x64xf32> to vector<1x64x64xf32>
    %59 = vector.shape_cast %58 : vector<1x64x64xf32> to vector<64x64xf32>
    %60 = vector.extract_strided_slice %47 {offsets = [6, 0, 0], sizes = [1, 64, 64], strides = [1, 1, 1]} : vector<9x64x64xf32> to vector<1x64x64xf32>
    %61 = vector.shape_cast %60 : vector<1x64x64xf32> to vector<64x64xf32>
    %62 = vector.extract_strided_slice %47 {offsets = [7, 0, 0], sizes = [1, 64, 64], strides = [1, 1, 1]} : vector<9x64x64xf32> to vector<1x64x64xf32>
    %63 = vector.shape_cast %62 : vector<1x64x64xf32> to vector<64x64xf32>
    %64 = vector.extract_strided_slice %47 {offsets = [8, 0, 0], sizes = [1, 64, 64], strides = [1, 1, 1]} : vector<9x64x64xf32> to vector<1x64x64xf32>
    %65 = vector.shape_cast %64 : vector<1x64x64xf32> to vector<64x64xf32>
    %66 = arith.maximumf %49, %51 : vector<64x64xf32>
    %67 = arith.maximumf %53, %55 : vector<64x64xf32>
    %68 = arith.maximumf %57, %59 : vector<64x64xf32>
    %69 = arith.maximumf %61, %63 : vector<64x64xf32>
    %70 = arith.maximumf %66, %67 : vector<64x64xf32>
    %71 = arith.maximumf %68, %69 : vector<64x64xf32>
    %72 = arith.maximumf %70, %71 : vector<64x64xf32>
    %73 = arith.maximumf %72, %65 : vector<64x64xf32>
    %74 = tpu.concatenate %44, %73 in 0 : vector<64x64xf32>, vector<64x64xf32> -> vector<128x64xf32>
    %75 = arith.truncf %74 : vector<128x64xf32> to vector<128x64xbf16>
    %c0_11 = arith.constant 0 : index
    %c0_12 = arith.constant 0 : index
    %76 = vector.load %arg4[%c0_11, %c0_12] : memref<576x64xbf16, #tpu.memory_space<vmem>>, vector<576x64xbf16>
    %c0_13 = arith.constant 0 : index
    %c0_14 = arith.constant 0 : index
    %77 = vector.load %arg5[%c0_13, %c0_14] : memref<576x64xbf16, #tpu.memory_space<vmem>>, vector<576x64xbf16>
    %c0_15 = arith.constant 0 : index
    %c0_16 = arith.constant 0 : index
    %c0_17 = arith.constant 0 : index
    %78 = vector.load %arg6[%c0_15, %c0_16, %c0_17] : memref<2x1x64xf32, #tpu.memory_space<vmem>>, vector<2x1x64xf32>
    %79 = vector.extract_strided_slice %75 {offsets = [0, 0], sizes = [64, 64], strides = [1, 1]} : vector<128x64xbf16> to vector<64x64xbf16>
    %cst_18 = arith.constant dense<0.000000e+00> : vector<576x64xf32>
    %80 = tpu.matmul %76, %79, %cst_18 {dimension_numbers = #tpu.dot_dimension_numbers<[1], [0], [0], [1], [0, 0, 1, 1], [], []>} : vector<576x64xbf16>, vector<64x64xbf16>, vector<576x64xf32> -> vector<576x64xf32>
    %81 = arith.truncf %80 : vector<576x64xf32> to vector<576x64xbf16>
    %82 = vector.extract_strided_slice %75 {offsets = [64, 0], sizes = [64, 64], strides = [1, 1]} : vector<128x64xbf16> to vector<64x64xbf16>
    %cst_19 = arith.constant dense<0.000000e+00> : vector<576x64xf32>
    %83 = tpu.matmul %76, %82, %cst_19 {dimension_numbers = #tpu.dot_dimension_numbers<[1], [0], [0], [1], [0, 0, 1, 1], [], []>} : vector<576x64xbf16>, vector<64x64xbf16>, vector<576x64xf32> -> vector<576x64xf32>
    %84 = arith.truncf %83 : vector<576x64xf32> to vector<576x64xbf16>
    %85 = vector.extract_strided_slice %81 {offsets = [0, 0], sizes = [64, 64], strides = [1, 1]} : vector<576x64xbf16> to vector<64x64xbf16>
    %86 = vector.extract_strided_slice %84 {offsets = [0, 0], sizes = [64, 64], strides = [1, 1]} : vector<576x64xbf16> to vector<64x64xbf16>
    %87 = tpu.concatenate %85, %86 in 0 : vector<64x64xbf16>, vector<64x64xbf16> -> vector<128x64xbf16>
    %88 = vector.extract_strided_slice %77 {offsets = [0, 0], sizes = [64, 64], strides = [1, 1]} : vector<576x64xbf16> to vector<64x64xbf16>
    %cst_20 = arith.constant dense<0.000000e+00> : vector<128x64xf32>
    %89 = tpu.matmul %87, %88, %cst_20 {dimension_numbers = #tpu.dot_dimension_numbers<[1], [0], [0], [1], [0, 0, 1, 1], [], []>} : vector<128x64xbf16>, vector<64x64xbf16>, vector<128x64xf32> -> vector<128x64xf32>
    %90 = vector.extract_strided_slice %81 {offsets = [64, 0], sizes = [64, 64], strides = [1, 1]} : vector<576x64xbf16> to vector<64x64xbf16>
    %91 = vector.extract_strided_slice %84 {offsets = [64, 0], sizes = [64, 64], strides = [1, 1]} : vector<576x64xbf16> to vector<64x64xbf16>
    %92 = tpu.concatenate %90, %91 in 0 : vector<64x64xbf16>, vector<64x64xbf16> -> vector<128x64xbf16>
    %93 = vector.extract_strided_slice %77 {offsets = [64, 0], sizes = [64, 64], strides = [1, 1]} : vector<576x64xbf16> to vector<64x64xbf16>
    %cst_21 = arith.constant dense<0.000000e+00> : vector<128x64xf32>
    %94 = tpu.matmul %92, %93, %cst_21 {dimension_numbers = #tpu.dot_dimension_numbers<[1], [0], [0], [1], [0, 0, 1, 1], [], []>} : vector<128x64xbf16>, vector<64x64xbf16>, vector<128x64xf32> -> vector<128x64xf32>
    %95 = vector.extract_strided_slice %81 {offsets = [128, 0], sizes = [64, 64], strides = [1, 1]} : vector<576x64xbf16> to vector<64x64xbf16>
    %96 = vector.extract_strided_slice %84 {offsets = [128, 0], sizes = [64, 64], strides = [1, 1]} : vector<576x64xbf16> to vector<64x64xbf16>
    %97 = tpu.concatenate %95, %96 in 0 : vector<64x64xbf16>, vector<64x64xbf16> -> vector<128x64xbf16>
    %98 = vector.extract_strided_slice %77 {offsets = [128, 0], sizes = [64, 64], strides = [1, 1]} : vector<576x64xbf16> to vector<64x64xbf16>
    %cst_22 = arith.constant dense<0.000000e+00> : vector<128x64xf32>
    %99 = tpu.matmul %97, %98, %cst_22 {dimension_numbers = #tpu.dot_dimension_numbers<[1], [0], [0], [1], [0, 0, 1, 1], [], []>} : vector<128x64xbf16>, vector<64x64xbf16>, vector<128x64xf32> -> vector<128x64xf32>
    %100 = vector.extract_strided_slice %81 {offsets = [192, 0], sizes = [64, 64], strides = [1, 1]} : vector<576x64xbf16> to vector<64x64xbf16>
    %101 = vector.extract_strided_slice %84 {offsets = [192, 0], sizes = [64, 64], strides = [1, 1]} : vector<576x64xbf16> to vector<64x64xbf16>
    %102 = tpu.concatenate %100, %101 in 0 : vector<64x64xbf16>, vector<64x64xbf16> -> vector<128x64xbf16>
    %103 = vector.extract_strided_slice %77 {offsets = [192, 0], sizes = [64, 64], strides = [1, 1]} : vector<576x64xbf16> to vector<64x64xbf16>
    %cst_23 = arith.constant dense<0.000000e+00> : vector<128x64xf32>
    %104 = tpu.matmul %102, %103, %cst_23 {dimension_numbers = #tpu.dot_dimension_numbers<[1], [0], [0], [1], [0, 0, 1, 1], [], []>} : vector<128x64xbf16>, vector<64x64xbf16>, vector<128x64xf32> -> vector<128x64xf32>
    %105 = vector.extract_strided_slice %81 {offsets = [256, 0], sizes = [64, 64], strides = [1, 1]} : vector<576x64xbf16> to vector<64x64xbf16>
    %106 = vector.extract_strided_slice %84 {offsets = [256, 0], sizes = [64, 64], strides = [1, 1]} : vector<576x64xbf16> to vector<64x64xbf16>
    %107 = tpu.concatenate %105, %106 in 0 : vector<64x64xbf16>, vector<64x64xbf16> -> vector<128x64xbf16>
    %108 = vector.extract_strided_slice %77 {offsets = [256, 0], sizes = [64, 64], strides = [1, 1]} : vector<576x64xbf16> to vector<64x64xbf16>
    %cst_24 = arith.constant dense<0.000000e+00> : vector<128x64xf32>
    %109 = tpu.matmul %107, %108, %cst_24 {dimension_numbers = #tpu.dot_dimension_numbers<[1], [0], [0], [1], [0, 0, 1, 1], [], []>} : vector<128x64xbf16>, vector<64x64xbf16>, vector<128x64xf32> -> vector<128x64xf32>
    %110 = vector.extract_strided_slice %81 {offsets = [320, 0], sizes = [64, 64], strides = [1, 1]} : vector<576x64xbf16> to vector<64x64xbf16>
    %111 = vector.extract_strided_slice %84 {offsets = [320, 0], sizes = [64, 64], strides = [1, 1]} : vector<576x64xbf16> to vector<64x64xbf16>
    %112 = tpu.concatenate %110, %111 in 0 : vector<64x64xbf16>, vector<64x64xbf16> -> vector<128x64xbf16>
    %113 = vector.extract_strided_slice %77 {offsets = [320, 0], sizes = [64, 64], strides = [1, 1]} : vector<576x64xbf16> to vector<64x64xbf16>
    %cst_25 = arith.constant dense<0.000000e+00> : vector<128x64xf32>
    %114 = tpu.matmul %112, %113, %cst_25 {dimension_numbers = #tpu.dot_dimension_numbers<[1], [0], [0], [1], [0, 0, 1, 1], [], []>} : vector<128x64xbf16>, vector<64x64xbf16>, vector<128x64xf32> -> vector<128x64xf32>
    %115 = vector.extract_strided_slice %81 {offsets = [384, 0], sizes = [64, 64], strides = [1, 1]} : vector<576x64xbf16> to vector<64x64xbf16>
    %116 = vector.extract_strided_slice %84 {offsets = [384, 0], sizes = [64, 64], strides = [1, 1]} : vector<576x64xbf16> to vector<64x64xbf16>
    %117 = tpu.concatenate %115, %116 in 0 : vector<64x64xbf16>, vector<64x64xbf16> -> vector<128x64xbf16>
    %118 = vector.extract_strided_slice %77 {offsets = [384, 0], sizes = [64, 64], strides = [1, 1]} : vector<576x64xbf16> to vector<64x64xbf16>
    %cst_26 = arith.constant dense<0.000000e+00> : vector<128x64xf32>
    %119 = tpu.matmul %117, %118, %cst_26 {dimension_numbers = #tpu.dot_dimension_numbers<[1], [0], [0], [1], [0, 0, 1, 1], [], []>} : vector<128x64xbf16>, vector<64x64xbf16>, vector<128x64xf32> -> vector<128x64xf32>
    %120 = vector.extract_strided_slice %81 {offsets = [448, 0], sizes = [64, 64], strides = [1, 1]} : vector<576x64xbf16> to vector<64x64xbf16>
    %121 = vector.extract_strided_slice %84 {offsets = [448, 0], sizes = [64, 64], strides = [1, 1]} : vector<576x64xbf16> to vector<64x64xbf16>
    %122 = tpu.concatenate %120, %121 in 0 : vector<64x64xbf16>, vector<64x64xbf16> -> vector<128x64xbf16>
    %123 = vector.extract_strided_slice %77 {offsets = [448, 0], sizes = [64, 64], strides = [1, 1]} : vector<576x64xbf16> to vector<64x64xbf16>
    %cst_27 = arith.constant dense<0.000000e+00> : vector<128x64xf32>
    %124 = tpu.matmul %122, %123, %cst_27 {dimension_numbers = #tpu.dot_dimension_numbers<[1], [0], [0], [1], [0, 0, 1, 1], [], []>} : vector<128x64xbf16>, vector<64x64xbf16>, vector<128x64xf32> -> vector<128x64xf32>
    %125 = vector.extract_strided_slice %81 {offsets = [512, 0], sizes = [64, 64], strides = [1, 1]} : vector<576x64xbf16> to vector<64x64xbf16>
    %126 = vector.extract_strided_slice %84 {offsets = [512, 0], sizes = [64, 64], strides = [1, 1]} : vector<576x64xbf16> to vector<64x64xbf16>
    %127 = tpu.concatenate %125, %126 in 0 : vector<64x64xbf16>, vector<64x64xbf16> -> vector<128x64xbf16>
    %128 = vector.extract_strided_slice %77 {offsets = [512, 0], sizes = [64, 64], strides = [1, 1]} : vector<576x64xbf16> to vector<64x64xbf16>
    %cst_28 = arith.constant dense<0.000000e+00> : vector<128x64xf32>
    %129 = tpu.matmul %127, %128, %cst_28 {dimension_numbers = #tpu.dot_dimension_numbers<[1], [0], [0], [1], [0, 0, 1, 1], [], []>} : vector<128x64xbf16>, vector<64x64xbf16>, vector<128x64xf32> -> vector<128x64xf32>
    %130 = arith.addf %89, %94 : vector<128x64xf32>
    %131 = arith.addf %99, %104 : vector<128x64xf32>
    %132 = arith.addf %109, %114 : vector<128x64xf32>
    %133 = arith.addf %119, %124 : vector<128x64xf32>
    %134 = arith.addf %130, %131 : vector<128x64xf32>
    %135 = arith.addf %132, %133 : vector<128x64xf32>
    %136 = arith.addf %134, %135 : vector<128x64xf32>
    %137 = arith.addf %136, %129 : vector<128x64xf32>
    %138 = vector.extract_strided_slice %78 {offsets = [0, 0, 0], sizes = [1, 1, 64], strides = [1, 1, 1]} : vector<2x1x64xf32> to vector<1x1x64xf32>
    %139 = vector.shape_cast %138 : vector<1x1x64xf32> to vector<1x64xf32>
    %140 = vector.broadcast %139 : vector<1x64xf32> to vector<128x64xf32>
    %141 = arith.mulf %137, %140 : vector<128x64xf32>
    %142 = vector.extract_strided_slice %78 {offsets = [1, 0, 0], sizes = [1, 1, 64], strides = [1, 1, 1]} : vector<2x1x64xf32> to vector<1x1x64xf32>
    %143 = vector.shape_cast %142 : vector<1x1x64xf32> to vector<1x64xf32>
    %144 = vector.broadcast %143 : vector<1x64xf32> to vector<128x64xf32>
    %145 = arith.addf %141, %144 : vector<128x64xf32>
    %cst_29 = arith.constant 0.000000e+00 : f32
    %146 = vector.broadcast %cst_29 : f32 to vector<128x64xf32>
    %147 = arith.maximumf %145, %146 : vector<128x64xf32>
    %148 = arith.truncf %147 : vector<128x64xf32> to vector<128x64xbf16>
    %c0_30 = arith.constant 0 : index
    %c0_31 = arith.constant 0 : index
    %149 = vector.load %arg7[%c0_30, %c0_31] : memref<144x64xbf16, #tpu.memory_space<vmem>>, vector<144x64xbf16>
    %150 = vector.extract_strided_slice %148 {offsets = [0, 0], sizes = [64, 64], strides = [1, 1]} : vector<128x64xbf16> to vector<64x64xbf16>
    %cst_32 = arith.constant dense<0.000000e+00> : vector<144x64xf32>
    %151 = tpu.matmul %149, %150, %cst_32 {dimension_numbers = #tpu.dot_dimension_numbers<[1], [0], [0], [1], [0, 0, 1, 1], [], []>} : vector<144x64xbf16>, vector<64x64xbf16>, vector<144x64xf32> -> vector<144x64xf32>
    %152 = vector.shape_cast %151 : vector<144x64xf32> to vector<9x16x64xf32>
    %153 = vector.extract_strided_slice %152 {offsets = [0, 0, 0], sizes = [1, 16, 64], strides = [1, 1, 1]} : vector<9x16x64xf32> to vector<1x16x64xf32>
    %154 = vector.shape_cast %153 : vector<1x16x64xf32> to vector<16x64xf32>
    %155 = vector.extract_strided_slice %152 {offsets = [1, 0, 0], sizes = [1, 16, 64], strides = [1, 1, 1]} : vector<9x16x64xf32> to vector<1x16x64xf32>
    %156 = vector.shape_cast %155 : vector<1x16x64xf32> to vector<16x64xf32>
    %157 = vector.extract_strided_slice %152 {offsets = [2, 0, 0], sizes = [1, 16, 64], strides = [1, 1, 1]} : vector<9x16x64xf32> to vector<1x16x64xf32>
    %158 = vector.shape_cast %157 : vector<1x16x64xf32> to vector<16x64xf32>
    %159 = vector.extract_strided_slice %152 {offsets = [3, 0, 0], sizes = [1, 16, 64], strides = [1, 1, 1]} : vector<9x16x64xf32> to vector<1x16x64xf32>
    %160 = vector.shape_cast %159 : vector<1x16x64xf32> to vector<16x64xf32>
    %161 = vector.extract_strided_slice %152 {offsets = [4, 0, 0], sizes = [1, 16, 64], strides = [1, 1, 1]} : vector<9x16x64xf32> to vector<1x16x64xf32>
    %162 = vector.shape_cast %161 : vector<1x16x64xf32> to vector<16x64xf32>
    %163 = vector.extract_strided_slice %152 {offsets = [5, 0, 0], sizes = [1, 16, 64], strides = [1, 1, 1]} : vector<9x16x64xf32> to vector<1x16x64xf32>
    %164 = vector.shape_cast %163 : vector<1x16x64xf32> to vector<16x64xf32>
    %165 = vector.extract_strided_slice %152 {offsets = [6, 0, 0], sizes = [1, 16, 64], strides = [1, 1, 1]} : vector<9x16x64xf32> to vector<1x16x64xf32>
    %166 = vector.shape_cast %165 : vector<1x16x64xf32> to vector<16x64xf32>
    %167 = vector.extract_strided_slice %152 {offsets = [7, 0, 0], sizes = [1, 16, 64], strides = [1, 1, 1]} : vector<9x16x64xf32> to vector<1x16x64xf32>
    %168 = vector.shape_cast %167 : vector<1x16x64xf32> to vector<16x64xf32>
    %169 = vector.extract_strided_slice %152 {offsets = [8, 0, 0], sizes = [1, 16, 64], strides = [1, 1, 1]} : vector<9x16x64xf32> to vector<1x16x64xf32>
    %170 = vector.shape_cast %169 : vector<1x16x64xf32> to vector<16x64xf32>
    %171 = arith.maximumf %154, %156 : vector<16x64xf32>
    %172 = arith.maximumf %158, %160 : vector<16x64xf32>
    %173 = arith.maximumf %162, %164 : vector<16x64xf32>
    %174 = arith.maximumf %166, %168 : vector<16x64xf32>
    %175 = arith.maximumf %171, %172 : vector<16x64xf32>
    %176 = arith.maximumf %173, %174 : vector<16x64xf32>
    %177 = arith.maximumf %175, %176 : vector<16x64xf32>
    %178 = arith.maximumf %177, %170 : vector<16x64xf32>
    %179 = vector.extract_strided_slice %148 {offsets = [64, 0], sizes = [64, 64], strides = [1, 1]} : vector<128x64xbf16> to vector<64x64xbf16>
    %cst_33 = arith.constant dense<0.000000e+00> : vector<144x64xf32>
    %180 = tpu.matmul %149, %179, %cst_33 {dimension_numbers = #tpu.dot_dimension_numbers<[1], [0], [0], [1], [0, 0, 1, 1], [], []>} : vector<144x64xbf16>, vector<64x64xbf16>, vector<144x64xf32> -> vector<144x64xf32>
    %181 = vector.shape_cast %180 : vector<144x64xf32> to vector<9x16x64xf32>
    %182 = vector.extract_strided_slice %181 {offsets = [0, 0, 0], sizes = [1, 16, 64], strides = [1, 1, 1]} : vector<9x16x64xf32> to vector<1x16x64xf32>
    %183 = vector.shape_cast %182 : vector<1x16x64xf32> to vector<16x64xf32>
    %184 = vector.extract_strided_slice %181 {offsets = [1, 0, 0], sizes = [1, 16, 64], strides = [1, 1, 1]} : vector<9x16x64xf32> to vector<1x16x64xf32>
    %185 = vector.shape_cast %184 : vector<1x16x64xf32> to vector<16x64xf32>
    %186 = vector.extract_strided_slice %181 {offsets = [2, 0, 0], sizes = [1, 16, 64], strides = [1, 1, 1]} : vector<9x16x64xf32> to vector<1x16x64xf32>
    %187 = vector.shape_cast %186 : vector<1x16x64xf32> to vector<16x64xf32>
    %188 = vector.extract_strided_slice %181 {offsets = [3, 0, 0], sizes = [1, 16, 64], strides = [1, 1, 1]} : vector<9x16x64xf32> to vector<1x16x64xf32>
    %189 = vector.shape_cast %188 : vector<1x16x64xf32> to vector<16x64xf32>
    %190 = vector.extract_strided_slice %181 {offsets = [4, 0, 0], sizes = [1, 16, 64], strides = [1, 1, 1]} : vector<9x16x64xf32> to vector<1x16x64xf32>
    %191 = vector.shape_cast %190 : vector<1x16x64xf32> to vector<16x64xf32>
    %192 = vector.extract_strided_slice %181 {offsets = [5, 0, 0], sizes = [1, 16, 64], strides = [1, 1, 1]} : vector<9x16x64xf32> to vector<1x16x64xf32>
    %193 = vector.shape_cast %192 : vector<1x16x64xf32> to vector<16x64xf32>
    %194 = vector.extract_strided_slice %181 {offsets = [6, 0, 0], sizes = [1, 16, 64], strides = [1, 1, 1]} : vector<9x16x64xf32> to vector<1x16x64xf32>
    %195 = vector.shape_cast %194 : vector<1x16x64xf32> to vector<16x64xf32>
    %196 = vector.extract_strided_slice %181 {offsets = [7, 0, 0], sizes = [1, 16, 64], strides = [1, 1, 1]} : vector<9x16x64xf32> to vector<1x16x64xf32>
    %197 = vector.shape_cast %196 : vector<1x16x64xf32> to vector<16x64xf32>
    %198 = vector.extract_strided_slice %181 {offsets = [8, 0, 0], sizes = [1, 16, 64], strides = [1, 1, 1]} : vector<9x16x64xf32> to vector<1x16x64xf32>
    %199 = vector.shape_cast %198 : vector<1x16x64xf32> to vector<16x64xf32>
    %200 = arith.maximumf %183, %185 : vector<16x64xf32>
    %201 = arith.maximumf %187, %189 : vector<16x64xf32>
    %202 = arith.maximumf %191, %193 : vector<16x64xf32>
    %203 = arith.maximumf %195, %197 : vector<16x64xf32>
    %204 = arith.maximumf %200, %201 : vector<16x64xf32>
    %205 = arith.maximumf %202, %203 : vector<16x64xf32>
    %206 = arith.maximumf %204, %205 : vector<16x64xf32>
    %207 = arith.maximumf %206, %199 : vector<16x64xf32>
    %208 = tpu.concatenate %178, %207 in 0 : vector<16x64xf32>, vector<16x64xf32> -> vector<32x64xf32>
    %209 = arith.truncf %208 : vector<32x64xf32> to vector<32x64xbf16>
    %c0_34 = arith.constant 0 : index
    %c0_35 = arith.constant 0 : index
    %210 = vector.load %arg8[%c0_34, %c0_35] : memref<64x128xbf16, #tpu.memory_space<vmem>>, vector<64x128xbf16>
    %cst_36 = arith.constant dense<0.000000e+00> : vector<32x128xf32>
    %211 = tpu.matmul %209, %210, %cst_36 {dimension_numbers = #tpu.dot_dimension_numbers<[1], [0], [0], [1], [0, 0, 1, 1], [], []>} : vector<32x64xbf16>, vector<64x128xbf16>, vector<32x128xf32> -> vector<32x128xf32>
    %212 = arith.truncf %211 : vector<32x128xf32> to vector<32x128xbf16>
    %c0_37 = arith.constant 0 : index
    %c0_38 = arith.constant 0 : index
    %c0_39 = arith.constant 0 : index
    %213 = vector.load %arg9[%c0_37, %c0_38, %c0_39] : memref<9x1x128xf32, #tpu.memory_space<vmem>>, vector<9x1x128xf32>
    %c0_40 = arith.constant 0 : index
    %c0_41 = arith.constant 0 : index
    %214 = vector.load %arg10[%c0_40, %c0_41] : memref<144x16xbf16, #tpu.memory_space<vmem>>, vector<144x16xbf16>
    %215 = vector.extract_strided_slice %212 {offsets = [0, 0], sizes = [16, 128], strides = [1, 1]} : vector<32x128xbf16> to vector<16x128xbf16>
    %cst_42 = arith.constant dense<0.000000e+00> : vector<144x128xf32>
    %216 = tpu.matmul %214, %215, %cst_42 {dimension_numbers = #tpu.dot_dimension_numbers<[1], [0], [0], [1], [0, 0, 1, 1], [], []>} : vector<144x16xbf16>, vector<16x128xbf16>, vector<144x128xf32> -> vector<144x128xf32>
    %217 = vector.shape_cast %216 : vector<144x128xf32> to vector<9x16x128xf32>
    %218 = vector.extract_strided_slice %217 {offsets = [0, 0, 0], sizes = [1, 16, 128], strides = [1, 1, 1]} : vector<9x16x128xf32> to vector<1x16x128xf32>
    %219 = vector.shape_cast %218 : vector<1x16x128xf32> to vector<16x128xf32>
    %220 = vector.extract_strided_slice %213 {offsets = [0, 0, 0], sizes = [1, 1, 128], strides = [1, 1, 1]} : vector<9x1x128xf32> to vector<1x1x128xf32>
    %221 = vector.shape_cast %220 : vector<1x1x128xf32> to vector<1x128xf32>
    %222 = vector.broadcast %221 : vector<1x128xf32> to vector<16x128xf32>
    %223 = arith.mulf %219, %222 : vector<16x128xf32>
    %224 = vector.extract_strided_slice %217 {offsets = [1, 0, 0], sizes = [1, 16, 128], strides = [1, 1, 1]} : vector<9x16x128xf32> to vector<1x16x128xf32>
    %225 = vector.shape_cast %224 : vector<1x16x128xf32> to vector<16x128xf32>
    %226 = vector.extract_strided_slice %213 {offsets = [1, 0, 0], sizes = [1, 1, 128], strides = [1, 1, 1]} : vector<9x1x128xf32> to vector<1x1x128xf32>
    %227 = vector.shape_cast %226 : vector<1x1x128xf32> to vector<1x128xf32>
    %228 = vector.broadcast %227 : vector<1x128xf32> to vector<16x128xf32>
    %229 = arith.mulf %225, %228 : vector<16x128xf32>
    %230 = vector.extract_strided_slice %217 {offsets = [2, 0, 0], sizes = [1, 16, 128], strides = [1, 1, 1]} : vector<9x16x128xf32> to vector<1x16x128xf32>
    %231 = vector.shape_cast %230 : vector<1x16x128xf32> to vector<16x128xf32>
    %232 = vector.extract_strided_slice %213 {offsets = [2, 0, 0], sizes = [1, 1, 128], strides = [1, 1, 1]} : vector<9x1x128xf32> to vector<1x1x128xf32>
    %233 = vector.shape_cast %232 : vector<1x1x128xf32> to vector<1x128xf32>
    %234 = vector.broadcast %233 : vector<1x128xf32> to vector<16x128xf32>
    %235 = arith.mulf %231, %234 : vector<16x128xf32>
    %236 = vector.extract_strided_slice %217 {offsets = [3, 0, 0], sizes = [1, 16, 128], strides = [1, 1, 1]} : vector<9x16x128xf32> to vector<1x16x128xf32>
    %237 = vector.shape_cast %236 : vector<1x16x128xf32> to vector<16x128xf32>
    %238 = vector.extract_strided_slice %213 {offsets = [3, 0, 0], sizes = [1, 1, 128], strides = [1, 1, 1]} : vector<9x1x128xf32> to vector<1x1x128xf32>
    %239 = vector.shape_cast %238 : vector<1x1x128xf32> to vector<1x128xf32>
    %240 = vector.broadcast %239 : vector<1x128xf32> to vector<16x128xf32>
    %241 = arith.mulf %237, %240 : vector<16x128xf32>
    %242 = vector.extract_strided_slice %217 {offsets = [4, 0, 0], sizes = [1, 16, 128], strides = [1, 1, 1]} : vector<9x16x128xf32> to vector<1x16x128xf32>
    %243 = vector.shape_cast %242 : vector<1x16x128xf32> to vector<16x128xf32>
    %244 = vector.extract_strided_slice %213 {offsets = [4, 0, 0], sizes = [1, 1, 128], strides = [1, 1, 1]} : vector<9x1x128xf32> to vector<1x1x128xf32>
    %245 = vector.shape_cast %244 : vector<1x1x128xf32> to vector<1x128xf32>
    %246 = vector.broadcast %245 : vector<1x128xf32> to vector<16x128xf32>
    %247 = arith.mulf %243, %246 : vector<16x128xf32>
    %248 = vector.extract_strided_slice %217 {offsets = [5, 0, 0], sizes = [1, 16, 128], strides = [1, 1, 1]} : vector<9x16x128xf32> to vector<1x16x128xf32>
    %249 = vector.shape_cast %248 : vector<1x16x128xf32> to vector<16x128xf32>
    %250 = vector.extract_strided_slice %213 {offsets = [5, 0, 0], sizes = [1, 1, 128], strides = [1, 1, 1]} : vector<9x1x128xf32> to vector<1x1x128xf32>
    %251 = vector.shape_cast %250 : vector<1x1x128xf32> to vector<1x128xf32>
    %252 = vector.broadcast %251 : vector<1x128xf32> to vector<16x128xf32>
    %253 = arith.mulf %249, %252 : vector<16x128xf32>
    %254 = vector.extract_strided_slice %217 {offsets = [6, 0, 0], sizes = [1, 16, 128], strides = [1, 1, 1]} : vector<9x16x128xf32> to vector<1x16x128xf32>
    %255 = vector.shape_cast %254 : vector<1x16x128xf32> to vector<16x128xf32>
    %256 = vector.extract_strided_slice %213 {offsets = [6, 0, 0], sizes = [1, 1, 128], strides = [1, 1, 1]} : vector<9x1x128xf32> to vector<1x1x128xf32>
    %257 = vector.shape_cast %256 : vector<1x1x128xf32> to vector<1x128xf32>
    %258 = vector.broadcast %257 : vector<1x128xf32> to vector<16x128xf32>
    %259 = arith.mulf %255, %258 : vector<16x128xf32>
    %260 = vector.extract_strided_slice %217 {offsets = [7, 0, 0], sizes = [1, 16, 128], strides = [1, 1, 1]} : vector<9x16x128xf32> to vector<1x16x128xf32>
    %261 = vector.shape_cast %260 : vector<1x16x128xf32> to vector<16x128xf32>
    %262 = vector.extract_strided_slice %213 {offsets = [7, 0, 0], sizes = [1, 1, 128], strides = [1, 1, 1]} : vector<9x1x128xf32> to vector<1x1x128xf32>
    %263 = vector.shape_cast %262 : vector<1x1x128xf32> to vector<1x128xf32>
    %264 = vector.broadcast %263 : vector<1x128xf32> to vector<16x128xf32>
    %265 = arith.mulf %261, %264 : vector<16x128xf32>
    %266 = vector.extract_strided_slice %217 {offsets = [8, 0, 0], sizes = [1, 16, 128], strides = [1, 1, 1]} : vector<9x16x128xf32> to vector<1x16x128xf32>
    %267 = vector.shape_cast %266 : vector<1x16x128xf32> to vector<16x128xf32>
    %268 = vector.extract_strided_slice %213 {offsets = [8, 0, 0], sizes = [1, 1, 128], strides = [1, 1, 1]} : vector<9x1x128xf32> to vector<1x1x128xf32>
    %269 = vector.shape_cast %268 : vector<1x1x128xf32> to vector<1x128xf32>
    %270 = vector.broadcast %269 : vector<1x128xf32> to vector<16x128xf32>
    %271 = arith.mulf %267, %270 : vector<16x128xf32>
    %272 = arith.addf %223, %229 : vector<16x128xf32>
    %273 = arith.addf %235, %241 : vector<16x128xf32>
    %274 = arith.addf %247, %253 : vector<16x128xf32>
    %275 = arith.addf %259, %265 : vector<16x128xf32>
    %276 = arith.addf %272, %273 : vector<16x128xf32>
    %277 = arith.addf %274, %275 : vector<16x128xf32>
    %278 = arith.addf %276, %277 : vector<16x128xf32>
    %279 = arith.addf %278, %271 : vector<16x128xf32>
    %280 = vector.extract_strided_slice %212 {offsets = [16, 0], sizes = [16, 128], strides = [1, 1]} : vector<32x128xbf16> to vector<16x128xbf16>
    %cst_43 = arith.constant dense<0.000000e+00> : vector<144x128xf32>
    %281 = tpu.matmul %214, %280, %cst_43 {dimension_numbers = #tpu.dot_dimension_numbers<[1], [0], [0], [1], [0, 0, 1, 1], [], []>} : vector<144x16xbf16>, vector<16x128xbf16>, vector<144x128xf32> -> vector<144x128xf32>
    %282 = vector.shape_cast %281 : vector<144x128xf32> to vector<9x16x128xf32>
    %283 = vector.extract_strided_slice %282 {offsets = [0, 0, 0], sizes = [1, 16, 128], strides = [1, 1, 1]} : vector<9x16x128xf32> to vector<1x16x128xf32>
    %284 = vector.shape_cast %283 : vector<1x16x128xf32> to vector<16x128xf32>
    %285 = vector.extract_strided_slice %213 {offsets = [0, 0, 0], sizes = [1, 1, 128], strides = [1, 1, 1]} : vector<9x1x128xf32> to vector<1x1x128xf32>
    %286 = vector.shape_cast %285 : vector<1x1x128xf32> to vector<1x128xf32>
    %287 = vector.broadcast %286 : vector<1x128xf32> to vector<16x128xf32>
    %288 = arith.mulf %284, %287 : vector<16x128xf32>
    %289 = vector.extract_strided_slice %282 {offsets = [1, 0, 0], sizes = [1, 16, 128], strides = [1, 1, 1]} : vector<9x16x128xf32> to vector<1x16x128xf32>
    %290 = vector.shape_cast %289 : vector<1x16x128xf32> to vector<16x128xf32>
    %291 = vector.extract_strided_slice %213 {offsets = [1, 0, 0], sizes = [1, 1, 128], strides = [1, 1, 1]} : vector<9x1x128xf32> to vector<1x1x128xf32>
    %292 = vector.shape_cast %291 : vector<1x1x128xf32> to vector<1x128xf32>
    %293 = vector.broadcast %292 : vector<1x128xf32> to vector<16x128xf32>
    %294 = arith.mulf %290, %293 : vector<16x128xf32>
    %295 = vector.extract_strided_slice %282 {offsets = [2, 0, 0], sizes = [1, 16, 128], strides = [1, 1, 1]} : vector<9x16x128xf32> to vector<1x16x128xf32>
    %296 = vector.shape_cast %295 : vector<1x16x128xf32> to vector<16x128xf32>
    %297 = vector.extract_strided_slice %213 {offsets = [2, 0, 0], sizes = [1, 1, 128], strides = [1, 1, 1]} : vector<9x1x128xf32> to vector<1x1x128xf32>
    %298 = vector.shape_cast %297 : vector<1x1x128xf32> to vector<1x128xf32>
    %299 = vector.broadcast %298 : vector<1x128xf32> to vector<16x128xf32>
    %300 = arith.mulf %296, %299 : vector<16x128xf32>
    %301 = vector.extract_strided_slice %282 {offsets = [3, 0, 0], sizes = [1, 16, 128], strides = [1, 1, 1]} : vector<9x16x128xf32> to vector<1x16x128xf32>
    %302 = vector.shape_cast %301 : vector<1x16x128xf32> to vector<16x128xf32>
    %303 = vector.extract_strided_slice %213 {offsets = [3, 0, 0], sizes = [1, 1, 128], strides = [1, 1, 1]} : vector<9x1x128xf32> to vector<1x1x128xf32>
    %304 = vector.shape_cast %303 : vector<1x1x128xf32> to vector<1x128xf32>
    %305 = vector.broadcast %304 : vector<1x128xf32> to vector<16x128xf32>
    %306 = arith.mulf %302, %305 : vector<16x128xf32>
    %307 = vector.extract_strided_slice %282 {offsets = [4, 0, 0], sizes = [1, 16, 128], strides = [1, 1, 1]} : vector<9x16x128xf32> to vector<1x16x128xf32>
    %308 = vector.shape_cast %307 : vector<1x16x128xf32> to vector<16x128xf32>
    %309 = vector.extract_strided_slice %213 {offsets = [4, 0, 0], sizes = [1, 1, 128], strides = [1, 1, 1]} : vector<9x1x128xf32> to vector<1x1x128xf32>
    %310 = vector.shape_cast %309 : vector<1x1x128xf32> to vector<1x128xf32>
    %311 = vector.broadcast %310 : vector<1x128xf32> to vector<16x128xf32>
    %312 = arith.mulf %308, %311 : vector<16x128xf32>
    %313 = vector.extract_strided_slice %282 {offsets = [5, 0, 0], sizes = [1, 16, 128], strides = [1, 1, 1]} : vector<9x16x128xf32> to vector<1x16x128xf32>
    %314 = vector.shape_cast %313 : vector<1x16x128xf32> to vector<16x128xf32>
    %315 = vector.extract_strided_slice %213 {offsets = [5, 0, 0], sizes = [1, 1, 128], strides = [1, 1, 1]} : vector<9x1x128xf32> to vector<1x1x128xf32>
    %316 = vector.shape_cast %315 : vector<1x1x128xf32> to vector<1x128xf32>
    %317 = vector.broadcast %316 : vector<1x128xf32> to vector<16x128xf32>
    %318 = arith.mulf %314, %317 : vector<16x128xf32>
    %319 = vector.extract_strided_slice %282 {offsets = [6, 0, 0], sizes = [1, 16, 128], strides = [1, 1, 1]} : vector<9x16x128xf32> to vector<1x16x128xf32>
    %320 = vector.shape_cast %319 : vector<1x16x128xf32> to vector<16x128xf32>
    %321 = vector.extract_strided_slice %213 {offsets = [6, 0, 0], sizes = [1, 1, 128], strides = [1, 1, 1]} : vector<9x1x128xf32> to vector<1x1x128xf32>
    %322 = vector.shape_cast %321 : vector<1x1x128xf32> to vector<1x128xf32>
    %323 = vector.broadcast %322 : vector<1x128xf32> to vector<16x128xf32>
    %324 = arith.mulf %320, %323 : vector<16x128xf32>
    %325 = vector.extract_strided_slice %282 {offsets = [7, 0, 0], sizes = [1, 16, 128], strides = [1, 1, 1]} : vector<9x16x128xf32> to vector<1x16x128xf32>
    %326 = vector.shape_cast %325 : vector<1x16x128xf32> to vector<16x128xf32>
    %327 = vector.extract_strided_slice %213 {offsets = [7, 0, 0], sizes = [1, 1, 128], strides = [1, 1, 1]} : vector<9x1x128xf32> to vector<1x1x128xf32>
    %328 = vector.shape_cast %327 : vector<1x1x128xf32> to vector<1x128xf32>
    %329 = vector.broadcast %328 : vector<1x128xf32> to vector<16x128xf32>
    %330 = arith.mulf %326, %329 : vector<16x128xf32>
    %331 = vector.extract_strided_slice %282 {offsets = [8, 0, 0], sizes = [1, 16, 128], strides = [1, 1, 1]} : vector<9x16x128xf32> to vector<1x16x128xf32>
    %332 = vector.shape_cast %331 : vector<1x16x128xf32> to vector<16x128xf32>
    %333 = vector.extract_strided_slice %213 {offsets = [8, 0, 0], sizes = [1, 1, 128], strides = [1, 1, 1]} : vector<9x1x128xf32> to vector<1x1x128xf32>
    %334 = vector.shape_cast %333 : vector<1x1x128xf32> to vector<1x128xf32>
    %335 = vector.broadcast %334 : vector<1x128xf32> to vector<16x128xf32>
    %336 = arith.mulf %332, %335 : vector<16x128xf32>
    %337 = arith.addf %288, %294 : vector<16x128xf32>
    %338 = arith.addf %300, %306 : vector<16x128xf32>
    %339 = arith.addf %312, %318 : vector<16x128xf32>
    %340 = arith.addf %324, %330 : vector<16x128xf32>
    %341 = arith.addf %337, %338 : vector<16x128xf32>
    %342 = arith.addf %339, %340 : vector<16x128xf32>
    %343 = arith.addf %341, %342 : vector<16x128xf32>
    %344 = arith.addf %343, %336 : vector<16x128xf32>
    %345 = tpu.concatenate %279, %344 in 0 : vector<16x128xf32>, vector<16x128xf32> -> vector<32x128xf32>
    %346 = arith.truncf %345 : vector<32x128xf32> to vector<32x128xbf16>
    %c0_44 = arith.constant 0 : index
    %c0_45 = arith.constant 0 : index
    %c0_46 = arith.constant 0 : index
    %347 = vector.load %arg12[%c0_44, %c0_45, %c0_46] : memref<2x1x128xf32, #tpu.memory_space<vmem>>, vector<2x1x128xf32>
    %c0_47 = arith.constant 0 : index
    %c0_48 = arith.constant 0 : index
    %348 = vector.load %arg11[%c0_47, %c0_48] : memref<128x128xbf16, #tpu.memory_space<vmem>>, vector<128x128xbf16>
    %cst_49 = arith.constant dense<0.000000e+00> : vector<32x128xf32>
    %349 = tpu.matmul %346, %348, %cst_49 {dimension_numbers = #tpu.dot_dimension_numbers<[1], [0], [0], [1], [0, 0, 1, 1], [], []>} : vector<32x128xbf16>, vector<128x128xbf16>, vector<32x128xf32> -> vector<32x128xf32>
    %350 = vector.extract_strided_slice %347 {offsets = [0, 0, 0], sizes = [1, 1, 128], strides = [1, 1, 1]} : vector<2x1x128xf32> to vector<1x1x128xf32>
    %351 = vector.shape_cast %350 : vector<1x1x128xf32> to vector<1x128xf32>
    %352 = vector.broadcast %351 : vector<1x128xf32> to vector<32x128xf32>
    %353 = arith.mulf %349, %352 : vector<32x128xf32>
    %354 = vector.extract_strided_slice %347 {offsets = [1, 0, 0], sizes = [1, 1, 128], strides = [1, 1, 1]} : vector<2x1x128xf32> to vector<1x1x128xf32>
    %355 = vector.shape_cast %354 : vector<1x1x128xf32> to vector<1x128xf32>
    %356 = vector.broadcast %355 : vector<1x128xf32> to vector<32x128xf32>
    %357 = arith.addf %353, %356 : vector<32x128xf32>
    %cst_50 = arith.constant 0.000000e+00 : f32
    %358 = vector.broadcast %cst_50 : f32 to vector<32x128xf32>
    %359 = arith.maximumf %357, %358 : vector<32x128xf32>
    %360 = arith.truncf %359 : vector<32x128xf32> to vector<32x128xbf16>
    %c0_51 = arith.constant 0 : index
    %c0_52 = arith.constant 0 : index
    %c0_53 = arith.constant 0 : index
    %361 = vector.load %arg13[%c0_51, %c0_52, %c0_53] : memref<9x1x128xf32, #tpu.memory_space<vmem>>, vector<9x1x128xf32>
    %c0_54 = arith.constant 0 : index
    %c0_55 = arith.constant 0 : index
    %362 = vector.load %arg10[%c0_54, %c0_55] : memref<144x16xbf16, #tpu.memory_space<vmem>>, vector<144x16xbf16>
    %363 = vector.extract_strided_slice %360 {offsets = [0, 0], sizes = [16, 128], strides = [1, 1]} : vector<32x128xbf16> to vector<16x128xbf16>
    %cst_56 = arith.constant dense<0.000000e+00> : vector<144x128xf32>
    %364 = tpu.matmul %362, %363, %cst_56 {dimension_numbers = #tpu.dot_dimension_numbers<[1], [0], [0], [1], [0, 0, 1, 1], [], []>} : vector<144x16xbf16>, vector<16x128xbf16>, vector<144x128xf32> -> vector<144x128xf32>
    %365 = vector.shape_cast %364 : vector<144x128xf32> to vector<9x16x128xf32>
    %366 = vector.extract_strided_slice %365 {offsets = [0, 0, 0], sizes = [1, 16, 128], strides = [1, 1, 1]} : vector<9x16x128xf32> to vector<1x16x128xf32>
    %367 = vector.shape_cast %366 : vector<1x16x128xf32> to vector<16x128xf32>
    %368 = vector.extract_strided_slice %361 {offsets = [0, 0, 0], sizes = [1, 1, 128], strides = [1, 1, 1]} : vector<9x1x128xf32> to vector<1x1x128xf32>
    %369 = vector.shape_cast %368 : vector<1x1x128xf32> to vector<1x128xf32>
    %370 = vector.broadcast %369 : vector<1x128xf32> to vector<16x128xf32>
    %371 = arith.mulf %367, %370 : vector<16x128xf32>
    %372 = vector.extract_strided_slice %365 {offsets = [1, 0, 0], sizes = [1, 16, 128], strides = [1, 1, 1]} : vector<9x16x128xf32> to vector<1x16x128xf32>
    %373 = vector.shape_cast %372 : vector<1x16x128xf32> to vector<16x128xf32>
    %374 = vector.extract_strided_slice %361 {offsets = [1, 0, 0], sizes = [1, 1, 128], strides = [1, 1, 1]} : vector<9x1x128xf32> to vector<1x1x128xf32>
    %375 = vector.shape_cast %374 : vector<1x1x128xf32> to vector<1x128xf32>
    %376 = vector.broadcast %375 : vector<1x128xf32> to vector<16x128xf32>
    %377 = arith.mulf %373, %376 : vector<16x128xf32>
    %378 = vector.extract_strided_slice %365 {offsets = [2, 0, 0], sizes = [1, 16, 128], strides = [1, 1, 1]} : vector<9x16x128xf32> to vector<1x16x128xf32>
    %379 = vector.shape_cast %378 : vector<1x16x128xf32> to vector<16x128xf32>
    %380 = vector.extract_strided_slice %361 {offsets = [2, 0, 0], sizes = [1, 1, 128], strides = [1, 1, 1]} : vector<9x1x128xf32> to vector<1x1x128xf32>
    %381 = vector.shape_cast %380 : vector<1x1x128xf32> to vector<1x128xf32>
    %382 = vector.broadcast %381 : vector<1x128xf32> to vector<16x128xf32>
    %383 = arith.mulf %379, %382 : vector<16x128xf32>
    %384 = vector.extract_strided_slice %365 {offsets = [3, 0, 0], sizes = [1, 16, 128], strides = [1, 1, 1]} : vector<9x16x128xf32> to vector<1x16x128xf32>
    %385 = vector.shape_cast %384 : vector<1x16x128xf32> to vector<16x128xf32>
    %386 = vector.extract_strided_slice %361 {offsets = [3, 0, 0], sizes = [1, 1, 128], strides = [1, 1, 1]} : vector<9x1x128xf32> to vector<1x1x128xf32>
    %387 = vector.shape_cast %386 : vector<1x1x128xf32> to vector<1x128xf32>
    %388 = vector.broadcast %387 : vector<1x128xf32> to vector<16x128xf32>
    %389 = arith.mulf %385, %388 : vector<16x128xf32>
    %390 = vector.extract_strided_slice %365 {offsets = [4, 0, 0], sizes = [1, 16, 128], strides = [1, 1, 1]} : vector<9x16x128xf32> to vector<1x16x128xf32>
    %391 = vector.shape_cast %390 : vector<1x16x128xf32> to vector<16x128xf32>
    %392 = vector.extract_strided_slice %361 {offsets = [4, 0, 0], sizes = [1, 1, 128], strides = [1, 1, 1]} : vector<9x1x128xf32> to vector<1x1x128xf32>
    %393 = vector.shape_cast %392 : vector<1x1x128xf32> to vector<1x128xf32>
    %394 = vector.broadcast %393 : vector<1x128xf32> to vector<16x128xf32>
    %395 = arith.mulf %391, %394 : vector<16x128xf32>
    %396 = vector.extract_strided_slice %365 {offsets = [5, 0, 0], sizes = [1, 16, 128], strides = [1, 1, 1]} : vector<9x16x128xf32> to vector<1x16x128xf32>
    %397 = vector.shape_cast %396 : vector<1x16x128xf32> to vector<16x128xf32>
    %398 = vector.extract_strided_slice %361 {offsets = [5, 0, 0], sizes = [1, 1, 128], strides = [1, 1, 1]} : vector<9x1x128xf32> to vector<1x1x128xf32>
    %399 = vector.shape_cast %398 : vector<1x1x128xf32> to vector<1x128xf32>
    %400 = vector.broadcast %399 : vector<1x128xf32> to vector<16x128xf32>
    %401 = arith.mulf %397, %400 : vector<16x128xf32>
    %402 = vector.extract_strided_slice %365 {offsets = [6, 0, 0], sizes = [1, 16, 128], strides = [1, 1, 1]} : vector<9x16x128xf32> to vector<1x16x128xf32>
    %403 = vector.shape_cast %402 : vector<1x16x128xf32> to vector<16x128xf32>
    %404 = vector.extract_strided_slice %361 {offsets = [6, 0, 0], sizes = [1, 1, 128], strides = [1, 1, 1]} : vector<9x1x128xf32> to vector<1x1x128xf32>
    %405 = vector.shape_cast %404 : vector<1x1x128xf32> to vector<1x128xf32>
    %406 = vector.broadcast %405 : vector<1x128xf32> to vector<16x128xf32>
    %407 = arith.mulf %403, %406 : vector<16x128xf32>
    %408 = vector.extract_strided_slice %365 {offsets = [7, 0, 0], sizes = [1, 16, 128], strides = [1, 1, 1]} : vector<9x16x128xf32> to vector<1x16x128xf32>
    %409 = vector.shape_cast %408 : vector<1x16x128xf32> to vector<16x128xf32>
    %410 = vector.extract_strided_slice %361 {offsets = [7, 0, 0], sizes = [1, 1, 128], strides = [1, 1, 1]} : vector<9x1x128xf32> to vector<1x1x128xf32>
    %411 = vector.shape_cast %410 : vector<1x1x128xf32> to vector<1x128xf32>
    %412 = vector.broadcast %411 : vector<1x128xf32> to vector<16x128xf32>
    %413 = arith.mulf %409, %412 : vector<16x128xf32>
    %414 = vector.extract_strided_slice %365 {offsets = [8, 0, 0], sizes = [1, 16, 128], strides = [1, 1, 1]} : vector<9x16x128xf32> to vector<1x16x128xf32>
    %415 = vector.shape_cast %414 : vector<1x16x128xf32> to vector<16x128xf32>
    %416 = vector.extract_strided_slice %361 {offsets = [8, 0, 0], sizes = [1, 1, 128], strides = [1, 1, 1]} : vector<9x1x128xf32> to vector<1x1x128xf32>
    %417 = vector.shape_cast %416 : vector<1x1x128xf32> to vector<1x128xf32>
    %418 = vector.broadcast %417 : vector<1x128xf32> to vector<16x128xf32>
    %419 = arith.mulf %415, %418 : vector<16x128xf32>
    %420 = arith.addf %371, %377 : vector<16x128xf32>
    %421 = arith.addf %383, %389 : vector<16x128xf32>
    %422 = arith.addf %395, %401 : vector<16x128xf32>
    %423 = arith.addf %407, %413 : vector<16x128xf32>
    %424 = arith.addf %420, %421 : vector<16x128xf32>
    %425 = arith.addf %422, %423 : vector<16x128xf32>
    %426 = arith.addf %424, %425 : vector<16x128xf32>
    %427 = arith.addf %426, %419 : vector<16x128xf32>
    %428 = vector.extract_strided_slice %360 {offsets = [16, 0], sizes = [16, 128], strides = [1, 1]} : vector<32x128xbf16> to vector<16x128xbf16>
    %cst_57 = arith.constant dense<0.000000e+00> : vector<144x128xf32>
    %429 = tpu.matmul %362, %428, %cst_57 {dimension_numbers = #tpu.dot_dimension_numbers<[1], [0], [0], [1], [0, 0, 1, 1], [], []>} : vector<144x16xbf16>, vector<16x128xbf16>, vector<144x128xf32> -> vector<144x128xf32>
    %430 = vector.shape_cast %429 : vector<144x128xf32> to vector<9x16x128xf32>
    %431 = vector.extract_strided_slice %430 {offsets = [0, 0, 0], sizes = [1, 16, 128], strides = [1, 1, 1]} : vector<9x16x128xf32> to vector<1x16x128xf32>
    %432 = vector.shape_cast %431 : vector<1x16x128xf32> to vector<16x128xf32>
    %433 = vector.extract_strided_slice %361 {offsets = [0, 0, 0], sizes = [1, 1, 128], strides = [1, 1, 1]} : vector<9x1x128xf32> to vector<1x1x128xf32>
    %434 = vector.shape_cast %433 : vector<1x1x128xf32> to vector<1x128xf32>
    %435 = vector.broadcast %434 : vector<1x128xf32> to vector<16x128xf32>
    %436 = arith.mulf %432, %435 : vector<16x128xf32>
    %437 = vector.extract_strided_slice %430 {offsets = [1, 0, 0], sizes = [1, 16, 128], strides = [1, 1, 1]} : vector<9x16x128xf32> to vector<1x16x128xf32>
    %438 = vector.shape_cast %437 : vector<1x16x128xf32> to vector<16x128xf32>
    %439 = vector.extract_strided_slice %361 {offsets = [1, 0, 0], sizes = [1, 1, 128], strides = [1, 1, 1]} : vector<9x1x128xf32> to vector<1x1x128xf32>
    %440 = vector.shape_cast %439 : vector<1x1x128xf32> to vector<1x128xf32>
    %441 = vector.broadcast %440 : vector<1x128xf32> to vector<16x128xf32>
    %442 = arith.mulf %438, %441 : vector<16x128xf32>
    %443 = vector.extract_strided_slice %430 {offsets = [2, 0, 0], sizes = [1, 16, 128], strides = [1, 1, 1]} : vector<9x16x128xf32> to vector<1x16x128xf32>
    %444 = vector.shape_cast %443 : vector<1x16x128xf32> to vector<16x128xf32>
    %445 = vector.extract_strided_slice %361 {offsets = [2, 0, 0], sizes = [1, 1, 128], strides = [1, 1, 1]} : vector<9x1x128xf32> to vector<1x1x128xf32>
    %446 = vector.shape_cast %445 : vector<1x1x128xf32> to vector<1x128xf32>
    %447 = vector.broadcast %446 : vector<1x128xf32> to vector<16x128xf32>
    %448 = arith.mulf %444, %447 : vector<16x128xf32>
    %449 = vector.extract_strided_slice %430 {offsets = [3, 0, 0], sizes = [1, 16, 128], strides = [1, 1, 1]} : vector<9x16x128xf32> to vector<1x16x128xf32>
    %450 = vector.shape_cast %449 : vector<1x16x128xf32> to vector<16x128xf32>
    %451 = vector.extract_strided_slice %361 {offsets = [3, 0, 0], sizes = [1, 1, 128], strides = [1, 1, 1]} : vector<9x1x128xf32> to vector<1x1x128xf32>
    %452 = vector.shape_cast %451 : vector<1x1x128xf32> to vector<1x128xf32>
    %453 = vector.broadcast %452 : vector<1x128xf32> to vector<16x128xf32>
    %454 = arith.mulf %450, %453 : vector<16x128xf32>
    %455 = vector.extract_strided_slice %430 {offsets = [4, 0, 0], sizes = [1, 16, 128], strides = [1, 1, 1]} : vector<9x16x128xf32> to vector<1x16x128xf32>
    %456 = vector.shape_cast %455 : vector<1x16x128xf32> to vector<16x128xf32>
    %457 = vector.extract_strided_slice %361 {offsets = [4, 0, 0], sizes = [1, 1, 128], strides = [1, 1, 1]} : vector<9x1x128xf32> to vector<1x1x128xf32>
    %458 = vector.shape_cast %457 : vector<1x1x128xf32> to vector<1x128xf32>
    %459 = vector.broadcast %458 : vector<1x128xf32> to vector<16x128xf32>
    %460 = arith.mulf %456, %459 : vector<16x128xf32>
    %461 = vector.extract_strided_slice %430 {offsets = [5, 0, 0], sizes = [1, 16, 128], strides = [1, 1, 1]} : vector<9x16x128xf32> to vector<1x16x128xf32>
    %462 = vector.shape_cast %461 : vector<1x16x128xf32> to vector<16x128xf32>
    %463 = vector.extract_strided_slice %361 {offsets = [5, 0, 0], sizes = [1, 1, 128], strides = [1, 1, 1]} : vector<9x1x128xf32> to vector<1x1x128xf32>
    %464 = vector.shape_cast %463 : vector<1x1x128xf32> to vector<1x128xf32>
    %465 = vector.broadcast %464 : vector<1x128xf32> to vector<16x128xf32>
    %466 = arith.mulf %462, %465 : vector<16x128xf32>
    %467 = vector.extract_strided_slice %430 {offsets = [6, 0, 0], sizes = [1, 16, 128], strides = [1, 1, 1]} : vector<9x16x128xf32> to vector<1x16x128xf32>
    %468 = vector.shape_cast %467 : vector<1x16x128xf32> to vector<16x128xf32>
    %469 = vector.extract_strided_slice %361 {offsets = [6, 0, 0], sizes = [1, 1, 128], strides = [1, 1, 1]} : vector<9x1x128xf32> to vector<1x1x128xf32>
    %470 = vector.shape_cast %469 : vector<1x1x128xf32> to vector<1x128xf32>
    %471 = vector.broadcast %470 : vector<1x128xf32> to vector<16x128xf32>
    %472 = arith.mulf %468, %471 : vector<16x128xf32>
    %473 = vector.extract_strided_slice %430 {offsets = [7, 0, 0], sizes = [1, 16, 128], strides = [1, 1, 1]} : vector<9x16x128xf32> to vector<1x16x128xf32>
    %474 = vector.shape_cast %473 : vector<1x16x128xf32> to vector<16x128xf32>
    %475 = vector.extract_strided_slice %361 {offsets = [7, 0, 0], sizes = [1, 1, 128], strides = [1, 1, 1]} : vector<9x1x128xf32> to vector<1x1x128xf32>
    %476 = vector.shape_cast %475 : vector<1x1x128xf32> to vector<1x128xf32>
    %477 = vector.broadcast %476 : vector<1x128xf32> to vector<16x128xf32>
    %478 = arith.mulf %474, %477 : vector<16x128xf32>
    %479 = vector.extract_strided_slice %430 {offsets = [8, 0, 0], sizes = [1, 16, 128], strides = [1, 1, 1]} : vector<9x16x128xf32> to vector<1x16x128xf32>
    %480 = vector.shape_cast %479 : vector<1x16x128xf32> to vector<16x128xf32>
    %481 = vector.extract_strided_slice %361 {offsets = [8, 0, 0], sizes = [1, 1, 128], strides = [1, 1, 1]} : vector<9x1x128xf32> to vector<1x1x128xf32>
    %482 = vector.shape_cast %481 : vector<1x1x128xf32> to vector<1x128xf32>
    %483 = vector.broadcast %482 : vector<1x128xf32> to vector<16x128xf32>
    %484 = arith.mulf %480, %483 : vector<16x128xf32>
    %485 = arith.addf %436, %442 : vector<16x128xf32>
    %486 = arith.addf %448, %454 : vector<16x128xf32>
    %487 = arith.addf %460, %466 : vector<16x128xf32>
    %488 = arith.addf %472, %478 : vector<16x128xf32>
    %489 = arith.addf %485, %486 : vector<16x128xf32>
    %490 = arith.addf %487, %488 : vector<16x128xf32>
    %491 = arith.addf %489, %490 : vector<16x128xf32>
    %492 = arith.addf %491, %484 : vector<16x128xf32>
    %493 = tpu.concatenate %427, %492 in 0 : vector<16x128xf32>, vector<16x128xf32> -> vector<32x128xf32>
    %494 = arith.truncf %493 : vector<32x128xf32> to vector<32x128xbf16>
    %c0_58 = arith.constant 0 : index
    %c0_59 = arith.constant 0 : index
    %c0_60 = arith.constant 0 : index
    %495 = vector.load %arg15[%c0_58, %c0_59, %c0_60] : memref<2x1x128xf32, #tpu.memory_space<vmem>>, vector<2x1x128xf32>
    %c0_61 = arith.constant 0 : index
    %c0_62 = arith.constant 0 : index
    %496 = vector.load %arg14[%c0_61, %c0_62] : memref<128x128xbf16, #tpu.memory_space<vmem>>, vector<128x128xbf16>
    %cst_63 = arith.constant dense<0.000000e+00> : vector<32x128xf32>
    %497 = tpu.matmul %494, %496, %cst_63 {dimension_numbers = #tpu.dot_dimension_numbers<[1], [0], [0], [1], [0, 0, 1, 1], [], []>} : vector<32x128xbf16>, vector<128x128xbf16>, vector<32x128xf32> -> vector<32x128xf32>
    %498 = vector.extract_strided_slice %495 {offsets = [0, 0, 0], sizes = [1, 1, 128], strides = [1, 1, 1]} : vector<2x1x128xf32> to vector<1x1x128xf32>
    %499 = vector.shape_cast %498 : vector<1x1x128xf32> to vector<1x128xf32>
    %500 = vector.broadcast %499 : vector<1x128xf32> to vector<32x128xf32>
    %501 = arith.mulf %497, %500 : vector<32x128xf32>
    %502 = vector.extract_strided_slice %495 {offsets = [1, 0, 0], sizes = [1, 1, 128], strides = [1, 1, 1]} : vector<2x1x128xf32> to vector<1x1x128xf32>
    %503 = vector.shape_cast %502 : vector<1x1x128xf32> to vector<1x128xf32>
    %504 = vector.broadcast %503 : vector<1x128xf32> to vector<32x128xf32>
    %505 = arith.addf %501, %504 : vector<32x128xf32>
    %506 = arith.truncf %505 : vector<32x128xf32> to vector<32x128xbf16>
    %c0_64 = arith.constant 0 : index
    %c0_65 = arith.constant 0 : index
    %507 = vector.load %arg16[%c0_64, %c0_65] : memref<36x16xbf16, #tpu.memory_space<vmem>>, vector<36x16xbf16>
    %508 = vector.extract_strided_slice %506 {offsets = [0, 0], sizes = [16, 128], strides = [1, 1]} : vector<32x128xbf16> to vector<16x128xbf16>
    %cst_66 = arith.constant dense<0.000000e+00> : vector<36x128xf32>
    %509 = tpu.matmul %507, %508, %cst_66 {dimension_numbers = #tpu.dot_dimension_numbers<[1], [0], [0], [1], [0, 0, 1, 1], [], []>} : vector<36x16xbf16>, vector<16x128xbf16>, vector<36x128xf32> -> vector<36x128xf32>
    %510 = vector.shape_cast %509 : vector<36x128xf32> to vector<9x4x128xf32>
    %511 = vector.extract_strided_slice %510 {offsets = [0, 0, 0], sizes = [1, 4, 128], strides = [1, 1, 1]} : vector<9x4x128xf32> to vector<1x4x128xf32>
    %512 = vector.shape_cast %511 : vector<1x4x128xf32> to vector<4x128xf32>
    %513 = vector.extract_strided_slice %510 {offsets = [1, 0, 0], sizes = [1, 4, 128], strides = [1, 1, 1]} : vector<9x4x128xf32> to vector<1x4x128xf32>
    %514 = vector.shape_cast %513 : vector<1x4x128xf32> to vector<4x128xf32>
    %515 = vector.extract_strided_slice %510 {offsets = [2, 0, 0], sizes = [1, 4, 128], strides = [1, 1, 1]} : vector<9x4x128xf32> to vector<1x4x128xf32>
    %516 = vector.shape_cast %515 : vector<1x4x128xf32> to vector<4x128xf32>
    %517 = vector.extract_strided_slice %510 {offsets = [3, 0, 0], sizes = [1, 4, 128], strides = [1, 1, 1]} : vector<9x4x128xf32> to vector<1x4x128xf32>
    %518 = vector.shape_cast %517 : vector<1x4x128xf32> to vector<4x128xf32>
    %519 = vector.extract_strided_slice %510 {offsets = [4, 0, 0], sizes = [1, 4, 128], strides = [1, 1, 1]} : vector<9x4x128xf32> to vector<1x4x128xf32>
    %520 = vector.shape_cast %519 : vector<1x4x128xf32> to vector<4x128xf32>
    %521 = vector.extract_strided_slice %510 {offsets = [5, 0, 0], sizes = [1, 4, 128], strides = [1, 1, 1]} : vector<9x4x128xf32> to vector<1x4x128xf32>
    %522 = vector.shape_cast %521 : vector<1x4x128xf32> to vector<4x128xf32>
    %523 = vector.extract_strided_slice %510 {offsets = [6, 0, 0], sizes = [1, 4, 128], strides = [1, 1, 1]} : vector<9x4x128xf32> to vector<1x4x128xf32>
    %524 = vector.shape_cast %523 : vector<1x4x128xf32> to vector<4x128xf32>
    %525 = vector.extract_strided_slice %510 {offsets = [7, 0, 0], sizes = [1, 4, 128], strides = [1, 1, 1]} : vector<9x4x128xf32> to vector<1x4x128xf32>
    %526 = vector.shape_cast %525 : vector<1x4x128xf32> to vector<4x128xf32>
    %527 = vector.extract_strided_slice %510 {offsets = [8, 0, 0], sizes = [1, 4, 128], strides = [1, 1, 1]} : vector<9x4x128xf32> to vector<1x4x128xf32>
    %528 = vector.shape_cast %527 : vector<1x4x128xf32> to vector<4x128xf32>
    %529 = arith.maximumf %512, %514 : vector<4x128xf32>
    %530 = arith.maximumf %516, %518 : vector<4x128xf32>
    %531 = arith.maximumf %520, %522 : vector<4x128xf32>
    %532 = arith.maximumf %524, %526 : vector<4x128xf32>
    %533 = arith.maximumf %529, %530 : vector<4x128xf32>
    %534 = arith.maximumf %531, %532 : vector<4x128xf32>
    %535 = arith.maximumf %533, %534 : vector<4x128xf32>
    %536 = arith.maximumf %535, %528 : vector<4x128xf32>
    %537 = vector.extract_strided_slice %506 {offsets = [16, 0], sizes = [16, 128], strides = [1, 1]} : vector<32x128xbf16> to vector<16x128xbf16>
    %cst_67 = arith.constant dense<0.000000e+00> : vector<36x128xf32>
    %538 = tpu.matmul %507, %537, %cst_67 {dimension_numbers = #tpu.dot_dimension_numbers<[1], [0], [0], [1], [0, 0, 1, 1], [], []>} : vector<36x16xbf16>, vector<16x128xbf16>, vector<36x128xf32> -> vector<36x128xf32>
    %539 = vector.shape_cast %538 : vector<36x128xf32> to vector<9x4x128xf32>
    %540 = vector.extract_strided_slice %539 {offsets = [0, 0, 0], sizes = [1, 4, 128], strides = [1, 1, 1]} : vector<9x4x128xf32> to vector<1x4x128xf32>
    %541 = vector.shape_cast %540 : vector<1x4x128xf32> to vector<4x128xf32>
    %542 = vector.extract_strided_slice %539 {offsets = [1, 0, 0], sizes = [1, 4, 128], strides = [1, 1, 1]} : vector<9x4x128xf32> to vector<1x4x128xf32>
    %543 = vector.shape_cast %542 : vector<1x4x128xf32> to vector<4x128xf32>
    %544 = vector.extract_strided_slice %539 {offsets = [2, 0, 0], sizes = [1, 4, 128], strides = [1, 1, 1]} : vector<9x4x128xf32> to vector<1x4x128xf32>
    %545 = vector.shape_cast %544 : vector<1x4x128xf32> to vector<4x128xf32>
    %546 = vector.extract_strided_slice %539 {offsets = [3, 0, 0], sizes = [1, 4, 128], strides = [1, 1, 1]} : vector<9x4x128xf32> to vector<1x4x128xf32>
    %547 = vector.shape_cast %546 : vector<1x4x128xf32> to vector<4x128xf32>
    %548 = vector.extract_strided_slice %539 {offsets = [4, 0, 0], sizes = [1, 4, 128], strides = [1, 1, 1]} : vector<9x4x128xf32> to vector<1x4x128xf32>
    %549 = vector.shape_cast %548 : vector<1x4x128xf32> to vector<4x128xf32>
    %550 = vector.extract_strided_slice %539 {offsets = [5, 0, 0], sizes = [1, 4, 128], strides = [1, 1, 1]} : vector<9x4x128xf32> to vector<1x4x128xf32>
    %551 = vector.shape_cast %550 : vector<1x4x128xf32> to vector<4x128xf32>
    %552 = vector.extract_strided_slice %539 {offsets = [6, 0, 0], sizes = [1, 4, 128], strides = [1, 1, 1]} : vector<9x4x128xf32> to vector<1x4x128xf32>
    %553 = vector.shape_cast %552 : vector<1x4x128xf32> to vector<4x128xf32>
    %554 = vector.extract_strided_slice %539 {offsets = [7, 0, 0], sizes = [1, 4, 128], strides = [1, 1, 1]} : vector<9x4x128xf32> to vector<1x4x128xf32>
    %555 = vector.shape_cast %554 : vector<1x4x128xf32> to vector<4x128xf32>
    %556 = vector.extract_strided_slice %539 {offsets = [8, 0, 0], sizes = [1, 4, 128], strides = [1, 1, 1]} : vector<9x4x128xf32> to vector<1x4x128xf32>
    %557 = vector.shape_cast %556 : vector<1x4x128xf32> to vector<4x128xf32>
    %558 = arith.maximumf %541, %543 : vector<4x128xf32>
    %559 = arith.maximumf %545, %547 : vector<4x128xf32>
    %560 = arith.maximumf %549, %551 : vector<4x128xf32>
    %561 = arith.maximumf %553, %555 : vector<4x128xf32>
    %562 = arith.maximumf %558, %559 : vector<4x128xf32>
    %563 = arith.maximumf %560, %561 : vector<4x128xf32>
    %564 = arith.maximumf %562, %563 : vector<4x128xf32>
    %565 = arith.maximumf %564, %557 : vector<4x128xf32>
    %566 = tpu.concatenate %536, %565 in 0 : vector<4x128xf32>, vector<4x128xf32> -> vector<8x128xf32>
    %cst_68 = arith.constant 0.000000e+00 : f32
    %567 = vector.broadcast %cst_68 : f32 to vector<8x128xf32>
    %568 = arith.maximumf %566, %567 : vector<8x128xf32>
    %569 = arith.truncf %568 : vector<8x128xf32> to vector<8x128xbf16>
    %c0_69 = arith.constant 0 : index
    %c0_70 = arith.constant 0 : index
    %c0_71 = arith.constant 0 : index
    %570 = vector.load %arg17[%c0_69, %c0_70, %c0_71] : memref<9x1x128xf32, #tpu.memory_space<vmem>>, vector<9x1x128xf32>
    %c0_72 = arith.constant 0 : index
    %c0_73 = arith.constant 0 : index
    %571 = vector.load %arg18[%c0_72, %c0_73] : memref<72x8xbf16, #tpu.memory_space<vmem>>, vector<72x8xbf16>
    %cst_74 = arith.constant dense<0.000000e+00> : vector<72x128xf32>
    %572 = tpu.matmul %571, %569, %cst_74 {dimension_numbers = #tpu.dot_dimension_numbers<[1], [0], [0], [1], [0, 0, 1, 1], [], []>} : vector<72x8xbf16>, vector<8x128xbf16>, vector<72x128xf32> -> vector<72x128xf32>
    %573 = vector.shape_cast %572 : vector<72x128xf32> to vector<9x8x128xf32>
    %574 = vector.extract_strided_slice %573 {offsets = [0, 0, 0], sizes = [1, 8, 128], strides = [1, 1, 1]} : vector<9x8x128xf32> to vector<1x8x128xf32>
    %575 = vector.shape_cast %574 : vector<1x8x128xf32> to vector<8x128xf32>
    %576 = vector.extract_strided_slice %570 {offsets = [0, 0, 0], sizes = [1, 1, 128], strides = [1, 1, 1]} : vector<9x1x128xf32> to vector<1x1x128xf32>
    %577 = vector.shape_cast %576 : vector<1x1x128xf32> to vector<1x128xf32>
    %578 = vector.broadcast %577 : vector<1x128xf32> to vector<8x128xf32>
    %579 = arith.mulf %575, %578 : vector<8x128xf32>
    %580 = vector.extract_strided_slice %573 {offsets = [1, 0, 0], sizes = [1, 8, 128], strides = [1, 1, 1]} : vector<9x8x128xf32> to vector<1x8x128xf32>
    %581 = vector.shape_cast %580 : vector<1x8x128xf32> to vector<8x128xf32>
    %582 = vector.extract_strided_slice %570 {offsets = [1, 0, 0], sizes = [1, 1, 128], strides = [1, 1, 1]} : vector<9x1x128xf32> to vector<1x1x128xf32>
    %583 = vector.shape_cast %582 : vector<1x1x128xf32> to vector<1x128xf32>
    %584 = vector.broadcast %583 : vector<1x128xf32> to vector<8x128xf32>
    %585 = arith.mulf %581, %584 : vector<8x128xf32>
    %586 = vector.extract_strided_slice %573 {offsets = [2, 0, 0], sizes = [1, 8, 128], strides = [1, 1, 1]} : vector<9x8x128xf32> to vector<1x8x128xf32>
    %587 = vector.shape_cast %586 : vector<1x8x128xf32> to vector<8x128xf32>
    %588 = vector.extract_strided_slice %570 {offsets = [2, 0, 0], sizes = [1, 1, 128], strides = [1, 1, 1]} : vector<9x1x128xf32> to vector<1x1x128xf32>
    %589 = vector.shape_cast %588 : vector<1x1x128xf32> to vector<1x128xf32>
    %590 = vector.broadcast %589 : vector<1x128xf32> to vector<8x128xf32>
    %591 = arith.mulf %587, %590 : vector<8x128xf32>
    %592 = vector.extract_strided_slice %573 {offsets = [3, 0, 0], sizes = [1, 8, 128], strides = [1, 1, 1]} : vector<9x8x128xf32> to vector<1x8x128xf32>
    %593 = vector.shape_cast %592 : vector<1x8x128xf32> to vector<8x128xf32>
    %594 = vector.extract_strided_slice %570 {offsets = [3, 0, 0], sizes = [1, 1, 128], strides = [1, 1, 1]} : vector<9x1x128xf32> to vector<1x1x128xf32>
    %595 = vector.shape_cast %594 : vector<1x1x128xf32> to vector<1x128xf32>
    %596 = vector.broadcast %595 : vector<1x128xf32> to vector<8x128xf32>
    %597 = arith.mulf %593, %596 : vector<8x128xf32>
    %598 = vector.extract_strided_slice %573 {offsets = [4, 0, 0], sizes = [1, 8, 128], strides = [1, 1, 1]} : vector<9x8x128xf32> to vector<1x8x128xf32>
    %599 = vector.shape_cast %598 : vector<1x8x128xf32> to vector<8x128xf32>
    %600 = vector.extract_strided_slice %570 {offsets = [4, 0, 0], sizes = [1, 1, 128], strides = [1, 1, 1]} : vector<9x1x128xf32> to vector<1x1x128xf32>
    %601 = vector.shape_cast %600 : vector<1x1x128xf32> to vector<1x128xf32>
    %602 = vector.broadcast %601 : vector<1x128xf32> to vector<8x128xf32>
    %603 = arith.mulf %599, %602 : vector<8x128xf32>
    %604 = vector.extract_strided_slice %573 {offsets = [5, 0, 0], sizes = [1, 8, 128], strides = [1, 1, 1]} : vector<9x8x128xf32> to vector<1x8x128xf32>
    %605 = vector.shape_cast %604 : vector<1x8x128xf32> to vector<8x128xf32>
    %606 = vector.extract_strided_slice %570 {offsets = [5, 0, 0], sizes = [1, 1, 128], strides = [1, 1, 1]} : vector<9x1x128xf32> to vector<1x1x128xf32>
    %607 = vector.shape_cast %606 : vector<1x1x128xf32> to vector<1x128xf32>
    %608 = vector.broadcast %607 : vector<1x128xf32> to vector<8x128xf32>
    %609 = arith.mulf %605, %608 : vector<8x128xf32>
    %610 = vector.extract_strided_slice %573 {offsets = [6, 0, 0], sizes = [1, 8, 128], strides = [1, 1, 1]} : vector<9x8x128xf32> to vector<1x8x128xf32>
    %611 = vector.shape_cast %610 : vector<1x8x128xf32> to vector<8x128xf32>
    %612 = vector.extract_strided_slice %570 {offsets = [6, 0, 0], sizes = [1, 1, 128], strides = [1, 1, 1]} : vector<9x1x128xf32> to vector<1x1x128xf32>
    %613 = vector.shape_cast %612 : vector<1x1x128xf32> to vector<1x128xf32>
    %614 = vector.broadcast %613 : vector<1x128xf32> to vector<8x128xf32>
    %615 = arith.mulf %611, %614 : vector<8x128xf32>
    %616 = vector.extract_strided_slice %573 {offsets = [7, 0, 0], sizes = [1, 8, 128], strides = [1, 1, 1]} : vector<9x8x128xf32> to vector<1x8x128xf32>
    %617 = vector.shape_cast %616 : vector<1x8x128xf32> to vector<8x128xf32>
    %618 = vector.extract_strided_slice %570 {offsets = [7, 0, 0], sizes = [1, 1, 128], strides = [1, 1, 1]} : vector<9x1x128xf32> to vector<1x1x128xf32>
    %619 = vector.shape_cast %618 : vector<1x1x128xf32> to vector<1x128xf32>
    %620 = vector.broadcast %619 : vector<1x128xf32> to vector<8x128xf32>
    %621 = arith.mulf %617, %620 : vector<8x128xf32>
    %622 = vector.extract_strided_slice %573 {offsets = [8, 0, 0], sizes = [1, 8, 128], strides = [1, 1, 1]} : vector<9x8x128xf32> to vector<1x8x128xf32>
    %623 = vector.shape_cast %622 : vector<1x8x128xf32> to vector<8x128xf32>
    %624 = vector.extract_strided_slice %570 {offsets = [8, 0, 0], sizes = [1, 1, 128], strides = [1, 1, 1]} : vector<9x1x128xf32> to vector<1x1x128xf32>
    %625 = vector.shape_cast %624 : vector<1x1x128xf32> to vector<1x128xf32>
    %626 = vector.broadcast %625 : vector<1x128xf32> to vector<8x128xf32>
    %627 = arith.mulf %623, %626 : vector<8x128xf32>
    %628 = arith.addf %579, %585 : vector<8x128xf32>
    %629 = arith.addf %591, %597 : vector<8x128xf32>
    %630 = arith.addf %603, %609 : vector<8x128xf32>
    %631 = arith.addf %615, %621 : vector<8x128xf32>
    %632 = arith.addf %628, %629 : vector<8x128xf32>
    %633 = arith.addf %630, %631 : vector<8x128xf32>
    %634 = arith.addf %632, %633 : vector<8x128xf32>
    %635 = arith.addf %634, %627 : vector<8x128xf32>
    %636 = arith.truncf %635 : vector<8x128xf32> to vector<8x128xbf16>
    %c0_75 = arith.constant 0 : index
    %c0_76 = arith.constant 0 : index
    %c0_77 = arith.constant 0 : index
    %637 = vector.load %arg20[%c0_75, %c0_76, %c0_77] : memref<2x1x128xf32, #tpu.memory_space<vmem>>, vector<2x1x128xf32>
    %c0_78 = arith.constant 0 : index
    %c0_79 = arith.constant 0 : index
    %638 = vector.load %arg19[%c0_78, %c0_79] : memref<128x128xbf16, #tpu.memory_space<vmem>>, vector<128x128xbf16>
    %cst_80 = arith.constant dense<0.000000e+00> : vector<8x128xf32>
    %639 = tpu.matmul %636, %638, %cst_80 {dimension_numbers = #tpu.dot_dimension_numbers<[1], [0], [0], [1], [0, 0, 1, 1], [], []>} : vector<8x128xbf16>, vector<128x128xbf16>, vector<8x128xf32> -> vector<8x128xf32>
    %640 = vector.extract_strided_slice %637 {offsets = [0, 0, 0], sizes = [1, 1, 128], strides = [1, 1, 1]} : vector<2x1x128xf32> to vector<1x1x128xf32>
    %641 = vector.shape_cast %640 : vector<1x1x128xf32> to vector<1x128xf32>
    %642 = vector.broadcast %641 : vector<1x128xf32> to vector<8x128xf32>
    %643 = arith.mulf %639, %642 : vector<8x128xf32>
    %644 = vector.extract_strided_slice %637 {offsets = [1, 0, 0], sizes = [1, 1, 128], strides = [1, 1, 1]} : vector<2x1x128xf32> to vector<1x1x128xf32>
    %645 = vector.shape_cast %644 : vector<1x1x128xf32> to vector<1x128xf32>
    %646 = vector.broadcast %645 : vector<1x128xf32> to vector<8x128xf32>
    %647 = arith.addf %643, %646 : vector<8x128xf32>
    %cst_81 = arith.constant 0.000000e+00 : f32
    %648 = vector.broadcast %cst_81 : f32 to vector<8x128xf32>
    %649 = arith.maximumf %647, %648 : vector<8x128xf32>
    %650 = arith.truncf %649 : vector<8x128xf32> to vector<8x128xbf16>
    %c0_82 = arith.constant 0 : index
    %c0_83 = arith.constant 0 : index
    %c0_84 = arith.constant 0 : index
    %651 = vector.load %arg21[%c0_82, %c0_83, %c0_84] : memref<9x1x128xf32, #tpu.memory_space<vmem>>, vector<9x1x128xf32>
    %c0_85 = arith.constant 0 : index
    %c0_86 = arith.constant 0 : index
    %652 = vector.load %arg18[%c0_85, %c0_86] : memref<72x8xbf16, #tpu.memory_space<vmem>>, vector<72x8xbf16>
    %cst_87 = arith.constant dense<0.000000e+00> : vector<72x128xf32>
    %653 = tpu.matmul %652, %650, %cst_87 {dimension_numbers = #tpu.dot_dimension_numbers<[1], [0], [0], [1], [0, 0, 1, 1], [], []>} : vector<72x8xbf16>, vector<8x128xbf16>, vector<72x128xf32> -> vector<72x128xf32>
    %654 = vector.shape_cast %653 : vector<72x128xf32> to vector<9x8x128xf32>
    %655 = vector.extract_strided_slice %654 {offsets = [0, 0, 0], sizes = [1, 8, 128], strides = [1, 1, 1]} : vector<9x8x128xf32> to vector<1x8x128xf32>
    %656 = vector.shape_cast %655 : vector<1x8x128xf32> to vector<8x128xf32>
    %657 = vector.extract_strided_slice %651 {offsets = [0, 0, 0], sizes = [1, 1, 128], strides = [1, 1, 1]} : vector<9x1x128xf32> to vector<1x1x128xf32>
    %658 = vector.shape_cast %657 : vector<1x1x128xf32> to vector<1x128xf32>
    %659 = vector.broadcast %658 : vector<1x128xf32> to vector<8x128xf32>
    %660 = arith.mulf %656, %659 : vector<8x128xf32>
    %661 = vector.extract_strided_slice %654 {offsets = [1, 0, 0], sizes = [1, 8, 128], strides = [1, 1, 1]} : vector<9x8x128xf32> to vector<1x8x128xf32>
    %662 = vector.shape_cast %661 : vector<1x8x128xf32> to vector<8x128xf32>
    %663 = vector.extract_strided_slice %651 {offsets = [1, 0, 0], sizes = [1, 1, 128], strides = [1, 1, 1]} : vector<9x1x128xf32> to vector<1x1x128xf32>
    %664 = vector.shape_cast %663 : vector<1x1x128xf32> to vector<1x128xf32>
    %665 = vector.broadcast %664 : vector<1x128xf32> to vector<8x128xf32>
    %666 = arith.mulf %662, %665 : vector<8x128xf32>
    %667 = vector.extract_strided_slice %654 {offsets = [2, 0, 0], sizes = [1, 8, 128], strides = [1, 1, 1]} : vector<9x8x128xf32> to vector<1x8x128xf32>
    %668 = vector.shape_cast %667 : vector<1x8x128xf32> to vector<8x128xf32>
    %669 = vector.extract_strided_slice %651 {offsets = [2, 0, 0], sizes = [1, 1, 128], strides = [1, 1, 1]} : vector<9x1x128xf32> to vector<1x1x128xf32>
    %670 = vector.shape_cast %669 : vector<1x1x128xf32> to vector<1x128xf32>
    %671 = vector.broadcast %670 : vector<1x128xf32> to vector<8x128xf32>
    %672 = arith.mulf %668, %671 : vector<8x128xf32>
    %673 = vector.extract_strided_slice %654 {offsets = [3, 0, 0], sizes = [1, 8, 128], strides = [1, 1, 1]} : vector<9x8x128xf32> to vector<1x8x128xf32>
    %674 = vector.shape_cast %673 : vector<1x8x128xf32> to vector<8x128xf32>
    %675 = vector.extract_strided_slice %651 {offsets = [3, 0, 0], sizes = [1, 1, 128], strides = [1, 1, 1]} : vector<9x1x128xf32> to vector<1x1x128xf32>
    %676 = vector.shape_cast %675 : vector<1x1x128xf32> to vector<1x128xf32>
    %677 = vector.broadcast %676 : vector<1x128xf32> to vector<8x128xf32>
    %678 = arith.mulf %674, %677 : vector<8x128xf32>
    %679 = vector.extract_strided_slice %654 {offsets = [4, 0, 0], sizes = [1, 8, 128], strides = [1, 1, 1]} : vector<9x8x128xf32> to vector<1x8x128xf32>
    %680 = vector.shape_cast %679 : vector<1x8x128xf32> to vector<8x128xf32>
    %681 = vector.extract_strided_slice %651 {offsets = [4, 0, 0], sizes = [1, 1, 128], strides = [1, 1, 1]} : vector<9x1x128xf32> to vector<1x1x128xf32>
    %682 = vector.shape_cast %681 : vector<1x1x128xf32> to vector<1x128xf32>
    %683 = vector.broadcast %682 : vector<1x128xf32> to vector<8x128xf32>
    %684 = arith.mulf %680, %683 : vector<8x128xf32>
    %685 = vector.extract_strided_slice %654 {offsets = [5, 0, 0], sizes = [1, 8, 128], strides = [1, 1, 1]} : vector<9x8x128xf32> to vector<1x8x128xf32>
    %686 = vector.shape_cast %685 : vector<1x8x128xf32> to vector<8x128xf32>
    %687 = vector.extract_strided_slice %651 {offsets = [5, 0, 0], sizes = [1, 1, 128], strides = [1, 1, 1]} : vector<9x1x128xf32> to vector<1x1x128xf32>
    %688 = vector.shape_cast %687 : vector<1x1x128xf32> to vector<1x128xf32>
    %689 = vector.broadcast %688 : vector<1x128xf32> to vector<8x128xf32>
    %690 = arith.mulf %686, %689 : vector<8x128xf32>
    %691 = vector.extract_strided_slice %654 {offsets = [6, 0, 0], sizes = [1, 8, 128], strides = [1, 1, 1]} : vector<9x8x128xf32> to vector<1x8x128xf32>
    %692 = vector.shape_cast %691 : vector<1x8x128xf32> to vector<8x128xf32>
    %693 = vector.extract_strided_slice %651 {offsets = [6, 0, 0], sizes = [1, 1, 128], strides = [1, 1, 1]} : vector<9x1x128xf32> to vector<1x1x128xf32>
    %694 = vector.shape_cast %693 : vector<1x1x128xf32> to vector<1x128xf32>
    %695 = vector.broadcast %694 : vector<1x128xf32> to vector<8x128xf32>
    %696 = arith.mulf %692, %695 : vector<8x128xf32>
    %697 = vector.extract_strided_slice %654 {offsets = [7, 0, 0], sizes = [1, 8, 128], strides = [1, 1, 1]} : vector<9x8x128xf32> to vector<1x8x128xf32>
    %698 = vector.shape_cast %697 : vector<1x8x128xf32> to vector<8x128xf32>
    %699 = vector.extract_strided_slice %651 {offsets = [7, 0, 0], sizes = [1, 1, 128], strides = [1, 1, 1]} : vector<9x1x128xf32> to vector<1x1x128xf32>
    %700 = vector.shape_cast %699 : vector<1x1x128xf32> to vector<1x128xf32>
    %701 = vector.broadcast %700 : vector<1x128xf32> to vector<8x128xf32>
    %702 = arith.mulf %698, %701 : vector<8x128xf32>
    %703 = vector.extract_strided_slice %654 {offsets = [8, 0, 0], sizes = [1, 8, 128], strides = [1, 1, 1]} : vector<9x8x128xf32> to vector<1x8x128xf32>
    %704 = vector.shape_cast %703 : vector<1x8x128xf32> to vector<8x128xf32>
    %705 = vector.extract_strided_slice %651 {offsets = [8, 0, 0], sizes = [1, 1, 128], strides = [1, 1, 1]} : vector<9x1x128xf32> to vector<1x1x128xf32>
    %706 = vector.shape_cast %705 : vector<1x1x128xf32> to vector<1x128xf32>
    %707 = vector.broadcast %706 : vector<1x128xf32> to vector<8x128xf32>
    %708 = arith.mulf %704, %707 : vector<8x128xf32>
    %709 = arith.addf %660, %666 : vector<8x128xf32>
    %710 = arith.addf %672, %678 : vector<8x128xf32>
    %711 = arith.addf %684, %690 : vector<8x128xf32>
    %712 = arith.addf %696, %702 : vector<8x128xf32>
    %713 = arith.addf %709, %710 : vector<8x128xf32>
    %714 = arith.addf %711, %712 : vector<8x128xf32>
    %715 = arith.addf %713, %714 : vector<8x128xf32>
    %716 = arith.addf %715, %708 : vector<8x128xf32>
    %717 = arith.truncf %716 : vector<8x128xf32> to vector<8x128xbf16>
    %c0_88 = arith.constant 0 : index
    %c0_89 = arith.constant 0 : index
    %c0_90 = arith.constant 0 : index
    %718 = vector.load %arg23[%c0_88, %c0_89, %c0_90] : memref<2x1x128xf32, #tpu.memory_space<vmem>>, vector<2x1x128xf32>
    %c0_91 = arith.constant 0 : index
    %c0_92 = arith.constant 0 : index
    %719 = vector.load %arg22[%c0_91, %c0_92] : memref<128x128xbf16, #tpu.memory_space<vmem>>, vector<128x128xbf16>
    %cst_93 = arith.constant dense<0.000000e+00> : vector<8x128xf32>
    %720 = tpu.matmul %717, %719, %cst_93 {dimension_numbers = #tpu.dot_dimension_numbers<[1], [0], [0], [1], [0, 0, 1, 1], [], []>} : vector<8x128xbf16>, vector<128x128xbf16>, vector<8x128xf32> -> vector<8x128xf32>
    %721 = vector.extract_strided_slice %718 {offsets = [0, 0, 0], sizes = [1, 1, 128], strides = [1, 1, 1]} : vector<2x1x128xf32> to vector<1x1x128xf32>
    %722 = vector.shape_cast %721 : vector<1x1x128xf32> to vector<1x128xf32>
    %723 = vector.broadcast %722 : vector<1x128xf32> to vector<8x128xf32>
    %724 = arith.mulf %720, %723 : vector<8x128xf32>
    %725 = vector.extract_strided_slice %718 {offsets = [1, 0, 0], sizes = [1, 1, 128], strides = [1, 1, 1]} : vector<2x1x128xf32> to vector<1x1x128xf32>
    %726 = vector.shape_cast %725 : vector<1x1x128xf32> to vector<1x128xf32>
    %727 = vector.broadcast %726 : vector<1x128xf32> to vector<8x128xf32>
    %728 = arith.addf %724, %727 : vector<8x128xf32>
    %729 = arith.truncf %728 : vector<8x128xf32> to vector<8x128xbf16>
    %c0_94 = arith.constant 0 : index
    %c0_95 = arith.constant 0 : index
    %730 = vector.load %arg24[%c0_94, %c0_95] : memref<18x8xbf16, #tpu.memory_space<vmem>>, vector<18x8xbf16>
    %cst_96 = arith.constant dense<0.000000e+00> : vector<18x128xf32>
    %731 = tpu.matmul %730, %729, %cst_96 {dimension_numbers = #tpu.dot_dimension_numbers<[1], [0], [0], [1], [0, 0, 1, 1], [], []>} : vector<18x8xbf16>, vector<8x128xbf16>, vector<18x128xf32> -> vector<18x128xf32>
    %732 = vector.shape_cast %731 : vector<18x128xf32> to vector<9x2x128xf32>
    %733 = vector.extract_strided_slice %732 {offsets = [0, 0, 0], sizes = [1, 2, 128], strides = [1, 1, 1]} : vector<9x2x128xf32> to vector<1x2x128xf32>
    %734 = vector.shape_cast %733 : vector<1x2x128xf32> to vector<2x128xf32>
    %735 = vector.extract_strided_slice %732 {offsets = [1, 0, 0], sizes = [1, 2, 128], strides = [1, 1, 1]} : vector<9x2x128xf32> to vector<1x2x128xf32>
    %736 = vector.shape_cast %735 : vector<1x2x128xf32> to vector<2x128xf32>
    %737 = vector.extract_strided_slice %732 {offsets = [2, 0, 0], sizes = [1, 2, 128], strides = [1, 1, 1]} : vector<9x2x128xf32> to vector<1x2x128xf32>
    %738 = vector.shape_cast %737 : vector<1x2x128xf32> to vector<2x128xf32>
    %739 = vector.extract_strided_slice %732 {offsets = [3, 0, 0], sizes = [1, 2, 128], strides = [1, 1, 1]} : vector<9x2x128xf32> to vector<1x2x128xf32>
    %740 = vector.shape_cast %739 : vector<1x2x128xf32> to vector<2x128xf32>
    %741 = vector.extract_strided_slice %732 {offsets = [4, 0, 0], sizes = [1, 2, 128], strides = [1, 1, 1]} : vector<9x2x128xf32> to vector<1x2x128xf32>
    %742 = vector.shape_cast %741 : vector<1x2x128xf32> to vector<2x128xf32>
    %743 = vector.extract_strided_slice %732 {offsets = [5, 0, 0], sizes = [1, 2, 128], strides = [1, 1, 1]} : vector<9x2x128xf32> to vector<1x2x128xf32>
    %744 = vector.shape_cast %743 : vector<1x2x128xf32> to vector<2x128xf32>
    %745 = vector.extract_strided_slice %732 {offsets = [6, 0, 0], sizes = [1, 2, 128], strides = [1, 1, 1]} : vector<9x2x128xf32> to vector<1x2x128xf32>
    %746 = vector.shape_cast %745 : vector<1x2x128xf32> to vector<2x128xf32>
    %747 = vector.extract_strided_slice %732 {offsets = [7, 0, 0], sizes = [1, 2, 128], strides = [1, 1, 1]} : vector<9x2x128xf32> to vector<1x2x128xf32>
    %748 = vector.shape_cast %747 : vector<1x2x128xf32> to vector<2x128xf32>
    %749 = vector.extract_strided_slice %732 {offsets = [8, 0, 0], sizes = [1, 2, 128], strides = [1, 1, 1]} : vector<9x2x128xf32> to vector<1x2x128xf32>
    %750 = vector.shape_cast %749 : vector<1x2x128xf32> to vector<2x128xf32>
    %751 = arith.maximumf %734, %736 : vector<2x128xf32>
    %752 = arith.maximumf %738, %740 : vector<2x128xf32>
    %753 = arith.maximumf %742, %744 : vector<2x128xf32>
    %754 = arith.maximumf %746, %748 : vector<2x128xf32>
    %755 = arith.maximumf %751, %752 : vector<2x128xf32>
    %756 = arith.maximumf %753, %754 : vector<2x128xf32>
    %757 = arith.maximumf %755, %756 : vector<2x128xf32>
    %758 = arith.maximumf %757, %750 : vector<2x128xf32>
    %cst_97 = arith.constant 0.000000e+00 : f32
    %759 = vector.broadcast %cst_97 : f32 to vector<2x128xf32>
    %760 = arith.maximumf %758, %759 : vector<2x128xf32>
    %761 = arith.truncf %760 : vector<2x128xf32> to vector<2x128xbf16>
    %c0_98 = arith.constant 0 : index
    %c0_99 = arith.constant 0 : index
    %762 = vector.load %arg25[%c0_98, %c0_99] : memref<128x256xbf16, #tpu.memory_space<vmem>>, vector<128x256xbf16>
    %cst_100 = arith.constant dense<0.000000e+00> : vector<2x256xf32>
    %763 = tpu.matmul %761, %762, %cst_100 {dimension_numbers = #tpu.dot_dimension_numbers<[1], [0], [0], [1], [0, 0, 1, 1], [], []>} : vector<2x128xbf16>, vector<128x256xbf16>, vector<2x256xf32> -> vector<2x256xf32>
    %764 = arith.truncf %763 : vector<2x256xf32> to vector<2x256xbf16>
    %c0_101 = arith.constant 0 : index
    %c0_102 = arith.constant 0 : index
    %765 = vector.load %arg26[%c0_101, %c0_102] : memref<1x256xf32, #tpu.memory_space<vmem>>, vector<1x256xf32>
    %766 = arith.extf %764 : vector<2x256xbf16> to vector<2x256xf32>
    %767 = vector.broadcast %765 : vector<1x256xf32> to vector<2x256xf32>
    %768 = arith.mulf %766, %767 : vector<2x256xf32>
    %769 = arith.truncf %768 : vector<2x256xf32> to vector<2x256xbf16>
    %c0_103 = arith.constant 0 : index
    %c0_104 = arith.constant 0 : index
    %c0_105 = arith.constant 0 : index
    %770 = vector.load %arg28[%c0_103, %c0_104, %c0_105] : memref<2x1x256xf32, #tpu.memory_space<vmem>>, vector<2x1x256xf32>
    %c0_106 = arith.constant 0 : index
    %c0_107 = arith.constant 0 : index
    %771 = vector.load %arg27[%c0_106, %c0_107] : memref<256x256xbf16, #tpu.memory_space<vmem>>, vector<256x256xbf16>
    %cst_108 = arith.constant dense<0.000000e+00> : vector<2x256xf32>
    %772 = tpu.matmul %769, %771, %cst_108 {dimension_numbers = #tpu.dot_dimension_numbers<[1], [0], [0], [1], [0, 0, 1, 1], [], []>} : vector<2x256xbf16>, vector<256x256xbf16>, vector<2x256xf32> -> vector<2x256xf32>
    %773 = vector.extract_strided_slice %770 {offsets = [0, 0, 0], sizes = [1, 1, 256], strides = [1, 1, 1]} : vector<2x1x256xf32> to vector<1x1x256xf32>
    %774 = vector.shape_cast %773 : vector<1x1x256xf32> to vector<1x256xf32>
    %775 = vector.broadcast %774 : vector<1x256xf32> to vector<2x256xf32>
    %776 = arith.mulf %772, %775 : vector<2x256xf32>
    %777 = vector.extract_strided_slice %770 {offsets = [1, 0, 0], sizes = [1, 1, 256], strides = [1, 1, 1]} : vector<2x1x256xf32> to vector<1x1x256xf32>
    %778 = vector.shape_cast %777 : vector<1x1x256xf32> to vector<1x256xf32>
    %779 = vector.broadcast %778 : vector<1x256xf32> to vector<2x256xf32>
    %780 = arith.addf %776, %779 : vector<2x256xf32>
    %cst_109 = arith.constant 0.000000e+00 : f32
    %781 = vector.broadcast %cst_109 : f32 to vector<2x256xf32>
    %782 = arith.maximumf %780, %781 : vector<2x256xf32>
    %783 = arith.truncf %782 : vector<2x256xf32> to vector<2x256xbf16>
    %c0_110 = arith.constant 0 : index
    %c0_111 = arith.constant 0 : index
    %784 = vector.load %arg29[%c0_110, %c0_111] : memref<1x256xf32, #tpu.memory_space<vmem>>, vector<1x256xf32>
    %785 = arith.extf %783 : vector<2x256xbf16> to vector<2x256xf32>
    %786 = vector.broadcast %784 : vector<1x256xf32> to vector<2x256xf32>
    %787 = arith.mulf %785, %786 : vector<2x256xf32>
    %788 = arith.truncf %787 : vector<2x256xf32> to vector<2x256xbf16>
    %c0_112 = arith.constant 0 : index
    %c0_113 = arith.constant 0 : index
    %c0_114 = arith.constant 0 : index
    %789 = vector.load %arg31[%c0_112, %c0_113, %c0_114] : memref<2x1x256xf32, #tpu.memory_space<vmem>>, vector<2x1x256xf32>
    %c0_115 = arith.constant 0 : index
    %c0_116 = arith.constant 0 : index
    %790 = vector.load %arg30[%c0_115, %c0_116] : memref<256x256xbf16, #tpu.memory_space<vmem>>, vector<256x256xbf16>
    %cst_117 = arith.constant dense<0.000000e+00> : vector<2x256xf32>
    %791 = tpu.matmul %788, %790, %cst_117 {dimension_numbers = #tpu.dot_dimension_numbers<[1], [0], [0], [1], [0, 0, 1, 1], [], []>} : vector<2x256xbf16>, vector<256x256xbf16>, vector<2x256xf32> -> vector<2x256xf32>
    %792 = vector.extract_strided_slice %789 {offsets = [0, 0, 0], sizes = [1, 1, 256], strides = [1, 1, 1]} : vector<2x1x256xf32> to vector<1x1x256xf32>
    %793 = vector.shape_cast %792 : vector<1x1x256xf32> to vector<1x256xf32>
    %794 = vector.broadcast %793 : vector<1x256xf32> to vector<2x256xf32>
    %795 = arith.mulf %791, %794 : vector<2x256xf32>
    %796 = vector.extract_strided_slice %789 {offsets = [1, 0, 0], sizes = [1, 1, 256], strides = [1, 1, 1]} : vector<2x1x256xf32> to vector<1x1x256xf32>
    %797 = vector.shape_cast %796 : vector<1x1x256xf32> to vector<1x256xf32>
    %798 = vector.broadcast %797 : vector<1x256xf32> to vector<2x256xf32>
    %799 = arith.addf %795, %798 : vector<2x256xf32>
    %800 = arith.truncf %799 : vector<2x256xf32> to vector<2x256xbf16>
    %cst_118 = arith.constant 0.000000e+00 : bf16
    %801 = vector.broadcast %cst_118 : bf16 to vector<2x256xbf16>
    %802 = arith.maximumf %800, %801 : vector<2x256xbf16>
    %c0_119 = arith.constant 0 : index
    %c0_120 = arith.constant 0 : index
    %803 = vector.load %arg32[%c0_119, %c0_120] : memref<1x256xf32, #tpu.memory_space<vmem>>, vector<1x256xf32>
    %804 = arith.extf %802 : vector<2x256xbf16> to vector<2x256xf32>
    %805 = vector.broadcast %803 : vector<1x256xf32> to vector<2x256xf32>
    %806 = arith.mulf %804, %805 : vector<2x256xf32>
    %807 = arith.truncf %806 : vector<2x256xf32> to vector<2x256xbf16>
    %c0_121 = arith.constant 0 : index
    %c0_122 = arith.constant 0 : index
    %c0_123 = arith.constant 0 : index
    %808 = vector.load %arg34[%c0_121, %c0_122, %c0_123] : memref<2x1x256xf32, #tpu.memory_space<vmem>>, vector<2x1x256xf32>
    %c0_124 = arith.constant 0 : index
    %c0_125 = arith.constant 0 : index
    %809 = vector.load %arg33[%c0_124, %c0_125] : memref<256x256xbf16, #tpu.memory_space<vmem>>, vector<256x256xbf16>
    %cst_126 = arith.constant dense<0.000000e+00> : vector<2x256xf32>
    %810 = tpu.matmul %807, %809, %cst_126 {dimension_numbers = #tpu.dot_dimension_numbers<[1], [0], [0], [1], [0, 0, 1, 1], [], []>} : vector<2x256xbf16>, vector<256x256xbf16>, vector<2x256xf32> -> vector<2x256xf32>
    %811 = vector.extract_strided_slice %808 {offsets = [0, 0, 0], sizes = [1, 1, 256], strides = [1, 1, 1]} : vector<2x1x256xf32> to vector<1x1x256xf32>
    %812 = vector.shape_cast %811 : vector<1x1x256xf32> to vector<1x256xf32>
    %813 = vector.broadcast %812 : vector<1x256xf32> to vector<2x256xf32>
    %814 = arith.mulf %810, %813 : vector<2x256xf32>
    %815 = vector.extract_strided_slice %808 {offsets = [1, 0, 0], sizes = [1, 1, 256], strides = [1, 1, 1]} : vector<2x1x256xf32> to vector<1x1x256xf32>
    %816 = vector.shape_cast %815 : vector<1x1x256xf32> to vector<1x256xf32>
    %817 = vector.broadcast %816 : vector<1x256xf32> to vector<2x256xf32>
    %818 = arith.addf %814, %817 : vector<2x256xf32>
    %cst_127 = arith.constant 0.000000e+00 : f32
    %819 = vector.broadcast %cst_127 : f32 to vector<2x256xf32>
    %820 = arith.maximumf %818, %819 : vector<2x256xf32>
    %821 = arith.truncf %820 : vector<2x256xf32> to vector<2x256xbf16>
    %c0_128 = arith.constant 0 : index
    %c0_129 = arith.constant 0 : index
    %822 = vector.load %arg35[%c0_128, %c0_129] : memref<1x256xf32, #tpu.memory_space<vmem>>, vector<1x256xf32>
    %823 = arith.extf %821 : vector<2x256xbf16> to vector<2x256xf32>
    %824 = vector.broadcast %822 : vector<1x256xf32> to vector<2x256xf32>
    %825 = arith.mulf %823, %824 : vector<2x256xf32>
    %826 = arith.truncf %825 : vector<2x256xf32> to vector<2x256xbf16>
    %c0_130 = arith.constant 0 : index
    %c0_131 = arith.constant 0 : index
    %c0_132 = arith.constant 0 : index
    %827 = vector.load %arg37[%c0_130, %c0_131, %c0_132] : memref<2x1x256xf32, #tpu.memory_space<vmem>>, vector<2x1x256xf32>
    %c0_133 = arith.constant 0 : index
    %c0_134 = arith.constant 0 : index
    %828 = vector.load %arg36[%c0_133, %c0_134] : memref<256x256xbf16, #tpu.memory_space<vmem>>, vector<256x256xbf16>
    %cst_135 = arith.constant dense<0.000000e+00> : vector<2x256xf32>
    %829 = tpu.matmul %826, %828, %cst_135 {dimension_numbers = #tpu.dot_dimension_numbers<[1], [0], [0], [1], [0, 0, 1, 1], [], []>} : vector<2x256xbf16>, vector<256x256xbf16>, vector<2x256xf32> -> vector<2x256xf32>
    %830 = vector.extract_strided_slice %827 {offsets = [0, 0, 0], sizes = [1, 1, 256], strides = [1, 1, 1]} : vector<2x1x256xf32> to vector<1x1x256xf32>
    %831 = vector.shape_cast %830 : vector<1x1x256xf32> to vector<1x256xf32>
    %832 = vector.broadcast %831 : vector<1x256xf32> to vector<2x256xf32>
    %833 = arith.mulf %829, %832 : vector<2x256xf32>
    %834 = vector.extract_strided_slice %827 {offsets = [1, 0, 0], sizes = [1, 1, 256], strides = [1, 1, 1]} : vector<2x1x256xf32> to vector<1x1x256xf32>
    %835 = vector.shape_cast %834 : vector<1x1x256xf32> to vector<1x256xf32>
    %836 = vector.broadcast %835 : vector<1x256xf32> to vector<2x256xf32>
    %837 = arith.addf %833, %836 : vector<2x256xf32>
    %838 = arith.truncf %837 : vector<2x256xf32> to vector<2x256xbf16>
    %cst_136 = arith.constant 0.000000e+00 : bf16
    %839 = vector.broadcast %cst_136 : bf16 to vector<2x256xbf16>
    %840 = arith.maximumf %838, %839 : vector<2x256xbf16>
    %c0_137 = arith.constant 0 : index
    %c0_138 = arith.constant 0 : index
    %c0_139 = arith.constant 0 : index
    %841 = vector.load %arg39[%c0_137, %c0_138, %c0_139] : memref<2x1x512xf32, #tpu.memory_space<vmem>>, vector<2x1x512xf32>
    %c0_140 = arith.constant 0 : index
    %c0_141 = arith.constant 0 : index
    %842 = vector.load %arg38[%c0_140, %c0_141] : memref<256x512xbf16, #tpu.memory_space<vmem>>, vector<256x512xbf16>
    %cst_142 = arith.constant dense<0.000000e+00> : vector<2x512xf32>
    %843 = tpu.matmul %840, %842, %cst_142 {dimension_numbers = #tpu.dot_dimension_numbers<[1], [0], [0], [1], [0, 0, 1, 1], [], []>} : vector<2x256xbf16>, vector<256x512xbf16>, vector<2x512xf32> -> vector<2x512xf32>
    %844 = vector.extract_strided_slice %841 {offsets = [0, 0, 0], sizes = [1, 1, 512], strides = [1, 1, 1]} : vector<2x1x512xf32> to vector<1x1x512xf32>
    %845 = vector.shape_cast %844 : vector<1x1x512xf32> to vector<1x512xf32>
    %846 = vector.broadcast %845 : vector<1x512xf32> to vector<2x512xf32>
    %847 = arith.mulf %843, %846 : vector<2x512xf32>
    %848 = vector.extract_strided_slice %841 {offsets = [1, 0, 0], sizes = [1, 1, 512], strides = [1, 1, 1]} : vector<2x1x512xf32> to vector<1x1x512xf32>
    %849 = vector.shape_cast %848 : vector<1x1x512xf32> to vector<1x512xf32>
    %850 = vector.broadcast %849 : vector<1x512xf32> to vector<2x512xf32>
    %851 = arith.addf %847, %850 : vector<2x512xf32>
    %cst_143 = arith.constant 0.000000e+00 : f32
    %852 = vector.broadcast %cst_143 : f32 to vector<2x512xf32>
    %853 = arith.maximumf %851, %852 : vector<2x512xf32>
    %854 = arith.truncf %853 : vector<2x512xf32> to vector<2x512xbf16>
    %c0_144 = arith.constant 0 : index
    %c0_145 = arith.constant 0 : index
    %c0_146 = arith.constant 0 : index
    %855 = vector.load %arg41[%c0_144, %c0_145, %c0_146] : memref<2x1x10xf32, #tpu.memory_space<vmem>>, vector<2x1x10xf32>
    %c0_147 = arith.constant 0 : index
    %c0_148 = arith.constant 0 : index
    %856 = vector.load %arg40[%c0_147, %c0_148] : memref<512x10xbf16, #tpu.memory_space<vmem>>, vector<512x10xbf16>
    %cst_149 = arith.constant dense<0.000000e+00> : vector<2x10xf32>
    %857 = tpu.matmul %854, %856, %cst_149 {dimension_numbers = #tpu.dot_dimension_numbers<[1], [0], [0], [1], [0, 0, 1, 1], [], []>} : vector<2x512xbf16>, vector<512x10xbf16>, vector<2x10xf32> -> vector<2x10xf32>
    %858 = vector.extract_strided_slice %855 {offsets = [0, 0, 0], sizes = [1, 1, 10], strides = [1, 1, 1]} : vector<2x1x10xf32> to vector<1x1x10xf32>
    %859 = vector.shape_cast %858 : vector<1x1x10xf32> to vector<1x10xf32>
    %860 = vector.broadcast %859 : vector<1x10xf32> to vector<2x10xf32>
    %861 = arith.mulf %857, %860 : vector<2x10xf32>
    %862 = vector.extract_strided_slice %855 {offsets = [1, 0, 0], sizes = [1, 1, 10], strides = [1, 1, 1]} : vector<2x1x10xf32> to vector<1x1x10xf32>
    %863 = vector.shape_cast %862 : vector<1x1x10xf32> to vector<1x10xf32>
    %864 = vector.broadcast %863 : vector<1x10xf32> to vector<2x10xf32>
    %865 = arith.addf %861, %864 : vector<2x10xf32>
    %c0_150 = arith.constant 0 : index
    %c0_151 = arith.constant 0 : index
    %866 = vector.load %arg42[%c0_150, %c0_151] : memref<2x10xf32, #tpu.memory_space<vmem>>, vector<2x10xf32>
    tpu.vector_store %arg42[%c0_150, %c0_151], %865 {strides = array<i32>} : memref<2x10xf32, #tpu.memory_space<vmem>>, vector<2x10xf32>,
    return
  }
}

</mosaic_0001>

<bundles_post_ra>
// kernel: atcnet_forward.1
= control target key start
LH: loop header
LB: loop body
LE: loop exit
PB: predicated region body
PF: predicated region fallthrough
CT: control target
= control target key end

     0   :  { %s12865_s6 = smov 1   ;;  %s12866_s10 = smov 2   ;;  %s15530_s0 = inlined_call_operand.smem [shape: u32[43], index: -1, kind: input, shape index: {}] }
   0x1   :  { %s12940_s5 = sld [smem:[%s15530_s0]]   ;;  %s12867_s14 = smov 3  }
   0x2   :  { %s12945_s9 = sld [smem:[%s15530_s0 + %s12865_s6]]   ;;  %s12868_s18 = smov 4  }
   0x3   :  { %s12950_s13 = sld [smem:[%s15530_s0 + %s12866_s10]]   ;;  %s12869_s22 = smov 5  }
   0x4   :  { %s12955_s17 = sld [smem:[%s15530_s0 + %s12867_s14]]   ;;  %s12870_s26 = smov 6  }
   0x5   :  { %s12960_s21 = sld [smem:[%s15530_s0 + %s12868_s18]]   ;;  %s12871_s30 = smov 7  }
   0x6   :  { %s12965_s25 = sld [smem:[%s15530_s0 + %s12869_s22]]   ;;  %s12872_s4 = smov 8  }
   0x7   :  { %15577 = sst [smem:[#allocation36_spill]] %s12940_s5  ;;  %s12873_s10 = smov 9  }
   0x8   :  { %s12970_s29 = sld [smem:[%s15530_s0 + %s12870_s26]]   ;;  %s12874_s15 = smov 10  }
   0x9   :  { %s12975_s3 = sld [smem:[%s15530_s0 + %s12871_s30]]   ;;  %s12875_s20 = smov 11  }
   0xa   :  { %15578 = sst [smem:[#allocation37_spill]] %s12955_s17  ;;  %s12876_s26 = smov 12  }
   0xb   :  { %15579 = sst [smem:[#allocation38_spill]] %s12960_s21  ;;  %s12877_s1 = smov 13  }
   0xc   :  { %15580 = sst [smem:[#allocation39_spill]] %s12965_s25  ;;  %s12878_s7 = smov 14  }
   0xd   :  { %s12980_s8 = sld [smem:[%s15530_s0 + %s12872_s4]]   ;;  %s12880_s22 = smov 16  }
   0xe   :  { %s12985_s14 = sld [smem:[%s15530_s0 + %s12873_s10]]   ;;  %s12881_s28 = smov 17  }
   0xf   :  { %15581 = sst [smem:[#allocation40_spill]] %s12975_s3 }
  0x10   :  { %s12990_s19 = sld [smem:[%s15530_s0 + %s12874_s15]]   ;;  %s12879_s15 = smov 15  }
  0x11   :  { %s12995_s24 = sld [smem:[%s15530_s0 + %s12875_s20]]  }
  0x12   :  { %s13000_s30 = sld [smem:[%s15530_s0 + %s12876_s26]]  }
  0x13   :  { %s13005_s6 = sld [smem:[%s15530_s0 + %s12877_s1]]  }
  0x14   :  { %s13010_s12 = sld [smem:[%s15530_s0 + %s12878_s7]]   ;;  %s12882_s7 = smov 18  }
  0x15   :  { %s13015_s20 = sld [smem:[%s15530_s0 + %s12879_s15]]   ;;  %s12883_s15 = smov 19  }
  0x16   :  { %15582 = sst [smem:[#allocation41_spill]] %s12990_s19 }
  0x17   :  { %s13020_s27 = sld [smem:[%s15530_s0 + %s12880_s22]]   ;;  %s12884_s22 = smov 20  }
  0x18   :  { %s13025_s4 = sld [smem:[%s15530_s0 + %s12881_s28]]   ;;  %s12885_s28 = smov 21  }
  0x19   :  { %s13030_s19 = sld [smem:[%s15530_s0 + %s12882_s7]]   ;;  %s12886_s7 = smov 22  }
  0x1a   :  { %s13035_s3 = sld [smem:[%s15530_s0 + %s12883_s15]]   ;;  %s12887_s15 = smov 23  }
  0x1b   :  { %s13055_s25 = sld [smem:[%s15530_s0 + %s12887_s15]]   ;;  %s12891_s15 = smov 27  }
  0x1c   :  { %s13075_s5 = sld [smem:[%s15530_s0 + %s12891_s15]]   ;;  %s12895_s15 = smov 31  }
  0x1d   :  { %15583 = sst [smem:[#allocation42_spill]] %s13020_s27 }
  0x1e   :  { %15584 = sst [smem:[#allocation43_spill]] %s13025_s4 }
  0x1f   :  { %15585 = sst [smem:[#allocation44_spill]] %s13030_s19 }
  0x20   :  { %s13040_s27 = sld [smem:[%s15530_s0 + %s12884_s22]]   ;;  %s12888_s22 = smov 24  }
  0x21   :  { %s13045_s4 = sld [smem:[%s15530_s0 + %s12885_s28]]   ;;  %s12889_s28 = smov 25  }
  0x22   :  { %s13050_s19 = sld [smem:[%s15530_s0 + %s12886_s7]]   ;;  %s12890_s7 = smov 26  }
  0x23   :  { %s13060_s21 = sld [smem:[%s15530_s0 + %s12888_s22]]   ;;  %s12892_s22 = smov 28  }
  0x24   :  { %s13070_s17 = sld [smem:[%s15530_s0 + %s12890_s7]]   ;;  %s12894_s7 = smov 30  }
  0x25   :  { %15590 = sst [smem:[#allocation49_spill]] %s13075_s5 }
  0x26   :  { %s13095_s5 = sld [smem:[%s15530_s0 + %s12895_s15]]   ;;  %s12899_s15 = smov 35  }
  0x27   :  { %15586 = sst [smem:[#allocation45_spill]] %s13045_s4 }
  0x28   :  { %s13065_s4 = sld [smem:[%s15530_s0 + %s12889_s28]]   ;;  %s12893_s28 = smov 29  }
  0x29   :  { %15587 = sst [smem:[#allocation46_spill]] %s13060_s21 }
  0x2a   :  { %15589 = sst [smem:[#allocation48_spill]] %s13070_s17 }
  0x2b   :  { %s13080_s21 = sld [smem:[%s15530_s0 + %s12892_s22]]   ;;  %s12896_s22 = smov 32  }
  0x2c   :  { %s13090_s17 = sld [smem:[%s15530_s0 + %s12894_s7]]   ;;  %s12898_s7 = smov 34  }
  0x2d   :  { %15594 = sst [smem:[#allocation53_spill]] %s13095_s5 }
  0x2e   :  { %15588 = sst [smem:[#allocation47_spill]] %s13065_s4 }
  0x2f   :  { %s13085_s4 = sld [smem:[%s15530_s0 + %s12893_s28]]   ;;  %s12897_s28 = smov 33  }
  0x30   :  { %s13115_s5 = sld [smem:[%s15530_s0 + %s12899_s15]]   ;;  %s12903_s15 = smov 39  }
  0x31   :  { %15591 = sst [smem:[#allocation50_spill]] %s13080_s21 }
  0x32   :  { %15593 = sst [smem:[#allocation52_spill]] %s13090_s17 }
  0x33   :  { %s13100_s21 = sld [smem:[%s15530_s0 + %s12896_s22]]   ;;  %s12900_s22 = smov 36  }
  0x34   :  { %s13110_s17 = sld [smem:[%s15530_s0 + %s12898_s7]]   ;;  %s12902_s7 = smov 38  }
  0x35   :  { %15592 = sst [smem:[#allocation51_spill]] %s13085_s4 }
  0x36   :  { %s13105_s4 = sld [smem:[%s15530_s0 + %s12897_s28]]   ;;  %s12901_s28 = smov 37  }
  0x37   :  { %15598 = sst [smem:[#allocation57_spill]] %s13115_s5 }
  0x38   :  { %s13135_s5 = sld [smem:[%s15530_s0 + %s12903_s15]]  }
  0x39   :  { %15595 = sst [smem:[#allocation54_spill]] %s13100_s21 }
  0x3a   :  { %15597 = sst [smem:[#allocation56_spill]] %s13110_s17 }
  0x3b   :  { %s13120_s21 = sld [smem:[%s15530_s0 + %s12900_s22]]   ;;  %s12904_s22 = smov 40  }
  0x3c   :  { %15596 = sst [smem:[#allocation55_spill]] %s13105_s4 }
  0x3d   :  { %s13125_s4 = sld [smem:[%s15530_s0 + %s12901_s28]]   ;;  %s12905_s28 = smov 41  }
  0x3e   :  { %s13130_s17 = sld [smem:[%s15530_s0 + %s12902_s7]]   ;;  %s12906_s7 = smov 42  }
  0x41   :  { %15599 = sst [smem:[#allocation58_spill]] %s13120_s21 }
  0x42   :  { %s13140_s21 = sld [smem:[%s15530_s0 + %s12904_s22]]  }
  0x43   :  { %15600 = sst [smem:[#allocation59_spill]] %s13125_s4 }
  0x44   :  { %15601 = sst [smem:[#allocation60_spill]] %s13130_s17 }
  0x45   :  { %s13145_s4 = sld [smem:[%s15530_s0 + %s12905_s28]]  }
  0x46   :  { %s13150_s17 = sld [smem:[%s15530_s0 + %s12906_s7]]  }
  0x47   :  { %90 = vsyncpa [#allocation3], 0 }
  0x48   :  { %91 = vsyncpa [#allocation6], 0 }
  0x49   :  { %92 = vsyncpa [#allocation9], 0 }
  0x4a   :  { %93 = vsyncpa [#allocation12], 0 }
  0x4b   :  { %94 = vsyncpa [#allocation15], 0 }
  0x4c   :  { %95 = vsyncpa [#allocation18], 0 }
  0x4d   :  { %96 = vsyncpa [#allocation21], 0 }
  0x4e   :  { %97 = vsyncpa [#allocation24], 0 }
  0x4f   :  { %98 = vsyncpa [#allocation4], 0  ;;  %s12907_s15 = smov [#allocation5]   ;;  %s12495_s18 = scalar_lea.hbm %s12950_s13, 32 }
  0x50   :  { %s118_s16 = sshll.u32 %s12907_s15, 4  ;;  %p12496_p0 = scmp.ne.s32.totalorder %s12950_s13, %s12495_s18  ;;  %s119_s16 = int_to_ptr.vmem [resolvable:$true] %s118_s16 }
  0x51   :  { %p12499_p1 = scmp.lt.u32.totalorder %s12495_s18, %s12950_s13 }
  0x53   :  { %p12501_p2 = pnand %p12499_p1, %p12496_p0 }
  0x55   :  { %12504 = shalt.err (!%p12501_p2)
}
  0x56   :  { %s12505_s0 = scalar_lea.vmem %s119_s16, 32  ;;  %p12510_p4 = scmp.lt.s32.totalorder %s119_s16, %s119_s16 }
  0x57   :  { %p12506_p3 = scmp.ne.s32.totalorder %s119_s16, %s12505_s0  ;;  %p12511_p5 = scmp.lt.s32.totalorder %s12505_s0, %s12505_s0 }
  0x59   :  { %p12512_p6 = por %p12511_p5, %p12510_p4 }
  0x5b   :  { %p12513_p7 = pnand %p12512_p6, %p12506_p3 }
  0x5d   :  { %12516 = shalt.err (!%p12513_p7)
}
  0x5e   :  { %s12908_s22 = smov 16   ;;  %s12909_s23 = smov 1  }
  0x5f   :  { %124 = dma.hbm_to_vmem [thread:$0]  %s12950_s13, 32, %s119_s16, [#allocation6], %s12908_s22, %s12908_s22, %s12909_s23  }
  0x60   :  { %s12910_s26 = smov [#allocation8]   ;;  %s12911_s1 = smov [#allocation11]  }
  0x61   :  { %s150_s28 = sshll.u32 %s12910_s26, 4  ;;  %s176_s2 = sshll.u32 %s12911_s1, 4  ;;  %s151_s28 = int_to_ptr.vmem [resolvable:$true] %s150_s28  ;;  %s177_s2 = int_to_ptr.vmem [resolvable:$true] %s176_s2 }
  0x62   :  { %s12517_s7 = scalar_lea.hbm %s12980_s8, 512 }
  0x63   :  { %p12518_p8 = scmp.ne.s32.totalorder %s12980_s8, %s12517_s7  ;;  %p12521_p9 = scmp.lt.u32.totalorder %s12517_s7, %s12980_s8 }
  0x65   :  { %p12523_p10 = pnand %p12521_p9, %p12518_p8 }
  0x67   :  { %12526 = shalt.err (!%p12523_p10)
}
  0x68   :  { %s12527_s10 = scalar_lea.vmem %s151_s28, 512  ;;  %p12532_p12 = scmp.lt.s32.totalorder %s151_s28, %s151_s28 }
  0x69   :  { %p12528_p11 = scmp.ne.s32.totalorder %s151_s28, %s12527_s10  ;;  %p12533_p13 = scmp.lt.s32.totalorder %s12527_s10, %s12527_s10 }
  0x6b   :  { %p12534_p0 = por %p12533_p13, %p12532_p12 }
  0x6d   :  { %p12535_p1 = pnand %p12534_p0, %p12528_p11 }
  0x6f   :  { %12538 = shalt.err (!%p12535_p1)
}
  0x70   :  { %s12912_s11 = smov 64   ;;  %s12913_s13 = smov 4  }
  0x71   :  { %156 = dma.hbm_to_vmem [thread:$0]  %s12980_s8, 512, %s151_s28, [#allocation9], %s12912_s11, %s12912_s11, %s12913_s13  }
  0x72   :  { %s12539_s15 = scalar_lea.hbm %s12995_s24, 1024 }
  0x73   :  { %p12540_p2 = scmp.ne.s32.totalorder %s12995_s24, %s12539_s15  ;;  %p12543_p3 = scmp.lt.u32.totalorder %s12539_s15, %s12995_s24 }
  0x75   :  { %p12545_p4 = pnand %p12543_p3, %p12540_p2 }
  0x77   :  { %12548 = shalt.err (!%p12545_p4)
}
  0x78   :  { %s12549_s16 = scalar_lea.vmem %s177_s2, 1024  ;;  %p12554_p6 = scmp.lt.s32.totalorder %s177_s2, %s177_s2 }
  0x79   :  { %p12550_p5 = scmp.ne.s32.totalorder %s177_s2, %s12549_s16  ;;  %p12555_p7 = scmp.lt.s32.totalorder %s12549_s16, %s12549_s16 }
  0x7b   :  { %p12556_p8 = por %p12555_p7, %p12554_p6 }
  0x7d   :  { %p12557_p9 = pnand %p12556_p8, %p12550_p5 }
  0x7f   :  { %12560 = shalt.err (!%p12557_p9)
}
  0x80   :  { %182 = dma.hbm_to_vmem [thread:$0]  %s12995_s24, 1024, %s177_s2, [#allocation12], %s12912_s11, %s12912_s11, %s12913_s13  }
  0x81   :  { %s12914_s8 = smov [#allocation14]   ;;  %s12915_s0 = smov [#allocation17]  }
  0x82   :  { %s200_s18 = sshll.u32 %s12914_s8, 4  ;;  %s224_s26 = sshll.u32 %s12915_s0, 4  ;;  %s201_s18 = int_to_ptr.vmem [resolvable:$true] %s200_s18  ;;  %s225_s26 = int_to_ptr.vmem [resolvable:$true] %s224_s26 }
  0x83   :  { %s12561_s28 = scalar_lea.hbm %s13005_s6, 144 }
  0x84   :  { %p12562_p10 = scmp.ne.s32.totalorder %s13005_s6, %s12561_s28  ;;  %p12565_p11 = scmp.lt.u32.totalorder %s12561_s28, %s13005_s6 }
  0x86   :  { %p12567_p12 = pnand %p12565_p11, %p12562_p10 }
  0x88   :  { %12570 = shalt.err (!%p12567_p12)
}
  0x89   :  { %s12571_s1 = scalar_lea.vmem %s201_s18, 144  ;;  %s12575_s7 = scalar_lea.vmem %s201_s18, 160 }
  0x8a   :  { %p12572_p13 = scmp.ne.s32.totalorder %s201_s18, %s12571_s1  ;;  %p12576_p0 = scmp.lt.s32.totalorder %s201_s18, %s201_s18 }
  0x8b   :  { %p12577_p1 = scmp.lt.s32.totalorder %s12575_s7, %s12571_s1 }
  0x8d   :  { %p12578_p2 = por %p12577_p1, %p12576_p0 }
  0x8f   :  { %p12579_p3 = pnand %p12578_p2, %p12572_p13 }
  0x91   :  { %12582 = shalt.err (!%p12579_p3)
}
  0x92   :  { %206 = dma.hbm_to_vmem [thread:$0]  %s13005_s6, 144, %s201_s18, [#allocation15], %s12908_s22, %s12908_s22, %s12909_s23  }
  0x93   :  { %s12583_s24 = scalar_lea.hbm %s13015_s20, 32 }
  0x94   :  { %p12584_p4 = scmp.ne.s32.totalorder %s13015_s20, %s12583_s24  ;;  %p12587_p5 = scmp.lt.u32.totalorder %s12583_s24, %s13015_s20 }
  0x96   :  { %p12589_p6 = pnand %p12587_p5, %p12584_p4 }
  0x98   :  { %12592 = shalt.err (!%p12589_p6)
}
  0x99   :  { %s12593_s2 = scalar_lea.vmem %s225_s26, 32  ;;  %p12598_p8 = scmp.lt.s32.totalorder %s225_s26, %s225_s26 }
  0x9a   :  { %p12594_p7 = scmp.ne.s32.totalorder %s225_s26, %s12593_s2  ;;  %p12599_p9 = scmp.lt.s32.totalorder %s12593_s2, %s12593_s2 }
  0x9c   :  { %p12600_p10 = por %p12599_p9, %p12598_p8 }
  0x9e   :  { %p12601_p11 = pnand %p12600_p10, %p12594_p7 }
  0xa0   :  { %12604 = shalt.err (!%p12601_p11)
}
  0xa1   :  { %230 = dma.hbm_to_vmem [thread:$0]  %s13015_s20, 32, %s225_s26, [#allocation18], %s12908_s22, %s12908_s22, %s12909_s23  }
  0xa2   :  { %s12916_s6 = smov [#allocation20]   ;;  %s12917_s15 = smov [#allocation23]  }
  0xa3   :  { %s254_s10 = sshll.u32 %s12916_s6, 4  ;;  %s280_s16 = sshll.u32 %s12917_s15, 4  ;;  %s255_s10 = int_to_ptr.vmem [resolvable:$true] %s254_s10  ;;  %s281_s16 = int_to_ptr.vmem [resolvable:$true] %s280_s16 }
  0xa4   :  { %s12605_s8 = scalar_lea.hbm %s13040_s27, 32 }
  0xa5   :  { %p12606_p12 = scmp.ne.s32.totalorder %s13040_s27, %s12605_s8  ;;  %p12609_p13 = scmp.lt.u32.totalorder %s12605_s8, %s13040_s27 }
  0xa7   :  { %p12611_p0 = pnand %p12609_p13, %p12606_p12 }
  0xa9   :  { %12614 = shalt.err (!%p12611_p0)
}
  0xaa   :  { %s12615_s18 = scalar_lea.vmem %s255_s10, 32  ;;  %p12620_p2 = scmp.lt.s32.totalorder %s255_s10, %s255_s10 }
  0xab   :  { %p12616_p1 = scmp.ne.s32.totalorder %s255_s10, %s12615_s18  ;;  %p12621_p3 = scmp.lt.s32.totalorder %s12615_s18, %s12615_s18 }
  0xad   :  { %p12622_p4 = por %p12621_p3, %p12620_p2 }
  0xaf   :  { %p12623_p5 = pnand %p12622_p4, %p12616_p1 }
  0xb1   :  { %12626 = shalt.err (!%p12623_p5)
}
  0xb2   :  { %260 = dma.hbm_to_vmem [thread:$0]  %s13040_s27, 32, %s255_s10, [#allocation21], %s12908_s22, %s12908_s22, %s12909_s23  }
  0xb3   :  { %s12627_s20 = scalar_lea.hbm %s13055_s25, 32 }
  0xb4   :  { %p12628_p6 = scmp.ne.s32.totalorder %s13055_s25, %s12627_s20  ;;  %p12631_p7 = scmp.lt.u32.totalorder %s12627_s20, %s13055_s25 }
  0xb6   :  { %p12633_p8 = pnand %p12631_p7, %p12628_p6 }
  0xb8   :  { %12636 = shalt.err (!%p12633_p8)
}
  0xb9   :  { %s12637_s0 = scalar_lea.vmem %s281_s16, 32  ;;  %p12642_p10 = scmp.lt.s32.totalorder %s281_s16, %s281_s16 }
  0xba   :  { %p12638_p9 = scmp.ne.s32.totalorder %s281_s16, %s12637_s0  ;;  %p12643_p11 = scmp.lt.s32.totalorder %s12637_s0, %s12637_s0 }
  0xbc   :  { %p12644_p12 = por %p12643_p11, %p12642_p10 }
  0xbe   :  { %p12645_p13 = pnand %p12644_p12, %p12638_p9 }
  0xc0   :  { %12648 = shalt.err (!%p12645_p13)
}
  0xc1   :  { %286 = dma.hbm_to_vmem [thread:$0]  %s13055_s25, 32, %s281_s16, [#allocation24], %s12908_s22, %s12908_s22, %s12909_s23  }
  0xc2   :  { %s12918_s27 = smov [#allocation2]   ;;  %s12919_s28 = smov [#allocation7]  }
  0xc3   :  { %s106_s26 = sshll.u32 %s12918_s27, 4  ;;  %s136_s1 = sshll.u32 %s12919_s28, 4  ;;  %s107_s26 = int_to_ptr.vmem [resolvable:$true] %s106_s26  ;;  %s137_s1 = int_to_ptr.vmem [resolvable:$true] %s136_s1 }
  0xc4   :  { %s12649_s7 = scalar_lea.hbm %s12945_s9, 128 }
  0xc5   :  { %p12650_p0 = scmp.ne.s32.totalorder %s12945_s9, %s12649_s7  ;;  %p12653_p1 = scmp.lt.u32.totalorder %s12649_s7, %s12945_s9 }
  0xc7   :  { %p12655_p2 = pnand %p12653_p1, %p12650_p0 }
  0xc9   :  { %12658 = shalt.err (!%p12655_p2)
}
  0xca   :  { %s12659_s24 = scalar_lea.vmem %s107_s26, 128  ;;  %p12664_p4 = scmp.lt.s32.totalorder %s107_s26, %s107_s26 }
  0xcb   :  { %p12660_p3 = scmp.ne.s32.totalorder %s107_s26, %s12659_s24  ;;  %p12665_p5 = scmp.lt.s32.totalorder %s12659_s24, %s12659_s24 }
  0xcd   :  { %p12666_p6 = por %p12665_p5, %p12664_p4 }
  0xcf   :  { %p12667_p7 = pnand %p12666_p6, %p12660_p3 }
  0xd1   :  { %12670 = shalt.err (!%p12667_p7)
}
  0xd2   :  { %112 = dma.hbm_to_vmem [thread:$0]  %s12945_s9, 128, %s107_s26, [#allocation3], %s12912_s11, %s12912_s11, %s12913_s13  }
  0xd3   :  { %s12671_s25 = scalar_lea.hbm %s12970_s29, 32 }
  0xd4   :  { %p12672_p8 = scmp.ne.s32.totalorder %s12970_s29, %s12671_s25  ;;  %p12675_p9 = scmp.lt.u32.totalorder %s12671_s25, %s12970_s29 }
  0xd6   :  { %p12677_p10 = pnand %p12675_p9, %p12672_p8 }
  0xd8   :  { %12680 = shalt.err (!%p12677_p10)
}
  0xd9   :  { %s12681_s2 = scalar_lea.vmem %s137_s1, 32  ;;  %p12686_p12 = scmp.lt.s32.totalorder %s137_s1, %s137_s1 }
  0xda   :  { %p12682_p11 = scmp.ne.s32.totalorder %s137_s1, %s12681_s2  ;;  %p12687_p13 = scmp.lt.s32.totalorder %s12681_s2, %s12681_s2 }
  0xdc   :  { %p12688_p0 = por %p12687_p13, %p12686_p12 }
  0xde   :  { %p12689_p1 = pnand %p12688_p0, %p12682_p11 }
  0xe0   :  { %12692 = shalt.err (!%p12689_p1)
}
  0xe1   :  { %142 = dma.hbm_to_vmem [thread:$0]  %s12970_s29, 32, %s137_s1, [#allocation6], %s12908_s22, %s12908_s22, %s12909_s23  }
  0xe2   :  { %s12920_s9 = smov [#allocation10]   ;;  %s12921_s10 = smov [#allocation13]  }
  0xe3   :  { %s162_s6 = sshll.u32 %s12920_s9, 4  ;;  %s188_s15 = sshll.u32 %s12921_s10, 4  ;;  %s163_s6 = int_to_ptr.vmem [resolvable:$true] %s162_s6  ;;  %s189_s15 = int_to_ptr.vmem [resolvable:$true] %s188_s15 }
  0xe4   :  { %s12693_s16 = scalar_lea.hbm %s12985_s14, 144 }
  0xe5   :  { %p12694_p2 = scmp.ne.s32.totalorder %s12985_s14, %s12693_s16  ;;  %p12697_p3 = scmp.lt.u32.totalorder %s12693_s16, %s12985_s14 }
  0xe7   :  { %p12699_p4 = pnand %p12697_p3, %p12694_p2 }
  0xe9   :  { %12702 = shalt.err (!%p12699_p4)
}
  0xea   :  { %s12703_s8 = scalar_lea.vmem %s163_s6, 144  ;;  %s12707_s18 = scalar_lea.vmem %s163_s6, 160 }
  0xeb   :  { %p12704_p5 = scmp.ne.s32.totalorder %s163_s6, %s12703_s8  ;;  %p12708_p6 = scmp.lt.s32.totalorder %s163_s6, %s163_s6 }
  0xec   :  { %p12709_p7 = scmp.lt.s32.totalorder %s12707_s18, %s12703_s8 }
  0xee   :  { %p12710_p8 = por %p12709_p7, %p12708_p6 }
  0xf0   :  { %p12711_p9 = pnand %p12710_p8, %p12704_p5 }
  0xf2   :  { %12714 = shalt.err (!%p12711_p9)
}
  0xf3   :  { %168 = dma.hbm_to_vmem [thread:$0]  %s12985_s14, 144, %s163_s6, [#allocation9], %s12908_s22, %s12908_s22, %s12909_s23  }
  0xf4   :  { %s12715_s29 = scalar_lea.hbm %s13000_s30, 32 }
  0xf5   :  { %p12716_p10 = scmp.ne.s32.totalorder %s13000_s30, %s12715_s29  ;;  %p12719_p11 = scmp.lt.u32.totalorder %s12715_s29, %s13000_s30 }
  0xf7   :  { %p12721_p12 = pnand %p12719_p11, %p12716_p10 }
  0xf9   :  { %12724 = shalt.err (!%p12721_p12)
}
  0xfa   :  { %s12725_s20 = scalar_lea.vmem %s189_s15, 32  ;;  %p12730_p0 = scmp.lt.s32.totalorder %s189_s15, %s189_s15 }
  0xfb   :  { %p12726_p13 = scmp.ne.s32.totalorder %s189_s15, %s12725_s20  ;;  %p12731_p1 = scmp.lt.s32.totalorder %s12725_s20, %s12725_s20 }
  0xfd   :  { %p12732_p2 = por %p12731_p1, %p12730_p0 }
  0xff   :  { %p12733_p3 = pnand %p12732_p2, %p12726_p13 }
 0x101   :  { %12736 = shalt.err (!%p12733_p3)
}
 0x102   :  { %194 = dma.hbm_to_vmem [thread:$0]  %s13000_s30, 32, %s189_s15, [#allocation12], %s12908_s22, %s12908_s22, %s12909_s23  }
 0x103   :  { %s12922_s14 = smov [#allocation16]   ;;  %s12923_s27 = smov [#allocation19]  }
 0x104   :  { %s212_s0 = sshll.u32 %s12922_s14, 4  ;;  %s242_s26 = sshll.u32 %s12923_s27, 4  ;;  %s213_s0 = int_to_ptr.vmem [resolvable:$true] %s212_s0  ;;  %s243_s26 = int_to_ptr.vmem [resolvable:$true] %s242_s26 }
 0x105   :  { %s12737_s28 = scalar_lea.hbm %s13010_s12, 1024 }
 0x106   :  { %p12738_p4 = scmp.ne.s32.totalorder %s13010_s12, %s12737_s28  ;;  %p12741_p5 = scmp.lt.u32.totalorder %s12737_s28, %s13010_s12 }
 0x108   :  { %p12743_p6 = pnand %p12741_p5, %p12738_p4 }
 0x10a   :  { %12746 = shalt.err (!%p12743_p6)
}
 0x10b   :  { %s12747_s1 = scalar_lea.vmem %s213_s0, 1024  ;;  %p12752_p8 = scmp.lt.s32.totalorder %s213_s0, %s213_s0 }
 0x10c   :  { %p12748_p7 = scmp.ne.s32.totalorder %s213_s0, %s12747_s1  ;;  %p12753_p9 = scmp.lt.s32.totalorder %s12747_s1, %s12747_s1 }
 0x10e   :  { %p12754_p10 = por %p12753_p9, %p12752_p8 }
 0x110   :  { %p12755_p11 = pnand %p12754_p10, %p12748_p7 }
 0x112   :  { %12758 = shalt.err (!%p12755_p11)
}
 0x113   :  { %218 = dma.hbm_to_vmem [thread:$0]  %s13010_s12, 1024, %s213_s0, [#allocation15], %s12912_s11, %s12912_s11, %s12913_s13  }
 0x114   :  { %s12759_s30 = scalar_lea.hbm %s13035_s3, 1024 }
 0x115   :  { %p12760_p12 = scmp.ne.s32.totalorder %s13035_s3, %s12759_s30  ;;  %p12763_p13 = scmp.lt.u32.totalorder %s12759_s30, %s13035_s3 }
 0x117   :  { %p12765_p0 = pnand %p12763_p13, %p12760_p12 }
 0x119   :  { %12768 = shalt.err (!%p12765_p0)
}
 0x11a   :  { %s12769_s22 = scalar_lea.vmem %s243_s26, 1024  ;;  %p12774_p2 = scmp.lt.s32.totalorder %s243_s26, %s243_s26 }
 0x11b   :  { %p12770_p1 = scmp.ne.s32.totalorder %s243_s26, %s12769_s22  ;;  %p12775_p3 = scmp.lt.s32.totalorder %s12769_s22, %s12769_s22 }
 0x11d   :  { %p12776_p4 = por %p12775_p3, %p12774_p2 }
 0x11f   :  { %p12777_p5 = pnand %p12776_p4, %p12770_p1 }
 0x121   :  { %12780 = shalt.err (!%p12777_p5)
}
 0x122   :  { %248 = dma.hbm_to_vmem [thread:$0]  %s13035_s3, 1024, %s243_s26, [#allocation18], %s12912_s11, %s12912_s11, %s12913_s13  }
 0x123   :  { %s12924_s12 = smov [#allocation22]   ;;  %s12925_s7 = smov [#allocation25]  }
 0x124   :  { %s268_s23 = sshll.u32 %s12924_s12, 4  ;;  %s303_s24 = sshll.u32 %s12925_s7, 4  ;;  %s269_s23 = int_to_ptr.vmem [resolvable:$true] %s268_s23  ;;  %s304_s24 = int_to_ptr.vmem [resolvable:$true] %s303_s24 }
 0x125   :  { %s12781_s25 = scalar_lea.hbm %s13050_s19, 1024 }
 0x126   :  { %p12782_p6 = scmp.ne.s32.totalorder %s13050_s19, %s12781_s25  ;;  %p12785_p7 = scmp.lt.u32.totalorder %s12781_s25, %s13050_s19 }
 0x128   :  { %p12787_p8 = pnand %p12785_p7, %p12782_p6 }
 0x12a   :  { %12790 = shalt.err (!%p12787_p8)
}
 0x12b   :  { %s12791_s2 = scalar_lea.vmem %s269_s23, 1024  ;;  %p12796_p10 = scmp.lt.s32.totalorder %s269_s23, %s269_s23 }
 0x12c   :  { %p12792_p9 = scmp.ne.s32.totalorder %s269_s23, %s12791_s2  ;;  %p12797_p11 = scmp.lt.s32.totalorder %s12791_s2, %s12791_s2 }
 0x12e   :  { %p12798_p12 = por %p12797_p11, %p12796_p10 }
 0x130   :  { %p12799_p13 = pnand %p12798_p12, %p12792_p9 }
 0x132   :  { %12802 = shalt.err (!%p12799_p13)
}
 0x133   :  { %s15602_s3 = sld [smem:[#allocation51_spill]] }
 0x134   :  { %274 = dma.hbm_to_vmem [thread:$0]  %s13050_s19, 1024, %s269_s23, [#allocation21], %s12912_s11, %s12912_s11, %s12913_s13  }
 0x139   :  { %s12803_s9 = scalar_lea.hbm %s15602_s3, 32 }
 0x13a   :  { %p12804_p0 = scmp.ne.s32.totalorder %s15602_s3, %s12803_s9  ;;  %p12807_p1 = scmp.lt.u32.totalorder %s12803_s9, %s15602_s3 }
 0x13c   :  { %p12809_p2 = pnand %p12807_p1, %p12804_p0 }
 0x13e   :  { %12812 = shalt.err (!%p12809_p2)
}
 0x13f   :  { %s12813_s6 = scalar_lea.vmem %s304_s24, 32  ;;  %p12818_p4 = scmp.lt.s32.totalorder %s304_s24, %s304_s24 }
 0x140   :  { %p12814_p3 = scmp.ne.s32.totalorder %s304_s24, %s12813_s6  ;;  %p12819_p5 = scmp.lt.s32.totalorder %s12813_s6, %s12813_s6 }
 0x142   :  { %p12820_p6 = por %p12819_p5, %p12818_p4 }
 0x144   :  { %p12821_p7 = pnand %p12820_p6, %p12814_p3 }
 0x146   :  { %12824 = shalt.err (!%p12821_p7)
}
 0x147   :  { %306 = dma.hbm_to_vmem [thread:$0]  %s15602_s3, 32, %s304_s24, [#allocation24]  }
 0x148   :  { %12847 = dma.done.wait [#allocation3], 128  }
 0x149   :  { %12848 = vsyncadd [#allocation3], 4294967168 }
 0x14a   :  { %12849 = dma.done.wait [#allocation6], 64  }
 0x14b   :  { %12850 = vsyncadd [#allocation6], 4294967232 }
 0x14c   :  { %12851 = dma.done.wait [#allocation9], 656  }
 0x14d   :  { %12852 = vsyncadd [#allocation9], 4294966640 }
 0x14e   :  { %12853 = dma.done.wait [#allocation12], 1056  }
 0x14f   :  { %12854 = vsyncadd [#allocation12], 4294966240 }
 0x150   :  { %12855 = dma.done.wait [#allocation15], 1168  }
 0x151   :  { %12856 = vsyncadd [#allocation15], 4294966128 }
 0x152   :  { %12857 = dma.done.wait [#allocation18], 1056  }
 0x153   :  { %12858 = vsyncadd [#allocation18], 4294966240 }
 0x154   :  { %12859 = dma.done.wait [#allocation21], 1056  }
 0x155   :  { %12860 = vsyncadd [#allocation21], 4294966240 }
 0x156   :  { %12861 = dma.done.wait [#allocation24], 64  }
 0x157   :  { %12862 = vsyncadd [#allocation24], 4294967232  ;;  %s15603_s19 = sld [smem:[#allocation36_spill]]  ;;  %vm707_vm0 = vcmask 1043456   ;;  %vm708_vm1 = vcmask 1044480   ;;  %v12926_v0 = vmov 65535  }
 0x158   :  { %v709_v1 = vsel %vm707_vm0, 4294967295, %v12926_v0  ;;  %vm610_vm2 = vcmask 72704   ;;  %v11874_v3 = vld [vmem:[#allocation2] sm:$0x1f]   ;;  %s15604_s11 = sld [smem:[#allocation37_spill]]  ;;  %v15553_v32 = vmov 0  }
 0x159   :  { %v710_v2 = vsel %vm708_vm1, %v709_v1, 0  ;;  %1671 = vmatprep.subr.bf16.mxu1 %v15553_v32  ;;  %v13322_v39 = vld [vmem:[#allocation5] ss:$0 sm:$0xff]  ;;  %v13324_v40 = vld [vmem:[#allocation5 + $0x1] ss:$0 sm:$0xff]  ;;  %s15605_s13 = sld [smem:[#allocation38_spill]] }
 0x15a   :  { %v712_v5 = vand.u32 %v11874_v3, %v710_v2  ;;  %vm2775_vm3 = vcmask 523264   ;;  %s15613_s10 = sld [smem:[#allocation39_spill]]  ;;  %vm12929_vm4 = vmmov 0   ;;  %s15703_s15 = sld [smem:[#allocation40_spill]]  ;;  %vm5530_vm5 = vcmask 130048  }
 0x15b   :  { %s15704_s16 = sld [smem:[#allocation41_spill]]  ;;  %s15705_s8 = sld [smem:[#allocation42_spill]]  ;;  %vm6739_vm6 = vcmask 64512   ;;  %vm9581_vm7 = vcmask 74752  }
 0x15c   :  { %10826 = vmatprep.subr.bf16.mxu0 %v712_v5  ;;  %s15706_s18 = sld [smem:[#allocation44_spill]]  ;;  %s15707_s29 = sld [smem:[#allocation43_spill]] }
 0x15d   :  { %v11875_v4 = vld [vmem:[%s15603_s19] sm:$0xff]   ;;  %v11876_v6 = vld [vmem:[%s15603_s19 + $0x8] sm:$0xff]   ;;  %10827 = vmatpush3.bf16.msra.mxu0 %v712_v5  ;;  %v11877_v7 = vld [vmem:[%s15603_s19 + $0x10] sm:$0xff]   ;;  %s15709_s20 = sld [smem:[#allocation45_spill]]  ;;  %s15710_s14 = sld [smem:[#allocation46_spill]] }
 0x15e   :  { %10828 = vmatprep.mubr.msk.bf16.mxu0 %vm610_vm2, %v11875_v4  ;;  %v11878_v8 = vld [vmem:[%s15603_s19 + $0x18] sm:$0xff]   ;;  %v11879_v9 = vld [vmem:[%s15603_s19 + $0x20] sm:$0xff]   ;;  %v11880_v10 = vld [vmem:[%s15603_s19 + $0x28] sm:$0xff]   ;;  %2056 = vmatprep.subr.bf16.mxu0 %v15553_v32  ;;  %s15711_s0 = sld [smem:[#allocation47_spill]]  ;;  %s15712_s27 = sld [smem:[#allocation49_spill]] }
 0x15f   :  { %v11881_v11 = vld [vmem:[%s15603_s19 + $0x30] sm:$0xff]   ;;  %v11882_v12 = vld [vmem:[%s15603_s19 + $0x38] sm:$0xff]   ;;  %v11883_v13 = vld [vmem:[%s15603_s19 + $0x40] sm:$0xff]   ;;  %s15713_s26 = sld [smem:[#allocation52_spill]]  ;;  %s15714_s28 = sld [smem:[#allocation48_spill]] }
 0x160   :  { %10829 = vmatmul.mubr.msk.bf16.vlgmr.msra.gmra.mrb[0].mxu0 %vm610_vm2, %v11876_v6  ;;  %v11884_v14 = vld [vmem:[%s15603_s19 + $0x48] sm:$0xff]   ;;  %v11885_v15 = vld [vmem:[%s15603_s19 + $0x50] sm:$0xff]   ;;  %v11886_v16 = vld [vmem:[%s15603_s19 + $0x58] sm:$0xff]   ;;  %s15715_s1 = sld [smem:[#allocation55_spill]]  ;;  %s15716_s30 = sld [smem:[#allocation50_spill]] }
 0x161   :  { %10832 = vmatprep.mubr.msk.bf16.mxu0 %vm610_vm2, %v11877_v7  ;;  %v11887_v17 = vld [vmem:[%s15603_s19 + $0x60] sm:$0xff]   ;;  %v11888_v18 = vld [vmem:[%s15603_s19 + $0x68] sm:$0xff]   ;;  %v11889_v19 = vld [vmem:[%s15603_s19 + $0x70] sm:$0xff]   ;;  %s15717_s22 = sld [smem:[#allocation58_spill]]  ;;  %s15718_s12 = sld [smem:[#allocation53_spill]] }
 0x162   :  { %v11890_v20 = vld [vmem:[%s15603_s19 + $0x78] sm:$0xff]   ;;  %v11891_v21 = vld [vmem:[%s15603_s19 + $0x80] sm:$0xff]   ;;  %v11892_v22 = vld [vmem:[%s15603_s19 + $0x88] sm:$0xff]   ;;  %s15719_s23 = sld [smem:[#allocation54_spill]]  ;;  %s15720_s7 = sld [smem:[#allocation60_spill]] }
 0x163   :  { %v11893_v23 = vld [vmem:[%s15603_s19 + $0x90] sm:$0xff]   ;;  %v11894_v24 = vld [vmem:[%s15603_s19 + $0x98] sm:$0xff]   ;;  %v11895_v25 = vld [vmem:[%s15603_s19 + $0xa0] sm:$0xff]   ;;  %s15721_s24 = sld [smem:[#allocation56_spill]]  ;;  %s15722_s25 = sld [smem:[#allocation57_spill]] }
 0x164   :  { %v11896_v26 = vld [vmem:[%s15603_s19 + $0xa8] sm:$0xff]   ;;  %v11897_v27 = vld [vmem:[%s15603_s19 + $0xb0] sm:$0xff]   ;;  %v11898_v28 = vld [vmem:[%s15603_s19 + $0xb8] sm:$0xff]   ;;  %s15723_s2 = sld [smem:[#allocation59_spill]] }
 0x165   :  { %v11899_v29 = vld [vmem:[%s15603_s19 + $0xc0] sm:$0xff]   ;;  %v11900_v30 = vld [vmem:[%s15603_s19 + $0xc8] sm:$0xff]   ;;  %v11901_v31 = vld [vmem:[%s15603_s19 + $0xd0] sm:$0xff]  }
 0x166   :  { %v11902_v33 = vld [vmem:[%s15603_s19 + $0xd8] sm:$0xff]   ;;  %v11903_v34 = vld [vmem:[%s15603_s19 + $0xe0] sm:$0xff]   ;;  %v11904_v35 = vld [vmem:[%s15603_s19 + $0xe8] sm:$0xff]  }
 0x167   :  { %v11905_v36 = vld [vmem:[%s15603_s19 + $0xf0] sm:$0xff]   ;;  %v11906_v37 = vld [vmem:[%s15603_s19 + $0xf8] sm:$0xff]   ;;  %v11909_v38 = vld [vmem:[%s15604_s11 + $0x4] ss:$8 sps:$4 sm:$0xff]  }
 0x168   :  { %10833 = vmatmul.mubr.msk.bf16.gmra.mrb[4].mxu0 %vm610_vm2, %v11878_v8  ;;  %1703 = vmatprep.mubr.bf16.mxu1 %v11909_v38 }
 0x169   :  { %10836 = vmatprep.mubr.msk.bf16.mxu0 %vm610_vm2, %v11879_v9 }
 0x170   :  { %10837 = vmatmul.mubr.msk.bf16.gmra.mrb[8].mxu0 %vm610_vm2, %v11880_v10 }
 0x171   :  { %10840 = vmatprep.mubr.msk.bf16.mxu0 %vm610_vm2, %v11881_v11 }
 0x178   :  { %10841 = vmatmul.mubr.msk.bf16.gmra.mrb[12].mxu0 %vm610_vm2, %v11882_v12 }
 0x179   :  { %10844 = vmatprep.mubr.msk.bf16.mxu0 %vm610_vm2, %v11883_v13 }
 0x180   :  { %10845 = vmatmul.mubr.msk.bf16.gmra.mrb[16].mxu0 %vm610_vm2, %v11884_v14 }
 0x181   :  { %10848 = vmatprep.mubr.msk.bf16.mxu0 %vm610_vm2, %v11885_v15 }
 0x188   :  { %10849 = vmatmul.mubr.msk.bf16.gmra.mrb[20].mxu0 %vm610_vm2, %v11886_v16 }
 0x189   :  { %10852 = vmatprep.mubr.msk.bf16.mxu0 %vm610_vm2, %v11887_v17 }
 0x190   :  { %10853 = vmatmul.mubr.msk.bf16.gmra.mrb[24].mxu0 %vm610_vm2, %v11888_v18 }
 0x191   :  { %10856 = vmatprep.mubr.msk.bf16.mxu0 %vm610_vm2, %v11889_v19 }
 0x198   :  { %10857 = vmatmul.mubr.msk.bf16.gmra.mrb[28].mxu0 %vm610_vm2, %v11890_v20 }
 0x199   :  { %10860 = vmatprep.mubr.msk.bf16.mxu0 %vm610_vm2, %v11891_v21 }
 0x1a0   :  { %10861 = vmatmul.mubr.msk.bf16.gmra.mrb[32].mxu0 %vm610_vm2, %v11892_v22 }
 0x1a1   :  { %10864 = vmatprep.mubr.msk.bf16.mxu0 %vm610_vm2, %v11893_v23 }
 0x1a8   :  { %10865 = vmatmul.mubr.msk.bf16.gmra.mrb[36].mxu0 %vm610_vm2, %v11894_v24 }
 0x1a9   :  { %10868 = vmatprep.mubr.msk.bf16.mxu0 %vm610_vm2, %v11895_v25 }
 0x1b0   :  { %10869 = vmatmul.mubr.msk.bf16.gmra.mrb[40].mxu0 %vm610_vm2, %v11896_v26 }
 0x1b1   :  { %10872 = vmatprep.mubr.msk.bf16.mxu0 %vm610_vm2, %v11897_v27 }
 0x1b8   :  { %10873 = vmatmul.mubr.msk.bf16.gmra.mrb[44].mxu0 %vm610_vm2, %v11898_v28 }
 0x1b9   :  { %10876 = vmatprep.mubr.msk.bf16.mxu0 %vm610_vm2, %v11899_v29 }
 0x1c0   :  { %10877 = vmatmul.mubr.msk.bf16.gmra.mrb[48].mxu0 %vm610_vm2, %v11900_v30 }
 0x1c1   :  { %10880 = vmatprep.mubr.msk.bf16.mxu0 %vm610_vm2, %v11901_v31 }
 0x1c8   :  { %10881 = vmatmul.mubr.msk.bf16.gmra.mrb[52].mxu0 %vm610_vm2, %v11902_v33 }
 0x1c9   :  { %10884 = vmatprep.mubr.msk.bf16.mxu0 %vm610_vm2, %v11903_v34 }
 0x1d0   :  { %10885 = vmatmul.mubr.msk.bf16.gmra.mrb[56].mxu0 %vm610_vm2, %v11904_v35 }
 0x1d1   :  { %10888 = vmatprep.mubr.msk.bf16.mxu0 %vm610_vm2, %v11905_v36 }
 0x1d8   :  { %10889 = vmatmul.mubr.msk.bf16.gmra.mrb[60].mxu0 %vm610_vm2, %v11906_v37 }
 0x1d9   :  { %2088 = vmatprep.mubr.bf16.mxu0 %v11909_v38 }
 0x233   :  { %v10830_v41 = vpop.f32.mrb[0].mxu0 }
 0x234   :  { %v1011_v42 = vmul.f32 %v10830_v41, %v13322_v39  ;;  %v748_v43 = vpop.f32.mrb[1].mxu0 }
 0x235   :  { %v1009_v44 = vmul.f32 %v13322_v39, %v748_v43  ;;  %v10831_v45 = vpop.f32.mrb[2].mxu0 }
 0x236   :  { %v1081_v46 = vadd.f32 %v13324_v40, %v1011_v42  ;;  %v1012_v47 = vmul.f32 %v10831_v45, %v13322_v39  ;;  %v751_v48 = vpop.f32.mrb[3].mxu0 }
 0x237   :  { %v1010_v49 = vmul.f32 %v13322_v39, %v751_v48  ;;  %v1079_v50 = vadd.f32 %v13324_v40, %v1009_v44 }
 0x238   :  { %v1082_v51 = vadd.f32 %v13324_v40, %v1012_v47  ;;  %v1145_v53 = vmax.f32 %v1081_v46, 0.0 }
 0x239   :  { %v1080_v52 = vadd.f32 %v13324_v40, %v1010_v49  ;;  %v1143_v56 = vmax.f32 %v1079_v50, 0.0 }
 0x23a   :  { %v1146_v54 = vmax.f32 %v1082_v51, 0.0 }
 0x23b   :  { %v10834_v55 = vpop.f32.mrb[4].mxu0  ;;  %v1144_v57 = vmax.f32 %v1080_v52, 0.0 }
 0x23c   :  { %v1015_v58 = vmul.f32 %v10834_v55, %v13322_v39  ;;  %v764_v59 = vpop.f32.mrb[5].mxu0  ;;  %v1208_v60 = vpack.c.bf16 %v1146_v54, %v1145_v53 }
 0x23d   :  { %v1013_v61 = vmul.f32 %v13322_v39, %v764_v59  ;;  %v10835_v62 = vpop.f32.mrb[6].mxu0  ;;  %v1207_v63 = vpack.c.bf16 %v1144_v57, %v1143_v56 }
 0x23e   :  { %v1085_v0 = vadd.f32 %v13324_v40, %v1015_v58  ;;  %v1016_v1 = vmul.f32 %v10835_v62, %v13322_v39  ;;  %v767_v2 = vpop.f32.mrb[7].mxu0 }
 0x23f   :  { %v1083_v3 = vadd.f32 %v13324_v40, %v1013_v61  ;;  %v1014_v4 = vmul.f32 %v13322_v39, %v767_v2  ;;  %1672 = vmatpush1.bf16.msra.mxu1 %v1207_v63 }
 0x240   :  { %v1086_v5 = vadd.f32 %v13324_v40, %v1016_v1  ;;  %1673 = vmatprep.subr.bf16.mxu1 %v15553_v32  ;;  %v1149_v7 = vmax.f32 %v1085_v0, 0.0 }
 0x241   :  { %v1084_v6 = vadd.f32 %v13324_v40, %v1014_v4  ;;  %v1147_v8 = vmax.f32 %v1083_v3, 0.0 }
 0x242   :  { %v1150_v9 = vmax.f32 %v1086_v5, 0.0 }
 0x243   :  { %v10838_v10 = vpop.f32.mrb[8].mxu0  ;;  %1674 = vmatpush1.bf16.msra.mxu1 %v1208_v60  ;;  %v1148_v11 = vmax.f32 %v1084_v6, 0.0 }
 0x244   :  { %v1019_v12 = vmul.f32 %v10838_v10, %v13322_v39  ;;  %v780_v13 = vpop.f32.mrb[9].mxu0  ;;  %1675 = vmatprep.subr.bf16.mxu1 %v15553_v32  ;;  %v1210_v14 = vpack.c.bf16 %v1150_v9, %v1149_v7 }
 0x245   :  { %v1017_v15 = vmul.f32 %v13322_v39, %v780_v13  ;;  %v10839_v16 = vpop.f32.mrb[10].mxu0  ;;  %v1209_v17 = vpack.c.bf16 %v1148_v11, %v1147_v8 }
 0x246   :  { %v1089_v18 = vadd.f32 %v13324_v40, %v1019_v12  ;;  %v1020_v19 = vmul.f32 %v10839_v16, %v13322_v39  ;;  %v783_v20 = vpop.f32.mrb[11].mxu0 }
 0x247   :  { %v1087_v21 = vadd.f32 %v13324_v40, %v1017_v15  ;;  %v1018_v22 = vmul.f32 %v13322_v39, %v783_v20  ;;  %1676 = vmatpush1.bf16.msra.mxu1 %v1209_v17 }
 0x248   :  { %v1090_v23 = vadd.f32 %v13324_v40, %v1020_v19  ;;  %1677 = vmatprep.subr.bf16.mxu1 %v15553_v32  ;;  %v1153_v25 = vmax.f32 %v1089_v18, 0.0 }
 0x249   :  { %v1088_v24 = vadd.f32 %v13324_v40, %v1018_v22  ;;  %v1151_v26 = vmax.f32 %v1087_v21, 0.0 }
 0x24a   :  { %v1154_v27 = vmax.f32 %v1090_v23, 0.0 }
 0x24b   :  { %v10842_v28 = vpop.f32.mrb[12].mxu0  ;;  %1678 = vmatpush1.bf16.msra.mxu1 %v1210_v14  ;;  %v1152_v29 = vmax.f32 %v1088_v24, 0.0 }
 0x24c   :  { %v1023_v30 = vmul.f32 %v10842_v28, %v13322_v39  ;;  %v796_v31 = vpop.f32.mrb[13].mxu0  ;;  %1679 = vmatprep.subr.bf16.mxu1 %v15553_v32  ;;  %v1212_v33 = vpack.c.bf16 %v1154_v27, %v1153_v25 }
 0x24d   :  { %v1021_v34 = vmul.f32 %v13322_v39, %v796_v31  ;;  %v10843_v35 = vpop.f32.mrb[14].mxu0  ;;  %v1211_v36 = vpack.c.bf16 %v1152_v29, %v1151_v26 }
 0x24e   :  { %v1093_v37 = vadd.f32 %v13324_v40, %v1023_v30  ;;  %v1024_v38 = vmul.f32 %v10843_v35, %v13322_v39  ;;  %v799_v41 = vpop.f32.mrb[15].mxu0 }
 0x24f   :  { %v1091_v42 = vadd.f32 %v13324_v40, %v1021_v34  ;;  %v1022_v43 = vmul.f32 %v13322_v39, %v799_v41  ;;  %1680 = vmatpush1.bf16.msra.mxu1 %v1211_v36 }
 0x250   :  { %v1094_v44 = vadd.f32 %v13324_v40, %v1024_v38  ;;  %1681 = vmatprep.subr.bf16.mxu1 %v15553_v32  ;;  %v1157_v46 = vmax.f32 %v1093_v37, 0.0 }
 0x251   :  { %v1092_v45 = vadd.f32 %v13324_v40, %v1022_v43  ;;  %v1155_v47 = vmax.f32 %v1091_v42, 0.0 }
 0x252   :  { %v1158_v48 = vmax.f32 %v1094_v44, 0.0 }
 0x253   :  { %v10846_v49 = vpop.f32.mrb[16].mxu0  ;;  %1682 = vmatpush1.bf16.msra.mxu1 %v1212_v33  ;;  %v1156_v50 = vmax.f32 %v1092_v45, 0.0 }
 0x254   :  { %v1027_v51 = vmul.f32 %v10846_v49, %v13322_v39  ;;  %v812_v52 = vpop.f32.mrb[17].mxu0  ;;  %1683 = vmatprep.subr.bf16.mxu1 %v15553_v32  ;;  %v1214_v53 = vpack.c.bf16 %v1158_v48, %v1157_v46 }
 0x255   :  { %v1025_v54 = vmul.f32 %v13322_v39, %v812_v52  ;;  %v10847_v55 = vpop.f32.mrb[18].mxu0  ;;  %v1213_v56 = vpack.c.bf16 %v1156_v50, %v1155_v47 }
 0x256   :  { %v1097_v57 = vadd.f32 %v13324_v40, %v1027_v51  ;;  %v1028_v58 = vmul.f32 %v10847_v55, %v13322_v39  ;;  %v815_v59 = vpop.f32.mrb[19].mxu0 }
 0x257   :  { %v1095_v60 = vadd.f32 %v13324_v40, %v1025_v54  ;;  %v1026_v61 = vmul.f32 %v13322_v39, %v815_v59  ;;  %1684 = vmatpush1.bf16.msra.mxu1 %v1213_v56 }
 0x258   :  { %v1098_v62 = vadd.f32 %v13324_v40, %v1028_v58  ;;  %1685 = vmatprep.subr.bf16.mxu1 %v15553_v32  ;;  %v1161_v0 = vmax.f32 %v1097_v57, 0.0 }
 0x259   :  { %v1096_v63 = vadd.f32 %v13324_v40, %v1026_v61  ;;  %v1159_v3 = vmax.f32 %v1095_v60, 0.0 }
 0x25a   :  { %v1162_v1 = vmax.f32 %v1098_v62, 0.0 }
 0x25b   :  { %v10850_v2 = vpop.f32.mrb[20].mxu0  ;;  %1686 = vmatpush1.bf16.msra.mxu1 %v1214_v53  ;;  %v1160_v4 = vmax.f32 %v1096_v63, 0.0 }
 0x25c   :  { %v1031_v5 = vmul.f32 %v10850_v2, %v13322_v39  ;;  %v828_v6 = vpop.f32.mrb[21].mxu0  ;;  %1687 = vmatprep.subr.bf16.mxu1 %v15553_v32  ;;  %v1216_v7 = vpack.c.bf16 %v1162_v1, %v1161_v0 }
 0x25d   :  { %v1029_v8 = vmul.f32 %v13322_v39, %v828_v6  ;;  %v10851_v9 = vpop.f32.mrb[22].mxu0  ;;  %v1215_v10 = vpack.c.bf16 %v1160_v4, %v1159_v3 }
 0x25e   :  { %v1101_v11 = vadd.f32 %v13324_v40, %v1031_v5  ;;  %v1032_v12 = vmul.f32 %v10851_v9, %v13322_v39  ;;  %v831_v13 = vpop.f32.mrb[23].mxu0 }
 0x25f   :  { %v1099_v14 = vadd.f32 %v13324_v40, %v1029_v8  ;;  %v1030_v15 = vmul.f32 %v13322_v39, %v831_v13  ;;  %1688 = vmatpush1.bf16.msra.mxu1 %v1215_v10  ;;  %v13414_v13 = vld [vmem:[%s15604_s11] ss:$8 sps:$4 sm:$0xff]  }
 0x260   :  { %v1102_v16 = vadd.f32 %v13324_v40, %v1032_v12  ;;  %1689 = vmatprep.subr.bf16.mxu1 %v15553_v32  ;;  %v1165_v18 = vmax.f32 %v1101_v11, 0.0 }
 0x261   :  { %v1100_v17 = vadd.f32 %v13324_v40, %v1030_v15  ;;  %v1163_v21 = vmax.f32 %v1099_v14, 0.0 }
 0x262   :  { %v1166_v19 = vmax.f32 %v1102_v16, 0.0 }
 0x263   :  { %v10854_v20 = vpop.f32.mrb[24].mxu0  ;;  %1690 = vmatpush1.bf16.msra.mxu1 %v1216_v7  ;;  %v1164_v22 = vmax.f32 %v1100_v17, 0.0  ;;  %v13417_v17 = vld [vmem:[%s15604_s11 + $0x14] ss:$8 sps:$4 sm:$0xff]  }
 0x264   :  { %v1035_v23 = vmul.f32 %v10854_v20, %v13322_v39  ;;  %v844_v24 = vpop.f32.mrb[25].mxu0  ;;  %1691 = vmatprep.subr.bf16.mxu1 %v15553_v32  ;;  %v1218_v25 = vpack.c.bf16 %v1166_v19, %v1165_v18 }
 0x265   :  { %v1033_v26 = vmul.f32 %v13322_v39, %v844_v24  ;;  %v10855_v27 = vpop.f32.mrb[26].mxu0  ;;  %v1217_v28 = vpack.c.bf16 %v1164_v22, %v1163_v21 }
 0x266   :  { %v1105_v29 = vadd.f32 %v13324_v40, %v1035_v23  ;;  %v1036_v30 = vmul.f32 %v10855_v27, %v13322_v39  ;;  %v847_v31 = vpop.f32.mrb[27].mxu0 }
 0x267   :  { %v1103_v33 = vadd.f32 %v13324_v40, %v1033_v26  ;;  %v1034_v34 = vmul.f32 %v13322_v39, %v847_v31  ;;  %1692 = vmatpush1.bf16.msra.mxu1 %v1217_v28 }
 0x268   :  { %v1106_v35 = vadd.f32 %v13324_v40, %v1036_v30  ;;  %1693 = vmatprep.subr.bf16.mxu1 %v15553_v32  ;;  %v1169_v37 = vmax.f32 %v1105_v29, 0.0 }
 0x269   :  { %v1104_v36 = vadd.f32 %v13324_v40, %v1034_v34  ;;  %v1167_v42 = vmax.f32 %v1103_v33, 0.0  ;;  %v13431_v34 = vld [vmem:[%s15604_s11 + $0x10] ss:$8 sps:$4 sm:$0xff]  }
 0x26a   :  { %v1170_v38 = vmax.f32 %v1106_v35, 0.0 }
 0x26b   :  { %v10858_v41 = vpop.f32.mrb[28].mxu0  ;;  %1694 = vmatpush1.bf16.msra.mxu1 %v1218_v25  ;;  %v1168_v43 = vmax.f32 %v1104_v36, 0.0 }
 0x26c   :  { %v1039_v44 = vmul.f32 %v10858_v41, %v13322_v39  ;;  %v860_v45 = vpop.f32.mrb[29].mxu0  ;;  %1695 = vmatprep.subr.bf16.mxu1 %v15553_v32  ;;  %v1220_v46 = vpack.c.bf16 %v1170_v38, %v1169_v37  ;;  %v13434_v38 = vld [vmem:[%s15604_s11 + $0x24] ss:$8 sps:$4 sm:$0xff]  }
 0x26d   :  { %v1037_v47 = vmul.f32 %v13322_v39, %v860_v45  ;;  %v10859_v48 = vpop.f32.mrb[30].mxu0  ;;  %v1219_v49 = vpack.c.bf16 %v1168_v43, %v1167_v42 }
 0x26e   :  { %v1109_v50 = vadd.f32 %v13324_v40, %v1039_v44  ;;  %v1040_v51 = vmul.f32 %v10859_v48, %v13322_v39  ;;  %v863_v52 = vpop.f32.mrb[31].mxu0 }
 0x26f   :  { %v1107_v53 = vadd.f32 %v13324_v40, %v1037_v47  ;;  %v1038_v54 = vmul.f32 %v13322_v39, %v863_v52  ;;  %1696 = vmatpush1.bf16.msra.mxu1 %v1219_v49 }
 0x270   :  { %v1110_v55 = vadd.f32 %v13324_v40, %v1040_v51  ;;  %1697 = vmatprep.subr.bf16.mxu1 %v15553_v32  ;;  %v1173_v57 = vmax.f32 %v1109_v50, 0.0 }
 0x271   :  { %v1108_v56 = vadd.f32 %v13324_v40, %v1038_v54  ;;  %v1171_v60 = vmax.f32 %v1107_v53, 0.0 }
 0x272   :  { %v1174_v58 = vmax.f32 %v1110_v55, 0.0 }
 0x273   :  { %v10862_v59 = vpop.f32.mrb[32].mxu0  ;;  %1698 = vmatpush1.bf16.msra.mxu1 %v1220_v46  ;;  %v1172_v61 = vmax.f32 %v1108_v56, 0.0  ;;  %v13449_v56 = vld [vmem:[%s15604_s11 + $0x20] ss:$8 sps:$4 sm:$0xff]  }
 0x274   :  { %v1043_v62 = vmul.f32 %v10862_v59, %v13322_v39  ;;  %v876_v63 = vpop.f32.mrb[33].mxu0  ;;  %1699 = vmatprep.subr.bf16.mxu1 %v15553_v32  ;;  %v1222_v0 = vpack.c.bf16 %v1174_v58, %v1173_v57 }
 0x275   :  { %v1041_v1 = vmul.f32 %v13322_v39, %v876_v63  ;;  %v10863_v2 = vpop.f32.mrb[34].mxu0  ;;  %v1221_v3 = vpack.c.bf16 %v1172_v61, %v1171_v60  ;;  %v13452_v60 = vld [vmem:[%s15604_s11 + $0x34] ss:$8 sps:$4 sm:$0xff]  }
 0x276   :  { %v1113_v4 = vadd.f32 %v13324_v40, %v1043_v62  ;;  %v1044_v5 = vmul.f32 %v10863_v2, %v13322_v39  ;;  %v879_v6 = vpop.f32.mrb[35].mxu0 }
 0x277   :  { %v1111_v7 = vadd.f32 %v13324_v40, %v1041_v1  ;;  %v1042_v8 = vmul.f32 %v13322_v39, %v879_v6  ;;  %1700 = vmatpush1.bf16.msra.mxu1 %v1221_v3 }
 0x278   :  { %v1114_v9 = vadd.f32 %v13324_v40, %v1044_v5  ;;  %1701 = vmatprep.subr.bf16.mxu1 %v15553_v32  ;;  %v1177_v11 = vmax.f32 %v1113_v4, 0.0 }
 0x279   :  { %v1112_v10 = vadd.f32 %v13324_v40, %v1042_v8  ;;  %v1175_v14 = vmax.f32 %v1111_v7, 0.0 }
 0x27a   :  { %v1178_v12 = vmax.f32 %v1114_v9, 0.0 }
 0x27b   :  { %v1176_v15 = vmax.f32 %v1112_v10, 0.0  ;;  %v10866_v16 = vpop.f32.mrb[36].mxu0  ;;  %1702 = vmatpush1.bf16.msra.mxu1 %v1222_v0 }
 0x27c   :  { %v1047_v18 = vmul.f32 %v10866_v16, %v13322_v39  ;;  %v892_v19 = vpop.f32.mrb[37].mxu0  ;;  %v1224_v20 = vpack.c.bf16 %v1178_v12, %v1177_v11  ;;  %v13467_v12 = vld [vmem:[%s15604_s11 + $0x30] ss:$8 sps:$4 sm:$0xff]  }
 0x27d   :  { %v1045_v21 = vmul.f32 %v13322_v39, %v892_v19  ;;  %v10867_v22 = vpop.f32.mrb[38].mxu0  ;;  %v1223_v23 = vpack.c.bf16 %v1176_v15, %v1175_v14 }
 0x27e   :  { %v1117_v24 = vadd.f32 %v13324_v40, %v1047_v18  ;;  %v1048_v25 = vmul.f32 %v10867_v22, %v13322_v39  ;;  %v895_v26 = vpop.f32.mrb[39].mxu0  ;;  %1704 = vmatmul.mubr.bf16.vlgmr.msra.gmra.mrb[0].mxu1 %v13414_v13  ;;  %v13470_v18 = vld [vmem:[%s15604_s11 + $0x44] ss:$8 sps:$4 sm:$0xff]  }
 0x27f   :  { %v1115_v27 = vadd.f32 %v13324_v40, %v1045_v21  ;;  %v1046_v28 = vmul.f32 %v13322_v39, %v895_v26  ;;  %2057 = vmatpush1.bf16.msra.mxu0 %v1223_v23  ;;  %1711 = vmatprep.mubr.bf16.mxu1 %v13417_v17 }
 0x280   :  { %v1118_v29 = vadd.f32 %v13324_v40, %v1048_v25  ;;  %2058 = vmatprep.subr.bf16.mxu0 %v15553_v32  ;;  %v1181_v31 = vmax.f32 %v1117_v24, 0.0 }
 0x281   :  { %v1116_v30 = vadd.f32 %v13324_v40, %v1046_v28  ;;  %v1179_v35 = vmax.f32 %v1115_v27, 0.0 }
 0x282   :  { %v1182_v33 = vmax.f32 %v1118_v29, 0.0 }
 0x283   :  { %v1180_v36 = vmax.f32 %v1116_v30, 0.0  ;;  %v10870_v37 = vpop.f32.mrb[40].mxu0  ;;  %2059 = vmatpush1.bf16.msra.mxu0 %v1224_v20 }
 0x284   :  { %v1051_v41 = vmul.f32 %v10870_v37, %v13322_v39  ;;  %v908_v42 = vpop.f32.mrb[41].mxu0  ;;  %2060 = vmatprep.subr.bf16.mxu0 %v15553_v32  ;;  %v1226_v43 = vpack.c.bf16 %v1182_v33, %v1181_v31 }
 0x285   :  { %v1049_v44 = vmul.f32 %v13322_v39, %v908_v42  ;;  %v10871_v45 = vpop.f32.mrb[42].mxu0  ;;  %v1225_v46 = vpack.c.bf16 %v1180_v36, %v1179_v35  ;;  %v13485_v36 = vld [vmem:[%s15604_s11 + $0x40] ss:$8 sps:$4 sm:$0xff]  }
 0x286   :  { %v1121_v47 = vadd.f32 %v13324_v40, %v1051_v41  ;;  %v1052_v48 = vmul.f32 %v10871_v45, %v13322_v39  ;;  %v911_v49 = vpop.f32.mrb[43].mxu0  ;;  %1712 = vmatmul.mubr.bf16.gmra.mrb[4].mxu1 %v13431_v34 }
 0x287   :  { %v1119_v50 = vadd.f32 %v13324_v40, %v1049_v44  ;;  %v1050_v51 = vmul.f32 %v13322_v39, %v911_v49  ;;  %2061 = vmatpush1.bf16.msra.mxu0 %v1225_v46  ;;  %1719 = vmatprep.mubr.bf16.mxu1 %v13434_v38 }
 0x288   :  { %v1122_v52 = vadd.f32 %v13324_v40, %v1052_v48  ;;  %2062 = vmatprep.subr.bf16.mxu0 %v15553_v32  ;;  %v1185_v54 = vmax.f32 %v1121_v47, 0.0 }
 0x289   :  { %v1120_v53 = vadd.f32 %v13324_v40, %v1050_v51  ;;  %v1183_v57 = vmax.f32 %v1119_v50, 0.0 }
 0x28a   :  { %v1186_v55 = vmax.f32 %v1122_v52, 0.0 }
 0x28b   :  { %v1184_v58 = vmax.f32 %v1120_v53, 0.0  ;;  %v10874_v59 = vpop.f32.mrb[44].mxu0  ;;  %2063 = vmatpush1.bf16.msra.mxu0 %v1226_v43  ;;  %v13488_v43 = vld [vmem:[%s15604_s11 + $0x54] ss:$8 sps:$4 sm:$0xff]  }
 0x28c   :  { %v1055_v61 = vmul.f32 %v10874_v59, %v13322_v39  ;;  %v924_v62 = vpop.f32.mrb[45].mxu0  ;;  %2064 = vmatprep.subr.bf16.mxu0 %v15553_v32  ;;  %v1228_v63 = vpack.c.bf16 %v1186_v55, %v1185_v54 }
 0x28d   :  { %v1053_v0 = vmul.f32 %v13322_v39, %v924_v62  ;;  %v10875_v1 = vpop.f32.mrb[46].mxu0  ;;  %v1227_v2 = vpack.c.bf16 %v1184_v58, %v1183_v57 }
 0x28e   :  { %v1125_v3 = vadd.f32 %v13324_v40, %v1055_v61  ;;  %v1056_v4 = vmul.f32 %v10875_v1, %v13322_v39  ;;  %v927_v5 = vpop.f32.mrb[47].mxu0  ;;  %1720 = vmatmul.mubr.bf16.gmra.mrb[8].mxu1 %v13449_v56  ;;  %v13503_v61 = vld [vmem:[%s15604_s11 + $0x50] ss:$8 sps:$4 sm:$0xff]   ;;  %v13506_v1 = vld [vmem:[%s15604_s11 + $0x64] ss:$8 sps:$4 sm:$0xff]  }
 0x28f   :  { %v1123_v6 = vadd.f32 %v13324_v40, %v1053_v0  ;;  %v1054_v7 = vmul.f32 %v13322_v39, %v927_v5  ;;  %2065 = vmatpush1.bf16.msra.mxu0 %v1227_v2  ;;  %1727 = vmatprep.mubr.bf16.mxu1 %v13452_v60 }
 0x290   :  { %v1126_v8 = vadd.f32 %v13324_v40, %v1056_v4  ;;  %2066 = vmatprep.subr.bf16.mxu0 %v15553_v32  ;;  %v1189_v10 = vmax.f32 %v1125_v3, 0.0 }
 0x291   :  { %v1124_v9 = vadd.f32 %v13324_v40, %v1054_v7  ;;  %v1187_v14 = vmax.f32 %v1123_v6, 0.0 }
 0x292   :  { %v1190_v11 = vmax.f32 %v1126_v8, 0.0 }
 0x293   :  { %v1188_v15 = vmax.f32 %v1124_v9, 0.0  ;;  %v10878_v16 = vpop.f32.mrb[48].mxu0  ;;  %2067 = vmatpush1.bf16.msra.mxu0 %v1228_v63 }
 0x294   :  { %v1059_v19 = vmul.f32 %v10878_v16, %v13322_v39  ;;  %v940_v20 = vpop.f32.mrb[49].mxu0  ;;  %2068 = vmatprep.subr.bf16.mxu0 %v15553_v32  ;;  %v1230_v21 = vpack.c.bf16 %v1190_v11, %v1189_v10 }
 0x295   :  { %v1057_v22 = vmul.f32 %v13322_v39, %v940_v20  ;;  %v10879_v23 = vpop.f32.mrb[50].mxu0  ;;  %v1229_v24 = vpack.c.bf16 %v1188_v15, %v1187_v14 }
 0x296   :  { %v1129_v25 = vadd.f32 %v13324_v40, %v1059_v19  ;;  %v1060_v26 = vmul.f32 %v10879_v23, %v13322_v39  ;;  %v943_v27 = vpop.f32.mrb[51].mxu0  ;;  %1728 = vmatmul.mubr.bf16.gmra.mrb[12].mxu1 %v13467_v12 }
 0x297   :  { %v1127_v28 = vadd.f32 %v13324_v40, %v1057_v22  ;;  %v1058_v29 = vmul.f32 %v13322_v39, %v943_v27  ;;  %2069 = vmatpush1.bf16.msra.mxu0 %v1229_v24  ;;  %1735 = vmatprep.mubr.bf16.mxu1 %v13470_v18 }
 0x298   :  { %v1130_v30 = vadd.f32 %v13324_v40, %v1060_v26  ;;  %2070 = vmatprep.subr.bf16.mxu0 %v15553_v32  ;;  %v1193_v33 = vmax.f32 %v1129_v25, 0.0  ;;  %v13524_v25 = vld [vmem:[%s15604_s11 + $0x74] ss:$8 sps:$4 sm:$0xff]  }
 0x299   :  { %v1128_v31 = vadd.f32 %v13324_v40, %v1058_v29  ;;  %v1191_v37 = vmax.f32 %v1127_v28, 0.0 }
 0x29a   :  { %v1194_v35 = vmax.f32 %v1130_v30, 0.0 }
 0x29b   :  { %v1192_v41 = vmax.f32 %v1128_v31, 0.0  ;;  %v10882_v42 = vpop.f32.mrb[52].mxu0  ;;  %2071 = vmatpush1.bf16.msra.mxu0 %v1230_v21  ;;  %v13521_v21 = vld [vmem:[%s15604_s11 + $0x60] ss:$8 sps:$4 sm:$0xff]  }
 0x29c   :  { %v1063_v44 = vmul.f32 %v10882_v42, %v13322_v39  ;;  %v956_v45 = vpop.f32.mrb[53].mxu0  ;;  %2072 = vmatprep.subr.bf16.mxu0 %v15553_v32  ;;  %v1232_v46 = vpack.c.bf16 %v1194_v35, %v1193_v33 }
 0x29d   :  { %v1061_v47 = vmul.f32 %v13322_v39, %v956_v45  ;;  %v10883_v48 = vpop.f32.mrb[54].mxu0  ;;  %v1231_v49 = vpack.c.bf16 %v1192_v41, %v1191_v37 }
 0x29e   :  { %v1133_v50 = vadd.f32 %v13324_v40, %v1063_v44  ;;  %v1064_v51 = vmul.f32 %v10883_v48, %v13322_v39  ;;  %v959_v52 = vpop.f32.mrb[55].mxu0  ;;  %1736 = vmatmul.mubr.bf16.gmra.mrb[16].mxu1 %v13485_v36  ;;  %v11930_v48 = vld [vmem:[%s15604_s11 + $0x70] ss:$8 sps:$4 sm:$0xff]  }
 0x29f   :  { %v1131_v53 = vadd.f32 %v13324_v40, %v1061_v47  ;;  %v1062_v54 = vmul.f32 %v13322_v39, %v959_v52  ;;  %2073 = vmatpush1.bf16.msra.mxu0 %v1231_v49  ;;  %1743 = vmatprep.mubr.bf16.mxu1 %v13488_v43 }
 0x2a0   :  { %v1134_v55 = vadd.f32 %v13324_v40, %v1064_v51  ;;  %2074 = vmatprep.subr.bf16.mxu0 %v15553_v32  ;;  %v1197_v58 = vmax.f32 %v1133_v50, 0.0  ;;  %v11931_v51 = vld [vmem:[%s15604_s11 + $0x84] ss:$8 sps:$4 sm:$0xff]  }
 0x2a1   :  { %v1132_v57 = vadd.f32 %v13324_v40, %v1062_v54  ;;  %v1195_v62 = vmax.f32 %v1131_v53, 0.0  ;;  %v11934_v53 = vld [vmem:[%s15604_s11 + $0x94] ss:$8 sps:$4 sm:$0xff]   ;;  %v11936_v54 = vld [vmem:[%s15604_s11 + $0x90] ss:$8 sps:$4 sm:$0xff]  }
 0x2a2   :  { %v1198_v59 = vmax.f32 %v1134_v55, 0.0  ;;  %v11937_v55 = vld [vmem:[%s15604_s11 + $0xa4] ss:$8 sps:$4 sm:$0xff]  }
 0x2a3   :  { %v1196_v63 = vmax.f32 %v1132_v57, 0.0  ;;  %v10886_v0 = vpop.f32.mrb[56].mxu0  ;;  %2075 = vmatpush1.bf16.msra.mxu0 %v1232_v46  ;;  %v11939_v57 = vld [vmem:[%s15604_s11 + $0xa0] ss:$8 sps:$4 sm:$0xff]  }
 0x2a4   :  { %v1067_v2 = vmul.f32 %v10886_v0, %v13322_v39  ;;  %v972_v3 = vpop.f32.mrb[57].mxu0  ;;  %2076 = vmatprep.subr.bf16.mxu0 %v15553_v32  ;;  %v1234_v4 = vpack.c.bf16 %v1198_v59, %v1197_v58  ;;  %v11940_v58 = vld [vmem:[%s15604_s11 + $0xb4] ss:$8 sps:$4 sm:$0xff]   ;;  %v11957_v59 = vld [vmem:[%s15604_s11 + $0x100] ss:$8 sps:$4 sm:$0xff]  }
 0x2a5   :  { %v1065_v5 = vmul.f32 %v13322_v39, %v972_v3  ;;  %v10887_v6 = vpop.f32.mrb[58].mxu0  ;;  %v1233_v7 = vpack.c.bf16 %v1196_v63, %v1195_v62  ;;  %v11960_v62 = vld [vmem:[%s15604_s11 + $0x110] ss:$8 sps:$4 sm:$0xff]   ;;  %v11961_v63 = vld [vmem:[%s15604_s11 + $0x124] ss:$8 sps:$4 sm:$0xff]  }
 0x2a6   :  { %v1137_v8 = vadd.f32 %v13324_v40, %v1067_v2  ;;  %v1068_v9 = vmul.f32 %v10887_v6, %v13322_v39  ;;  %v975_v10 = vpop.f32.mrb[59].mxu0  ;;  %1744 = vmatmul.mubr.bf16.gmra.mrb[20].mxu1 %v13503_v61  ;;  %v11963_v0 = vld [vmem:[%s15604_s11 + $0x120] ss:$8 sps:$4 sm:$0xff]   ;;  %v11966_v2 = vld [vmem:[%s15604_s11 + $0x130] ss:$8 sps:$4 sm:$0xff]  }
 0x2a7   :  { %v1135_v11 = vadd.f32 %v13324_v40, %v1065_v5  ;;  %v1066_v14 = vmul.f32 %v13322_v39, %v975_v10  ;;  %2077 = vmatpush1.bf16.msra.mxu0 %v1233_v7  ;;  %1751 = vmatprep.mubr.bf16.mxu1 %v13506_v1  ;;  %v11967_v3 = vld [vmem:[%s15604_s11 + $0x144] ss:$8 sps:$4 sm:$0xff]   ;;  %v11970_v5 = vld [vmem:[%s15604_s11 + $0x154] ss:$8 sps:$4 sm:$0xff]   ;;  %v11972_v6 = vld [vmem:[%s15604_s11 + $0x150] ss:$8 sps:$4 sm:$0xff]  }
 0x2a8   :  { %v1138_v15 = vadd.f32 %v13324_v40, %v1068_v9  ;;  %2078 = vmatprep.subr.bf16.mxu0 %v15553_v32  ;;  %v1201_v19 = vmax.f32 %v1137_v8, 0.0  ;;  %v13584_v7 = vld [vmem:[%s15604_s11 + $0x164] ss:$8 sps:$4 sm:$0xff]   ;;  %v13588_v8 = vld [vmem:[%s15604_s11 + $0x160] ss:$8 sps:$4 sm:$0xff]  }
 0x2a9   :  { %v1136_v16 = vadd.f32 %v13324_v40, %v1066_v14  ;;  %v1199_v22 = vmax.f32 %v1135_v11, 0.0  ;;  %v13591_v9 = vld [vmem:[%s15604_s11 + $0x174] ss:$8 sps:$4 sm:$0xff]   ;;  %v13596_v10 = vld [vmem:[%s15604_s11 + $0x170] ss:$8 sps:$4 sm:$0xff]  }
 0x2aa   :  { %v1202_v20 = vmax.f32 %v1138_v15, 0.0  ;;  %v13599_v11 = vld [vmem:[%s15604_s11 + $0x184] ss:$8 sps:$4 sm:$0xff]   ;;  %v13604_v14 = vld [vmem:[%s15604_s11 + $0x180] ss:$8 sps:$4 sm:$0xff]  }
 0x2ab   :  { %v1200_v23 = vmax.f32 %v1136_v16, 0.0  ;;  %v10890_v24 = vpop.f32.mrb[60].mxu0  ;;  %2079 = vmatpush1.bf16.msra.mxu0 %v1234_v4  ;;  %v11969_v4 = vld [vmem:[%s15604_s11 + $0x140] ss:$8 sps:$4 sm:$0xff]   ;;  %v13607_v15 = vld [vmem:[%s15604_s11 + $0x194] ss:$8 sps:$4 sm:$0xff]  }
 0x2ac   :  { %v1071_v26 = vmul.f32 %v10890_v24, %v13322_v39  ;;  %v988_v27 = vpop.f32.mrb[61].mxu0  ;;  %2080 = vmatprep.subr.bf16.mxu0 %v15553_v32  ;;  %v1236_v28 = vpack.c.bf16 %v1202_v20, %v1201_v19  ;;  %v13612_v16 = vld [vmem:[%s15604_s11 + $0x190] ss:$8 sps:$4 sm:$0xff]   ;;  %v13615_v19 = vld [vmem:[%s15604_s11 + $0x1a4] ss:$8 sps:$4 sm:$0xff]  }
 0x2ad   :  { %v1069_v29 = vmul.f32 %v13322_v39, %v988_v27  ;;  %v10891_v30 = vpop.f32.mrb[62].mxu0  ;;  %v1235_v31 = vpack.c.bf16 %v1200_v23, %v1199_v22  ;;  %v13620_v20 = vld [vmem:[%s15604_s11 + $0x1a0] ss:$8 sps:$4 sm:$0xff]   ;;  %v13630_v23 = vld [vmem:[%s15604_s11 + $0x1b0] ss:$8 sps:$4 sm:$0xff]  }
 0x2ae   :  { %v1141_v33 = vadd.f32 %v13324_v40, %v1071_v26  ;;  %v1072_v35 = vmul.f32 %v10891_v30, %v13322_v39  ;;  %v991_v37 = vpop.f32.mrb[63].mxu0  ;;  %1752 = vmatmul.mubr.bf16.gmra.mrb[24].mxu1 %v13521_v21 }
 0x2af   :  { %v1139_v41 = vadd.f32 %v13324_v40, %v1069_v29  ;;  %v1070_v42 = vmul.f32 %v13322_v39, %v991_v37  ;;  %2081 = vmatpush1.bf16.msra.mxu0 %v1235_v31  ;;  %1759 = vmatprep.mubr.bf16.mxu1 %v13524_v25  ;;  %v13642_v29 = vld [vmem:[%s15604_s11 + $0x1c0] ss:$8 sps:$4 sm:$0xff]   ;;  %v13645_v31 = vld [vmem:[%s15604_s11 + $0x1d4] ss:$8 sps:$4 sm:$0xff]  }
 0x2b0   :  { %v1142_v44 = vadd.f32 %v13324_v40, %v1072_v35  ;;  %2082 = vmatprep.subr.bf16.mxu0 %v15553_v32  ;;  %v1205_v46 = vmax.f32 %v1141_v33, 0.0 }
 0x2b1   :  { %v1140_v45 = vadd.f32 %v13324_v40, %v1070_v42  ;;  %v1203_v49 = vmax.f32 %v1139_v41, 0.0  ;;  %v11933_v40 = vld [vmem:[%s15604_s11 + $0x80] ss:$8 sps:$4 sm:$0xff]   ;;  %v13654_v41 = vld [vmem:[%s15604_s11 + $0x1d0] ss:$8 sps:$4 sm:$0xff]  }
 0x2b2   :  { %v1206_v47 = vmax.f32 %v1142_v44, 0.0  ;;  %v13657_v44 = vld [vmem:[%s15604_s11 + $0x1e4] ss:$8 sps:$4 sm:$0xff]  }
 0x2b3   :  { %v1204_v50 = vmax.f32 %v1140_v45, 0.0  ;;  %2083 = vmatpush1.bf16.msra.mxu0 %v1236_v28 }
 0x2b4   :  { %2084 = vmatprep.subr.bf16.mxu0 %v15553_v32  ;;  %v1238_v39 = vpack.c.bf16 %v1206_v47, %v1205_v46 }
 0x2b5   :  { %v1237_v52 = vpack.c.bf16 %v1204_v50, %v1203_v49  ;;  %v13670_v50 = vld [vmem:[%s15604_s11 + $0x1f4] ss:$8 sps:$4 sm:$0xff]  }
 0x2b6   :  { %1760 = vmatmul.mubr.bf16.gmra.mrb[28].mxu1 %v11930_v48 }
 0x2b7   :  { %2085 = vmatpush1.bf16.msra.mxu0 %v1237_v52  ;;  %1767 = vmatprep.mubr.bf16.mxu1 %v11931_v51 }
 0x2b8   :  { %2086 = vmatprep.subr.bf16.mxu0 %v15553_v32 }
 0x2bb   :  { %2087 = vmatpush1.bf16.msra.mxu0 %v1238_v39 }
 0x2be   :  { %1768 = vmatmul.mubr.bf16.gmra.mrb[32].mxu1 %v11933_v40  ;;  %2089 = vmatmul.mubr.bf16.vlgmr.msra.gmra.mrb[64].mxu0 %v13414_v13  ;;  %v11942_v13 = vld [vmem:[%s15604_s11 + $0xb0] ss:$8 sps:$4 sm:$0xff]  }
 0x2bf   :  { %1775 = vmatprep.mubr.bf16.mxu1 %v11934_v53  ;;  %2096 = vmatprep.mubr.bf16.mxu0 %v13417_v17  ;;  %v11943_v17 = vld [vmem:[%s15604_s11 + $0xc4] ss:$8 sps:$4 sm:$0xff]  }
 0x2c6   :  { %1776 = vmatmul.mubr.bf16.gmra.mrb[36].mxu1 %v11936_v54  ;;  %2097 = vmatmul.mubr.bf16.gmra.mrb[68].mxu0 %v13431_v34  ;;  %v11945_v34 = vld [vmem:[%s15604_s11 + $0xc0] ss:$8 sps:$4 sm:$0xff]  }
 0x2c7   :  { %1783 = vmatprep.mubr.bf16.mxu1 %v11937_v55  ;;  %2104 = vmatprep.mubr.bf16.mxu0 %v13434_v38  ;;  %v11946_v38 = vld [vmem:[%s15604_s11 + $0xd4] ss:$8 sps:$4 sm:$0xff]  }
 0x2ce   :  { %1784 = vmatmul.mubr.bf16.gmra.mrb[40].mxu1 %v11939_v57  ;;  %2105 = vmatmul.mubr.bf16.gmra.mrb[72].mxu0 %v13449_v56  ;;  %v11948_v56 = vld [vmem:[%s15604_s11 + $0xd0] ss:$8 sps:$4 sm:$0xff]  }
 0x2cf   :  { %1791 = vmatprep.mubr.bf16.mxu1 %v11940_v58  ;;  %2112 = vmatprep.mubr.bf16.mxu0 %v13452_v60  ;;  %v11949_v60 = vld [vmem:[%s15604_s11 + $0xe4] ss:$8 sps:$4 sm:$0xff]  }
 0x2d6   :  { %1792 = vmatmul.mubr.bf16.gmra.mrb[44].mxu1 %v11942_v13  ;;  %2113 = vmatmul.mubr.bf16.gmra.mrb[76].mxu0 %v13467_v12  ;;  %v11951_v12 = vld [vmem:[%s15604_s11 + $0xe0] ss:$8 sps:$4 sm:$0xff]  }
 0x2d7   :  { %1799 = vmatprep.mubr.bf16.mxu1 %v11943_v17  ;;  %2120 = vmatprep.mubr.bf16.mxu0 %v13470_v18  ;;  %v11952_v18 = vld [vmem:[%s15604_s11 + $0xf4] ss:$8 sps:$4 sm:$0xff]  }
 0x2de   :  { %1800 = vmatmul.mubr.bf16.gmra.mrb[48].mxu1 %v11945_v34  ;;  %2121 = vmatmul.mubr.bf16.gmra.mrb[80].mxu0 %v13485_v36  ;;  %v11954_v36 = vld [vmem:[%s15604_s11 + $0xf0] ss:$8 sps:$4 sm:$0xff]  }
 0x2df   :  { %1807 = vmatprep.mubr.bf16.mxu1 %v11946_v38  ;;  %2128 = vmatprep.mubr.bf16.mxu0 %v13488_v43  ;;  %v11955_v43 = vld [vmem:[%s15604_s11 + $0x104] ss:$8 sps:$4 sm:$0xff]  }
 0x2e6   :  { %1808 = vmatmul.mubr.bf16.gmra.mrb[52].mxu1 %v11948_v56  ;;  %2129 = vmatmul.mubr.bf16.gmra.mrb[84].mxu0 %v13503_v61  ;;  %v11958_v61 = vld [vmem:[%s15604_s11 + $0x114] ss:$8 sps:$4 sm:$0xff]  }
 0x2e7   :  { %1815 = vmatprep.mubr.bf16.mxu1 %v11949_v60  ;;  %2136 = vmatprep.mubr.bf16.mxu0 %v13506_v1  ;;  %v11964_v1 = vld [vmem:[%s15604_s11 + $0x134] ss:$8 sps:$4 sm:$0xff]  }
 0x2ee   :  { %1816 = vmatmul.mubr.bf16.gmra.mrb[56].mxu1 %v11951_v12  ;;  %2137 = vmatmul.mubr.bf16.gmra.mrb[88].mxu0 %v13521_v21  ;;  %v13623_v21 = vld [vmem:[%s15604_s11 + $0x1b4] ss:$8 sps:$4 sm:$0xff]  }
 0x2ef   :  { %1823 = vmatprep.mubr.bf16.mxu1 %v11952_v18  ;;  %2144 = vmatprep.mubr.bf16.mxu0 %v13524_v25  ;;  %v13633_v25 = vld [vmem:[%s15604_s11 + $0x1c4] ss:$8 sps:$4 sm:$0xff]  }
 0x2f6   :  { %1824 = vmatmul.mubr.bf16.gmra.mrb[60].mxu1 %v11954_v36  ;;  %2145 = vmatmul.mubr.bf16.gmra.mrb[92].mxu0 %v11930_v48  ;;  %v13667_v48 = vld [vmem:[%s15604_s11 + $0x1e0] ss:$8 sps:$4 sm:$0xff]  }
 0x2f7   :  { %1831 = vmatprep.mubr.bf16.mxu1 %v11955_v43  ;;  %2152 = vmatprep.mubr.bf16.mxu0 %v11931_v51 }
 0x2fe   :  { %1832 = vmatmul.mubr.bf16.gmra.mrb[64].mxu1 %v11957_v59  ;;  %2153 = vmatmul.mubr.bf16.gmra.mrb[96].mxu0 %v11933_v40  ;;  %v13681_v40 = vld [vmem:[%s15604_s11 + $0x1f0] ss:$8 sps:$4 sm:$0xff]  }
 0x2ff   :  { %1839 = vmatprep.mubr.bf16.mxu1 %v11958_v61  ;;  %2160 = vmatprep.mubr.bf16.mxu0 %v11934_v53 }
 0x306   :  { %1840 = vmatmul.mubr.bf16.gmra.mrb[68].mxu1 %v11960_v62  ;;  %2161 = vmatmul.mubr.bf16.gmra.mrb[100].mxu0 %v11936_v54 }
 0x307   :  { %1847 = vmatprep.mubr.bf16.mxu1 %v11961_v63  ;;  %2168 = vmatprep.mubr.bf16.mxu0 %v11937_v55  ;;  %v13686_v55 = vld [vmem:[%s15604_s11 + $0x204] ss:$8 sps:$4 sm:$0xff]  }
 0x30e   :  { %1848 = vmatmul.mubr.bf16.gmra.mrb[72].mxu1 %v11963_v0  ;;  %2169 = vmatmul.mubr.bf16.gmra.mrb[104].mxu0 %v11939_v57 }
 0x30f   :  { %1855 = vmatprep.mubr.bf16.mxu1 %v11964_v1  ;;  %2176 = vmatprep.mubr.bf16.mxu0 %v11940_v58 }
 0x316   :  { %1856 = vmatmul.mubr.bf16.gmra.mrb[76].mxu1 %v11966_v2  ;;  %2177 = vmatmul.mubr.bf16.gmra.mrb[108].mxu0 %v11942_v13 }
 0x317   :  { %1863 = vmatprep.mubr.bf16.mxu1 %v11967_v3  ;;  %2184 = vmatprep.mubr.bf16.mxu0 %v11943_v17 }
 0x31e   :  { %1864 = vmatmul.mubr.bf16.gmra.mrb[80].mxu1 %v11969_v4  ;;  %2185 = vmatmul.mubr.bf16.gmra.mrb[112].mxu0 %v11945_v34  ;;  %v13699_v34 = vld [vmem:[%s15604_s11 + $0x200] ss:$8 sps:$4 sm:$0xff]  }
 0x31f   :  { %1871 = vmatprep.mubr.bf16.mxu1 %v11970_v5  ;;  %2192 = vmatprep.mubr.bf16.mxu0 %v11946_v38 }
 0x326   :  { %1872 = vmatmul.mubr.bf16.gmra.mrb[84].mxu1 %v11972_v6  ;;  %2193 = vmatmul.mubr.bf16.gmra.mrb[116].mxu0 %v11948_v56 }
 0x327   :  { %1879 = vmatprep.mubr.bf16.mxu1 %v13584_v7  ;;  %2200 = vmatprep.mubr.bf16.mxu0 %v11949_v60  ;;  %v13704_v60 = vld [vmem:[%s15604_s11 + $0x214] ss:$8 sps:$4 sm:$0xff]  }
 0x32e   :  { %1880 = vmatmul.mubr.bf16.gmra.mrb[88].mxu1 %v13588_v8  ;;  %2201 = vmatmul.mubr.bf16.gmra.mrb[120].mxu0 %v11951_v12 }
 0x32f   :  { %1887 = vmatprep.mubr.bf16.mxu1 %v13591_v9  ;;  %2208 = vmatprep.mubr.bf16.mxu0 %v11952_v18 }
 0x336   :  { %1888 = vmatmul.mubr.bf16.gmra.mrb[92].mxu1 %v13596_v10  ;;  %2209 = vmatmul.mubr.bf16.gmra.mrb[124].mxu0 %v11954_v36 }
 0x337   :  { %1895 = vmatprep.mubr.bf16.mxu1 %v13599_v11  ;;  %2216 = vmatprep.mubr.bf16.mxu0 %v11955_v43 }
 0x33e   :  { %1896 = vmatmul.mubr.bf16.gmra.mrb[96].mxu1 %v13604_v14  ;;  %2217 = vmatmul.mubr.bf16.gmra.mrb[128].mxu0 %v11957_v59  ;;  %v13717_v59 = vld [vmem:[%s15604_s11 + $0x210] ss:$8 sps:$4 sm:$0xff]  }
 0x33f   :  { %1903 = vmatprep.mubr.bf16.mxu1 %v13607_v15  ;;  %2224 = vmatprep.mubr.bf16.mxu0 %v11958_v61 }
 0x346   :  { %1904 = vmatmul.mubr.bf16.gmra.mrb[100].mxu1 %v13612_v16  ;;  %2225 = vmatmul.mubr.bf16.gmra.mrb[132].mxu0 %v11960_v62 }
 0x347   :  { %1911 = vmatprep.mubr.bf16.mxu1 %v13615_v19  ;;  %2232 = vmatprep.mubr.bf16.mxu0 %v11961_v63  ;;  %v13722_v63 = vld [vmem:[%s15604_s11 + $0x224] ss:$8 sps:$4 sm:$0xff]  }
 0x34e   :  { %1912 = vmatmul.mubr.bf16.gmra.mrb[104].mxu1 %v13620_v20  ;;  %2233 = vmatmul.mubr.bf16.gmra.mrb[136].mxu0 %v11963_v0 }
 0x34f   :  { %1919 = vmatprep.mubr.bf16.mxu1 %v13623_v21  ;;  %2240 = vmatprep.mubr.bf16.mxu0 %v11964_v1 }
 0x351   :  { %v13627_v22 = vpop.f32.mrb[0].mxu1 }
 0x352   :  { %v1707_v24 = vpop.f32.mrb[1].mxu1 }
 0x353   :  { %v13635_v26 = vpop.f32.mrb[2].mxu1 }
 0x354   :  { %v1710_v27 = vpop.f32.mrb[3].mxu1 }
 0x356   :  { %1920 = vmatmul.mubr.bf16.gmra.mrb[108].mxu1 %v13630_v23  ;;  %2241 = vmatmul.mubr.bf16.gmra.mrb[140].mxu0 %v11966_v2 }
 0x357   :  { %1927 = vmatprep.mubr.bf16.mxu1 %v13633_v25  ;;  %2248 = vmatprep.mubr.bf16.mxu0 %v11967_v3 }
 0x359   :  { %v13639_v28 = vpop.f32.mrb[4].mxu1 }
 0x35a   :  { %v1715_v30 = vpop.f32.mrb[5].mxu1 }
 0x35b   :  { %v13647_v33 = vpop.f32.mrb[6].mxu1 }
 0x35c   :  { %v1718_v35 = vpop.f32.mrb[7].mxu1 }
 0x35e   :  { %1928 = vmatmul.mubr.bf16.gmra.mrb[112].mxu1 %v13642_v29  ;;  %2249 = vmatmul.mubr.bf16.gmra.mrb[144].mxu0 %v11969_v4  ;;  %v13735_v4 = vld [vmem:[%s15604_s11 + $0x220] ss:$8 sps:$4 sm:$0xff]  }
 0x35f   :  { %1935 = vmatprep.mubr.bf16.mxu1 %v13645_v31  ;;  %2256 = vmatprep.mubr.bf16.mxu0 %v11970_v5 }
 0x361   :  { %v13651_v37 = vpop.f32.mrb[8].mxu1 }
 0x362   :  { %v1723_v42 = vpop.f32.mrb[9].mxu1 }
 0x363   :  { %v13659_v45 = vpop.f32.mrb[10].mxu1 }
 0x364   :  { %v1726_v46 = vpop.f32.mrb[11].mxu1 }
 0x366   :  { %1936 = vmatmul.mubr.bf16.gmra.mrb[116].mxu1 %v13654_v41  ;;  %2257 = vmatmul.mubr.bf16.gmra.mrb[148].mxu0 %v11972_v6 }
 0x367   :  { %1943 = vmatprep.mubr.bf16.mxu1 %v13657_v44  ;;  %2264 = vmatprep.mubr.bf16.mxu0 %v13584_v7  ;;  %v13740_v7 = vld [vmem:[%s15604_s11 + $0x234] ss:$8 sps:$4 sm:$0xff]  }
 0x369   :  { %v13664_v47 = vpop.f32.mrb[12].mxu1 }
 0x36a   :  { %v1731_v49 = vpop.f32.mrb[13].mxu1 }
 0x36b   :  { %v13672_v51 = vpop.f32.mrb[14].mxu1 }
 0x36c   :  { %v1734_v39 = vpop.f32.mrb[15].mxu1 }
 0x36e   :  { %1944 = vmatmul.mubr.bf16.gmra.mrb[120].mxu1 %v13667_v48  ;;  %2265 = vmatmul.mubr.bf16.gmra.mrb[152].mxu0 %v13588_v8 }
 0x36f   :  { %1951 = vmatprep.mubr.bf16.mxu1 %v13670_v50  ;;  %2272 = vmatprep.mubr.bf16.mxu0 %v13591_v9 }
 0x371   :  { %v13678_v52 = vpop.f32.mrb[16].mxu1 }
 0x372   :  { %v1992_v53 = vmax.f32 %v13627_v22, %v13678_v52  ;;  %v1739_v54 = vpop.f32.mrb[17].mxu1 }
 0x373   :  { %v13688_v57 = vpop.f32.mrb[18].mxu1 }
 0x374   :  { %v1993_v58 = vmax.f32 %v13635_v26, %v13688_v57  ;;  %v1742_v13 = vpop.f32.mrb[19].mxu1 }
 0x376   :  { %1952 = vmatmul.mubr.bf16.gmra.mrb[124].mxu1 %v13681_v40  ;;  %2273 = vmatmul.mubr.bf16.gmra.mrb[156].mxu0 %v13596_v10 }
 0x377   :  { %1959 = vmatprep.mubr.bf16.mxu1 %v13686_v55  ;;  %2280 = vmatprep.mubr.bf16.mxu0 %v13599_v11 }
 0x379   :  { %v13696_v17 = vpop.f32.mrb[20].mxu1 }
 0x37a   :  { %v1994_v38 = vmax.f32 %v13639_v28, %v13696_v17  ;;  %v1747_v56 = vpop.f32.mrb[21].mxu1 }
 0x37b   :  { %v13706_v12 = vpop.f32.mrb[22].mxu1 }
 0x37c   :  { %v1995_v18 = vmax.f32 %v13647_v33, %v13706_v12  ;;  %v1750_v36 = vpop.f32.mrb[23].mxu1 }
 0x37e   :  { %1960 = vmatmul.mubr.bf16.gmra.mrb[128].mxu1 %v13699_v34  ;;  %2281 = vmatmul.mubr.bf16.gmra.mrb[160].mxu0 %v13604_v14 }
 0x37f   :  { %1967 = vmatprep.mubr.bf16.mxu1 %v13704_v60  ;;  %2288 = vmatprep.mubr.bf16.mxu0 %v13607_v15 }
 0x381   :  { %v13714_v43 = vpop.f32.mrb[24].mxu1 }
 0x382   :  { %v1996_v61 = vmax.f32 %v13651_v37, %v13714_v43  ;;  %v1755_v62 = vpop.f32.mrb[25].mxu1 }
 0x383   :  { %v13724_v0 = vpop.f32.mrb[26].mxu1 }
 0x384   :  { %v1997_v1 = vmax.f32 %v13659_v45, %v13724_v0  ;;  %v1758_v2 = vpop.f32.mrb[27].mxu1 }
 0x386   :  { %1968 = vmatmul.mubr.bf16.gmra.mrb[132].mxu1 %v13717_v59  ;;  %2289 = vmatmul.mubr.bf16.gmra.mrb[164].mxu0 %v13612_v16  ;;  %v13753_v16 = vld [vmem:[%s15604_s11 + $0x230] ss:$8 sps:$4 sm:$0xff]  }
 0x387   :  { %1975 = vmatprep.mubr.bf16.mxu1 %v13722_v63  ;;  %2296 = vmatprep.mubr.bf16.mxu0 %v13615_v19 }
 0x389   :  { %v13732_v3 = vpop.f32.mrb[28].mxu1 }
 0x38a   :  { %v1998_v5 = vmax.f32 %v13664_v47, %v13732_v3  ;;  %v1763_v6 = vpop.f32.mrb[29].mxu1 }
 0x38b   :  { %v13742_v8 = vpop.f32.mrb[30].mxu1 }
 0x38c   :  { %v1999_v9 = vmax.f32 %v13672_v51, %v13742_v8  ;;  %v1766_v10 = vpop.f32.mrb[31].mxu1 }
 0x38e   :  { %1976 = vmatmul.mubr.bf16.gmra.mrb[136].mxu1 %v13735_v4  ;;  %2297 = vmatmul.mubr.bf16.gmra.mrb[168].mxu0 %v13620_v20 }
 0x38f   :  { %1983 = vmatprep.mubr.bf16.mxu1 %v13740_v7  ;;  %2304 = vmatprep.mubr.bf16.mxu0 %v13623_v21 }
 0x391   :  { %v13750_v11 = vpop.f32.mrb[64].mxu0  ;;  %v1769_v14 = vpop.f32.mrb[32].mxu1 }
 0x392   :  { %v2092_v15 = vpop.f32.mrb[65].mxu0  ;;  %v1771_v19 = vpop.f32.mrb[33].mxu1 }
 0x393   :  { %v13755_v24 = vpop.f32.mrb[66].mxu0  ;;  %v1772_v27 = vpop.f32.mrb[34].mxu1 }
 0x394   :  { %v2095_v30 = vpop.f32.mrb[67].mxu0  ;;  %v1774_v35 = vpop.f32.mrb[35].mxu1 }
 0x396   :  { %1984 = vmatmul.mubr.bf16.gmra.mrb[140].mxu1 %v13753_v16  ;;  %2305 = vmatmul.mubr.bf16.gmra.mrb[172].mxu0 %v13630_v23 }
 0x397   :  { %2312 = vmatprep.mubr.bf16.mxu0 %v13633_v25 }
 0x399   :  { %v13760_v20 = vpop.f32.mrb[68].mxu0  ;;  %v1777_v21 = vpop.f32.mrb[36].mxu1 }
 0x39a   :  { %v2100_v42 = vpop.f32.mrb[69].mxu0  ;;  %v1779_v46 = vpop.f32.mrb[37].mxu1 }
 0x39b   :  { %v13762_v49 = vpop.f32.mrb[70].mxu0  ;;  %v1780_v39 = vpop.f32.mrb[38].mxu1 }
 0x39c   :  { %v2103_v54 = vpop.f32.mrb[71].mxu0  ;;  %v1782_v13 = vpop.f32.mrb[39].mxu1 }
 0x39e   :  { %2313 = vmatmul.mubr.bf16.gmra.mrb[176].mxu0 %v13642_v29 }
 0x39f   :  { %2320 = vmatprep.mubr.bf16.mxu0 %v13645_v31 }
 0x3a1   :  { %v13766_v56 = vpop.f32.mrb[72].mxu0  ;;  %v13768_v36 = vpop.f32.mrb[40].mxu1 }
 0x3a2   :  { %v2108_v23 = vpop.f32.mrb[73].mxu0  ;;  %v1787_v25 = vpop.f32.mrb[41].mxu1 }
 0x3a3   :  { %v13770_v62 = vpop.f32.mrb[74].mxu0  ;;  %v1788_v2 = vpop.f32.mrb[42].mxu1 }
 0x3a4   :  { %v2111_v6 = vpop.f32.mrb[75].mxu0  ;;  %v1790_v10 = vpop.f32.mrb[43].mxu1 }
 0x3a6   :  { %2321 = vmatmul.mubr.bf16.gmra.mrb[180].mxu0 %v13654_v41 }
 0x3a7   :  { %2328 = vmatprep.mubr.bf16.mxu0 %v13657_v44 }
 0x3a9   :  { %v13774_v15 = vpop.f32.mrb[76].mxu0  ;;  %v13776_v29 = vpop.f32.mrb[44].mxu1 }
 0x3aa   :  { %v2116_v31 = vpop.f32.mrb[77].mxu0  ;;  %v1795_v19 = vpop.f32.mrb[45].mxu1 }
 0x3ab   :  { %v13778_v30 = vpop.f32.mrb[78].mxu0  ;;  %v13780_v35 = vpop.f32.mrb[46].mxu1 }
 0x3ac   :  { %v2119_v42 = vpop.f32.mrb[79].mxu0  ;;  %v1798_v46 = vpop.f32.mrb[47].mxu1 }
 0x3ae   :  { %2329 = vmatmul.mubr.bf16.gmra.mrb[184].mxu0 %v13667_v48 }
 0x3af   :  { %2336 = vmatprep.mubr.bf16.mxu0 %v13670_v50 }
 0x3b1   :  { %v1801_v54 = vpop.f32.mrb[48].mxu1  ;;  %v13784_v41 = vpop.f32.mrb[80].mxu0 }
 0x3b2   :  { %v2000_v44 = vmax.f32 %v1769_v14, %v1801_v54  ;;  %v2377_v13 = vmax.f32 %v13750_v11, %v13784_v41  ;;  %v1803_v23 = vpop.f32.mrb[49].mxu1  ;;  %v2124_v25 = vpop.f32.mrb[81].mxu0 }
 0x3b3   :  { %v1804_v6 = vpop.f32.mrb[50].mxu1  ;;  %v13788_v10 = vpop.f32.mrb[82].mxu0 }
 0x3b4   :  { %v2001_v31 = vmax.f32 %v1772_v27, %v1804_v6  ;;  %v2378_v19 = vmax.f32 %v13755_v24, %v13788_v10  ;;  %v2127_v42 = vpop.f32.mrb[83].mxu0  ;;  %v1806_v48 = vpop.f32.mrb[51].mxu1  ;;  %v13795_v50 = vmax.f32 %v1992_v53, %v2000_v44 }
 0x3b6   :  { %2337 = vmatmul.mubr.bf16.gmra.mrb[188].mxu0 %v13681_v40  ;;  %v13801_v14 = vmax.f32 %v1993_v58, %v2001_v31 }
 0x3b7   :  { %2344 = vmatprep.mubr.bf16.mxu0 %v13686_v55 }
 0x3b9   :  { %v1809_v27 = vpop.f32.mrb[52].mxu1  ;;  %v13804_v46 = vpop.f32.mrb[84].mxu0 }
 0x3ba   :  { %v2002_v54 = vmax.f32 %v1777_v21, %v1809_v27  ;;  %v2379_v23 = vmax.f32 %v13760_v20, %v13804_v46  ;;  %v1811_v25 = vpop.f32.mrb[53].mxu1  ;;  %v2132_v22 = vpop.f32.mrb[85].mxu0 }
 0x3bb   :  { %v1812_v52 = vpop.f32.mrb[54].mxu1  ;;  %v13808_v53 = vpop.f32.mrb[86].mxu0 }
 0x3bc   :  { %v2003_v40 = vmax.f32 %v1780_v39, %v1812_v52  ;;  %v2380_v26 = vmax.f32 %v13762_v49, %v13808_v53  ;;  %v2135_v57 = vpop.f32.mrb[87].mxu0  ;;  %v1814_v58 = vpop.f32.mrb[55].mxu1  ;;  %v13815_v55 = vmax.f32 %v1994_v38, %v2002_v54 }
 0x3be   :  { %2345 = vmatmul.mubr.bf16.gmra.mrb[192].mxu0 %v13699_v34  ;;  %v13821_v21 = vmax.f32 %v1995_v18, %v2003_v40 }
 0x3bf   :  { %2352 = vmatprep.mubr.bf16.mxu0 %v13704_v60 }
 0x3c1   :  { %v1817_v39 = vpop.f32.mrb[56].mxu1  ;;  %v13824_v44 = vpop.f32.mrb[88].mxu0 }
 0x3c2   :  { %v2004_v6 = vmax.f32 %v13768_v36, %v1817_v39  ;;  %v2381_v31 = vmax.f32 %v13766_v56, %v13824_v44  ;;  %v1819_v28 = vpop.f32.mrb[57].mxu1  ;;  %v2140_v17 = vpop.f32.mrb[89].mxu0 }
 0x3c3   :  { %v1820_v38 = vpop.f32.mrb[58].mxu1  ;;  %v13829_v42 = vpop.f32.mrb[90].mxu0 }
 0x3c4   :  { %v2005_v34 = vmax.f32 %v1788_v2, %v1820_v38  ;;  %v2382_v33 = vmax.f32 %v13770_v62, %v13829_v42  ;;  %v2143_v12 = vpop.f32.mrb[91].mxu0  ;;  %v1822_v18 = vpop.f32.mrb[59].mxu1  ;;  %v13836_v60 = vmax.f32 %v1996_v61, %v2004_v6 }
 0x3c6   :  { %2353 = vmatmul.mubr.bf16.gmra.mrb[196].mxu0 %v13717_v59  ;;  %v13842_v36 = vmax.f32 %v1997_v1, %v2005_v34 }
 0x3c7   :  { %2360 = vmatprep.mubr.bf16.mxu0 %v13722_v63 }
 0x3c9   :  { %v1825_v2 = vpop.f32.mrb[60].mxu1  ;;  %v13845_v48 = vpop.f32.mrb[92].mxu0 }
 0x3ca   :  { %v2006_v27 = vmax.f32 %v13776_v29, %v1825_v2  ;;  %v2383_v54 = vmax.f32 %v13774_v15, %v13845_v48  ;;  %v1827_v37 = vpop.f32.mrb[61].mxu1  ;;  %v2148_v43 = vpop.f32.mrb[93].mxu0 }
 0x3cb   :  { %v1828_v61 = vpop.f32.mrb[62].mxu1  ;;  %v13850_v25 = vpop.f32.mrb[94].mxu0 }
 0x3cc   :  { %v2007_v59 = vmax.f32 %v13780_v35, %v1828_v61  ;;  %v2384_v45 = vmax.f32 %v13778_v30, %v13850_v25  ;;  %v2151_v0 = vpop.f32.mrb[95].mxu0  ;;  %v1830_v63 = vpop.f32.mrb[63].mxu1  ;;  %v13858_v1 = vmax.f32 %v1998_v5, %v2006_v27 }
 0x3ce   :  { %2361 = vmatmul.mubr.bf16.gmra.mrb[200].mxu0 %v13735_v4  ;;  %v13864_v29 = vmax.f32 %v1999_v9, %v2007_v59 }
 0x3cf   :  { %2368 = vmatprep.mubr.bf16.mxu0 %v13740_v7 }
 0x3d1   :  { %v2154_v35 = vpop.f32.mrb[96].mxu0  ;;  %v13867_v22 = vpop.f32.mrb[64].mxu1 }
 0x3d2   :  { %v2156_v52 = vpop.f32.mrb[97].mxu0  ;;  %v1835_v40 = vpop.f32.mrb[65].mxu1 }
 0x3d3   :  { %v2157_v57 = vpop.f32.mrb[98].mxu0  ;;  %v13869_v58 = vpop.f32.mrb[66].mxu1 }
 0x3d4   :  { %v2159_v47 = vpop.f32.mrb[99].mxu0  ;;  %v1838_v3 = vpop.f32.mrb[67].mxu1 }
 0x3d6   :  { %2369 = vmatmul.mubr.bf16.gmra.mrb[204].mxu0 %v13753_v16 }
 0x3d9   :  { %v2162_v4 = vpop.f32.mrb[100].mxu0  ;;  %v13872_v5 = vpop.f32.mrb[68].mxu1 }
 0x3da   :  { %v2164_v51 = vpop.f32.mrb[101].mxu0  ;;  %v1843_v8 = vpop.f32.mrb[69].mxu1 }
 0x3db   :  { %v2165_v9 = vpop.f32.mrb[102].mxu0  ;;  %v13874_v39 = vpop.f32.mrb[70].mxu1 }
 0x3dc   :  { %v2167_v7 = vpop.f32.mrb[103].mxu0  ;;  %v1846_v6 = vpop.f32.mrb[71].mxu1 }
 0x3e1   :  { %v2170_v28 = vpop.f32.mrb[104].mxu0  ;;  %v13876_v17 = vpop.f32.mrb[72].mxu1 }
 0x3e2   :  { %v2172_v38 = vpop.f32.mrb[105].mxu0  ;;  %v1851_v34 = vpop.f32.mrb[73].mxu1 }
 0x3e3   :  { %v2173_v12 = vpop.f32.mrb[106].mxu0  ;;  %v13878_v18 = vpop.f32.mrb[74].mxu1 }
 0x3e4   :  { %v2175_v2 = vpop.f32.mrb[107].mxu0  ;;  %v1854_v16 = vpop.f32.mrb[75].mxu1 }
 0x3e9   :  { %v2178_v27 = vpop.f32.mrb[108].mxu0  ;;  %v13880_v37 = vpop.f32.mrb[76].mxu1 }
 0x3ea   :  { %v2180_v43 = vpop.f32.mrb[109].mxu0  ;;  %v1859_v61 = vpop.f32.mrb[77].mxu1 }
 0x3eb   :  { %v2181_v59 = vpop.f32.mrb[110].mxu0  ;;  %v13882_v0 = vpop.f32.mrb[78].mxu1 }
 0x3ec   :  { %v2183_v63 = vpop.f32.mrb[111].mxu0  ;;  %v1862_v52 = vpop.f32.mrb[79].mxu1 }
 0x3f1   :  { %v2186_v40 = vpop.f32.mrb[112].mxu0  ;;  %v13884_v47 = vpop.f32.mrb[80].mxu1 }
 0x3f2   :  { %v2385_v3 = vmax.f32 %v2154_v35, %v2186_v40  ;;  %v2188_v51 = vpop.f32.mrb[113].mxu0  ;;  %v2008_v8 = vmax.f32 %v13867_v22, %v13884_v47  ;;  %v1867_v7 = vpop.f32.mrb[81].mxu1 }
 0x3f3   :  { %v2189_v6 = vpop.f32.mrb[114].mxu0  ;;  %v13888_v38 = vpop.f32.mrb[82].mxu1 }
 0x3f4   :  { %v13893_v34 = vmax.f32 %v2377_v13, %v2385_v3  ;;  %v2386_v2 = vmax.f32 %v2157_v57, %v2189_v6  ;;  %v2191_v16 = vpop.f32.mrb[115].mxu0  ;;  %v2009_v43 = vmax.f32 %v13869_v58, %v13888_v38  ;;  %v1870_v61 = vpop.f32.mrb[83].mxu1 }
 0x3f6   :  { %v13900_v35 = vmax.f32 %v2378_v19, %v2386_v2 }
 0x3f9   :  { %v2194_v63 = vpop.f32.mrb[116].mxu0  ;;  %v13902_v52 = vpop.f32.mrb[84].mxu1 }
 0x3fa   :  { %v2387_v40 = vmax.f32 %v2162_v4, %v2194_v63  ;;  %v2196_v51 = vpop.f32.mrb[117].mxu0  ;;  %v1875_v41 = vpop.f32.mrb[85].mxu1  ;;  %v15606_v58 = vmax.f32 %v13872_v5, %v13902_v52 }
 0x3fb   :  { %v2197_v13 = vpop.f32.mrb[118].mxu0  ;;  %v13906_v57 = vpop.f32.mrb[86].mxu1 }
 0x3fc   :  { %v13911_v3 = vmax.f32 %v2379_v23, %v2387_v40  ;;  %v2388_v24 = vmax.f32 %v2165_v9, %v2197_v13  ;;  %v2199_v10 = vpop.f32.mrb[119].mxu0  ;;  %v1878_v7 = vpop.f32.mrb[87].mxu1 }
 0x3fe   :  { %v13918_v4 = vmax.f32 %v2380_v26, %v2388_v24 }
 0x401   :  { %v2202_v6 = vpop.f32.mrb[120].mxu0  ;;  %v13920_v2 = vpop.f32.mrb[88].mxu1 }
 0x402   :  { %v2389_v16 = vmax.f32 %v2170_v28, %v2202_v6  ;;  %v2204_v61 = vpop.f32.mrb[121].mxu0  ;;  %v1883_v46 = vpop.f32.mrb[89].mxu1 }
 0x403   :  { %v2205_v23 = vpop.f32.mrb[122].mxu0  ;;  %v13924_v9 = vpop.f32.mrb[90].mxu1 }
 0x404   :  { %v13929_v63 = vmax.f32 %v2381_v31, %v2389_v16  ;;  %v2390_v49 = vmax.f32 %v2173_v12, %v2205_v23  ;;  %v2207_v53 = vpop.f32.mrb[123].mxu0  ;;  %v1886_v40 = vpop.f32.mrb[91].mxu1 }
 0x406   :  { %v13936_v28 = vmax.f32 %v2382_v33, %v2390_v49 }
 0x409   :  { %v2210_v51 = vpop.f32.mrb[124].mxu0  ;;  %v13938_v41 = vpop.f32.mrb[92].mxu1 }
 0x40a   :  { %v2391_v13 = vmax.f32 %v2178_v27, %v2210_v51  ;;  %v2212_v24 = vpop.f32.mrb[125].mxu0  ;;  %v1891_v44 = vpop.f32.mrb[93].mxu1 }
 0x40b   :  { %v2213_v31 = vpop.f32.mrb[126].mxu0  ;;  %v13942_v12 = vpop.f32.mrb[94].mxu1 }
 0x40c   :  { %v13947_v10 = vmax.f32 %v2383_v54, %v2391_v13  ;;  %v2392_v62 = vmax.f32 %v2181_v59, %v2213_v31  ;;  %v2215_v42 = vpop.f32.mrb[127].mxu0  ;;  %v1894_v7 = vpop.f32.mrb[95].mxu1  ;;  %v12015_v13 = vld [vmem:[%s15605_s13] sm:$0xff]  }
 0x40d   :  { %10900 = vmatprep.mubr.msk.bf16.mxu1 %vm2775_vm3, %v12015_v13  ;;  %10980 = vmatprep.mubr.msk.bf16.mxu0 %vm2775_vm3, %v12015_v13 }
 0x40e   :  { %v13954_v27 = vmax.f32 %v2384_v45, %v2392_v62 }
 0x411   :  { %v13956_v6 = vpop.f32.mrb[128].mxu0  ;;  %v1897_v16 = vpop.f32.mrb[96].mxu1 }
 0x412   :  { %v2220_v61 = vpop.f32.mrb[129].mxu0  ;;  %v1899_v46 = vpop.f32.mrb[97].mxu1 }
 0x413   :  { %v13958_v15 = vpop.f32.mrb[130].mxu0  ;;  %v1900_v48 = vpop.f32.mrb[98].mxu1 }
 0x414   :  { %v2223_v54 = vpop.f32.mrb[131].mxu0  ;;  %v1902_v59 = vpop.f32.mrb[99].mxu1 }
 0x419   :  { %v13960_v23 = vpop.f32.mrb[132].mxu0  ;;  %v1905_v49 = vpop.f32.mrb[100].mxu1 }
 0x41a   :  { %v2228_v53 = vpop.f32.mrb[133].mxu0  ;;  %v1907_v40 = vpop.f32.mrb[101].mxu1 }
 0x41b   :  { %v13962_v51 = vpop.f32.mrb[134].mxu0  ;;  %v1908_v30 = vpop.f32.mrb[102].mxu1 }
 0x41c   :  { %v2231_v25 = vpop.f32.mrb[135].mxu0  ;;  %v1910_v45 = vpop.f32.mrb[103].mxu1 }
 0x421   :  { %v13967_v24 = vpop.f32.mrb[136].mxu0  ;;  %v1913_v44 = vpop.f32.mrb[104].mxu1 }
 0x422   :  { %v2236_v31 = vpop.f32.mrb[137].mxu0  ;;  %v1915_v62 = vpop.f32.mrb[105].mxu1 }
 0x423   :  { %v13969_v42 = vpop.f32.mrb[138].mxu0  ;;  %v1916_v7 = vpop.f32.mrb[106].mxu1 }
 0x424   :  { %v2239_v61 = vpop.f32.mrb[139].mxu0  ;;  %v1918_v46 = vpop.f32.mrb[107].mxu1 }
 0x429   :  { %v13971_v54 = vpop.f32.mrb[140].mxu0  ;;  %v13973_v59 = vpop.f32.mrb[108].mxu1 }
 0x42a   :  { %v2244_v53 = vpop.f32.mrb[141].mxu0  ;;  %v1923_v40 = vpop.f32.mrb[109].mxu1 }
 0x42b   :  { %v13975_v25 = vpop.f32.mrb[142].mxu0  ;;  %v13977_v45 = vpop.f32.mrb[110].mxu1 }
 0x42c   :  { %v2247_v13 = vpop.f32.mrb[143].mxu0  ;;  %v1926_v32 = vpop.f32.mrb[111].mxu1 }
 0x431   :  { %v1929_v33 = vpop.f32.mrb[112].mxu1  ;;  %v13979_v31 = vpop.f32.mrb[144].mxu0 }
 0x432   :  { %v2016_v62 = vmax.f32 %v1897_v16, %v1929_v33  ;;  %v1931_v46 = vpop.f32.mrb[113].mxu1  ;;  %v2252_v56 = vpop.f32.mrb[145].mxu0 }
 0x433   :  { %v1932_v26 = vpop.f32.mrb[114].mxu1  ;;  %v13983_v20 = vpop.f32.mrb[146].mxu0 }
 0x434   :  { %v2032_v53 = vmax.f32 %v2008_v8, %v2016_v62  ;;  %v2017_v40 = vmax.f32 %v1900_v48, %v1932_v26  ;;  %v2394_v32 = vmax.f32 %v13958_v15, %v13983_v20  ;;  %v2255_v13 = vpop.f32.mrb[147].mxu0  ;;  %v1934_v19 = vpop.f32.mrb[115].mxu1 }
 0x436   :  { %v2033_v33 = vmax.f32 %v2009_v43, %v2017_v40  ;;  %v2040_v16 = vmax.f32 %v13795_v50, %v2032_v53 }
 0x438   :  { %v2041_v56 = vmax.f32 %v13801_v14, %v2033_v33 }
 0x439   :  { %v1937_v46 = vpop.f32.mrb[116].mxu1  ;;  %v13995_v61 = vpop.f32.mrb[148].mxu0 }
 0x43a   :  { %v2018_v11 = vmax.f32 %v1905_v49, %v1937_v46  ;;  %v2395_v22 = vmax.f32 %v13960_v23, %v13995_v61  ;;  %v1939_v47 = vpop.f32.mrb[117].mxu1  ;;  %v2260_v8 = vpop.f32.mrb[149].mxu0  ;;  %v15607_v49 = vmax.f32 %v13874_v39, %v13906_v57  ;;  %v15608_v39 = vmax.f32 %v13876_v17, %v13920_v2  ;;  %v14085_v61 = vld [vmem:[%s15605_s13 + $0x30] sm:$0xff]  }
 0x43b   :  { %v1940_v26 = vpop.f32.mrb[118].mxu1  ;;  %v13999_v48 = vpop.f32.mrb[150].mxu0 }
 0x43c   :  { %v2034_v38 = vmax.f32 %v15606_v58, %v2018_v11  ;;  %v2019_v43 = vmax.f32 %v1908_v30, %v1940_v26  ;;  %v2396_v50 = vmax.f32 %v13962_v51, %v13999_v48  ;;  %v2263_v14 = vpop.f32.mrb[151].mxu0  ;;  %v1942_v19 = vpop.f32.mrb[119].mxu1 }
 0x43e   :  { %v2035_v62 = vmax.f32 %v15607_v49, %v2019_v43  ;;  %v2042_v53 = vmax.f32 %v13815_v55, %v2034_v38 }
 0x440   :  { %v2043_v40 = vmax.f32 %v13821_v21, %v2035_v62 }
 0x441   :  { %v1945_v13 = vpop.f32.mrb[120].mxu1  ;;  %v14011_v33 = vpop.f32.mrb[152].mxu0 }
 0x442   :  { %v2020_v46 = vmax.f32 %v1913_v44, %v1945_v13  ;;  %v2397_v5 = vmax.f32 %v13967_v24, %v14011_v33  ;;  %v1947_v52 = vpop.f32.mrb[121].mxu1  ;;  %v2268_v11 = vpop.f32.mrb[153].mxu0  ;;  %v15609_v44 = vmax.f32 %v13878_v18, %v13924_v9  ;;  %v15610_v18 = vmax.f32 %v13880_v37, %v13938_v41  ;;  %v14103_v33 = vld [vmem:[%s15605_s13 + $0x40] sm:$0xff]  }
 0x443   :  { %v1948_v30 = vpop.f32.mrb[122].mxu1  ;;  %v14015_v47 = vpop.f32.mrb[154].mxu0 }
 0x444   :  { %v2036_v57 = vmax.f32 %v15608_v39, %v2020_v46  ;;  %v2021_v8 = vmax.f32 %v1916_v7, %v1948_v30  ;;  %v2398_v55 = vmax.f32 %v13969_v42, %v14015_v47  ;;  %v2271_v21 = vpop.f32.mrb[155].mxu0  ;;  %v1950_v26 = vpop.f32.mrb[123].mxu1 }
 0x446   :  { %v2037_v58 = vmax.f32 %v15609_v44, %v2021_v8  ;;  %v2044_v38 = vmax.f32 %v13836_v60, %v2036_v57 }
 0x448   :  { %v2045_v43 = vmax.f32 %v13842_v36, %v2037_v58 }
 0x449   :  { %v1953_v14 = vpop.f32.mrb[124].mxu1  ;;  %v14027_v19 = vpop.f32.mrb[156].mxu0 }
 0x44a   :  { %v2022_v17 = vmax.f32 %v13973_v59, %v1953_v14  ;;  %v2399_v2 = vmax.f32 %v13971_v54, %v14027_v19  ;;  %v1955_v7 = vpop.f32.mrb[125].mxu1  ;;  %v2276_v49 = vpop.f32.mrb[157].mxu0  ;;  %v15611_v59 = vmax.f32 %v13882_v0, %v13942_v12  ;;  %v14118_v54 = vld [vmem:[%s15605_s13 + $0x48] sm:$0xff]  }
 0x44b   :  { %v1956_v62 = vpop.f32.mrb[126].mxu1  ;;  %v14032_v13 = vpop.f32.mrb[158].mxu0 }
 0x44c   :  { %v2038_v9 = vmax.f32 %v15610_v18, %v2022_v17  ;;  %v2023_v60 = vmax.f32 %v13977_v45, %v1956_v62  ;;  %v2400_v36 = vmax.f32 %v13975_v25, %v14032_v13  ;;  %v2279_v46 = vpop.f32.mrb[159].mxu0  ;;  %v1958_v52 = vpop.f32.mrb[127].mxu1  ;;  %v14131_v13 = vld [vmem:[%s15605_s13 + $0x60] sm:$0xff]  }
 0x44e   :  { %v2039_v11 = vmax.f32 %v15611_v59, %v2023_v60  ;;  %v2046_v30 = vmax.f32 %v13858_v1, %v2038_v9 }
 0x450   :  { %v2047_v39 = vmax.f32 %v13864_v29, %v2039_v11 }
 0x451   :  { %v1961_v57 = vpop.f32.mrb[128].mxu1  ;;  %v2282_v8 = vpop.f32.mrb[160].mxu0 }
 0x452   :  { %v2048_v21 = vmax.f32 %v2040_v16, %v1961_v57  ;;  %v1963_v37 = vpop.f32.mrb[129].mxu1  ;;  %v2284_v41 = vpop.f32.mrb[161].mxu0 }
 0x453   :  { %v1964_v26 = vpop.f32.mrb[130].mxu1  ;;  %v2285_v45 = vpop.f32.mrb[162].mxu0 }
 0x454   :  { %v2049_v44 = vmax.f32 %v2041_v56, %v1964_v26  ;;  %v2287_v58 = vpop.f32.mrb[163].mxu0  ;;  %v1966_v14 = vpop.f32.mrb[131].mxu1 }
 0x456   :  { %v2441_v17 = vpack.c.bf16 %v2049_v44, %v2048_v21 }
 0x458   :  { %10892 = vmatprep.subr.bf16.mxu1 %v2441_v17 }
 0x459   :  { %v1969_v7 = vpop.f32.mrb[132].mxu1  ;;  %v2290_v49 = vpop.f32.mrb[164].mxu0  ;;  %10893 = vmatpush3.bf16.msra.mxu1 %v2441_v17 }
 0x45a   :  { %v2050_v0 = vmax.f32 %v2042_v53, %v1969_v7  ;;  %v1971_v12 = vpop.f32.mrb[133].mxu1  ;;  %v2292_v1 = vpop.f32.mrb[165].mxu0 }
 0x45b   :  { %v1972_v62 = vpop.f32.mrb[134].mxu1  ;;  %v2293_v29 = vpop.f32.mrb[166].mxu0 }
 0x45c   :  { %v2051_v18 = vmax.f32 %v2043_v40, %v1972_v62  ;;  %v2295_v9 = vpop.f32.mrb[167].mxu0  ;;  %v1974_v16 = vpop.f32.mrb[135].mxu1 }
 0x45d   :  { %v14049_v9 = vld [vmem:[%s15605_s13 + $0x10] sm:$0xff]  }
 0x45e   :  { %v2442_v60 = vpack.c.bf16 %v2051_v18, %v2050_v0 }
 0x460   :  { %10894 = vmatprep.subr.bf16.mxu1 %v2442_v60 }
 0x461   :  { %v1977_v46 = vpop.f32.mrb[136].mxu1  ;;  %v2298_v52 = vpop.f32.mrb[168].mxu0  ;;  %10895 = vmatpush3.bf16.msra.mxu1 %v2442_v60 }
 0x462   :  { %v2052_v56 = vmax.f32 %v2044_v38, %v1977_v46  ;;  %v1979_v59 = vpop.f32.mrb[137].mxu1  ;;  %v2300_v11 = vpop.f32.mrb[169].mxu0  ;;  %v15612_v46 = vmax.f32 %v13956_v6, %v13979_v31  ;;  %v14067_v31 = vld [vmem:[%s15605_s13 + $0x20] sm:$0xff]  }
 0x463   :  { %v1980_v57 = vpop.f32.mrb[138].mxu1  ;;  %v2301_v21 = vpop.f32.mrb[170].mxu0 }
 0x464   :  { %v2053_v37 = vmax.f32 %v2045_v43, %v1980_v57  ;;  %v2303_v41 = vpop.f32.mrb[171].mxu0  ;;  %v1982_v53 = vpop.f32.mrb[139].mxu1  ;;  %v14046_v43 = vld [vmem:[%s15605_s13 + $0x8] sm:$0xff]  }
 0x466   :  { %v2443_v26 = vpack.c.bf16 %v2053_v37, %v2052_v56  ;;  %v14064_v37 = vld [vmem:[%s15605_s13 + $0x18] sm:$0xff]  }
 0x468   :  { %10896 = vmatprep.subr.bf16.mxu1 %v2443_v26 }
 0x469   :  { %v1985_v44 = vpop.f32.mrb[140].mxu1  ;;  %v2306_v40 = vpop.f32.mrb[172].mxu0  ;;  %10897 = vmatpush3.bf16.msra.mxu1 %v2443_v26 }
 0x46a   :  { %v2054_v58 = vmax.f32 %v2046_v30, %v1985_v44  ;;  %v1987_v14 = vpop.f32.mrb[141].mxu1  ;;  %v2308_v17 = vpop.f32.mrb[173].mxu0 }
 0x46b   :  { %v1988_v7 = vpop.f32.mrb[142].mxu1  ;;  %v2309_v0 = vpop.f32.mrb[174].mxu0 }
 0x46c   :  { %v2055_v38 = vmax.f32 %v2047_v39, %v1988_v7  ;;  %v2311_v12 = vpop.f32.mrb[175].mxu0  ;;  %v1990_v1 = vpop.f32.mrb[143].mxu1 }
 0x46e   :  { %v2444_v62 = vpack.c.bf16 %v2055_v38, %v2054_v58 }
 0x470   :  { %10898 = vmatprep.subr.bf16.mxu1 %v2444_v62 }
 0x471   :  { %v2314_v18 = vpop.f32.mrb[176].mxu0  ;;  %10899 = vmatpush3.bf16.msra.mxu1 %v2444_v62 }
 0x472   :  { %v2401_v16 = vmax.f32 %v2282_v8, %v2314_v18  ;;  %v2316_v60 = vpop.f32.mrb[177].mxu0 }
 0x473   :  { %v2317_v30 = vpop.f32.mrb[178].mxu0 }
 0x474   :  { %v2417_v56 = vmax.f32 %v15612_v46, %v2401_v16  ;;  %v2402_v39 = vmax.f32 %v2285_v45, %v2317_v30  ;;  %v2319_v59 = vpop.f32.mrb[179].mxu0  ;;  %10901 = vmatmul.mubr.msk.bf16.vlgmr.msra.gmra.mrb[144].mxu1 %vm2775_vm3, %v14046_v43  ;;  %v14138_v30 = vld [vmem:[%s15605_s13 + $0x68] sm:$0xff]  }
 0x475   :  { %10904 = vmatprep.mubr.msk.bf16.mxu1 %vm2775_vm3, %v14049_v9 }
 0x476   :  { %v2418_v11 = vmax.f32 %v2394_v32, %v2402_v39  ;;  %v2425_v8 = vmax.f32 %v13893_v34, %v2417_v56  ;;  %v14141_v56 = vld [vmem:[%s15605_s13 + $0x70] sm:$0xff]  }
 0x478   :  { %v2426_v57 = vmax.f32 %v13900_v35, %v2418_v11 }
 0x479   :  { %v2322_v6 = vpop.f32.mrb[180].mxu0 }
 0x47a   :  { %v2403_v45 = vmax.f32 %v2290_v49, %v2322_v6  ;;  %v2324_v41 = vpop.f32.mrb[181].mxu0  ;;  %v14082_v49 = vld [vmem:[%s15605_s13 + $0x28] sm:$0xff]  }
 0x47b   :  { %v2325_v53 = vpop.f32.mrb[182].mxu0 }
 0x47c   :  { %v2419_v26 = vmax.f32 %v2395_v22, %v2403_v45  ;;  %v2404_v20 = vmax.f32 %v2293_v29, %v2325_v53  ;;  %v2327_v15 = vpop.f32.mrb[183].mxu0  ;;  %10905 = vmatmul.mubr.msk.bf16.gmra.mrb[148].mxu1 %vm2775_vm3, %v14064_v37  ;;  %v14148_v45 = vld [vmem:[%s15605_s13 + $0x78] sm:$0xff]   ;;  %v14151_v53 = vld [vmem:[%s15605_s13 + $0x80] sm:$0xff]  }
 0x47d   :  { %10908 = vmatprep.mubr.msk.bf16.mxu1 %vm2775_vm3, %v14067_v31 }
 0x47e   :  { %v2420_v34 = vmax.f32 %v2396_v50, %v2404_v20  ;;  %v2427_v35 = vmax.f32 %v13911_v3, %v2419_v26 }
 0x480   :  { %v2428_v32 = vmax.f32 %v13918_v4, %v2420_v34 }
 0x481   :  { %v2330_v23 = vpop.f32.mrb[184].mxu0 }
 0x482   :  { %v2405_v22 = vmax.f32 %v2298_v52, %v2330_v23  ;;  %v2332_v29 = vpop.f32.mrb[185].mxu0  ;;  %v14100_v52 = vld [vmem:[%s15605_s13 + $0x38] sm:$0xff]   ;;  %v14158_v23 = vld [vmem:[%s15605_s13 + $0x88] sm:$0xff]  }
 0x483   :  { %v2333_v44 = vpop.f32.mrb[186].mxu0  ;;  %v12034_v29 = vld [vmem:[%s15605_s13 + $0x98] sm:$0xff]  }
 0x484   :  { %v2421_v58 = vmax.f32 %v2397_v5, %v2405_v22  ;;  %v2406_v51 = vmax.f32 %v2301_v21, %v2333_v44  ;;  %v2335_v48 = vpop.f32.mrb[187].mxu0  ;;  %10909 = vmatmul.mubr.msk.bf16.gmra.mrb[152].mxu1 %vm2775_vm3, %v14082_v49  ;;  %v14161_v22 = vld [vmem:[%s15605_s13 + $0x90] sm:$0xff]   ;;  %v12035_v44 = vld [vmem:[%s15605_s13 + $0xa0] sm:$0xff]  }
 0x485   :  { %10912 = vmatprep.mubr.msk.bf16.mxu1 %vm2775_vm3, %v14085_v61  ;;  %v12053_v48 = vld [vmem:[%s15613_s10 + $0x30] sm:$0xff]  }
 0x486   :  { %v2422_v3 = vmax.f32 %v2398_v55, %v2406_v51  ;;  %v2429_v4 = vmax.f32 %v13929_v63, %v2421_v58  ;;  %v12037_v58 = vld [vmem:[%s15605_s13 + $0xb0] sm:$0xff]   ;;  %v12052_v51 = vld [vmem:[%s15613_s10 + $0x28] sm:$0xff]  }
 0x488   :  { %v2430_v50 = vmax.f32 %v13936_v28, %v2422_v3  ;;  %v12042_v3 = vld [vmem:[%s15605_s13 + $0xd8] sm:$0xff]  }
 0x489   :  { %v2338_v24 = vpop.f32.mrb[188].mxu0 }
 0x48a   :  { %v2407_v5 = vmax.f32 %v2306_v40, %v2338_v24  ;;  %v2340_v21 = vpop.f32.mrb[189].mxu0  ;;  %v12045_v24 = vld [vmem:[%s15605_s13 + $0xf0] sm:$0xff]  }
 0x48b   :  { %v2341_v14 = vpop.f32.mrb[190].mxu0  ;;  %v12048_v21 = vld [vmem:[%s15605_s13 + $0x108] sm:$0xff]  }
 0x48c   :  { %v2423_v17 = vmax.f32 %v2399_v2, %v2407_v5  ;;  %v2408_v42 = vmax.f32 %v2309_v0, %v2341_v14  ;;  %v2343_v47 = vpop.f32.mrb[191].mxu0  ;;  %10913 = vmatmul.mubr.msk.bf16.gmra.mrb[156].mxu1 %vm2775_vm3, %v14100_v52  ;;  %v14121_v2 = vld [vmem:[%s15605_s13 + $0x50] sm:$0xff]   ;;  %v12047_v5 = vld [vmem:[%s15605_s13 + $0x100] sm:$0xff]  }
 0x48d   :  { %10916 = vmatprep.mubr.msk.bf16.mxu1 %vm2775_vm3, %v14103_v33  ;;  %v12049_v14 = vld [vmem:[%s15605_s13 + $0x110] sm:$0xff]  }
 0x48e   :  { %v2424_v63 = vmax.f32 %v2400_v36, %v2408_v42  ;;  %v2431_v28 = vmax.f32 %v13947_v10, %v2423_v17  ;;  %v12050_v17 = vld [vmem:[%s15605_s13 + $0x118] sm:$0xff]   ;;  %v12055_v42 = vld [vmem:[%s15613_s10 + $0x60] sm:$0xff]  }
 0x490   :  { %v2432_v55 = vmax.f32 %v13954_v27, %v2424_v63  ;;  %v14128_v27 = vld [vmem:[%s15605_s13 + $0x58] sm:$0xff]  }
 0x491   :  { %v2346_v19 = vpop.f32.mrb[192].mxu0 }
 0x492   :  { %v2433_v40 = vmax.f32 %v2425_v8, %v2346_v19  ;;  %v2348_v7 = vpop.f32.mrb[193].mxu0 }
 0x493   :  { %v2349_v0 = vpop.f32.mrb[194].mxu0 }
 0x494   :  { %v2434_v38 = vmax.f32 %v2426_v57, %v2349_v0  ;;  %v2351_v12 = vpop.f32.mrb[195].mxu0  ;;  %10917 = vmatmul.mubr.msk.bf16.gmra.mrb[160].mxu1 %vm2775_vm3, %v14118_v54 }
 0x495   :  { %10920 = vmatprep.mubr.msk.bf16.mxu1 %vm2775_vm3, %v14121_v2 }
 0x496   :  { %v2445_v10 = vpack.c.bf16 %v2434_v38, %v2433_v40 }
 0x498   :  { %10972 = vmatprep.subr.bf16.mxu0 %v2445_v10 }
 0x499   :  { %v2354_v25 = vpop.f32.mrb[196].mxu0  ;;  %10973 = vmatpush3.bf16.msra.mxu0 %v2445_v10 }
 0x49a   :  { %v2435_v36 = vmax.f32 %v2427_v35, %v2354_v25  ;;  %v2356_v1 = vpop.f32.mrb[197].mxu0 }
 0x49b   :  { %v2357_v62 = vpop.f32.mrb[198].mxu0 }
 0x49c   :  { %v2436_v18 = vmax.f32 %v2428_v32, %v2357_v62  ;;  %v2359_v16 = vpop.f32.mrb[199].mxu0  ;;  %10921 = vmatmul.mubr.msk.bf16.gmra.mrb[164].mxu1 %vm2775_vm3, %v14128_v27  ;;  %v12056_v62 = vld [vmem:[%s15613_s10 + $0x68] sm:$0xff]  }
 0x49d   :  { %10924 = vmatprep.mubr.msk.bf16.mxu1 %vm2775_vm3, %v14131_v13 }
 0x49e   :  { %v2446_v60 = vpack.c.bf16 %v2436_v18, %v2435_v36 }
 0x4a0   :  { %10974 = vmatprep.subr.bf16.mxu0 %v2446_v60 }
 0x4a1   :  { %v2362_v46 = vpop.f32.mrb[200].mxu0  ;;  %10975 = vmatpush3.bf16.msra.mxu0 %v2446_v60  ;;  %v12057_v60 = vld [vmem:[%s15613_s10 + $0x70] sm:$0xff]  }
 0x4a2   :  { %v2437_v39 = vmax.f32 %v2429_v4, %v2362_v46  ;;  %v2364_v59 = vpop.f32.mrb[201].mxu0  ;;  %v12043_v4 = vld [vmem:[%s15605_s13 + $0xe0] sm:$0xff]  }
 0x4a3   :  { %v2365_v11 = vpop.f32.mrb[202].mxu0  ;;  %v12058_v59 = vld [vmem:[%s15613_s10 + $0x78] sm:$0xff]  }
 0x4a4   :  { %v2438_v8 = vmax.f32 %v2430_v50, %v2365_v11  ;;  %v2367_v57 = vpop.f32.mrb[203].mxu0  ;;  %10925 = vmatmul.mubr.msk.bf16.gmra.mrb[168].mxu1 %vm2775_vm3, %v14138_v30  ;;  %v12054_v50 = vld [vmem:[%s15613_s10 + $0x38] sm:$0xff]  }
 0x4a5   :  { %10928 = vmatprep.mubr.msk.bf16.mxu1 %vm2775_vm3, %v14141_v56  ;;  %v14295_v57 = vld [vmem:[%s15613_s10 + $0xa0] sm:$0xff]  }
 0x4a6   :  { %v2447_v6 = vpack.c.bf16 %v2438_v8, %v2437_v39 }
 0x4a8   :  { %10976 = vmatprep.subr.bf16.mxu0 %v2447_v6 }
 0x4a9   :  { %v2370_v41 = vpop.f32.mrb[204].mxu0  ;;  %10977 = vmatpush3.bf16.msra.mxu0 %v2447_v6 }
 0x4aa   :  { %v2439_v26 = vmax.f32 %v2431_v28, %v2370_v41  ;;  %v2372_v20 = vpop.f32.mrb[205].mxu0 }
 0x4ab   :  { %v2373_v15 = vpop.f32.mrb[206].mxu0 }
 0x4ac   :  { %v2440_v34 = vmax.f32 %v2432_v55, %v2373_v15  ;;  %10929 = vmatmul.mubr.msk.bf16.gmra.mrb[172].mxu1 %vm2775_vm3, %v14148_v45  ;;  %v2375_v35 = vpop.f32.mrb[207].mxu0 }
 0x4ad   :  { %10932 = vmatprep.mubr.msk.bf16.mxu1 %vm2775_vm3, %v14151_v53 }
 0x4ae   :  { %v2448_v32 = vpack.c.bf16 %v2440_v34, %v2439_v26 }
 0x4b0   :  { %10978 = vmatprep.subr.bf16.mxu0 %v2448_v32 }
 0x4b1   :  { %10979 = vmatpush3.bf16.msra.mxu0 %v2448_v32 }
 0x4b4   :  { %10981 = vmatmul.mubr.msk.bf16.vlgmr.msra.gmra.mrb[208].mxu0 %vm2775_vm3, %v14046_v43  ;;  %10933 = vmatmul.mubr.msk.bf16.gmra.mrb[176].mxu1 %vm2775_vm3, %v14158_v23  ;;  %v12051_v43 = vld [vmem:[%s15613_s10 + $0x20] sm:$0xff]  }
 0x4b5   :  { %10984 = vmatprep.mubr.msk.bf16.mxu0 %vm2775_vm3, %v14049_v9  ;;  %10936 = vmatprep.mubr.msk.bf16.mxu1 %vm2775_vm3, %v14161_v22  ;;  %v12036_v9 = vld [vmem:[%s15605_s13 + $0xa8] sm:$0xff]  }
 0x4b6   :  { %11052 = vmatprep.subr.bf16.mxu1 %v12051_v43 }
 0x4b7   :  { %11053 = vmatpush3.bf16.msra.mxu1 %v12051_v43 }
 0x4b8   :  { %11054 = vmatprep.subr.bf16.mxu1 %v12052_v51 }
 0x4bb   :  { %11055 = vmatpush3.bf16.msra.mxu1 %v12052_v51 }
 0x4bc   :  { %10985 = vmatmul.mubr.msk.bf16.gmra.mrb[212].mxu0 %vm2775_vm3, %v14064_v37  ;;  %10937 = vmatmul.mubr.msk.bf16.gmra.mrb[180].mxu1 %vm2775_vm3, %v12034_v29  ;;  %v12038_v37 = vld [vmem:[%s15605_s13 + $0xb8] sm:$0xff]  }
 0x4bd   :  { %10988 = vmatprep.mubr.msk.bf16.mxu0 %vm2775_vm3, %v14067_v31  ;;  %10940 = vmatprep.mubr.msk.bf16.mxu1 %vm2775_vm3, %v12035_v44  ;;  %v12039_v31 = vld [vmem:[%s15605_s13 + $0xc0] sm:$0xff]  }
 0x4be   :  { %11056 = vmatprep.subr.bf16.mxu1 %v12053_v48 }
 0x4bf   :  { %11057 = vmatpush3.bf16.msra.mxu1 %v12053_v48 }
 0x4c0   :  { %11058 = vmatprep.subr.bf16.mxu1 %v12054_v50 }
 0x4c3   :  { %11059 = vmatpush3.bf16.msra.mxu1 %v12054_v50 }
 0x4c4   :  { %10989 = vmatmul.mubr.msk.bf16.gmra.mrb[216].mxu0 %vm2775_vm3, %v14082_v49  ;;  %10941 = vmatmul.mubr.msk.bf16.gmra.mrb[184].mxu1 %vm2775_vm3, %v12036_v9  ;;  %v12040_v49 = vld [vmem:[%s15605_s13 + $0xc8] sm:$0xff]  }
 0x4c5   :  { %10992 = vmatprep.mubr.msk.bf16.mxu0 %vm2775_vm3, %v14085_v61  ;;  %10944 = vmatprep.mubr.msk.bf16.mxu1 %vm2775_vm3, %v12037_v58  ;;  %v12041_v61 = vld [vmem:[%s15605_s13 + $0xd0] sm:$0xff]  }
 0x4c6   :  { %11076 = vmatprep.subr.bf16.mxu1 %v12055_v42 }
 0x4cc   :  { %10993 = vmatmul.mubr.msk.bf16.gmra.mrb[220].mxu0 %vm2775_vm3, %v14100_v52  ;;  %10945 = vmatmul.mubr.msk.bf16.gmra.mrb[188].mxu1 %vm2775_vm3, %v12038_v37  ;;  %v12044_v52 = vld [vmem:[%s15605_s13 + $0xe8] sm:$0xff]  }
 0x4cd   :  { %10996 = vmatprep.mubr.msk.bf16.mxu0 %vm2775_vm3, %v14103_v33  ;;  %10948 = vmatprep.mubr.msk.bf16.mxu1 %vm2775_vm3, %v12039_v31  ;;  %v12046_v33 = vld [vmem:[%s15605_s13 + $0xf8] sm:$0xff]  }
 0x4d4   :  { %10997 = vmatmul.mubr.msk.bf16.gmra.mrb[224].mxu0 %vm2775_vm3, %v14118_v54  ;;  %10949 = vmatmul.mubr.msk.bf16.gmra.mrb[192].mxu1 %vm2775_vm3, %v12040_v49 }
 0x4d5   :  { %11000 = vmatprep.mubr.msk.bf16.mxu0 %vm2775_vm3, %v14121_v2  ;;  %10952 = vmatprep.mubr.msk.bf16.mxu1 %vm2775_vm3, %v12041_v61 }
 0x4dc   :  { %11001 = vmatmul.mubr.msk.bf16.gmra.mrb[228].mxu0 %vm2775_vm3, %v14128_v27  ;;  %10953 = vmatmul.mubr.msk.bf16.gmra.mrb[196].mxu1 %vm2775_vm3, %v12042_v3 }
 0x4dd   :  { %11004 = vmatprep.mubr.msk.bf16.mxu0 %vm2775_vm3, %v14131_v13  ;;  %10956 = vmatprep.mubr.msk.bf16.mxu1 %vm2775_vm3, %v12043_v4 }
 0x4e4   :  { %11005 = vmatmul.mubr.msk.bf16.gmra.mrb[232].mxu0 %vm2775_vm3, %v14138_v30  ;;  %10957 = vmatmul.mubr.msk.bf16.gmra.mrb[200].mxu1 %vm2775_vm3, %v12044_v52 }
 0x4e5   :  { %11008 = vmatprep.mubr.msk.bf16.mxu0 %vm2775_vm3, %v14141_v56  ;;  %10960 = vmatprep.mubr.msk.bf16.mxu1 %vm2775_vm3, %v12045_v24 }
 0x4ec   :  { %11009 = vmatmul.mubr.msk.bf16.gmra.mrb[236].mxu0 %vm2775_vm3, %v14148_v45  ;;  %10961 = vmatmul.mubr.msk.bf16.gmra.mrb[204].mxu1 %vm2775_vm3, %v12046_v33 }
 0x4ed   :  { %11012 = vmatprep.mubr.msk.bf16.mxu0 %vm2775_vm3, %v14151_v53  ;;  %10964 = vmatprep.mubr.msk.bf16.mxu1 %vm2775_vm3, %v12047_v5 }
 0x4f4   :  { %11013 = vmatmul.mubr.msk.bf16.gmra.mrb[240].mxu0 %vm2775_vm3, %v14158_v23  ;;  %10965 = vmatmul.mubr.msk.bf16.gmra.mrb[208].mxu1 %vm2775_vm3, %v12048_v21 }
 0x4f5   :  { %11016 = vmatprep.mubr.msk.bf16.mxu0 %vm2775_vm3, %v14161_v22  ;;  %10968 = vmatprep.mubr.msk.bf16.mxu1 %vm2775_vm3, %v12049_v14 }
 0x4fc   :  { %11017 = vmatmul.mubr.msk.bf16.gmra.mrb[244].mxu0 %vm2775_vm3, %v12034_v29  ;;  %10969 = vmatmul.mubr.msk.bf16.gmra.mrb[212].mxu1 %vm2775_vm3, %v12050_v17 }
 0x4fd   :  { %11020 = vmatprep.mubr.msk.bf16.mxu0 %vm2775_vm3, %v12035_v44 }
 0x504   :  { %11021 = vmatmul.mubr.msk.bf16.gmra.mrb[248].mxu0 %vm2775_vm3, %v12036_v9 }
 0x505   :  { %11024 = vmatprep.mubr.msk.bf16.mxu0 %vm2775_vm3, %v12037_v58 }
 0x50c   :  { %11025 = vmatmul.mubr.msk.bf16.gmra.mrb[252].mxu0 %vm2775_vm3, %v12038_v37 }
 0x50d   :  { %11028 = vmatprep.mubr.msk.bf16.mxu0 %vm2775_vm3, %v12039_v31 }
 0x514   :  { %11029 = vmatmul.mubr.msk.bf16.gmra.mrb[0].mxu0 %vm2775_vm3, %v12040_v49 }
 0x515   :  { %11032 = vmatprep.mubr.msk.bf16.mxu0 %vm2775_vm3, %v12041_v61 }
 0x51c   :  { %11033 = vmatmul.mubr.msk.bf16.gmra.mrb[4].mxu0 %vm2775_vm3, %v12042_v3 }
 0x51d   :  { %11036 = vmatprep.mubr.msk.bf16.mxu0 %vm2775_vm3, %v12043_v4 }
 0x524   :  { %11037 = vmatmul.mubr.msk.bf16.gmra.mrb[8].mxu0 %vm2775_vm3, %v12044_v52 }
 0x525   :  { %11040 = vmatprep.mubr.msk.bf16.mxu0 %vm2775_vm3, %v12045_v24 }
 0x52c   :  { %11041 = vmatmul.mubr.msk.bf16.gmra.mrb[12].mxu0 %vm2775_vm3, %v12046_v33 }
 0x52d   :  { %11044 = vmatprep.mubr.msk.bf16.mxu0 %vm2775_vm3, %v12047_v5 }
 0x534   :  { %11045 = vmatmul.mubr.msk.bf16.gmra.mrb[16].mxu0 %vm2775_vm3, %v12048_v21 }
 0x535   :  { %11048 = vmatprep.mubr.msk.bf16.mxu0 %vm2775_vm3, %v12049_v14 }
 0x53c   :  { %11049 = vmatmul.mubr.msk.bf16.gmra.mrb[20].mxu0 %vm2775_vm3, %v12050_v17 }
 0x547   :  { %v14259_v47 = vpop.f32.mrb[144].mxu1 }
 0x548   :  { %v14261_v63 = vpop.f32.mrb[145].mxu1 }
 0x549   :  { %v14263_v28 = vpop.f32.mrb[146].mxu1 }
 0x54a   :  { %v14267_v54 = vpop.f32.mrb[147].mxu1 }
 0x54f   :  { %v14271_v2 = vpop.f32.mrb[148].mxu1 }
 0x550   :  { %v14273_v40 = vpop.f32.mrb[149].mxu1 }
 0x551   :  { %v14275_v7 = vpop.f32.mrb[150].mxu1 }
 0x552   :  { %v14279_v38 = vpop.f32.mrb[151].mxu1 }
 0x557   :  { %v10910_v10 = vpop.f32.mrb[152].mxu1 }
 0x558   :  { %v2950_v27 = vpop.f32.mrb[153].mxu1 }
 0x559   :  { %v10911_v25 = vpop.f32.mrb[154].mxu1 }
 0x55a   :  { %v3210_v13 = vpack.c.bf16 %v10911_v25, %v10910_v10  ;;  %v2953_v36 = vpop.f32.mrb[155].mxu1 }
 0x55b   :  { %v3209_v1 = vpack.c.bf16 %v2953_v36, %v2950_v27 }
 0x55d   :  { %11060 = vmatprep.mubr.msk.bf16.mxu1 %vm2775_vm3, %v3209_v1 }
 0x55e   :  { %11061 = vmatmul.mubr.msk.bf16.vlgmr.msra.gmra.mrb[216].mxu1 %vm2775_vm3, %v3210_v13 }
 0x55f   :  { %v10914_v18 = vpop.f32.mrb[156].mxu1  ;;  %11077 = vmatpush3.bf16.msra.mxu1 %v12055_v42 }
 0x560   :  { %v2966_v16 = vpop.f32.mrb[157].mxu1  ;;  %11078 = vmatprep.subr.bf16.mxu1 %v12056_v62 }
 0x561   :  { %v10915_v30 = vpop.f32.mrb[158].mxu1 }
 0x562   :  { %v3212_v46 = vpack.c.bf16 %v10915_v30, %v10914_v18  ;;  %v2969_v56 = vpop.f32.mrb[159].mxu1 }
 0x563   :  { %v3211_v39 = vpack.c.bf16 %v2969_v56, %v2966_v16  ;;  %11079 = vmatpush3.bf16.msra.mxu1 %v12056_v62  ;;  %v12060_v16 = vld [vmem:[%s15613_s10 + $0xa8] sm:$0xff]  }
 0x564   :  { %11080 = vmatprep.subr.bf16.mxu1 %v12057_v60 }
 0x565   :  { %11064 = vmatprep.mubr.msk.bf16.mxu1 %vm2775_vm3, %v3211_v39 }
 0x566   :  { %11065 = vmatmul.mubr.msk.bf16.gmra.mrb[220].mxu1 %vm2775_vm3, %v3212_v46 }
 0x567   :  { %v14290_v11 = vpop.f32.mrb[160].mxu1  ;;  %11081 = vmatpush3.bf16.msra.mxu1 %v12057_v60 }
 0x568   :  { %v14292_v8 = vpop.f32.mrb[161].mxu1  ;;  %11082 = vmatprep.subr.bf16.mxu1 %v12058_v59 }
 0x569   :  { %v14297_v6 = vpop.f32.mrb[162].mxu1 }
 0x56a   :  { %v14301_v41 = vpop.f32.mrb[163].mxu1 }
 0x56b   :  { %11083 = vmatpush3.bf16.msra.mxu1 %v12058_v59 }
 0x56c   :  { %11100 = vmatprep.subr.bf16.mxu1 %v14295_v57 }
 0x56f   :  { %v14306_v26 = vpop.f32.mrb[164].mxu1 }
 0x570   :  { %v14308_v20 = vpop.f32.mrb[165].mxu1 }
 0x571   :  { %v14310_v15 = vpop.f32.mrb[166].mxu1 }
 0x572   :  { %v14314_v35 = vpop.f32.mrb[167].mxu1 }
 0x577   :  { %v14318_v23 = vpop.f32.mrb[168].mxu1 }
 0x578   :  { %v14320_v22 = vpop.f32.mrb[169].mxu1 }
 0x579   :  { %v14322_v29 = vpop.f32.mrb[170].mxu1 }
 0x57a   :  { %v3218_v44 = vpack.c.bf16 %v14322_v29, %v14318_v23  ;;  %v3017_v43 = vpop.f32.mrb[171].mxu1 }
 0x57b   :  { %v3217_v9 = vpack.c.bf16 %v3017_v43, %v14320_v22 }
 0x57f   :  { %v14327_v58 = vpop.f32.mrb[172].mxu1 }
 0x580   :  { %v14329_v37 = vpop.f32.mrb[173].mxu1 }
 0x581   :  { %v14331_v31 = vpop.f32.mrb[174].mxu1 }
 0x582   :  { %v14335_v49 = vpop.f32.mrb[175].mxu1 }
 0x583   :  { %v3219_v61 = vpack.c.bf16 %v14335_v49, %v14329_v37 }
 0x587   :  { %v14339_v48 = vpop.f32.mrb[208].mxu0  ;;  %v14341_v3 = vpop.f32.mrb[176].mxu1 }
 0x588   :  { %15614 = vst [vmem:[#allocation61_spill] sm:$0xff] %v14341_v3  ;;  %v14343_v4 = vpop.f32.mrb[209].mxu0  ;;  %v14345_v50 = vpop.f32.mrb[177].mxu1 }
 0x589   :  { %15615 = vst [vmem:[#allocation62_spill] sm:$0xff] %v14345_v50  ;;  %v14347_v52 = vpop.f32.mrb[210].mxu0  ;;  %v14349_v24 = vpop.f32.mrb[178].mxu1 }
 0x58a   :  { %15616 = vst [vmem:[#allocation63_spill] sm:$0xff] %v14349_v24  ;;  %v14353_v5 = vpop.f32.mrb[211].mxu0  ;;  %v14357_v14 = vpop.f32.mrb[179].mxu1 }
 0x58b   :  { %15617 = vst [vmem:[#allocation64_spill] sm:$0xff] %v14357_v14 }
 0x58f   :  { %v14363_v10 = vpop.f32.mrb[212].mxu0  ;;  %v14365_v27 = vpop.f32.mrb[180].mxu1 }
 0x590   :  { %15618 = vst [vmem:[#allocation65_spill] sm:$0xff] %v14365_v27  ;;  %v14367_v25 = vpop.f32.mrb[213].mxu0  ;;  %v14369_v13 = vpop.f32.mrb[181].mxu1 }
 0x591   :  { %15619 = vst [vmem:[#allocation66_spill] sm:$0xff] %v14369_v13  ;;  %v14371_v36 = vpop.f32.mrb[214].mxu0  ;;  %v14373_v1 = vpop.f32.mrb[182].mxu1  ;;  %v12065_v13 = vld [vmem:[%s15613_s10 + $0xf0] sm:$0xff]  }
 0x592   :  { %15620 = vst [vmem:[#allocation67_spill] sm:$0xff] %v14373_v1  ;;  %v14377_v18 = vpop.f32.mrb[215].mxu0  ;;  %v14381_v60 = vpop.f32.mrb[183].mxu1 }
 0x593   :  { %15621 = vst [vmem:[#allocation68_spill] sm:$0xff] %v14381_v60  ;;  %v12064_v60 = vld [vmem:[%s15613_s10 + $0xe8] sm:$0xff]  }
 0x597   :  { %v10990_v56 = vpop.f32.mrb[216].mxu0  ;;  %v14387_v39 = vpop.f32.mrb[184].mxu1 }
 0x598   :  { %v3307_v59 = vpop.f32.mrb[217].mxu0  ;;  %v14389_v22 = vpop.f32.mrb[185].mxu1 }
 0x599   :  { %v10991_v43 = vpop.f32.mrb[218].mxu0  ;;  %v14391_v21 = vpop.f32.mrb[186].mxu1 }
 0x59a   :  { %v3567_v42 = vpack.c.bf16 %v10991_v43, %v10990_v56  ;;  %v3310_v34 = vpop.f32.mrb[219].mxu0  ;;  %v14395_v32 = vpop.f32.mrb[187].mxu1  ;;  %v15636_v3 = vpack.c.bf16 %v14391_v21, %v14387_v39 }
 0x59b   :  { %v3566_v45 = vpack.c.bf16 %v3310_v34, %v3307_v59 }
 0x59d   :  { %11068 = vmatprep.mubr.msk.bf16.mxu1 %vm2775_vm3, %v3566_v45  ;;  %v12061_v45 = vld [vmem:[%s15613_s10 + $0xb0] sm:$0xff]  }
 0x59e   :  { %11069 = vmatmul.mubr.msk.bf16.gmra.mrb[224].mxu1 %vm2775_vm3, %v3567_v42 }
 0x59f   :  { %v10994_v53 = vpop.f32.mrb[220].mxu0  ;;  %v14401_v62 = vpop.f32.mrb[188].mxu1 }
 0x5a0   :  { %v3323_v30 = vpop.f32.mrb[221].mxu0  ;;  %v14403_v33 = vpop.f32.mrb[189].mxu1 }
 0x5a1   :  { %v10995_v56 = vpop.f32.mrb[222].mxu0  ;;  %v14405_v43 = vpop.f32.mrb[190].mxu1 }
 0x5a2   :  { %v3569_v17 = vpack.c.bf16 %v10995_v56, %v10994_v53  ;;  %v3326_v0 = vpop.f32.mrb[223].mxu0  ;;  %v14409_v59 = vpop.f32.mrb[191].mxu1  ;;  %v15640_v24 = vpack.c.bf16 %v14405_v43, %v14401_v62 }
 0x5a3   :  { %v3568_v12 = vpack.c.bf16 %v3326_v0, %v3323_v30 }
 0x5a5   :  { %11072 = vmatprep.mubr.msk.bf16.mxu1 %vm2775_vm3, %v3568_v12 }
 0x5a6   :  { %11073 = vmatmul.mubr.msk.bf16.gmra.mrb[228].mxu1 %vm2775_vm3, %v3569_v17 }
 0x5a7   :  { %11084 = vmatprep.mubr.msk.bf16.mxu1 %vm2775_vm3, %v3217_v9  ;;  %v14416_v42 = vpop.f32.mrb[224].mxu0  ;;  %v14418_v53 = vpop.f32.mrb[192].mxu1 }
 0x5a8   :  { %15622 = vst [vmem:[#allocation69_spill] sm:$0xff] %v14418_v53  ;;  %v14420_v56 = vpop.f32.mrb[225].mxu0  ;;  %v14422_v55 = vpop.f32.mrb[193].mxu1  ;;  %v12062_v53 = vld [vmem:[%s15613_s10 + $0xb8] sm:$0xff]  }
 0x5a9   :  { %15623 = vst [vmem:[#allocation70_spill] sm:$0xff] %v14422_v55  ;;  %v14424_v19 = vpop.f32.mrb[226].mxu0  ;;  %v14426_v0 = vpop.f32.mrb[194].mxu1 }
 0x5aa   :  { %15624 = vst [vmem:[#allocation71_spill] sm:$0xff] %v14426_v0  ;;  %v14430_v30 = vpop.f32.mrb[227].mxu0  ;;  %v14434_v17 = vpop.f32.mrb[195].mxu1  ;;  %v15630_v0 = vpack.c.bf16 %v14331_v31, %v14327_v58 }
 0x5ab   :  { %15625 = vst [vmem:[#allocation72_spill] sm:$0xff] %v14434_v17 }
 0x5ae   :  { %11085 = vmatmul.mubr.msk.bf16.vlgmr.msra.gmra.mrb[216].mxu1 %vm2775_vm3, %v3218_v44 }
 0x5af   :  { %v14445_v12 = vpop.f32.mrb[228].mxu0  ;;  %11088 = vmatprep.mubr.msk.bf16.mxu1 %vm2775_vm3, %v3219_v61  ;;  %11101 = vmatpush3.bf16.msra.mxu1 %v14295_v57  ;;  %v14452_v9 = vpop.f32.mrb[196].mxu1 }
 0x5b0   :  { %15626 = vst [vmem:[#allocation73_spill] sm:$0xff] %v14452_v9  ;;  %v14454_v34 = vpop.f32.mrb[229].mxu0  ;;  %11102 = vmatprep.subr.bf16.mxu1 %v12060_v16  ;;  %v14457_v46 = vpop.f32.mrb[197].mxu1  ;;  %v12063_v9 = vld [vmem:[%s15613_s10 + $0xe0] sm:$0xff]  }
 0x5b1   :  { %15627 = vst [vmem:[#allocation74_spill] sm:$0xff] %v14457_v46  ;;  %v14459_v23 = vpop.f32.mrb[230].mxu0  ;;  %v14461_v29 = vpop.f32.mrb[198].mxu1 }
 0x5b2   :  { %15628 = vst [vmem:[#allocation75_spill] sm:$0xff] %v14461_v29  ;;  %v14465_v37 = vpop.f32.mrb[231].mxu0  ;;  %v14469_v49 = vpop.f32.mrb[199].mxu1 }
 0x5b3   :  { %15629 = vst [vmem:[#allocation76_spill] sm:$0xff] %v14469_v49  ;;  %11103 = vmatpush3.bf16.msra.mxu1 %v12060_v16 }
 0x5b4   :  { %11104 = vmatprep.subr.bf16.mxu1 %v12061_v45 }
 0x5b6   :  { %11089 = vmatmul.mubr.msk.bf16.gmra.mrb[220].mxu1 %vm2775_vm3, %v15630_v0 }
 0x5b7   :  { %v11006_v44 = vpop.f32.mrb[232].mxu0  ;;  %11105 = vmatpush3.bf16.msra.mxu1 %v12061_v45  ;;  %v14480_v55 = vpop.f32.mrb[200].mxu1 }
 0x5b8   :  { %v3371_v57 = vpop.f32.mrb[233].mxu0  ;;  %11106 = vmatprep.subr.bf16.mxu1 %v12062_v53  ;;  %v14483_v29 = vpop.f32.mrb[201].mxu1 }
 0x5b9   :  { %v11007_v16 = vpop.f32.mrb[234].mxu0  ;;  %v14485_v61 = vpop.f32.mrb[202].mxu1 }
 0x5ba   :  { %v3575_v51 = vpack.c.bf16 %v11007_v16, %v11006_v44  ;;  %v3374_v46 = vpop.f32.mrb[235].mxu0  ;;  %v14489_v58 = vpop.f32.mrb[203].mxu1 }
 0x5bb   :  { %v3574_v31 = vpack.c.bf16 %v3374_v46, %v3371_v57  ;;  %11107 = vmatpush3.bf16.msra.mxu1 %v12062_v53 }
 0x5bc   :  { %11124 = vmatprep.subr.bf16.mxu1 %v12063_v9 }
 0x5bd   :  { %11092 = vmatprep.mubr.msk.bf16.mxu1 %vm2775_vm3, %v3574_v31  ;;  %v15631_v31 = vpack.c.bf16 %v14395_v32, %v14389_v22 }
 0x5be   :  { %11093 = vmatmul.mubr.msk.bf16.gmra.mrb[224].mxu1 %vm2775_vm3, %v3575_v51 }
 0x5bf   :  { %v11010_v0 = vpop.f32.mrb[236].mxu0  ;;  %v14495_v17 = vpop.f32.mrb[204].mxu1 }
 0x5c0   :  { %v3387_v44 = vpop.f32.mrb[237].mxu0  ;;  %v14497_v16 = vpop.f32.mrb[205].mxu1 }
 0x5c1   :  { %v11011_v27 = vpop.f32.mrb[238].mxu0  ;;  %v14499_v49 = vpop.f32.mrb[206].mxu1 }
 0x5c2   :  { %v3577_v1 = vpack.c.bf16 %v11011_v27, %v11010_v0  ;;  %v3390_v46 = vpop.f32.mrb[239].mxu0  ;;  %v14503_v57 = vpop.f32.mrb[207].mxu1 }
 0x5c3   :  { %v3576_v45 = vpack.c.bf16 %v3390_v46, %v3387_v44 }
 0x5c5   :  { %11096 = vmatprep.mubr.msk.bf16.mxu1 %vm2775_vm3, %v3576_v45 }
 0x5c6   :  { %11097 = vmatmul.mubr.msk.bf16.gmra.mrb[228].mxu1 %vm2775_vm3, %v3577_v1 }
 0x5c7   :  { %11108 = vmatprep.mubr.msk.bf16.mxu1 %vm2775_vm3, %v15631_v31  ;;  %v14513_v27 = vpop.f32.mrb[240].mxu0  ;;  %v14515_v0 = vpop.f32.mrb[208].mxu1 }
 0x5c8   :  { %15632 = vst [vmem:[#allocation77_spill] sm:$0xff] %v14513_v27  ;;  %v14517_v53 = vpop.f32.mrb[241].mxu0  ;;  %v14519_v44 = vpop.f32.mrb[209].mxu1  ;;  %v15638_v27 = vpack.c.bf16 %v14409_v59, %v14403_v33  ;;  %v12067_v59 = vld [vmem:[%s15613_s10 + $0x100] sm:$0xff]  }
 0x5c9   :  { %15633 = vst [vmem:[#allocation78_spill] sm:$0xff] %v14517_v53  ;;  %v14521_v46 = vpop.f32.mrb[242].mxu0  ;;  %v14523_v51 = vpop.f32.mrb[210].mxu1 }
 0x5ca   :  { %15634 = vst [vmem:[#allocation79_spill] sm:$0xff] %v14521_v46  ;;  %v14527_v45 = vpop.f32.mrb[243].mxu0  ;;  %v14531_v22 = vpop.f32.mrb[211].mxu1 }
 0x5cb   :  { %15635 = vst [vmem:[#allocation80_spill] sm:$0xff] %v14527_v45  ;;  %v12066_v45 = vld [vmem:[%s15613_s10 + $0xf8] sm:$0xff]  }
 0x5ce   :  { %11109 = vmatmul.mubr.msk.bf16.vlgmr.msra.gmra.mrb[216].mxu1 %vm2775_vm3, %v15636_v3 }
 0x5cf   :  { %v14542_v1 = vpop.f32.mrb[244].mxu0  ;;  %11112 = vmatprep.mubr.msk.bf16.mxu1 %vm2775_vm3, %v15638_v27  ;;  %11125 = vmatpush3.bf16.msra.mxu1 %v12063_v9  ;;  %v14548_v32 = vpop.f32.mrb[212].mxu1 }
 0x5d0   :  { %15637 = vst [vmem:[#allocation81_spill] sm:$0xff] %v14542_v1  ;;  %v14550_v31 = vpop.f32.mrb[245].mxu0  ;;  %11126 = vmatprep.subr.bf16.mxu1 %v12064_v60  ;;  %v14553_v46 = vpop.f32.mrb[213].mxu1 }
 0x5d1   :  { %v14555_v21 = vpop.f32.mrb[246].mxu0  ;;  %v14557_v3 = vpop.f32.mrb[214].mxu1 }
 0x5d2   :  { %15639 = vst [vmem:[#allocation82_spill] sm:$0xff] %v14555_v21  ;;  %v14561_v39 = vpop.f32.mrb[247].mxu0  ;;  %v14565_v9 = vpop.f32.mrb[215].mxu1 }
 0x5d3   :  { %11127 = vmatpush3.bf16.msra.mxu1 %v12064_v60 }
 0x5d4   :  { %11128 = vmatprep.subr.bf16.mxu1 %v12065_v13 }
 0x5d6   :  { %11113 = vmatmul.mubr.msk.bf16.gmra.mrb[220].mxu1 %vm2775_vm3, %v15640_v24 }
 0x5d7   :  { %v11022_v33 = vpop.f32.mrb[248].mxu0  ;;  %11129 = vmatpush3.bf16.msra.mxu1 %v12065_v13 }
 0x5d8   :  { %v3435_v1 = vpop.f32.mrb[249].mxu0  ;;  %11130 = vmatprep.subr.bf16.mxu1 %v12066_v45 }
 0x5d9   :  { %v11023_v21 = vpop.f32.mrb[250].mxu0 }
 0x5da   :  { %v3583_v50 = vpack.c.bf16 %v11023_v21, %v11022_v33  ;;  %v3438_v14 = vpop.f32.mrb[251].mxu0 }
 0x5db   :  { %v3582_v27 = vpack.c.bf16 %v3438_v14, %v3435_v1  ;;  %11131 = vmatpush3.bf16.msra.mxu1 %v12066_v45  ;;  %v15641_v14 = vpack.c.bf16 %v14489_v58, %v14483_v29  ;;  %v15642_v29 = vpack.c.bf16 %v14485_v61, %v14480_v55 }
 0x5dc   :  { %11148 = vmatprep.subr.bf16.mxu1 %v12067_v59 }
 0x5dd   :  { %11116 = vmatprep.mubr.msk.bf16.mxu1 %vm2775_vm3, %v3582_v27  ;;  %v12068_v27 = vld [vmem:[%s15613_s10 + $0x108] sm:$0xff]  }
 0x5de   :  { %11117 = vmatmul.mubr.msk.bf16.gmra.mrb[224].mxu1 %vm2775_vm3, %v3583_v50 }
 0x5df   :  { %v11026_v60 = vpop.f32.mrb[252].mxu0 }
 0x5e0   :  { %v3451_v62 = vpop.f32.mrb[253].mxu0 }
 0x5e1   :  { %v11027_v43 = vpop.f32.mrb[254].mxu0 }
 0x5e2   :  { %v3585_v24 = vpack.c.bf16 %v11027_v43, %v11026_v60  ;;  %v3454_v53 = vpop.f32.mrb[255].mxu0  ;;  %v15643_v60 = vpack.c.bf16 %v14503_v57, %v14497_v16  ;;  %v12069_v43 = vld [vmem:[%s15613_s10 + $0x110] sm:$0xff]   ;;  %v12070_v16 = vld [vmem:[%s15613_s10 + $0x118] sm:$0xff]   ;;  %v15644_v57 = vpack.c.bf16 %v14499_v49, %v14495_v17 }
 0x5e3   :  { %v3584_v13 = vpack.c.bf16 %v3454_v53, %v3451_v62 }
 0x5e5   :  { %11120 = vmatprep.mubr.msk.bf16.mxu1 %vm2775_vm3, %v3584_v13 }
 0x5e6   :  { %11121 = vmatmul.mubr.msk.bf16.gmra.mrb[228].mxu1 %vm2775_vm3, %v3585_v24 }
 0x5e7   :  { %11132 = vmatprep.mubr.msk.bf16.mxu1 %vm2775_vm3, %v15641_v14  ;;  %v14585_v1 = vpop.f32.mrb[0].mxu0 }
 0x5e8   :  { %v14587_v50 = vpop.f32.mrb[1].mxu0 }
 0x5e9   :  { %v14589_v45 = vpop.f32.mrb[2].mxu0 }
 0x5ea   :  { %v14593_v53 = vpop.f32.mrb[3].mxu0 }
 0x5ee   :  { %11133 = vmatmul.mubr.msk.bf16.vlgmr.msra.gmra.mrb[216].mxu1 %vm2775_vm3, %v15642_v29  ;;  %v12071_v29 = vld [vmem:[%s15613_s10] sm:$0xff]  }
 0x5ef   :  { %v14602_v58 = vpop.f32.mrb[4].mxu0  ;;  %11136 = vmatprep.mubr.msk.bf16.mxu1 %vm2775_vm3, %v15643_v60  ;;  %11149 = vmatpush3.bf16.msra.mxu1 %v12067_v59 }
 0x5f0   :  { %v14608_v62 = vpop.f32.mrb[5].mxu0  ;;  %11150 = vmatprep.subr.bf16.mxu1 %v12068_v27 }
 0x5f1   :  { %v14611_v24 = vpop.f32.mrb[6].mxu0 }
 0x5f2   :  { %v14615_v61 = vpop.f32.mrb[7].mxu0 }
 0x5f3   :  { %11151 = vmatpush3.bf16.msra.mxu1 %v12068_v27 }
 0x5f4   :  { %11152 = vmatprep.subr.bf16.mxu1 %v12069_v43 }
 0x5f6   :  { %11137 = vmatmul.mubr.msk.bf16.gmra.mrb[220].mxu1 %vm2775_vm3, %v15644_v57 }
 0x5f7   :  { %v11038_v59 = vpop.f32.mrb[8].mxu0  ;;  %11153 = vmatpush3.bf16.msra.mxu1 %v12069_v43 }
 0x5f8   :  { %v3499_v14 = vpop.f32.mrb[9].mxu0  ;;  %11154 = vmatprep.subr.bf16.mxu1 %v12070_v16 }
 0x5f9   :  { %v11039_v60 = vpop.f32.mrb[10].mxu0 }
 0x5fa   :  { %v3591_v55 = vpack.c.bf16 %v11039_v60, %v11038_v59  ;;  %v3502_v21 = vpop.f32.mrb[11].mxu0 }
 0x5fb   :  { %v3590_v33 = vpack.c.bf16 %v3502_v21, %v3499_v14  ;;  %11155 = vmatpush3.bf16.msra.mxu1 %v12070_v16  ;;  %v15645_v21 = vpack.c.bf16 %v14531_v22, %v14519_v44 }
 0x5fc   :  { %11172 = vmatprep.subr.bf16.mxu1 %v12071_v29 }
 0x5fd   :  { %11140 = vmatprep.mubr.msk.bf16.mxu1 %vm2775_vm3, %v3590_v33 }
 0x5fe   :  { %11141 = vmatmul.mubr.msk.bf16.gmra.mrb[224].mxu1 %vm2775_vm3, %v3591_v55 }
 0x5ff   :  { %v11042_v27 = vpop.f32.mrb[12].mxu0 }
 0x600   :  { %v3515_v17 = vpop.f32.mrb[13].mxu0 }
 0x601   :  { %v11043_v49 = vpop.f32.mrb[14].mxu0 }
 0x602   :  { %v3593_v57 = vpack.c.bf16 %v11043_v49, %v11042_v27  ;;  %v3518_v13 = vpop.f32.mrb[15].mxu0  ;;  %v12072_v27 = vld [vmem:[%s15613_s10 + $0x8] sm:$0xff]   ;;  %v12073_v49 = vld [vmem:[%s15613_s10 + $0x10] sm:$0xff]  }
 0x603   :  { %v3592_v43 = vpack.c.bf16 %v3518_v13, %v3515_v17  ;;  %v15646_v13 = vpack.c.bf16 %v14523_v51, %v14515_v0  ;;  %v15647_v17 = vpack.c.bf16 %v14565_v9, %v14553_v46  ;;  %v12074_v51 = vld [vmem:[%s15613_s10 + $0x18] sm:$0xff]   ;;  %v15648_v0 = vpack.c.bf16 %v14557_v3, %v14548_v32  ;;  %v12075_v46 = vld [vmem:[%s15613_s10 + $0x40] sm:$0xff]   ;;  %v12076_v3 = vld [vmem:[%s15613_s10 + $0x48] sm:$0xff]  }
 0x604   :  { %v15649_v32 = vpack.c.bf16 %v14267_v54, %v14261_v63  ;;  %v15650_v9 = vpack.c.bf16 %v14263_v28, %v14259_v47  ;;  %v12078_v63 = vld [vmem:[%s15613_s10 + $0x58] sm:$0xff]   ;;  %v15652_v54 = vpack.c.bf16 %v14275_v7, %v14271_v2  ;;  %v15653_v47 = vpack.c.bf16 %v14353_v5, %v14343_v4  ;;  %v12079_v28 = vld [vmem:[%s15613_s10 + $0x80] sm:$0xff]   ;;  %v12080_v4 = vld [vmem:[%s15613_s10 + $0x88] sm:$0xff]  }
 0x605   :  { %11144 = vmatprep.mubr.msk.bf16.mxu1 %vm2775_vm3, %v3592_v43  ;;  %v15655_v2 = vpack.c.bf16 %v14377_v18, %v14367_v25  ;;  %v15656_v7 = vpack.c.bf16 %v14371_v36, %v14363_v10  ;;  %v12081_v5 = vld [vmem:[%s15613_s10 + $0x90] sm:$0xff]   ;;  %v12084_v36 = vld [vmem:[%s15613_s10 + $0xc8] sm:$0xff]   ;;  %v15668_v18 = vld [vmem:[#allocation63_spill] sm:$0xff] }
 0x606   :  { %11145 = vmatmul.mubr.msk.bf16.gmra.mrb[228].mxu1 %vm2775_vm3, %v3593_v57  ;;  %v15666_v10 = vld [vmem:[#allocation62_spill] sm:$0xff] }
 0x607   :  { %11156 = vmatprep.mubr.msk.bf16.mxu1 %vm2775_vm3, %v15645_v21  ;;  %v11046_v33 = vpop.f32.mrb[16].mxu0 }
 0x608   :  { %v3531_v16 = vpop.f32.mrb[17].mxu0 }
 0x609   :  { %v11047_v55 = vpop.f32.mrb[18].mxu0 }
 0x60a   :  { %v3595_v59 = vpack.c.bf16 %v11047_v55, %v11046_v33  ;;  %v3534_v14 = vpop.f32.mrb[19].mxu0  ;;  %v15675_v55 = vld [vmem:[#allocation65_spill] sm:$0xff] }
 0x60b   :  { %v3594_v60 = vpack.c.bf16 %v3534_v14, %v3531_v16  ;;  %v12077_v16 = vld [vmem:[%s15613_s10 + $0x50] sm:$0xff]   ;;  %v15677_v14 = vld [vmem:[#allocation80_spill] sm:$0xff] }
 0x60e   :  { %11157 = vmatmul.mubr.msk.bf16.vlgmr.msra.gmra.mrb[216].mxu1 %vm2775_vm3, %v15646_v13  ;;  %v15680_v13 = vld [vmem:[#allocation79_spill] sm:$0xff] }
 0x60f   :  { %11160 = vmatprep.mubr.msk.bf16.mxu1 %vm2775_vm3, %v15647_v17  ;;  %v11050_v44 = vpop.f32.mrb[20].mxu0  ;;  %11173 = vmatpush3.bf16.msra.mxu1 %v12071_v29  ;;  %v15651_v29 = vpack.c.bf16 %v14279_v38, %v14273_v40  ;;  %v15654_v40 = vpack.c.bf16 %v14347_v52, %v14339_v48  ;;  %v15657_v38 = vpack.c.bf16 %v14301_v41, %v14292_v8  ;;  %v12082_v8 = vld [vmem:[%s15613_s10 + $0x98] sm:$0xff]   ;;  %v15681_v17 = vld [vmem:[#allocation77_spill] sm:$0xff] }
 0x610   :  { %v3547_v22 = vpop.f32.mrb[21].mxu0  ;;  %11174 = vmatprep.subr.bf16.mxu1 %v12072_v27  ;;  %v15658_v48 = vpack.c.bf16 %v14297_v6, %v14290_v11  ;;  %v15659_v52 = vpack.c.bf16 %v14314_v35, %v14308_v20  ;;  %v15660_v41 = vpack.c.bf16 %v14310_v15, %v14306_v26  ;;  %v15661_v11 = vpack.c.bf16 %v14430_v30, %v14420_v56  ;;  %v12083_v6 = vld [vmem:[%s15613_s10 + $0xc0] sm:$0xff]  }
 0x611   :  { %v11051_v57 = vpop.f32.mrb[22].mxu0  ;;  %v15662_v20 = vpack.c.bf16 %v14424_v19, %v14416_v42  ;;  %v15663_v26 = vpack.c.bf16 %v14465_v37, %v14454_v34  ;;  %v15664_v15 = vpack.c.bf16 %v14459_v23, %v14445_v12  ;;  %v15665_v35 = vld [vmem:[#allocation64_spill] sm:$0xff]  ;;  %v15669_v19 = vld [vmem:[#allocation61_spill] sm:$0xff]  ;;  %v15672_v34 = vld [vmem:[#allocation66_spill] sm:$0xff] }
 0x612   :  { %v3597_v43 = vpack.c.bf16 %v11051_v57, %v11050_v44  ;;  %v3550_v21 = vpop.f32.mrb[23].mxu0  ;;  %v15667_v25 = vpack.c.bf16 %v15665_v35, %v15666_v10  ;;  %v15670_v42 = vpack.c.bf16 %v15668_v18, %v15669_v19  ;;  %v15671_v56 = vld [vmem:[#allocation68_spill] sm:$0xff]  ;;  %v12085_v12 = vld [vmem:[%s15613_s10 + $0xd0] sm:$0xff]   ;;  %v12086_v23 = vld [vmem:[%s15613_s10 + $0xd8] sm:$0xff]   ;;  %v15682_v44 = vpack.c.bf16 %v15680_v13, %v15681_v17 }
 0x613   :  { %v3596_v33 = vpack.c.bf16 %v3550_v21, %v3547_v22  ;;  %11175 = vmatpush3.bf16.msra.mxu1 %v12072_v27  ;;  %v15673_v30 = vpack.c.bf16 %v15671_v56, %v15672_v34  ;;  %v15674_v37 = vld [vmem:[#allocation67_spill] sm:$0xff]  ;;  %v15683_v22 = vpack.c.bf16 %v14561_v39, %v14550_v31  ;;  %v15685_v57 = vld [vmem:[#allocation81_spill] sm:$0xff]  ;;  %v15687_v21 = vld [vmem:[#allocation72_spill] sm:$0xff] }
 0x614   :  { %11176 = vmatprep.subr.bf16.mxu1 %v12073_v49  ;;  %v15696_v39 = vld [vmem:[#allocation75_spill] sm:$0xff] }
 0x616   :  { %11161 = vmatmul.mubr.msk.bf16.gmra.mrb[220].mxu1 %vm2775_vm3, %v15648_v0  ;;  %v15690_v0 = vld [vmem:[#allocation71_spill] sm:$0xff] }
 0x617   :  { %11164 = vmatprep.mubr.msk.bf16.mxu1 %vm2775_vm3, %v3594_v60  ;;  %11177 = vmatpush3.bf16.msra.mxu1 %v12073_v49  ;;  %v15678_v60 = vld [vmem:[#allocation78_spill] sm:$0xff] }
 0x618   :  { %11178 = vmatprep.subr.bf16.mxu1 %v12074_v51  ;;  %v15679_v27 = vpack.c.bf16 %v15677_v14, %v15678_v60  ;;  %v15684_v49 = vld [vmem:[#allocation82_spill] sm:$0xff] }
 0x61b   :  { %11179 = vmatpush3.bf16.msra.mxu1 %v12074_v51 }
 0x61c   :  { %11196 = vmatprep.subr.bf16.mxu1 %v12075_v46 }
 0x61e   :  { %11165 = vmatmul.mubr.msk.bf16.gmra.mrb[224].mxu1 %vm2775_vm3, %v3595_v59  ;;  %v15676_v59 = vpack.c.bf16 %v15674_v37, %v15675_v55 }
 0x61f   :  { %11168 = vmatprep.mubr.msk.bf16.mxu1 %vm2775_vm3, %v3596_v33  ;;  %v15688_v33 = vld [vmem:[#allocation70_spill] sm:$0xff] }
 0x620   :  { %v15689_v51 = vpack.c.bf16 %v15687_v21, %v15688_v33 }
 0x626   :  { %11169 = vmatmul.mubr.msk.bf16.gmra.mrb[228].mxu1 %vm2775_vm3, %v3597_v43  ;;  %v15686_v43 = vpack.c.bf16 %v15684_v49, %v15685_v57 }
 0x627   :  { %11180 = vmatprep.mubr.msk.bf16.mxu1 %vm2775_vm3, %v15649_v32 }
 0x62e   :  { %11181 = vmatmul.mubr.msk.bf16.vlgmr.msra.gmra.mrb[216].mxu1 %vm2775_vm3, %v15650_v9  ;;  %v15694_v9 = vld [vmem:[#allocation74_spill] sm:$0xff] }
 0x62f   :  { %11184 = vmatprep.mubr.msk.bf16.mxu1 %vm2775_vm3, %v15651_v29  ;;  %11197 = vmatpush3.bf16.msra.mxu1 %v12075_v46  ;;  %v15691_v46 = vld [vmem:[#allocation69_spill] sm:$0xff] }
 0x630   :  { %11198 = vmatprep.subr.bf16.mxu1 %v12076_v3  ;;  %v15692_v32 = vpack.c.bf16 %v15690_v0, %v15691_v46  ;;  %v15697_v29 = vld [vmem:[#allocation73_spill] sm:$0xff] }
 0x633   :  { %11199 = vmatpush3.bf16.msra.mxu1 %v12076_v3  ;;  %v15693_v3 = vld [vmem:[#allocation76_spill] sm:$0xff] }
 0x634   :  { %11200 = vmatprep.subr.bf16.mxu1 %v12077_v16  ;;  %v15695_v31 = vpack.c.bf16 %v15693_v3, %v15694_v9 }
 0x636   :  { %11185 = vmatmul.mubr.msk.bf16.gmra.mrb[220].mxu1 %vm2775_vm3, %v15652_v54  ;;  %v15700_v54 = vpack.c.bf16 %v14589_v45, %v14585_v1  ;;  %v14798_v1 = vld [vmem:[#allocation7] ss:$0 sm:$0xff] }
 0x637   :  { %11188 = vmatprep.mubr.msk.bf16.mxu1 %vm2775_vm3, %v15653_v47  ;;  %11201 = vmatpush3.bf16.msra.mxu1 %v12077_v16  ;;  %v15698_v16 = vpack.c.bf16 %v15696_v39, %v15697_v29  ;;  %v15701_v47 = vpack.c.bf16 %v14615_v61, %v14608_v62 }
 0x638   :  { %11202 = vmatprep.subr.bf16.mxu1 %v12078_v63 }
 0x63b   :  { %11203 = vmatpush3.bf16.msra.mxu1 %v12078_v63  ;;  %v15699_v63 = vpack.c.bf16 %v14593_v53, %v14587_v50  ;;  %v14800_v50 = vld [vmem:[#allocation7 + $0x1] ss:$0 sm:$0xff] }
 0x63c   :  { %11220 = vmatprep.subr.bf16.mxu1 %v12079_v28 }
 0x63e   :  { %11189 = vmatmul.mubr.msk.bf16.gmra.mrb[224].mxu1 %vm2775_vm3, %v15654_v40  ;;  %v12928_v40 = vmov 0.0  }
 0x63f   :  { %11192 = vmatprep.mubr.msk.bf16.mxu1 %vm2775_vm3, %v15655_v2  ;;  %11268 = vmatprep.subr.bf16.mxu0 %v12928_v40 }
 0x640   :  { %11276 = vmatprep.mubr.msk.bf16.mxu0 %vm12929_vm4, %v12928_v40 }
 0x646   :  { %11193 = vmatmul.mubr.msk.bf16.gmra.mrb[228].mxu1 %vm2775_vm3, %v15656_v7 }
 0x647   :  { %11204 = vmatprep.mubr.msk.bf16.mxu1 %vm2775_vm3, %v15657_v38 }
 0x64e   :  { %11205 = vmatmul.mubr.msk.bf16.vlgmr.msra.gmra.mrb[216].mxu1 %vm2775_vm3, %v15658_v48 }
 0x64f   :  { %11208 = vmatprep.mubr.msk.bf16.mxu1 %vm2775_vm3, %v15659_v52  ;;  %11221 = vmatpush3.bf16.msra.mxu1 %v12079_v28  ;;  %v15702_v28 = vpack.c.bf16 %v14611_v24, %v14602_v58 }
 0x650   :  { %11222 = vmatprep.subr.bf16.mxu1 %v12080_v4 }
 0x653   :  { %11223 = vmatpush3.bf16.msra.mxu1 %v12080_v4 }
 0x654   :  { %11224 = vmatprep.subr.bf16.mxu1 %v12081_v5 }
 0x656   :  { %11209 = vmatmul.mubr.msk.bf16.gmra.mrb[220].mxu1 %vm2775_vm3, %v15660_v41 }
 0x657   :  { %11212 = vmatprep.mubr.msk.bf16.mxu1 %vm2775_vm3, %v15661_v11  ;;  %11225 = vmatpush3.bf16.msra.mxu1 %v12081_v5 }
 0x658   :  { %11226 = vmatprep.subr.bf16.mxu1 %v12082_v8 }
 0x65b   :  { %11227 = vmatpush3.bf16.msra.mxu1 %v12082_v8 }
 0x65c   :  { %11244 = vmatprep.subr.bf16.mxu1 %v12083_v6 }
 0x65e   :  { %11213 = vmatmul.mubr.msk.bf16.gmra.mrb[224].mxu1 %vm2775_vm3, %v15662_v20 }
 0x65f   :  { %11216 = vmatprep.mubr.msk.bf16.mxu1 %vm2775_vm3, %v15663_v26 }
 0x666   :  { %11217 = vmatmul.mubr.msk.bf16.gmra.mrb[228].mxu1 %vm2775_vm3, %v15664_v15 }
 0x667   :  { %11228 = vmatprep.mubr.msk.bf16.mxu1 %vm2775_vm3, %v15667_v25 }
 0x66e   :  { %11229 = vmatmul.mubr.msk.bf16.vlgmr.msra.gmra.mrb[216].mxu1 %vm2775_vm3, %v15670_v42 }
 0x66f   :  { %11232 = vmatprep.mubr.msk.bf16.mxu1 %vm2775_vm3, %v15673_v30  ;;  %11245 = vmatpush3.bf16.msra.mxu1 %v12083_v6 }
 0x670   :  { %11246 = vmatprep.subr.bf16.mxu1 %v12084_v36 }
 0x673   :  { %11247 = vmatpush3.bf16.msra.mxu1 %v12084_v36 }
 0x674   :  { %11248 = vmatprep.subr.bf16.mxu1 %v12085_v12 }
 0x676   :  { %11233 = vmatmul.mubr.msk.bf16.gmra.mrb[220].mxu1 %vm2775_vm3, %v15676_v59 }
 0x677   :  { %11236 = vmatprep.mubr.msk.bf16.mxu1 %vm2775_vm3, %v15679_v27  ;;  %11249 = vmatpush3.bf16.msra.mxu1 %v12085_v12 }
 0x678   :  { %11250 = vmatprep.subr.bf16.mxu1 %v12086_v23 }
 0x67b   :  { %11251 = vmatpush3.bf16.msra.mxu1 %v12086_v23 }
 0x67c   :  { %11406 = vmatprep.subr.bf16.mxu1 %v12928_v40 }
 0x67e   :  { %11237 = vmatmul.mubr.msk.bf16.gmra.mrb[224].mxu1 %vm2775_vm3, %v15682_v44 }
 0x67f   :  { %11240 = vmatprep.mubr.msk.bf16.mxu1 %vm2775_vm3, %v15683_v22 }
 0x686   :  { %11241 = vmatmul.mubr.msk.bf16.gmra.mrb[228].mxu1 %vm2775_vm3, %v15686_v43 }
 0x687   :  { %11252 = vmatprep.mubr.msk.bf16.mxu1 %vm2775_vm3, %v15689_v51 }
 0x68e   :  { %11253 = vmatmul.mubr.msk.bf16.vlgmr.msra.gmra.mrb[216].mxu1 %vm2775_vm3, %v15692_v32  ;;  %v12087_v32 = vld [vmem:[%s15703_s15] sm:$0xff]  }
 0x68f   :  { %11256 = vmatprep.mubr.msk.bf16.mxu1 %vm2775_vm3, %v15695_v31 }
 0x696   :  { %11257 = vmatmul.mubr.msk.bf16.gmra.mrb[220].mxu1 %vm2775_vm3, %v15698_v16 }
 0x697   :  { %11260 = vmatprep.mubr.msk.bf16.mxu1 %vm2775_vm3, %v15699_v63 }
 0x69e   :  { %11261 = vmatmul.mubr.msk.bf16.gmra.mrb[224].mxu1 %vm2775_vm3, %v15700_v54 }
 0x69f   :  { %11264 = vmatprep.mubr.msk.bf16.mxu1 %vm2775_vm3, %v15701_v47 }
 0x6a6   :  { %11265 = vmatmul.mubr.msk.bf16.gmra.mrb[228].mxu1 %vm2775_vm3, %v15702_v28 }
 0x6a7   :  { %11408 = vmatprep.mubr.msk.bf16.mxu1 %vm12929_vm4, %v12928_v40 }
 0x761   :  { %v11254_v45 = vpop.f32.mrb[216].mxu1 }
 0x762   :  { %v4975_v53 = vmul.f32 %v11254_v45, %v14798_v1  ;;  %v4840_v58 = vpop.f32.mrb[217].mxu1 }
 0x763   :  { %v4973_v62 = vmul.f32 %v14798_v1, %v4840_v58  ;;  %v11255_v24 = vpop.f32.mrb[218].mxu1 }
 0x764   :  { %v4997_v61 = vadd.f32 %v14800_v50, %v4975_v53  ;;  %v4976_v2 = vmul.f32 %v11255_v24, %v14798_v1  ;;  %v4843_v7 = vpop.f32.mrb[219].mxu1 }
 0x765   :  { %v4995_v38 = vadd.f32 %v14800_v50, %v4973_v62  ;;  %v4974_v4 = vmul.f32 %v14798_v1, %v4843_v7 }
 0x766   :  { %v4998_v48 = vadd.f32 %v14800_v50, %v4976_v2  ;;  %v5013_v5 = vmax.f32 %v4997_v61, 0.0 }
 0x767   :  { %v4996_v52 = vadd.f32 %v14800_v50, %v4974_v4  ;;  %v5011_v41 = vmax.f32 %v4995_v38, 0.0  ;;  %v12088_v38 = vld [vmem:[%s15703_s15 + $0x8] sm:$0xff]  }
 0x768   :  { %v5014_v8 = vmax.f32 %v4998_v48, 0.0 }
 0x769   :  { %v5012_v11 = vmax.f32 %v4996_v52, 0.0  ;;  %v11258_v6 = vpop.f32.mrb[220].mxu1 }
 0x76a   :  { %v5028_v20 = vpack.c.bf16 %v5014_v8, %v5013_v5  ;;  %v4979_v26 = vmul.f32 %v11258_v6, %v14798_v1  ;;  %v4856_v15 = vpop.f32.mrb[221].mxu1  ;;  %v12090_v5 = vld [vmem:[%s15703_s15 + $0x18] sm:$0xff]   ;;  %v12091_v8 = vld [vmem:[%s15703_s15 + $0x20] sm:$0xff]  }
 0x76b   :  { %v5027_v35 = vpack.c.bf16 %v5012_v11, %v5011_v41  ;;  %v4977_v10 = vmul.f32 %v14798_v1, %v4856_v15  ;;  %v11259_v25 = vpop.f32.mrb[222].mxu1  ;;  %v12092_v41 = vld [vmem:[%s15703_s15 + $0x28] sm:$0xff]   ;;  %v12093_v11 = vld [vmem:[%s15703_s15 + $0x30] sm:$0xff]   ;;  %v12094_v6 = vld [vmem:[%s15703_s15 + $0x38] sm:$0xff]  }
 0x76c   :  { %v5001_v36 = vadd.f32 %v14800_v50, %v4979_v26  ;;  %v4980_v18 = vmul.f32 %v11259_v25, %v14798_v1  ;;  %v4859_v19 = vpop.f32.mrb[223].mxu1  ;;  %v12096_v26 = vld [vmem:[#allocation8] sm:$0xff]  }
 0x76d   :  { %v4999_v42 = vadd.f32 %v14800_v50, %v4977_v10  ;;  %v4978_v56 = vmul.f32 %v14798_v1, %v4859_v19  ;;  %11269 = vmatpush3.bf16.msra.mxu0 %v5027_v35  ;;  %v12097_v10 = vld [vmem:[#allocation8 + $0x8] sm:$0xff]  }
 0x76e   :  { %v5002_v34 = vadd.f32 %v14800_v50, %v4980_v18  ;;  %11270 = vmatprep.subr.bf16.mxu0 %v12928_v40  ;;  %v5017_v12 = vmax.f32 %v5001_v36, 0.0  ;;  %v12098_v18 = vld [vmem:[#allocation8 + $0x10] sm:$0xff]  }
 0x76f   :  { %v5000_v30 = vadd.f32 %v14800_v50, %v4978_v56  ;;  %v5015_v37 = vmax.f32 %v4999_v42, 0.0 }
 0x770   :  { %v5018_v23 = vmax.f32 %v5002_v34, 0.0  ;;  %v12099_v34 = vld [vmem:[#allocation8 + $0x18] sm:$0xff]  }
 0x771   :  { %v5016_v55 = vmax.f32 %v5000_v30, 0.0  ;;  %v11262_v59 = vpop.f32.mrb[224].mxu1  ;;  %11271 = vmatpush3.bf16.msra.mxu0 %v5028_v20  ;;  %v12095_v20 = vld [vmem:[%s15703_s15 + $0x40] sm:$0xff]  }
 0x772   :  { %v5030_v14 = vpack.c.bf16 %v5018_v23, %v5017_v12  ;;  %v4983_v60 = vmul.f32 %v11262_v59, %v14798_v1  ;;  %v4872_v27 = vpop.f32.mrb[225].mxu1  ;;  %11272 = vmatprep.subr.bf16.mxu0 %v12928_v40 }
 0x773   :  { %v5029_v13 = vpack.c.bf16 %v5016_v55, %v5015_v37  ;;  %v4981_v17 = vmul.f32 %v14798_v1, %v4872_v27  ;;  %v11263_v44 = vpop.f32.mrb[226].mxu1 }
 0x774   :  { %v5005_v22 = vadd.f32 %v14800_v50, %v4983_v60  ;;  %v4984_v49 = vmul.f32 %v11263_v44, %v14798_v1  ;;  %v4875_v57 = vpop.f32.mrb[227].mxu1 }
 0x775   :  { %v5003_v43 = vadd.f32 %v14800_v50, %v4981_v17  ;;  %v4982_v21 = vmul.f32 %v14798_v1, %v4875_v57  ;;  %11273 = vmatpush3.bf16.msra.mxu0 %v5029_v13 }
 0x776   :  { %v5006_v33 = vadd.f32 %v14800_v50, %v4984_v49  ;;  %11274 = vmatprep.subr.bf16.mxu0 %v12928_v40  ;;  %v5021_v0 = vmax.f32 %v5005_v22, 0.0 }
 0x777   :  { %v5004_v51 = vadd.f32 %v14800_v50, %v4982_v21  ;;  %v5019_v3 = vmax.f32 %v5003_v43, 0.0 }
 0x778   :  { %v5022_v46 = vmax.f32 %v5006_v33, 0.0 }
 0x779   :  { %v5020_v9 = vmax.f32 %v5004_v51, 0.0  ;;  %v11266_v31 = vpop.f32.mrb[228].mxu1  ;;  %11275 = vmatpush3.bf16.msra.mxu0 %v5030_v14 }
 0x77a   :  { %v5032_v39 = vpack.c.bf16 %v5022_v46, %v5021_v0  ;;  %v4987_v29 = vmul.f32 %v11266_v31, %v14798_v1  ;;  %v4888_v16 = vpop.f32.mrb[229].mxu1  ;;  %11312 = vmatprep.subr.bf16.mxu0 %v12928_v40 }
 0x77b   :  { %v5031_v63 = vpack.c.bf16 %v5020_v9, %v5019_v3  ;;  %v4985_v54 = vmul.f32 %v14798_v1, %v4888_v16  ;;  %v11267_v47 = vpop.f32.mrb[230].mxu1 }
 0x77c   :  { %v5009_v28 = vadd.f32 %v14800_v50, %v4987_v29  ;;  %v4988_v45 = vmul.f32 %v11267_v47, %v14798_v1  ;;  %v4891_v53 = vpop.f32.mrb[231].mxu1  ;;  %11277 = vmatmul.mubr.msk.bf16.vlgmr.msra.gmra.mrb[24].mxu0 %vm2775_vm3, %v12087_v32 }
 0x77d   :  { %v5007_v58 = vadd.f32 %v14800_v50, %v4985_v54  ;;  %v4986_v62 = vmul.f32 %v14798_v1, %v4891_v53  ;;  %11313 = vmatpush3.bf16.msra.mxu0 %v5031_v63  ;;  %11280 = vmatprep.mubr.msk.bf16.mxu0 %vm12929_vm4, %v12928_v40 }
 0x77e   :  { %v5010_v24 = vadd.f32 %v14800_v50, %v4988_v45  ;;  %11314 = vmatprep.subr.bf16.mxu0 %v12928_v40  ;;  %v5025_v2 = vmax.f32 %v5009_v28, 0.0 }
 0x77f   :  { %v5008_v61 = vadd.f32 %v14800_v50, %v4986_v62  ;;  %v5023_v4 = vmax.f32 %v5007_v58, 0.0  ;;  %v12089_v50 = vld [vmem:[%s15703_s15 + $0x10] sm:$0xff]  }
 0x780   :  { %v5026_v7 = vmax.f32 %v5010_v24, 0.0 }
 0x781   :  { %v5024_v48 = vmax.f32 %v5008_v61, 0.0  ;;  %11315 = vmatpush3.bf16.msra.mxu0 %v5032_v39 }
 0x782   :  { %v5034_v1 = vpack.c.bf16 %v5026_v7, %v5025_v2  ;;  %11316 = vmatprep.subr.bf16.mxu0 %v12928_v40 }
 0x783   :  { %v5033_v52 = vpack.c.bf16 %v5024_v48, %v5023_v4 }
 0x784   :  { %11281 = vmatmul.mubr.msk.bf16.gmra.mrb[28].mxu0 %vm2775_vm3, %v12088_v38 }
 0x785   :  { %11317 = vmatpush3.bf16.msra.mxu0 %v5033_v52  ;;  %11284 = vmatprep.mubr.msk.bf16.mxu0 %vm12929_vm4, %v12928_v40 }
 0x786   :  { %11318 = vmatprep.subr.bf16.mxu0 %v12928_v40 }
 0x789   :  { %11319 = vmatpush3.bf16.msra.mxu0 %v5034_v1 }
 0x78a   :  { %11356 = vmatprep.subr.bf16.mxu0 %v12096_v26 }
 0x78c   :  { %11285 = vmatmul.mubr.msk.bf16.gmra.mrb[32].mxu0 %vm2775_vm3, %v12089_v50 }
 0x78d   :  { %11288 = vmatprep.mubr.msk.bf16.mxu0 %vm12929_vm4, %v12928_v40 }
 0x794   :  { %11289 = vmatmul.mubr.msk.bf16.gmra.mrb[36].mxu0 %vm2775_vm3, %v12090_v5 }
 0x795   :  { %11292 = vmatprep.mubr.msk.bf16.mxu0 %vm12929_vm4, %v12928_v40 }
 0x79c   :  { %11293 = vmatmul.mubr.msk.bf16.gmra.mrb[40].mxu0 %vm2775_vm3, %v12091_v8 }
 0x79d   :  { %11296 = vmatprep.mubr.msk.bf16.mxu0 %vm12929_vm4, %v12928_v40 }
 0x7a4   :  { %11297 = vmatmul.mubr.msk.bf16.gmra.mrb[44].mxu0 %vm2775_vm3, %v12092_v41 }
 0x7a5   :  { %11300 = vmatprep.mubr.msk.bf16.mxu0 %vm12929_vm4, %v12928_v40 }
 0x7ac   :  { %11301 = vmatmul.mubr.msk.bf16.gmra.mrb[48].mxu0 %vm2775_vm3, %v12093_v11 }
 0x7ad   :  { %11304 = vmatprep.mubr.msk.bf16.mxu0 %vm12929_vm4, %v12928_v40 }
 0x7b4   :  { %11305 = vmatmul.mubr.msk.bf16.gmra.mrb[52].mxu0 %vm2775_vm3, %v12094_v6 }
 0x7b5   :  { %11308 = vmatprep.mubr.msk.bf16.mxu0 %vm12929_vm4, %v12928_v40 }
 0x7bc   :  { %11309 = vmatmul.mubr.msk.bf16.gmra.mrb[56].mxu0 %vm2775_vm3, %v12095_v20 }
 0x7bd   :  { %11320 = vmatprep.mubr.msk.bf16.mxu0 %vm12929_vm4, %v12928_v40 }
 0x7c4   :  { %11321 = vmatmul.mubr.msk.bf16.vlgmr.msra.gmra.mrb[60].mxu0 %vm2775_vm3, %v12087_v32 }
 0x7c5   :  { %11324 = vmatprep.mubr.msk.bf16.mxu0 %vm12929_vm4, %v12928_v40  ;;  %11357 = vmatpush3.bf16.msra.mxu0 %v12096_v26 }
 0x7c6   :  { %11358 = vmatprep.subr.bf16.mxu0 %v12097_v10 }
 0x7c9   :  { %11359 = vmatpush3.bf16.msra.mxu0 %v12097_v10 }
 0x7ca   :  { %11360 = vmatprep.subr.bf16.mxu0 %v12098_v18 }
 0x7cc   :  { %11325 = vmatmul.mubr.msk.bf16.gmra.mrb[64].mxu0 %vm2775_vm3, %v12088_v38 }
 0x7cd   :  { %11328 = vmatprep.mubr.msk.bf16.mxu0 %vm12929_vm4, %v12928_v40  ;;  %11361 = vmatpush3.bf16.msra.mxu0 %v12098_v18 }
 0x7ce   :  { %11362 = vmatprep.subr.bf16.mxu0 %v12099_v34 }
 0x7d1   :  { %11363 = vmatpush3.bf16.msra.mxu0 %v12099_v34 }
 0x7d2   :  { %11368 = vmatprep.subr.bf16.mxu0 %v12928_v40 }
 0x7d4   :  { %11329 = vmatmul.mubr.msk.bf16.gmra.mrb[68].mxu0 %vm2775_vm3, %v12089_v50 }
 0x7d5   :  { %11332 = vmatprep.mubr.msk.bf16.mxu0 %vm12929_vm4, %v12928_v40 }
 0x7dc   :  { %11333 = vmatmul.mubr.msk.bf16.gmra.mrb[72].mxu0 %vm2775_vm3, %v12090_v5 }
 0x7dd   :  { %11336 = vmatprep.mubr.msk.bf16.mxu0 %vm12929_vm4, %v12928_v40 }
 0x7e4   :  { %11337 = vmatmul.mubr.msk.bf16.gmra.mrb[76].mxu0 %vm2775_vm3, %v12091_v8 }
 0x7e5   :  { %11340 = vmatprep.mubr.msk.bf16.mxu0 %vm12929_vm4, %v12928_v40 }
 0x7ec   :  { %11341 = vmatmul.mubr.msk.bf16.gmra.mrb[80].mxu0 %vm2775_vm3, %v12092_v41 }
 0x7ed   :  { %11344 = vmatprep.mubr.msk.bf16.mxu0 %vm12929_vm4, %v12928_v40 }
 0x7f4   :  { %11345 = vmatmul.mubr.msk.bf16.gmra.mrb[84].mxu0 %vm2775_vm3, %v12093_v11 }
 0x7f5   :  { %11348 = vmatprep.mubr.msk.bf16.mxu0 %vm12929_vm4, %v12928_v40 }
 0x7fc   :  { %11349 = vmatmul.mubr.msk.bf16.gmra.mrb[88].mxu0 %vm2775_vm3, %v12094_v6 }
 0x7fd   :  { %11352 = vmatprep.mubr.msk.bf16.mxu0 %vm12929_vm4, %v12928_v40 }
 0x804   :  { %11353 = vmatmul.mubr.msk.bf16.gmra.mrb[92].mxu0 %vm2775_vm3, %v12095_v20 }
 0x84f   :  { %v5159_v15 = vpop.f32.mrb[24].mxu0 }
 0x850   :  { %v11278_v35 = vpop.f32.mrb[25].mxu0 }
 0x851   :  { %v5162_v25 = vpop.f32.mrb[26].mxu0 }
 0x852   :  { %v11279_v36 = vpop.f32.mrb[27].mxu0 }
 0x857   :  { %v5167_v19 = vpop.f32.mrb[28].mxu0 }
 0x858   :  { %v5230_v42 = vmax.f32 %v5159_v15, %v5167_v19  ;;  %v11282_v56 = vpop.f32.mrb[29].mxu0 }
 0x859   :  { %v5170_v30 = vpop.f32.mrb[30].mxu0 }
 0x85a   :  { %v5231_v12 = vmax.f32 %v5162_v25, %v5170_v30  ;;  %v11283_v23 = vpop.f32.mrb[31].mxu0 }
 0x85f   :  { %v5175_v37 = vpop.f32.mrb[32].mxu0 }
 0x860   :  { %v11286_v55 = vpop.f32.mrb[33].mxu0 }
 0x861   :  { %v5178_v59 = vpop.f32.mrb[34].mxu0 }
 0x862   :  { %v11287_v14 = vpop.f32.mrb[35].mxu0 }
 0x867   :  { %v5183_v60 = vpop.f32.mrb[36].mxu0 }
 0x868   :  { %v5232_v27 = vmax.f32 %v5175_v37, %v5183_v60  ;;  %v11290_v13 = vpop.f32.mrb[37].mxu0 }
 0x869   :  { %v5186_v17 = vpop.f32.mrb[38].mxu0 }
 0x86a   :  { %v5238_v44 = vmax.f32 %v5230_v42, %v5232_v27  ;;  %v5233_v22 = vmax.f32 %v5178_v59, %v5186_v17  ;;  %v11291_v49 = vpop.f32.mrb[39].mxu0 }
 0x86c   :  { %v5239_v57 = vmax.f32 %v5231_v12, %v5233_v22 }
 0x86f   :  { %v5191_v43 = vpop.f32.mrb[40].mxu0 }
 0x870   :  { %v11294_v21 = vpop.f32.mrb[41].mxu0 }
 0x871   :  { %v5194_v33 = vpop.f32.mrb[42].mxu0 }
 0x872   :  { %v11295_v51 = vpop.f32.mrb[43].mxu0 }
 0x877   :  { %v5199_v0 = vpop.f32.mrb[44].mxu0 }
 0x878   :  { %v5234_v46 = vmax.f32 %v5191_v43, %v5199_v0  ;;  %v11298_v32 = vpop.f32.mrb[45].mxu0 }
 0x879   :  { %v5202_v3 = vpop.f32.mrb[46].mxu0 }
 0x87a   :  { %v5235_v9 = vmax.f32 %v5194_v33, %v5202_v3  ;;  %v11299_v31 = vpop.f32.mrb[47].mxu0 }
 0x87f   :  { %v5207_v39 = vpop.f32.mrb[48].mxu0 }
 0x880   :  { %v11302_v29 = vpop.f32.mrb[49].mxu0 }
 0x881   :  { %v5210_v16 = vpop.f32.mrb[50].mxu0 }
 0x882   :  { %v11303_v63 = vpop.f32.mrb[51].mxu0 }
 0x887   :  { %v5215_v54 = vpop.f32.mrb[52].mxu0 }
 0x888   :  { %v5236_v47 = vmax.f32 %v5207_v39, %v5215_v54  ;;  %v11306_v28 = vpop.f32.mrb[53].mxu0 }
 0x889   :  { %v5218_v45 = vpop.f32.mrb[54].mxu0 }
 0x88a   :  { %v5240_v53 = vmax.f32 %v5234_v46, %v5236_v47  ;;  %v5237_v58 = vmax.f32 %v5210_v16, %v5218_v45  ;;  %v11307_v62 = vpop.f32.mrb[55].mxu0 }
 0x88c   :  { %v5241_v24 = vmax.f32 %v5235_v9, %v5237_v58  ;;  %v5242_v61 = vmax.f32 %v5238_v44, %v5240_v53 }
 0x88e   :  { %v5243_v2 = vmax.f32 %v5239_v57, %v5241_v24 }
 0x88f   :  { %v5223_v7 = vpop.f32.mrb[56].mxu0 }
 0x890   :  { %v5244_v38 = vmax.f32 %v5242_v61, %v5223_v7  ;;  %v11310_v4 = vpop.f32.mrb[57].mxu0 }
 0x891   :  { %v5226_v48 = vpop.f32.mrb[58].mxu0 }
 0x892   :  { %v5245_v1 = vmax.f32 %v5243_v2, %v5226_v48  ;;  %v11311_v52 = vpop.f32.mrb[59].mxu0  ;;  %v14908_v48 = vld [vmem:[%s15704_s16] sm:$0xff]  }
 0x893   :  { %v14931_v52 = vld [vmem:[%s15704_s16 + $0x10] sm:$0xff]  }
 0x894   :  { %v5367_v50 = vpack.c.bf16 %v5245_v1, %v5244_v38  ;;  %v14920_v1 = vld [vmem:[%s15704_s16 + $0x8] sm:$0xff]  }
 0x896   :  { %11364 = vmatprep.mubr.msk.bf16.mxu0 %vm2775_vm3, %v5367_v50  ;;  %v14942_v50 = vld [vmem:[%s15704_s16 + $0x18] sm:$0xff]  }
 0x897   :  { %v5280_v5 = vpop.f32.mrb[60].mxu0 }
 0x898   :  { %v11322_v8 = vpop.f32.mrb[61].mxu0 }
 0x899   :  { %v5283_v41 = vpop.f32.mrb[62].mxu0  ;;  %v14964_v8 = vld [vmem:[%s15704_s16 + $0x28] sm:$0xff]  }
 0x89a   :  { %v11323_v11 = vpop.f32.mrb[63].mxu0 }
 0x89b   :  { %v14986_v11 = vld [vmem:[%s15704_s16 + $0x38] sm:$0xff]  }
 0x89f   :  { %v5288_v6 = vpop.f32.mrb[64].mxu0 }
 0x8a0   :  { %v5351_v20 = vmax.f32 %v5280_v5, %v5288_v6  ;;  %v11326_v26 = vpop.f32.mrb[65].mxu0  ;;  %v14953_v5 = vld [vmem:[%s15704_s16 + $0x20] sm:$0xff]  }
 0x8a1   :  { %v5291_v15 = vpop.f32.mrb[66].mxu0  ;;  %v14997_v6 = vld [vmem:[%s15704_s16 + $0x40] sm:$0xff]  }
 0x8a2   :  { %v5352_v35 = vmax.f32 %v5283_v41, %v5291_v15  ;;  %v11327_v10 = vpop.f32.mrb[67].mxu0  ;;  %v14975_v41 = vld [vmem:[%s15704_s16 + $0x30] sm:$0xff]   ;;  %v12110_v26 = vld [vmem:[#allocation11 + $0x8] sm:$0xff]   ;;  %v12111_v15 = vld [vmem:[#allocation11 + $0x10] sm:$0xff]  }
 0x8a3   :  { %v12113_v10 = vld [vmem:[#allocation11 + $0x20] sm:$0xff]  }
 0x8a7   :  { %v5296_v25 = vpop.f32.mrb[68].mxu0 }
 0x8a8   :  { %v11330_v36 = vpop.f32.mrb[69].mxu0 }
 0x8a9   :  { %v5299_v18 = vpop.f32.mrb[70].mxu0  ;;  %v12115_v36 = vld [vmem:[#allocation11 + $0x30] sm:$0xff]  }
 0x8aa   :  { %v11331_v19 = vpop.f32.mrb[71].mxu0 }
 0x8af   :  { %v5304_v42 = vpop.f32.mrb[72].mxu0 }
 0x8b0   :  { %v5353_v56 = vmax.f32 %v5296_v25, %v5304_v42  ;;  %v11334_v34 = vpop.f32.mrb[73].mxu0  ;;  %v12114_v25 = vld [vmem:[#allocation11 + $0x28] sm:$0xff]  }
 0x8b1   :  { %v5307_v30 = vpop.f32.mrb[74].mxu0 }
 0x8b2   :  { %v5359_v12 = vmax.f32 %v5351_v20, %v5353_v56  ;;  %v5354_v23 = vmax.f32 %v5299_v18, %v5307_v30  ;;  %v11335_v37 = vpop.f32.mrb[75].mxu0  ;;  %v12109_v20 = vld [vmem:[#allocation11] sm:$0xff]   ;;  %v12116_v18 = vld [vmem:[#allocation11 + $0x38] sm:$0xff]  }
 0x8b4   :  { %v5360_v55 = vmax.f32 %v5352_v35, %v5354_v23  ;;  %v12112_v35 = vld [vmem:[#allocation11 + $0x18] sm:$0xff]  }
 0x8b7   :  { %v5312_v59 = vpop.f32.mrb[76].mxu0 }
 0x8b8   :  { %v11338_v14 = vpop.f32.mrb[77].mxu0 }
 0x8b9   :  { %v5315_v60 = vpop.f32.mrb[78].mxu0 }
 0x8ba   :  { %v11339_v27 = vpop.f32.mrb[79].mxu0 }
 0x8bf   :  { %v5320_v13 = vpop.f32.mrb[80].mxu0 }
 0x8c0   :  { %v5355_v17 = vmax.f32 %v5312_v59, %v5320_v13  ;;  %v11342_v44 = vpop.f32.mrb[81].mxu0  ;;  %v10056_v59 = vld [vmem:[#allocation10 + $0x1] ss:$0 sm:$0xff] }
 0x8c1   :  { %v5323_v22 = vpop.f32.mrb[82].mxu0 }
 0x8c2   :  { %v5356_v49 = vmax.f32 %v5315_v60, %v5323_v22  ;;  %v11343_v57 = vpop.f32.mrb[83].mxu0 }
 0x8c7   :  { %v5328_v43 = vpop.f32.mrb[84].mxu0 }
 0x8c8   :  { %v11346_v21 = vpop.f32.mrb[85].mxu0 }
 0x8c9   :  { %v5331_v33 = vpop.f32.mrb[86].mxu0 }
 0x8ca   :  { %v11347_v51 = vpop.f32.mrb[87].mxu0 }
 0x8cf   :  { %v5336_v0 = vpop.f32.mrb[88].mxu0 }
 0x8d0   :  { %v5357_v46 = vmax.f32 %v5328_v43, %v5336_v0  ;;  %v11350_v32 = vpop.f32.mrb[89].mxu0 }
 0x8d1   :  { %v5339_v3 = vpop.f32.mrb[90].mxu0 }
 0x8d2   :  { %v5361_v9 = vmax.f32 %v5355_v17, %v5357_v46  ;;  %v5358_v31 = vmax.f32 %v5331_v33, %v5339_v3  ;;  %v11351_v39 = vpop.f32.mrb[91].mxu0 }
 0x8d4   :  { %v5362_v29 = vmax.f32 %v5356_v49, %v5358_v31  ;;  %v5363_v16 = vmax.f32 %v5359_v12, %v5361_v9 }
 0x8d6   :  { %v5364_v63 = vmax.f32 %v5360_v55, %v5362_v29  ;;  %v10055_v55 = vld [vmem:[#allocation10] ss:$0 sm:$0xff] }
 0x8d7   :  { %v5344_v54 = vpop.f32.mrb[92].mxu0 }
 0x8d8   :  { %v5365_v47 = vmax.f32 %v5363_v16, %v5344_v54  ;;  %v11354_v28 = vpop.f32.mrb[93].mxu0 }
 0x8d9   :  { %v5347_v45 = vpop.f32.mrb[94].mxu0 }
 0x8da   :  { %v5366_v53 = vmax.f32 %v5364_v63, %v5347_v45  ;;  %v11355_v58 = vpop.f32.mrb[95].mxu0 }
 0x8db   :  { %v10057_v58 = vld [vmem:[#allocation10 + $0x2] ss:$0 sm:$0xff] }
 0x8dc   :  { %v5368_v62 = vpack.c.bf16 %v5366_v53, %v5365_v47 }
 0x8de   :  { %11365 = vmatmul.mubr.msk.bf16.vlgmr.msra.gmra.mrb[96].mxu0 %vm2775_vm3, %v5368_v62  ;;  %v10058_v62 = vld [vmem:[#allocation10 + $0x3] ss:$0 sm:$0xff] }
 0x8df   :  { %11370 = vmatprep.mubr.msk.bf16.mxu0 %vm12929_vm4, %v12928_v40 }
 0x9b1   :  { %v11366_v24 = vpop.f32.mrb[96].mxu0 }
 0x9b2   :  { %v5441_v61 = vpop.f32.mrb[97].mxu0 }
 0x9b3   :  { %v11367_v2 = vpop.f32.mrb[98].mxu0 }
 0x9b4   :  { %v5457_v7 = vpack.c.bf16 %v11367_v2, %v11366_v24  ;;  %v5444_v38 = vpop.f32.mrb[99].mxu0 }
 0x9b5   :  { %v5456_v4 = vpack.c.bf16 %v5444_v38, %v5441_v61 }
 0x9b6   :  { %11407 = vmatpush3.bf16.msra.mxu1 %v5457_v7 }
 0x9b7   :  { %11369 = vmatpush3.bf16.msra.mxu0 %v5456_v4  ;;  %11502 = vmatprep.subr.bf16.mxu1 %v12928_v40 }
 0x9b8   :  { %11444 = vmatprep.subr.bf16.mxu0 %v12109_v20 }
 0x9b9   :  { %11409 = vmatmul.mubr.msk.bf16.vlgmr.msra.gmra.mrb[232].mxu1 %vm5530_vm5, %v14908_v48 }
 0x9ba   :  { %11371 = vmatmul.mubr.msk.bf16.vlgmr.msra.gmra.mrb[100].mxu0 %vm5530_vm5, %v14908_v48  ;;  %11412 = vmatprep.mubr.msk.bf16.mxu1 %vm12929_vm4, %v12928_v40 }
 0x9bb   :  { %11374 = vmatprep.mubr.msk.bf16.mxu0 %vm12929_vm4, %v12928_v40  ;;  %11445 = vmatpush3.bf16.msra.mxu0 %v12109_v20 }
 0x9bc   :  { %11446 = vmatprep.subr.bf16.mxu0 %v12110_v26 }
 0x9bf   :  { %11447 = vmatpush3.bf16.msra.mxu0 %v12110_v26 }
 0x9c0   :  { %11448 = vmatprep.subr.bf16.mxu0 %v12111_v15 }
 0x9c1   :  { %11413 = vmatmul.mubr.msk.bf16.gmra.mrb[236].mxu1 %vm5530_vm5, %v14920_v1 }
 0x9c2   :  { %11375 = vmatmul.mubr.msk.bf16.gmra.mrb[104].mxu0 %vm5530_vm5, %v14920_v1  ;;  %11416 = vmatprep.mubr.msk.bf16.mxu1 %vm12929_vm4, %v12928_v40 }
 0x9c3   :  { %11378 = vmatprep.mubr.msk.bf16.mxu0 %vm12929_vm4, %v12928_v40  ;;  %11449 = vmatpush3.bf16.msra.mxu0 %v12111_v15 }
 0x9c4   :  { %11450 = vmatprep.subr.bf16.mxu0 %v12112_v35 }
 0x9c7   :  { %11451 = vmatpush3.bf16.msra.mxu0 %v12112_v35 }
 0x9c8   :  { %11452 = vmatprep.subr.bf16.mxu0 %v12113_v10 }
 0x9c9   :  { %11417 = vmatmul.mubr.msk.bf16.gmra.mrb[240].mxu1 %vm5530_vm5, %v14931_v52 }
 0x9ca   :  { %11379 = vmatmul.mubr.msk.bf16.gmra.mrb[108].mxu0 %vm5530_vm5, %v14931_v52  ;;  %11420 = vmatprep.mubr.msk.bf16.mxu1 %vm12929_vm4, %v12928_v40 }
 0x9cb   :  { %11382 = vmatprep.mubr.msk.bf16.mxu0 %vm12929_vm4, %v12928_v40  ;;  %11453 = vmatpush3.bf16.msra.mxu0 %v12113_v10 }
 0x9cc   :  { %11454 = vmatprep.subr.bf16.mxu0 %v12114_v25 }
 0x9cf   :  { %11455 = vmatpush3.bf16.msra.mxu0 %v12114_v25 }
 0x9d0   :  { %11456 = vmatprep.subr.bf16.mxu0 %v12115_v36 }
 0x9d1   :  { %11421 = vmatmul.mubr.msk.bf16.gmra.mrb[244].mxu1 %vm5530_vm5, %v14942_v50 }
 0x9d2   :  { %11383 = vmatmul.mubr.msk.bf16.gmra.mrb[112].mxu0 %vm5530_vm5, %v14942_v50  ;;  %11424 = vmatprep.mubr.msk.bf16.mxu1 %vm12929_vm4, %v12928_v40 }
 0x9d3   :  { %11386 = vmatprep.mubr.msk.bf16.mxu0 %vm12929_vm4, %v12928_v40  ;;  %11457 = vmatpush3.bf16.msra.mxu0 %v12115_v36 }
 0x9d4   :  { %11458 = vmatprep.subr.bf16.mxu0 %v12116_v18 }
 0x9d7   :  { %11459 = vmatpush3.bf16.msra.mxu0 %v12116_v18 }
 0x9d8   :  { %11464 = vmatprep.subr.bf16.mxu0 %v12928_v40 }
 0x9d9   :  { %11425 = vmatmul.mubr.msk.bf16.gmra.mrb[248].mxu1 %vm5530_vm5, %v14953_v5 }
 0x9da   :  { %11387 = vmatmul.mubr.msk.bf16.gmra.mrb[116].mxu0 %vm5530_vm5, %v14953_v5  ;;  %11428 = vmatprep.mubr.msk.bf16.mxu1 %vm12929_vm4, %v12928_v40 }
 0x9db   :  { %11390 = vmatprep.mubr.msk.bf16.mxu0 %vm12929_vm4, %v12928_v40 }
 0x9e1   :  { %11429 = vmatmul.mubr.msk.bf16.gmra.mrb[252].mxu1 %vm5530_vm5, %v14964_v8 }
 0x9e2   :  { %11391 = vmatmul.mubr.msk.bf16.gmra.mrb[120].mxu0 %vm5530_vm5, %v14964_v8  ;;  %11432 = vmatprep.mubr.msk.bf16.mxu1 %vm12929_vm4, %v12928_v40 }
 0x9e3   :  { %11394 = vmatprep.mubr.msk.bf16.mxu0 %vm12929_vm4, %v12928_v40 }
 0x9e9   :  { %11433 = vmatmul.mubr.msk.bf16.gmra.mrb[0].mxu1 %vm5530_vm5, %v14975_v41 }
 0x9ea   :  { %11395 = vmatmul.mubr.msk.bf16.gmra.mrb[124].mxu0 %vm5530_vm5, %v14975_v41  ;;  %11436 = vmatprep.mubr.msk.bf16.mxu1 %vm12929_vm4, %v12928_v40 }
 0x9eb   :  { %11398 = vmatprep.mubr.msk.bf16.mxu0 %vm12929_vm4, %v12928_v40 }
 0x9f1   :  { %11437 = vmatmul.mubr.msk.bf16.gmra.mrb[4].mxu1 %vm5530_vm5, %v14986_v11 }
 0x9f2   :  { %11399 = vmatmul.mubr.msk.bf16.gmra.mrb[128].mxu0 %vm5530_vm5, %v14986_v11  ;;  %11440 = vmatprep.mubr.msk.bf16.mxu1 %vm12929_vm4, %v12928_v40 }
 0x9f3   :  { %11402 = vmatprep.mubr.msk.bf16.mxu0 %vm12929_vm4, %v12928_v40 }
 0x9f9   :  { %11441 = vmatmul.mubr.msk.bf16.gmra.mrb[8].mxu1 %vm5530_vm5, %v14997_v6 }
 0x9fa   :  { %11403 = vmatmul.mubr.msk.bf16.gmra.mrb[132].mxu0 %vm5530_vm5, %v14997_v6  ;;  %11504 = vmatprep.mubr.msk.bf16.mxu1 %vm12929_vm4, %v12928_v40 }
 0xa8c   :  { %v5785_v19 = vpop.f32.mrb[232].mxu1 }
 0xa8d   :  { %v5592_v42 = vpop.f32.mrb[100].mxu0  ;;  %v11410_v56 = vpop.f32.mrb[233].mxu1  ;;  %v5856_v60 = vmul.f32 %v10055_v55, %v5785_v19 }
 0xa8e   :  { %v11372_v34 = vpop.f32.mrb[101].mxu0  ;;  %v5788_v30 = vpop.f32.mrb[234].mxu1  ;;  %v5669_v44 = vmul.f32 %v10055_v55, %v5592_v42 }
 0xa8f   :  { %v5595_v12 = vpop.f32.mrb[102].mxu0  ;;  %v11411_v23 = vpop.f32.mrb[235].mxu1  ;;  %v5857_v43 = vmul.f32 %v10055_v55, %v5788_v30 }
 0xa90   :  { %v11373_v37 = vpop.f32.mrb[103].mxu0  ;;  %v5670_v46 = vmul.f32 %v10055_v55, %v5595_v12 }
 0xa94   :  { %v5793_v14 = vpop.f32.mrb[236].mxu1 }
 0xa95   :  { %v5600_v27 = vpop.f32.mrb[104].mxu0  ;;  %v5858_v13 = vmul.f32 %v10056_v59, %v5793_v14  ;;  %v11414_v17 = vpop.f32.mrb[237].mxu1 }
 0xa96   :  { %v5677_v22 = vmul.f32 %v10056_v59, %v5600_v27  ;;  %v11376_v49 = vpop.f32.mrb[105].mxu0  ;;  %v5796_v57 = vpop.f32.mrb[238].mxu1 }
 0xa97   :  { %v5874_v21 = vadd.f32 %v5858_v13, %v5856_v60  ;;  %v5603_v33 = vpop.f32.mrb[106].mxu0  ;;  %v5859_v51 = vmul.f32 %v10056_v59, %v5796_v57  ;;  %v11415_v0 = vpop.f32.mrb[239].mxu1  ;;  %v10059_v57 = vld [vmem:[#allocation10 + $0x4] ss:$0 sm:$0xff] }
 0xa98   :  { %v5735_v32 = vadd.f32 %v5677_v22, %v5669_v44  ;;  %v5678_v3 = vmul.f32 %v10056_v59, %v5603_v33  ;;  %v11377_v9 = vpop.f32.mrb[107].mxu0 }
 0xa99   :  { %v5875_v31 = vadd.f32 %v5859_v51, %v5857_v43  ;;  %v10060_v43 = vld [vmem:[#allocation10 + $0x5] ss:$0 sm:$0xff] }
 0xa9a   :  { %v5736_v39 = vadd.f32 %v5678_v3, %v5670_v46 }
 0xa9c   :  { %v5801_v29 = vpop.f32.mrb[240].mxu1 }
 0xa9d   :  { %v5608_v16 = vpop.f32.mrb[108].mxu0  ;;  %v11418_v63 = vpop.f32.mrb[241].mxu1  ;;  %v5860_v61 = vmul.f32 %v10057_v58, %v5801_v29 }
 0xa9e   :  { %v11380_v54 = vpop.f32.mrb[109].mxu0  ;;  %v5804_v47 = vpop.f32.mrb[242].mxu1  ;;  %v5685_v4 = vmul.f32 %v10057_v58, %v5608_v16 }
 0xa9f   :  { %v5611_v28 = vpop.f32.mrb[110].mxu0  ;;  %v11419_v45 = vpop.f32.mrb[243].mxu1  ;;  %v5861_v35 = vmul.f32 %v10057_v58, %v5804_v47 }
 0xaa0   :  { %v11381_v53 = vpop.f32.mrb[111].mxu0  ;;  %v5686_v19 = vmul.f32 %v10057_v58, %v5611_v28 }
 0xaa4   :  { %v5809_v24 = vpop.f32.mrb[244].mxu1 }
 0xaa5   :  { %v5616_v2 = vpop.f32.mrb[112].mxu0  ;;  %v5862_v7 = vmul.f32 %v10058_v62, %v5809_v24  ;;  %v11422_v38 = vpop.f32.mrb[245].mxu1 }
 0xaa6   :  { %v5693_v20 = vmul.f32 %v10058_v62, %v5616_v2  ;;  %v11384_v26 = vpop.f32.mrb[113].mxu0  ;;  %v5812_v15 = vpop.f32.mrb[246].mxu1 }
 0xaa7   :  { %v5876_v10 = vadd.f32 %v5862_v7, %v5860_v61  ;;  %v5619_v25 = vpop.f32.mrb[114].mxu0  ;;  %v5863_v36 = vmul.f32 %v10058_v62, %v5812_v15  ;;  %v11423_v18 = vpop.f32.mrb[247].mxu1  ;;  %v10061_v15 = vld [vmem:[#allocation10 + $0x6] ss:$0 sm:$0xff] }
 0xaa8   :  { %v5737_v42 = vadd.f32 %v5693_v20, %v5685_v4  ;;  %v5694_v56 = vmul.f32 %v10058_v62, %v5619_v25  ;;  %v11385_v34 = vpop.f32.mrb[115].mxu0 }
 0xaa9   :  { %v15006_v30 = vadd.f32 %v5876_v10, %v5874_v21  ;;  %v5877_v12 = vadd.f32 %v5863_v36, %v5861_v35  ;;  %v10062_v35 = vld [vmem:[#allocation10 + $0x7] ss:$0 sm:$0xff] }
 0xaaa   :  { %v15008_v23 = vadd.f32 %v5737_v42, %v5735_v32  ;;  %v5738_v37 = vadd.f32 %v5694_v56, %v5686_v19 }
 0xaab   :  { %v15010_v55 = vadd.f32 %v5877_v12, %v5875_v31 }
 0xaac   :  { %v15012_v59 = vadd.f32 %v5738_v37, %v5736_v39  ;;  %v5817_v14 = vpop.f32.mrb[248].mxu1 }
 0xaad   :  { %v5624_v60 = vpop.f32.mrb[116].mxu0  ;;  %v11426_v27 = vpop.f32.mrb[249].mxu1  ;;  %v5864_v33 = vmul.f32 %v10059_v57, %v5817_v14 }
 0xaae   :  { %v11388_v13 = vpop.f32.mrb[117].mxu0  ;;  %v5820_v17 = vpop.f32.mrb[250].mxu1  ;;  %v5701_v32 = vmul.f32 %v10059_v57, %v5624_v60 }
 0xaaf   :  { %v5627_v44 = vpop.f32.mrb[118].mxu0  ;;  %v11427_v22 = vpop.f32.mrb[251].mxu1  ;;  %v5865_v39 = vmul.f32 %v10059_v57, %v5820_v17 }
 0xab0   :  { %v11389_v49 = vpop.f32.mrb[119].mxu0  ;;  %v5702_v47 = vmul.f32 %v10059_v57, %v5627_v44 }
 0xab4   :  { %v5825_v21 = vpop.f32.mrb[252].mxu1 }
 0xab5   :  { %v5632_v51 = vpop.f32.mrb[120].mxu0  ;;  %v5866_v0 = vmul.f32 %v10060_v43, %v5825_v21  ;;  %v11430_v46 = vpop.f32.mrb[253].mxu1 }
 0xab6   :  { %v5709_v3 = vmul.f32 %v10060_v43, %v5632_v51  ;;  %v11392_v9 = vpop.f32.mrb[121].mxu0  ;;  %v5828_v31 = vpop.f32.mrb[254].mxu1  ;;  %v10063_v51 = vld [vmem:[#allocation10 + $0x8] ss:$0 sm:$0xff] }
 0xab7   :  { %v5878_v29 = vadd.f32 %v5866_v0, %v5864_v33  ;;  %v5635_v16 = vpop.f32.mrb[122].mxu0  ;;  %v5867_v63 = vmul.f32 %v10060_v43, %v5828_v31  ;;  %v11431_v54 = vpop.f32.mrb[255].mxu1 }
 0xab8   :  { %v5739_v28 = vadd.f32 %v5709_v3, %v5701_v32  ;;  %v5710_v45 = vmul.f32 %v10060_v43, %v5635_v16  ;;  %v11393_v53 = vpop.f32.mrb[123].mxu0 }
 0xab9   :  { %v5879_v58 = vadd.f32 %v5867_v63, %v5865_v39 }
 0xaba   :  { %v5740_v62 = vadd.f32 %v5710_v45, %v5702_v47 }
 0xabc   :  { %v5833_v24 = vpop.f32.mrb[0].mxu1 }
 0xabd   :  { %v5640_v61 = vpop.f32.mrb[124].mxu0  ;;  %v11434_v2 = vpop.f32.mrb[1].mxu1  ;;  %v5868_v25 = vmul.f32 %v10061_v15, %v5833_v24 }
 0xabe   :  { %v11396_v7 = vpop.f32.mrb[125].mxu0  ;;  %v5836_v38 = vpop.f32.mrb[2].mxu1  ;;  %v5717_v42 = vmul.f32 %v10061_v15, %v5640_v61 }
 0xabf   :  { %v5643_v4 = vpop.f32.mrb[126].mxu0  ;;  %v11435_v20 = vpop.f32.mrb[3].mxu1  ;;  %v5869_v37 = vmul.f32 %v10061_v15, %v5836_v38 }
 0xac0   :  { %v11397_v26 = vpop.f32.mrb[127].mxu0  ;;  %v5718_v17 = vmul.f32 %v10061_v15, %v5643_v4  ;;  %v10082_v4 = vld [vmem:[#allocation13 + $0x1] ss:$0 sm:$0xff] }
 0xac4   :  { %v5841_v10 = vpop.f32.mrb[4].mxu1 }
 0xac5   :  { %v5648_v36 = vpop.f32.mrb[128].mxu0  ;;  %v5870_v18 = vmul.f32 %v10062_v35, %v5841_v10  ;;  %v11438_v19 = vpop.f32.mrb[5].mxu1 }
 0xac6   :  { %v5725_v56 = vmul.f32 %v10062_v35, %v5648_v36  ;;  %v11400_v34 = vpop.f32.mrb[129].mxu0  ;;  %v5844_v12 = vpop.f32.mrb[6].mxu1 }
 0xac7   :  { %v5880_v14 = vadd.f32 %v5870_v18, %v5868_v25  ;;  %v5651_v60 = vpop.f32.mrb[130].mxu0  ;;  %v5871_v27 = vmul.f32 %v10062_v35, %v5844_v12  ;;  %v11439_v13 = vpop.f32.mrb[7].mxu1 }
 0xac8   :  { %v5741_v44 = vadd.f32 %v5725_v56, %v5717_v42  ;;  %v5726_v22 = vmul.f32 %v10062_v35, %v5651_v60  ;;  %v11401_v49 = vpop.f32.mrb[131].mxu0 }
 0xac9   :  { %v5884_v57 = vadd.f32 %v5880_v14, %v5878_v29  ;;  %v5881_v43 = vadd.f32 %v5871_v27, %v5869_v37 }
 0xaca   :  { %v5745_v21 = vadd.f32 %v5741_v44, %v5739_v28  ;;  %v5742_v33 = vadd.f32 %v5726_v22, %v5718_v17 }
 0xacb   :  { %v5885_v0 = vadd.f32 %v5881_v43, %v5879_v58  ;;  %v5886_v46 = vadd.f32 %v5884_v57, %v15006_v30 }
 0xacc   :  { %v5746_v32 = vadd.f32 %v5742_v33, %v5740_v62  ;;  %v5747_v3 = vadd.f32 %v5745_v21, %v15008_v23  ;;  %v5849_v9 = vpop.f32.mrb[8].mxu1  ;;  %v10092_v21 = vld [vmem:[#allocation14] ss:$0 sm:$0xff]  ;;  %v10093_v33 = vld [vmem:[#allocation14 + $0x1] ss:$0 sm:$0xff] }
 0xacd   :  { %v5656_v31 = vpop.f32.mrb[132].mxu0  ;;  %v5872_v39 = vmul.f32 %v10063_v51, %v5849_v9  ;;  %v11442_v16 = vpop.f32.mrb[9].mxu1  ;;  %v5887_v63 = vadd.f32 %v5885_v0, %v15010_v55  ;;  %v10081_v55 = vld [vmem:[#allocation13] ss:$0 sm:$0xff] }
 0xace   :  { %v5733_v54 = vmul.f32 %v10063_v51, %v5656_v31  ;;  %v11404_v47 = vpop.f32.mrb[133].mxu0  ;;  %v5748_v29 = vadd.f32 %v5746_v32, %v15012_v59  ;;  %v5852_v45 = vpop.f32.mrb[10].mxu1 }
 0xacf   :  { %v5888_v28 = vadd.f32 %v5886_v46, %v5872_v39  ;;  %v5659_v53 = vpop.f32.mrb[134].mxu0  ;;  %v5873_v24 = vmul.f32 %v10063_v51, %v5852_v45  ;;  %v11443_v58 = vpop.f32.mrb[11].mxu1 }
 0xad0   :  { %v5749_v61 = vadd.f32 %v5747_v3, %v5733_v54  ;;  %v5734_v30 = vmul.f32 %v10063_v51, %v5659_v53  ;;  %v11405_v62 = vpop.f32.mrb[135].mxu0 }
 0xad1   :  { %v5889_v2 = vadd.f32 %v5887_v63, %v5873_v24 }
 0xad2   :  { %v5750_v23 = vadd.f32 %v5748_v29, %v5734_v30 }
 0xad3   :  { %v5891_v7 = vpack.c.bf16 %v5889_v2, %v5888_v28 }
 0xad4   :  { %v5890_v38 = vpack.c.bf16 %v5750_v23, %v5749_v61 }
 0xad6   :  { %11460 = vmatprep.mubr.bf16.mxu0 %v5890_v38 }
 0xad7   :  { %11461 = vmatmul.mubr.bf16.vlgmr.msra.gmra.mrb[136].mxu0 %v5891_v7 }
 0xad8   :  { %11466 = vmatprep.mubr.msk.bf16.mxu0 %vm12929_vm4, %v12928_v40 }
 0xbaa   :  { %v11462_v59 = vpop.f32.mrb[136].mxu0 }
 0xbab   :  { %v6015_v20 = vmul.f32 %v11462_v59, %v10081_v55  ;;  %v5992_v26 = vpop.f32.mrb[137].mxu0 }
 0xbac   :  { %v6013_v15 = vmul.f32 %v10081_v55, %v5992_v26  ;;  %v11463_v35 = vpop.f32.mrb[138].mxu0  ;;  %v10095_v26 = vld [vmem:[#allocation14 + $0x3] ss:$0 sm:$0xff] }
 0xbad   :  { %v6025_v10 = vadd.f32 %v10082_v4, %v6015_v20  ;;  %v6016_v25 = vmul.f32 %v11463_v35, %v10081_v55  ;;  %v5995_v36 = vpop.f32.mrb[139].mxu0  ;;  %v10094_v20 = vld [vmem:[#allocation14 + $0x2] ss:$0 sm:$0xff] }
 0xbae   :  { %v6023_v18 = vadd.f32 %v10082_v4, %v6013_v15  ;;  %v6014_v19 = vmul.f32 %v10081_v55, %v5995_v36 }
 0xbaf   :  { %v6026_v42 = vadd.f32 %v10082_v4, %v6016_v25  ;;  %v6029_v34 = vmax.f32 %v6025_v10, 0.0 }
 0xbb0   :  { %v6024_v56 = vadd.f32 %v10082_v4, %v6014_v19  ;;  %v6027_v37 = vmax.f32 %v6023_v18, 0.0 }
 0xbb1   :  { %v6030_v12 = vmax.f32 %v6026_v42, 0.0 }
 0xbb2   :  { %v6028_v14 = vmax.f32 %v6024_v56, 0.0 }
 0xbb3   :  { %v6032_v60 = vpack.c.bf16 %v6030_v12, %v6029_v34 }
 0xbb4   :  { %v6031_v27 = vpack.c.bf16 %v6028_v14, %v6027_v37 }
 0xbb5   :  { %11503 = vmatpush3.bf16.msra.mxu1 %v6032_v60 }
 0xbb6   :  { %11465 = vmatpush3.bf16.msra.mxu0 %v6031_v27  ;;  %11610 = vmatprep.subr.bf16.mxu1 %v12928_v40 }
 0xbb8   :  { %11505 = vmatmul.mubr.msk.bf16.vlgmr.msra.gmra.mrb[12].mxu1 %vm5530_vm5, %v14908_v48 }
 0xbb9   :  { %11467 = vmatmul.mubr.msk.bf16.vlgmr.msra.gmra.mrb[140].mxu0 %vm5530_vm5, %v14908_v48  ;;  %11508 = vmatprep.mubr.msk.bf16.mxu1 %vm12929_vm4, %v12928_v40  ;;  %v12117_v48 = vld [vmem:[#allocation16] sm:$0xff]  }
 0xbba   :  { %11470 = vmatprep.mubr.msk.bf16.mxu0 %vm12929_vm4, %v12928_v40  ;;  %11540 = vmatprep.subr.bf16.mxu0 %v12117_v48 }
 0xbbb   :  { %11541 = vmatpush3.bf16.msra.mxu0 %v12117_v48 }
 0xbc0   :  { %11509 = vmatmul.mubr.msk.bf16.gmra.mrb[16].mxu1 %vm5530_vm5, %v14920_v1 }
 0xbc1   :  { %11471 = vmatmul.mubr.msk.bf16.gmra.mrb[144].mxu0 %vm5530_vm5, %v14920_v1  ;;  %11512 = vmatprep.mubr.msk.bf16.mxu1 %vm12929_vm4, %v12928_v40  ;;  %v12118_v1 = vld [vmem:[#allocation16 + $0x8] sm:$0xff]  }
 0xbc2   :  { %11474 = vmatprep.mubr.msk.bf16.mxu0 %vm12929_vm4, %v12928_v40  ;;  %11542 = vmatprep.subr.bf16.mxu0 %v12118_v1 }
 0xbc3   :  { %11543 = vmatpush3.bf16.msra.mxu0 %v12118_v1 }
 0xbc8   :  { %11513 = vmatmul.mubr.msk.bf16.gmra.mrb[20].mxu1 %vm5530_vm5, %v14931_v52 }
 0xbc9   :  { %11475 = vmatmul.mubr.msk.bf16.gmra.mrb[148].mxu0 %vm5530_vm5, %v14931_v52  ;;  %11516 = vmatprep.mubr.msk.bf16.mxu1 %vm12929_vm4, %v12928_v40  ;;  %v12119_v52 = vld [vmem:[#allocation16 + $0x10] sm:$0xff]  }
 0xbca   :  { %11478 = vmatprep.mubr.msk.bf16.mxu0 %vm12929_vm4, %v12928_v40  ;;  %11544 = vmatprep.subr.bf16.mxu0 %v12119_v52 }
 0xbcb   :  { %11545 = vmatpush3.bf16.msra.mxu0 %v12119_v52 }
 0xbd0   :  { %11517 = vmatmul.mubr.msk.bf16.gmra.mrb[24].mxu1 %vm5530_vm5, %v14942_v50 }
 0xbd1   :  { %11479 = vmatmul.mubr.msk.bf16.gmra.mrb[152].mxu0 %vm5530_vm5, %v14942_v50  ;;  %11520 = vmatprep.mubr.msk.bf16.mxu1 %vm12929_vm4, %v12928_v40  ;;  %v12120_v50 = vld [vmem:[#allocation16 + $0x18] sm:$0xff]  }
 0xbd2   :  { %11482 = vmatprep.mubr.msk.bf16.mxu0 %vm12929_vm4, %v12928_v40  ;;  %11546 = vmatprep.subr.bf16.mxu0 %v12120_v50 }
 0xbd3   :  { %11547 = vmatpush3.bf16.msra.mxu0 %v12120_v50 }
 0xbd8   :  { %11521 = vmatmul.mubr.msk.bf16.gmra.mrb[28].mxu1 %vm5530_vm5, %v14953_v5 }
 0xbd9   :  { %11483 = vmatmul.mubr.msk.bf16.gmra.mrb[156].mxu0 %vm5530_vm5, %v14953_v5  ;;  %11524 = vmatprep.mubr.msk.bf16.mxu1 %vm12929_vm4, %v12928_v40  ;;  %v12121_v5 = vld [vmem:[#allocation16 + $0x20] sm:$0xff]  }
 0xbda   :  { %11486 = vmatprep.mubr.msk.bf16.mxu0 %vm12929_vm4, %v12928_v40  ;;  %11548 = vmatprep.subr.bf16.mxu0 %v12121_v5 }
 0xbdb   :  { %11549 = vmatpush3.bf16.msra.mxu0 %v12121_v5 }
 0xbe0   :  { %11525 = vmatmul.mubr.msk.bf16.gmra.mrb[32].mxu1 %vm5530_vm5, %v14964_v8 }
 0xbe1   :  { %11487 = vmatmul.mubr.msk.bf16.gmra.mrb[160].mxu0 %vm5530_vm5, %v14964_v8  ;;  %11528 = vmatprep.mubr.msk.bf16.mxu1 %vm12929_vm4, %v12928_v40  ;;  %v12122_v8 = vld [vmem:[#allocation16 + $0x28] sm:$0xff]  }
 0xbe2   :  { %11490 = vmatprep.mubr.msk.bf16.mxu0 %vm12929_vm4, %v12928_v40  ;;  %11550 = vmatprep.subr.bf16.mxu0 %v12122_v8 }
 0xbe3   :  { %11551 = vmatpush3.bf16.msra.mxu0 %v12122_v8 }
 0xbe8   :  { %11529 = vmatmul.mubr.msk.bf16.gmra.mrb[36].mxu1 %vm5530_vm5, %v14975_v41 }
 0xbe9   :  { %11491 = vmatmul.mubr.msk.bf16.gmra.mrb[164].mxu0 %vm5530_vm5, %v14975_v41  ;;  %11532 = vmatprep.mubr.msk.bf16.mxu1 %vm12929_vm4, %v12928_v40  ;;  %v12123_v41 = vld [vmem:[#allocation16 + $0x30] sm:$0xff]  }
 0xbea   :  { %11494 = vmatprep.mubr.msk.bf16.mxu0 %vm12929_vm4, %v12928_v40  ;;  %11552 = vmatprep.subr.bf16.mxu0 %v12123_v41 }
 0xbeb   :  { %11553 = vmatpush3.bf16.msra.mxu0 %v12123_v41 }
 0xbf0   :  { %11533 = vmatmul.mubr.msk.bf16.gmra.mrb[40].mxu1 %vm5530_vm5, %v14986_v11 }
 0xbf1   :  { %11495 = vmatmul.mubr.msk.bf16.gmra.mrb[168].mxu0 %vm5530_vm5, %v14986_v11  ;;  %11536 = vmatprep.mubr.msk.bf16.mxu1 %vm12929_vm4, %v12928_v40  ;;  %v12124_v11 = vld [vmem:[#allocation16 + $0x38] sm:$0xff]  }
 0xbf2   :  { %11498 = vmatprep.mubr.msk.bf16.mxu0 %vm12929_vm4, %v12928_v40  ;;  %11554 = vmatprep.subr.bf16.mxu0 %v12124_v11 }
 0xbf3   :  { %11555 = vmatpush3.bf16.msra.mxu0 %v12124_v11 }
 0xbf4   :  { %11560 = vmatprep.subr.bf16.mxu0 %v12928_v40 }
 0xbf8   :  { %11537 = vmatmul.mubr.msk.bf16.gmra.mrb[44].mxu1 %vm5530_vm5, %v14997_v6 }
 0xbf9   :  { %11499 = vmatmul.mubr.msk.bf16.gmra.mrb[172].mxu0 %vm5530_vm5, %v14997_v6  ;;  %11626 = vmatprep.mubr.msk.bf16.mxu1 %vm12929_vm4, %v12928_v40 }
 0xc8b   :  { %v6269_v6 = vpop.f32.mrb[12].mxu1 }
 0xc8c   :  { %v6076_v13 = vpop.f32.mrb[140].mxu0  ;;  %v11506_v17 = vpop.f32.mrb[13].mxu1  ;;  %v6340_v0 = vmul.f32 %v10092_v21, %v6269_v6 }
 0xc8d   :  { %v11468_v44 = vpop.f32.mrb[141].mxu0  ;;  %v6272_v22 = vpop.f32.mrb[14].mxu1  ;;  %v6153_v9 = vmul.f32 %v10092_v21, %v6076_v13 }
 0xc8e   :  { %v6079_v49 = vpop.f32.mrb[142].mxu0  ;;  %v11507_v57 = vpop.f32.mrb[15].mxu1  ;;  %v6341_v63 = vmul.f32 %v10092_v21, %v6272_v22 }
 0xc8f   :  { %v11469_v43 = vpop.f32.mrb[143].mxu0  ;;  %v6154_v28 = vmul.f32 %v10092_v21, %v6079_v49 }
 0xc93   :  { %v6277_v51 = vpop.f32.mrb[16].mxu1 }
 0xc94   :  { %v6084_v46 = vpop.f32.mrb[144].mxu0  ;;  %v6342_v32 = vmul.f32 %v10093_v33, %v6277_v51  ;;  %v11510_v3 = vpop.f32.mrb[17].mxu1  ;;  %v10097_v51 = vld [vmem:[#allocation14 + $0x5] ss:$0 sm:$0xff] }
 0xc95   :  { %v6161_v31 = vmul.f32 %v10093_v33, %v6084_v46  ;;  %v11472_v39 = vpop.f32.mrb[145].mxu0  ;;  %v6280_v16 = vpop.f32.mrb[18].mxu1 }
 0xc96   :  { %v6358_v54 = vadd.f32 %v6342_v32, %v6340_v0  ;;  %v6087_v47 = vpop.f32.mrb[146].mxu0  ;;  %v6343_v29 = vmul.f32 %v10093_v33, %v6280_v16  ;;  %v11511_v45 = vpop.f32.mrb[19].mxu1 }
 0xc97   :  { %v6219_v53 = vadd.f32 %v6161_v31, %v6153_v9  ;;  %v6162_v24 = vmul.f32 %v10093_v33, %v6087_v47  ;;  %v11473_v58 = vpop.f32.mrb[147].mxu0  ;;  %v10096_v33 = vld [vmem:[#allocation14 + $0x4] ss:$0 sm:$0xff] }
 0xc98   :  { %v6359_v61 = vadd.f32 %v6343_v29, %v6341_v63 }
 0xc99   :  { %v6220_v30 = vadd.f32 %v6162_v24, %v6154_v28 }
 0xc9b   :  { %v6285_v62 = vpop.f32.mrb[20].mxu1 }
 0xc9c   :  { %v6092_v2 = vpop.f32.mrb[148].mxu0  ;;  %v11514_v23 = vpop.f32.mrb[21].mxu1  ;;  %v6344_v35 = vmul.f32 %v10094_v20, %v6285_v62 }
 0xc9d   :  { %v11476_v7 = vpop.f32.mrb[149].mxu0  ;;  %v6288_v38 = vpop.f32.mrb[22].mxu1  ;;  %v6169_v18 = vmul.f32 %v10094_v20, %v6092_v2 }
 0xc9e   :  { %v6095_v55 = vpop.f32.mrb[150].mxu0  ;;  %v11515_v4 = vpop.f32.mrb[23].mxu1  ;;  %v6345_v34 = vmul.f32 %v10094_v20, %v6288_v38 }
 0xc9f   :  { %v11477_v59 = vpop.f32.mrb[151].mxu0  ;;  %v6170_v27 = vmul.f32 %v10094_v20, %v6095_v55 }
 0xca3   :  { %v6293_v15 = vpop.f32.mrb[24].mxu1 }
 0xca4   :  { %v6100_v10 = vpop.f32.mrb[152].mxu0  ;;  %v6346_v25 = vmul.f32 %v10095_v26, %v6293_v15  ;;  %v11518_v36 = vpop.f32.mrb[25].mxu1  ;;  %v10099_v15 = vld [vmem:[#allocation14 + $0x7] ss:$0 sm:$0xff] }
 0xca5   :  { %v6177_v19 = vmul.f32 %v10095_v26, %v6100_v10  ;;  %v11480_v42 = vpop.f32.mrb[153].mxu0  ;;  %v6296_v56 = vpop.f32.mrb[26].mxu1 }
 0xca6   :  { %v6360_v12 = vadd.f32 %v6346_v25, %v6344_v35  ;;  %v6103_v37 = vpop.f32.mrb[154].mxu0  ;;  %v6347_v14 = vmul.f32 %v10095_v26, %v6296_v56  ;;  %v11519_v60 = vpop.f32.mrb[27].mxu1 }
 0xca7   :  { %v6221_v48 = vadd.f32 %v6177_v19, %v6169_v18  ;;  %v6178_v1 = vmul.f32 %v10095_v26, %v6103_v37  ;;  %v11481_v52 = vpop.f32.mrb[155].mxu0  ;;  %v10098_v26 = vld [vmem:[#allocation14 + $0x6] ss:$0 sm:$0xff] }
 0xca8   :  { %v15092_v50 = vadd.f32 %v6360_v12, %v6358_v54  ;;  %v6361_v5 = vadd.f32 %v6347_v14, %v6345_v34 }
 0xca9   :  { %v15094_v8 = vadd.f32 %v6221_v48, %v6219_v53  ;;  %v6222_v41 = vadd.f32 %v6178_v1, %v6170_v27 }
 0xcaa   :  { %v15096_v11 = vadd.f32 %v6361_v5, %v6359_v61 }
 0xcab   :  { %v15098_v6 = vadd.f32 %v6222_v41, %v6220_v30  ;;  %v6301_v13 = vpop.f32.mrb[28].mxu1 }
 0xcac   :  { %v6108_v17 = vpop.f32.mrb[156].mxu0  ;;  %v11522_v44 = vpop.f32.mrb[29].mxu1  ;;  %v6348_v46 = vmul.f32 %v10096_v33, %v6301_v13 }
 0xcad   :  { %v11484_v22 = vpop.f32.mrb[157].mxu0  ;;  %v6304_v49 = vpop.f32.mrb[30].mxu1  ;;  %v6185_v31 = vmul.f32 %v10096_v33, %v6108_v17 }
 0xcae   :  { %v6111_v57 = vpop.f32.mrb[158].mxu0  ;;  %v11523_v43 = vpop.f32.mrb[31].mxu1  ;;  %v6349_v54 = vmul.f32 %v10096_v33, %v6304_v49  ;;  %v10100_v22 = vld [vmem:[#allocation14 + $0x8] ss:$0 sm:$0xff] }
 0xcaf   :  { %v11485_v21 = vpop.f32.mrb[159].mxu0  ;;  %v6186_v53 = vmul.f32 %v10096_v33, %v6111_v57 }
 0xcb3   :  { %v6309_v0 = vpop.f32.mrb[32].mxu1 }
 0xcb4   :  { %v6116_v32 = vpop.f32.mrb[160].mxu0  ;;  %v6350_v3 = vmul.f32 %v10097_v51, %v6309_v0  ;;  %v11526_v9 = vpop.f32.mrb[33].mxu1 }
 0xcb5   :  { %v6193_v39 = vmul.f32 %v10097_v51, %v6116_v32  ;;  %v11488_v16 = vpop.f32.mrb[161].mxu0  ;;  %v6312_v63 = vpop.f32.mrb[34].mxu1 }
 0xcb6   :  { %v6362_v47 = vadd.f32 %v6350_v3, %v6348_v46  ;;  %v6119_v29 = vpop.f32.mrb[162].mxu0  ;;  %v6351_v45 = vmul.f32 %v10097_v51, %v6312_v63  ;;  %v11527_v28 = vpop.f32.mrb[35].mxu1 }
 0xcb7   :  { %v6223_v24 = vadd.f32 %v6193_v39, %v6185_v31  ;;  %v6194_v58 = vmul.f32 %v10097_v51, %v6119_v29  ;;  %v11489_v61 = vpop.f32.mrb[163].mxu0 }
 0xcb8   :  { %v6363_v30 = vadd.f32 %v6351_v45, %v6349_v54 }
 0xcb9   :  { %v6224_v62 = vadd.f32 %v6194_v58, %v6186_v53 }
 0xcbb   :  { %v6317_v2 = vpop.f32.mrb[36].mxu1 }
 0xcbc   :  { %v6124_v23 = vpop.f32.mrb[164].mxu0  ;;  %v11530_v7 = vpop.f32.mrb[37].mxu1  ;;  %v6352_v10 = vmul.f32 %v10098_v26, %v6317_v2 }
 0xcbd   :  { %v11492_v38 = vpop.f32.mrb[165].mxu0  ;;  %v6320_v55 = vpop.f32.mrb[38].mxu1  ;;  %v6201_v19 = vmul.f32 %v10098_v26, %v6124_v23 }
 0xcbe   :  { %v6127_v4 = vpop.f32.mrb[166].mxu0  ;;  %v11531_v59 = vpop.f32.mrb[39].mxu1  ;;  %v6353_v12 = vmul.f32 %v10098_v26, %v6320_v55 }
 0xcbf   :  { %v11493_v20 = vpop.f32.mrb[167].mxu0  ;;  %v6202_v48 = vmul.f32 %v10098_v26, %v6127_v4 }
 0xcc3   :  { %v6325_v35 = vpop.f32.mrb[40].mxu1 }
 0xcc4   :  { %v6132_v25 = vpop.f32.mrb[168].mxu0  ;;  %v6354_v36 = vmul.f32 %v10099_v15, %v6325_v35  ;;  %v11534_v18 = vpop.f32.mrb[41].mxu1  ;;  %v12125_v35 = vld [vmem:[%s15705_s8] sm:$0xff]  }
 0xcc5   :  { %v6209_v42 = vmul.f32 %v10099_v15, %v6132_v25  ;;  %v11496_v56 = vpop.f32.mrb[169].mxu0  ;;  %v6328_v34 = vpop.f32.mrb[42].mxu1  ;;  %v12127_v25 = vld [vmem:[%s15705_s8 + $0x10] ss:$0 sps:$4 sm:$0x33]  }
 0xcc6   :  { %v6364_v37 = vadd.f32 %v6354_v36, %v6352_v10  ;;  %v6135_v14 = vpop.f32.mrb[170].mxu0  ;;  %v6355_v60 = vmul.f32 %v10099_v15, %v6328_v34  ;;  %v11535_v27 = vpop.f32.mrb[43].mxu1  ;;  %v12126_v10 = vld [vmem:[%s15705_s8 + $0x8] sm:$0xff]  }
 0xcc7   :  { %v6225_v1 = vadd.f32 %v6209_v42, %v6201_v19  ;;  %v6210_v52 = vmul.f32 %v10099_v15, %v6135_v14  ;;  %v11497_v5 = vpop.f32.mrb[171].mxu0  ;;  %v12133_v36 = vld [vmem:[#allocation19] sm:$0xff]   ;;  %v12134_v18 = vld [vmem:[#allocation19 + $0x8] sm:$0xff]  }
 0xcc8   :  { %v6368_v41 = vadd.f32 %v6364_v37, %v6362_v47  ;;  %v6365_v13 = vadd.f32 %v6355_v60, %v6353_v12  ;;  %11611 = vmatpush3.bf16.msra.mxu1 %v12133_v36  ;;  %v12138_v36 = vld [vmem:[#allocation19 + $0x28] sm:$0xff]  }
 0xcc9   :  { %v6229_v17 = vadd.f32 %v6225_v1, %v6223_v24  ;;  %v6226_v44 = vadd.f32 %v6210_v52, %v6202_v48  ;;  %11612 = vmatprep.subr.bf16.mxu1 %v12928_v40 }
 0xcca   :  { %v6369_v49 = vadd.f32 %v6365_v13, %v6363_v30  ;;  %v6370_v57 = vadd.f32 %v6368_v41, %v15092_v50  ;;  %v10119_v30 = vld [vmem:[#allocation17 + $0x1] ss:$0 sm:$0xff] }
 0xccb   :  { %v6230_v43 = vadd.f32 %v6226_v44, %v6224_v62  ;;  %v6231_v21 = vadd.f32 %v6229_v17, %v15094_v8  ;;  %v6333_v33 = vpop.f32.mrb[44].mxu1 }
 0xccc   :  { %v6140_v51 = vpop.f32.mrb[172].mxu0  ;;  %v6356_v0 = vmul.f32 %v10100_v22, %v6333_v33  ;;  %v11538_v46 = vpop.f32.mrb[45].mxu1  ;;  %v6371_v32 = vadd.f32 %v6369_v49, %v15096_v11  ;;  %v10118_v11 = vld [vmem:[#allocation17] ss:$0 sm:$0xff]  ;;  %11613 = vmatpush3.bf16.msra.mxu1 %v12134_v18  ;;  %v12139_v18 = vld [vmem:[#allocation19 + $0x30] sm:$0xff]  }
 0xccd   :  { %v6217_v3 = vmul.f32 %v10100_v22, %v6140_v51  ;;  %v11500_v9 = vpop.f32.mrb[173].mxu0  ;;  %v6232_v31 = vadd.f32 %v6230_v43, %v15098_v6  ;;  %v6336_v39 = vpop.f32.mrb[46].mxu1  ;;  %11614 = vmatprep.subr.bf16.mxu1 %v12928_v40 }
 0xcce   :  { %v6372_v16 = vadd.f32 %v6370_v57, %v6356_v0  ;;  %v6143_v63 = vpop.f32.mrb[174].mxu0  ;;  %v6357_v54 = vmul.f32 %v10100_v22, %v6336_v39  ;;  %v11539_v47 = vpop.f32.mrb[47].mxu1 }
 0xccf   :  { %v6233_v29 = vadd.f32 %v6231_v21, %v6217_v3  ;;  %v6218_v50 = vmul.f32 %v10100_v22, %v6143_v63  ;;  %v11501_v45 = vpop.f32.mrb[175].mxu0 }
 0xcd0   :  { %v6373_v28 = vadd.f32 %v6371_v32, %v6357_v54 }
 0xcd1   :  { %v6234_v8 = vadd.f32 %v6232_v31, %v6218_v50 }
 0xcd2   :  { %v6375_v53 = vpack.c.bf16 %v6373_v28, %v6372_v16 }
 0xcd3   :  { %v6374_v24 = vpack.c.bf16 %v6234_v8, %v6233_v29 }
 0xcd5   :  { %11556 = vmatprep.mubr.bf16.mxu0 %v6374_v24 }
 0xcd6   :  { %11557 = vmatmul.mubr.bf16.vlgmr.msra.gmra.mrb[176].mxu0 %v6375_v53 }
 0xcd7   :  { %11562 = vmatprep.mubr.msk.bf16.mxu0 %vm12929_vm4, %v12928_v40 }
 0xda9   :  { %v11558_v6 = vpop.f32.mrb[176].mxu0 }
 0xdaa   :  { %v6499_v58 = vmul.f32 %v11558_v6, %v10118_v11  ;;  %v6476_v61 = vpop.f32.mrb[177].mxu0 }
 0xdab   :  { %v6497_v62 = vmul.f32 %v10118_v11, %v6476_v61  ;;  %v11559_v2 = vpop.f32.mrb[178].mxu0 }
 0xdac   :  { %v6500_v23 = vmul.f32 %v11559_v2, %v10118_v11  ;;  %v6479_v7 = vpop.f32.mrb[179].mxu0  ;;  %v6509_v55 = vadd.f32 %v10119_v30, %v6499_v58 }
 0xdad   :  { %v6498_v38 = vmul.f32 %v10118_v11, %v6479_v7  ;;  %v6507_v59 = vadd.f32 %v10119_v30, %v6497_v62 }
 0xdae   :  { %v6510_v4 = vadd.f32 %v10119_v30, %v6500_v23 }
 0xdaf   :  { %v6508_v20 = vadd.f32 %v10119_v30, %v6498_v38 }
 0xdb0   :  { %v6512_v26 = vpack.c.bf16 %v6510_v4, %v6509_v55  ;;  %v15134_v4 = vld [vmem:[%s15706_s18] sm:$0xff]  }
 0xdb1   :  { %v6511_v15 = vpack.c.bf16 %v6508_v20, %v6507_v59  ;;  %v15142_v59 = vld [vmem:[%s15706_s18 + $0x8] sm:$0xff]   ;;  %v15149_v20 = vld [vmem:[%s15706_s18 + $0x10] sm:$0xff]  }
 0xdb3   :  { %11561 = vmatpush3.bf16.msra.mxu0 %v6511_v15  ;;  %v15163_v15 = vld [vmem:[%s15706_s18 + $0x20] ss:$0 sps:$4 sm:$0xff]  }
 0xdb4   :  { %11574 = vmatprep.subr.bf16.mxu0 %v12928_v40 }
 0xdb6   :  { %11563 = vmatmul.mubr.msk.bf16.vlgmr.msra.gmra.mrb[180].mxu0 %vm5530_vm5, %v12125_v35 }
 0xdb7   :  { %11575 = vmatpush3.bf16.msra.mxu0 %v6512_v26  ;;  %11566 = vmatprep.mubr.msk.bf16.mxu0 %vm12929_vm4, %v12928_v40  ;;  %v15156_v26 = vld [vmem:[%s15706_s18 + $0x18] sm:$0xff]  }
 0xdb8   :  { %11588 = vmatprep.subr.bf16.mxu0 %v12928_v40 }
 0xdbe   :  { %11567 = vmatmul.mubr.msk.bf16.gmra.mrb[184].mxu0 %vm5530_vm5, %v12126_v10 }
 0xdbf   :  { %11570 = vmatprep.mubr.msk.bf16.mxu0 %vm12929_vm4, %v12928_v40 }
 0xdc6   :  { %11571 = vmatmul.mubr.msk.bf16.gmra.mrb[188].mxu0 %vm5530_vm5, %v12127_v25 }
 0xdc7   :  { %11576 = vmatprep.mubr.msk.bf16.mxu0 %vm12929_vm4, %v12928_v40 }
 0xdce   :  { %11577 = vmatmul.mubr.msk.bf16.vlgmr.msra.gmra.mrb[192].mxu0 %vm5530_vm5, %v12125_v35  ;;  %v12135_v35 = vld [vmem:[#allocation19 + $0x10] sm:$0xff]  }
 0xdcf   :  { %11580 = vmatprep.mubr.msk.bf16.mxu0 %vm12929_vm4, %v12928_v40  ;;  %11615 = vmatpush3.bf16.msra.mxu1 %v12135_v35 }
 0xdd0   :  { %11616 = vmatprep.subr.bf16.mxu1 %v12928_v40 }
 0xdd6   :  { %11581 = vmatmul.mubr.msk.bf16.gmra.mrb[196].mxu0 %vm5530_vm5, %v12126_v10  ;;  %v12136_v10 = vld [vmem:[#allocation19 + $0x18] sm:$0xff]  }
 0xdd7   :  { %11584 = vmatprep.mubr.msk.bf16.mxu0 %vm12929_vm4, %v12928_v40  ;;  %11617 = vmatpush3.bf16.msra.mxu1 %v12136_v10 }
 0xdd8   :  { %11618 = vmatprep.subr.bf16.mxu1 %v12928_v40 }
 0xdde   :  { %11585 = vmatmul.mubr.msk.bf16.gmra.mrb[200].mxu0 %vm5530_vm5, %v12127_v25  ;;  %v12137_v25 = vld [vmem:[#allocation19 + $0x20] sm:$0xff]  }
 0xddf   :  { %11590 = vmatprep.mubr.msk.bf16.mxu0 %vm12929_vm4, %v12928_v40  ;;  %11619 = vmatpush3.bf16.msra.mxu1 %v12137_v25 }
 0xde0   :  { %11620 = vmatprep.subr.bf16.mxu1 %v12928_v40 }
 0xde3   :  { %11621 = vmatpush3.bf16.msra.mxu1 %v12138_v36 }
 0xde4   :  { %11622 = vmatprep.subr.bf16.mxu1 %v12928_v40 }
 0xde7   :  { %11623 = vmatpush3.bf16.msra.mxu1 %v12139_v18 }
 0xde8   :  { %11624 = vmatprep.subr.bf16.mxu1 %v12928_v40 }
 0xe89   :  { %v6574_v19 = vpop.f32.mrb[180].mxu0 }
 0xe8a   :  { %v6600_v42 = vcombine.high %v6574_v19, %v6574_v19  ;;  %v11564_v56 = vpop.f32.mrb[181].mxu0 }
 0xe8b   :  { %v6577_v34 = vpop.f32.mrb[182].mxu0 }
 0xe8c   :  { %v6601_v12 = vcombine.high %v6577_v34, %v6577_v34  ;;  %v11565_v37 = vpop.f32.mrb[183].mxu0  ;;  %v6608_v14 = vmax.f32 %v6574_v19, %v6600_v42  ;;  %v12140_v19 = vld [vmem:[#allocation19 + $0x38] sm:$0xff]  }
 0xe8d   :  { %11625 = vmatpush3.bf16.msra.mxu1 %v12140_v19  ;;  %v10139_v42 = vld [vmem:[%s15707_s29] ss:$0 sm:$0xff] }
 0xe8e   :  { %v6609_v60 = vmax.f32 %v6577_v34, %v6601_v12  ;;  %11630 = vmatprep.subr.bf16.mxu1 %v12928_v40  ;;  %v10140_v34 = vld [vmem:[%s15707_s29 + $0x1] ss:$0 sm:$0xff] }
 0xe90   :  { %v6612_v27 = vmax.f32 %v6608_v14, %v6609_v60 }
 0xe91   :  { %v6582_v48 = vpop.f32.mrb[184].mxu0 }
 0xe92   :  { %v6602_v1 = vcombine.high %v6582_v48, %v6582_v48  ;;  %v11568_v52 = vpop.f32.mrb[185].mxu0 }
 0xe93   :  { %v6585_v5 = vpop.f32.mrb[186].mxu0 }
 0xe94   :  { %v6603_v41 = vcombine.high %v6585_v5, %v6585_v5  ;;  %v11569_v13 = vpop.f32.mrb[187].mxu0  ;;  %v6610_v17 = vmax.f32 %v6582_v48, %v6602_v1  ;;  %v10141_v1 = vld [vmem:[%s15707_s29 + $0x2] ss:$0 sm:$0xff] }
 0xe96   :  { %v6611_v44 = vmax.f32 %v6585_v5, %v6603_v41  ;;  %v10142_v5 = vld [vmem:[%s15707_s29 + $0x3] ss:$0 sm:$0xff] }
 0xe98   :  { %v6613_v22 = vmax.f32 %v6610_v17, %v6611_v44 }
 0xe99   :  { %v6590_v49 = vpop.f32.mrb[188].mxu0 }
 0xe9a   :  { %v6614_v57 = vmax.f32 %v6612_v27, %v6613_v22  ;;  %v11572_v43 = vpop.f32.mrb[189].mxu0 }
 0xe9b   :  { %v6593_v21 = vpop.f32.mrb[190].mxu0  ;;  %v10143_v43 = vld [vmem:[%s15707_s29 + $0x4] ss:$0 sm:$0xff] }
 0xe9c   :  { %v6615_v33 = vmax.f32 %v6614_v57, %v6590_v49  ;;  %v11573_v51 = vpop.f32.mrb[191].mxu0 }
 0xea1   :  { %v6650_v0 = vpop.f32.mrb[192].mxu0 }
 0xea2   :  { %v6676_v46 = vcombine.high %v6650_v0, %v6650_v0  ;;  %v11578_v32 = vpop.f32.mrb[193].mxu0 }
 0xea3   :  { %v6653_v3 = vpop.f32.mrb[194].mxu0 }
 0xea4   :  { %v6677_v9 = vcombine.high %v6653_v3, %v6653_v3  ;;  %v11579_v31 = vpop.f32.mrb[195].mxu0  ;;  %v6684_v39 = vmax.f32 %v6650_v0, %v6676_v46 }
 0xea5   :  { %v10145_v31 = vld [vmem:[%s15707_s29 + $0x6] ss:$0 sm:$0xff] }
 0xea6   :  { %v6685_v16 = vmax.f32 %v6653_v3, %v6677_v9 }
 0xea8   :  { %v6688_v63 = vmax.f32 %v6684_v39, %v6685_v16  ;;  %v10146_v16 = vld [vmem:[%s15707_s29 + $0x7] ss:$0 sm:$0xff] }
 0xea9   :  { %v6658_v54 = vpop.f32.mrb[196].mxu0 }
 0xeaa   :  { %v6678_v47 = vcombine.high %v6658_v54, %v6658_v54  ;;  %v11582_v29 = vpop.f32.mrb[197].mxu0 }
 0xeab   :  { %v6661_v50 = vpop.f32.mrb[198].mxu0 }
 0xeac   :  { %v6679_v45 = vcombine.high %v6661_v50, %v6661_v50  ;;  %v11583_v28 = vpop.f32.mrb[199].mxu0  ;;  %v6686_v8 = vmax.f32 %v6658_v54, %v6678_v47 }
 0xead   :  { %v10147_v28 = vld [vmem:[%s15707_s29 + $0x8] ss:$0 sm:$0xff] }
 0xeae   :  { %v6687_v53 = vmax.f32 %v6661_v50, %v6679_v45 }
 0xeb0   :  { %v6689_v24 = vmax.f32 %v6686_v8, %v6687_v53 }
 0xeb1   :  { %v6666_v11 = vpop.f32.mrb[200].mxu0 }
 0xeb2   :  { %v6690_v6 = vmax.f32 %v6688_v63, %v6689_v24  ;;  %v11586_v58 = vpop.f32.mrb[201].mxu0 }
 0xeb3   :  { %v6669_v61 = vpop.f32.mrb[202].mxu0 }
 0xeb4   :  { %v6691_v30 = vmax.f32 %v6690_v6, %v6666_v11  ;;  %v11587_v62 = vpop.f32.mrb[203].mxu0 }
 0xeb6   :  { %v6693_v2 = vcombine.low %v6691_v30, %v6691_v30 }
 0xeb8   :  { %v6695_v23 = vsel %vm707_vm0, %v6615_v33, %v6693_v2  ;;  %v10144_v33 = vld [vmem:[%s15707_s29 + $0x5] ss:$0 sm:$0xff]  ;;  %v12141_v2 = vld [vmem:[#allocation22] sm:$0xff]  }
 0xeb9   :  { %v6696_v7 = vmax.f32 %v6695_v23, 0.0  ;;  %v10156_v23 = vld [vmem:[#allocation20] ss:$0 sm:$0xff] }
 0xebb   :  { %v6697_v38 = vpack.c.bf16 %v6696_v7, %v6696_v7  ;;  %v10157_v7 = vld [vmem:[#allocation20 + $0x1] ss:$0 sm:$0xff] }
 0xebd   :  { %v6756_v55 = vsel %vm707_vm0, %v6697_v38, 0 }
 0xebe   :  { %11589 = vmatpush3.bf16.msra.mxu0 %v6756_v55 }
 0xebf   :  { %11652 = vmatprep.subr.bf16.mxu0 %v12928_v40 }
 0xec1   :  { %11591 = vmatmul.mubr.msk.bf16.vlgmr.msra.gmra.mrb[204].mxu0 %vm6739_vm6, %v15134_v4 }
 0xec2   :  { %11594 = vmatprep.mubr.msk.bf16.mxu0 %vm12929_vm4, %v12928_v40  ;;  %11653 = vmatpush3.bf16.msra.mxu0 %v12141_v2 }
 0xec3   :  { %11654 = vmatprep.subr.bf16.mxu0 %v12928_v40 }
 0xec9   :  { %11595 = vmatmul.mubr.msk.bf16.gmra.mrb[208].mxu0 %vm6739_vm6, %v15142_v59 }
 0xeca   :  { %11598 = vmatprep.mubr.msk.bf16.mxu0 %vm12929_vm4, %v12928_v40 }
 0xed1   :  { %11599 = vmatmul.mubr.msk.bf16.gmra.mrb[212].mxu0 %vm6739_vm6, %v15149_v20 }
 0xed2   :  { %11602 = vmatprep.mubr.msk.bf16.mxu0 %vm12929_vm4, %v12928_v40 }
 0xed9   :  { %11603 = vmatmul.mubr.msk.bf16.gmra.mrb[216].mxu0 %vm6739_vm6, %v15156_v26 }
 0xeda   :  { %11606 = vmatprep.mubr.msk.bf16.mxu0 %vm12929_vm4, %v12928_v40 }
 0xee1   :  { %11607 = vmatmul.mubr.msk.bf16.gmra.mrb[220].mxu0 %vm6739_vm6, %v15163_v15 }
 0xee2   :  { %11668 = vmatprep.mubr.msk.bf16.mxu0 %vm12929_vm4, %v12928_v40 }
 0xf94   :  { %v6792_v56 = vpop.f32.mrb[204].mxu0 }
 0xf95   :  { %v11592_v12 = vpop.f32.mrb[205].mxu0  ;;  %v6836_v14 = vmul.f32 %v10139_v42, %v6792_v56  ;;  %v12143_v56 = vld [vmem:[#allocation22 + $0x10] sm:$0xff]  }
 0xf96   :  { %v6795_v37 = vpop.f32.mrb[206].mxu0  ;;  %v12148_v12 = vld [vmem:[#allocation22 + $0x38] sm:$0xff]  }
 0xf97   :  { %v6843_v60 = vmul.f32 %v10140_v34, %v6795_v37  ;;  %v11593_v27 = vpop.f32.mrb[207].mxu0  ;;  %v12147_v34 = vld [vmem:[#allocation22 + $0x30] sm:$0xff]   ;;  %v10163_v37 = vld [vmem:[%s15709_s20] ss:$0 sm:$0xff] }
 0xf99   :  { %v6893_v48 = vadd.f32 %v6843_v60, %v6836_v14  ;;  %v10164_v60 = vld [vmem:[%s15709_s20 + $0x1] ss:$0 sm:$0xff] }
 0xf9c   :  { %v6800_v52 = vpop.f32.mrb[208].mxu0 }
 0xf9d   :  { %v11596_v41 = vpop.f32.mrb[209].mxu0  ;;  %v6850_v17 = vmul.f32 %v10141_v1, %v6800_v52 }
 0xf9e   :  { %v6803_v13 = vpop.f32.mrb[210].mxu0 }
 0xf9f   :  { %v6857_v44 = vmul.f32 %v10142_v5, %v6803_v13  ;;  %v11597_v22 = vpop.f32.mrb[211].mxu0  ;;  %v10165_v13 = vld [vmem:[%s15709_s20 + $0x2] ss:$0 sm:$0xff] }
 0xfa1   :  { %v6894_v49 = vadd.f32 %v6857_v44, %v6850_v17  ;;  %v10166_v44 = vld [vmem:[%s15709_s20 + $0x3] ss:$0 sm:$0xff] }
 0xfa3   :  { %v6897_v57 = vadd.f32 %v6894_v49, %v6893_v48 }
 0xfa4   :  { %v6808_v21 = vpop.f32.mrb[212].mxu0 }
 0xfa5   :  { %v11600_v51 = vpop.f32.mrb[213].mxu0  ;;  %v6864_v46 = vmul.f32 %v10143_v43, %v6808_v21 }
 0xfa6   :  { %v6811_v0 = vpop.f32.mrb[214].mxu0  ;;  %v10167_v51 = vld [vmem:[%s15709_s20 + $0x4] ss:$0 sm:$0xff] }
 0xfa7   :  { %v6871_v32 = vmul.f32 %v10144_v33, %v6811_v0  ;;  %v11601_v3 = vpop.f32.mrb[215].mxu0 }
 0xfa9   :  { %v6895_v9 = vadd.f32 %v6871_v32, %v6864_v46  ;;  %v10168_v46 = vld [vmem:[%s15709_s20 + $0x5] ss:$0 sm:$0xff] }
 0xfac   :  { %v6816_v39 = vpop.f32.mrb[216].mxu0 }
 0xfad   :  { %v11604_v63 = vpop.f32.mrb[217].mxu0  ;;  %v6878_v47 = vmul.f32 %v10145_v31, %v6816_v39 }
 0xfae   :  { %v6819_v54 = vpop.f32.mrb[218].mxu0  ;;  %v10169_v63 = vld [vmem:[%s15709_s20 + $0x6] ss:$0 sm:$0xff] }
 0xfaf   :  { %v6885_v29 = vmul.f32 %v10146_v16, %v6819_v54  ;;  %v11605_v50 = vpop.f32.mrb[219].mxu0 }
 0xfb1   :  { %v6896_v45 = vadd.f32 %v6885_v29, %v6878_v47  ;;  %v10170_v47 = vld [vmem:[%s15709_s20 + $0x7] ss:$0 sm:$0xff] }
 0xfb3   :  { %v6898_v8 = vadd.f32 %v6896_v45, %v6895_v9 }
 0xfb4   :  { %v6824_v53 = vpop.f32.mrb[220].mxu0 }
 0xfb5   :  { %v6892_v24 = vmul.f32 %v10147_v28, %v6824_v53  ;;  %v6899_v11 = vadd.f32 %v6898_v8, %v6897_v57  ;;  %v11608_v6 = vpop.f32.mrb[221].mxu0 }
 0xfb6   :  { %v6827_v58 = vpop.f32.mrb[222].mxu0 }
 0xfb7   :  { %v6900_v61 = vadd.f32 %v6899_v11, %v6892_v24  ;;  %v11609_v30 = vpop.f32.mrb[223].mxu0  ;;  %v10171_v24 = vld [vmem:[%s15709_s20 + $0x8] ss:$0 sm:$0xff] }
 0xfb9   :  { %v6901_v62 = vpack.c.bf16 %v6900_v61, %v6900_v61 }
 0xfbb   :  { %11627 = vmatmul.mubr.bf16.vlgmr.msra.gmra.mrb[48].mxu1 %v6901_v62 }
 0xfbc   :  { %11632 = vmatprep.mubr.msk.bf16.mxu1 %vm12929_vm4, %v12928_v40 }
0x108e   :  { %v7002_v38 = vpop.f32.mrb[48].mxu1 }
0x108f   :  { %v7014_v55 = vmul.f32 %v10156_v23, %v7002_v38  ;;  %v11628_v35 = vpop.f32.mrb[49].mxu1  ;;  %v12149_v38 = vld [vmem:[%s15710_s14] sm:$0xff]  }
0x1090   :  { %v7005_v10 = vpop.f32.mrb[50].mxu1  ;;  %v12153_v35 = vld [vmem:[%s15711_s0 + $0x4] ss:$8 sps:$4 sm:$0xff]  }
0x1091   :  { %v7021_v25 = vadd.f32 %v10157_v7, %v7014_v55  ;;  %v11629_v36 = vpop.f32.mrb[51].mxu1  ;;  %v12151_v55 = vld [vmem:[%s15711_s0] ss:$8 sps:$4 sm:$0xff]   ;;  %v12156_v10 = vld [vmem:[%s15711_s0 + $0x14] ss:$8 sps:$4 sm:$0xff]  }
0x1092   :  { %v12159_v36 = vld [vmem:[%s15711_s0 + $0x24] ss:$8 sps:$4 sm:$0xff]  }
0x1093   :  { %v7022_v18 = vmax.f32 %v7021_v25, 0.0  ;;  %v12154_v25 = vld [vmem:[%s15711_s0 + $0x10] ss:$8 sps:$4 sm:$0xff]  }
0x1095   :  { %v7023_v19 = vpack.c.bf16 %v7022_v18, %v7022_v18  ;;  %v12157_v18 = vld [vmem:[%s15711_s0 + $0x20] ss:$8 sps:$4 sm:$0xff]  }
0x1097   :  { %v7034_v42 = vsel %vm707_vm0, %v7023_v19, 0  ;;  %v10180_v19 = vld [vmem:[#allocation23] ss:$0 sm:$0xff] }
0x1098   :  { %11631 = vmatpush3.bf16.msra.mxu1 %v7034_v42  ;;  %v10181_v42 = vld [vmem:[#allocation23 + $0x1] ss:$0 sm:$0xff] }
0x1099   :  { %7528 = vmatprep.subr.bf16.mxu1 %v12153_v35 }
0x109b   :  { %11633 = vmatmul.mubr.msk.bf16.vlgmr.msra.gmra.mrb[52].mxu1 %vm6739_vm6, %v15134_v4  ;;  %v15708_v4 = vmov 0  }
0x109c   :  { %11636 = vmatprep.mubr.msk.bf16.mxu1 %vm12929_vm4, %v12928_v40  ;;  %7529 = vmatpush1.bf16.msra.mxu1 %v12151_v55 }
0x109d   :  { %7530 = vmatprep.subr.bf16.mxu1 %v12156_v10 }
0x10a0   :  { %7531 = vmatpush1.bf16.msra.mxu1 %v12154_v25 }
0x10a1   :  { %7532 = vmatprep.subr.bf16.mxu1 %v12159_v36 }
0x10a3   :  { %11637 = vmatmul.mubr.msk.bf16.gmra.mrb[56].mxu1 %vm6739_vm6, %v15142_v59  ;;  %v12142_v59 = vld [vmem:[#allocation22 + $0x8] sm:$0xff]  }
0x10a4   :  { %11640 = vmatprep.mubr.msk.bf16.mxu1 %vm12929_vm4, %v12928_v40  ;;  %11655 = vmatpush3.bf16.msra.mxu0 %v12142_v59 }
0x10a5   :  { %11656 = vmatprep.subr.bf16.mxu0 %v12928_v40  ;;  %7533 = vmatpush1.bf16.msra.mxu1 %v12157_v18 }
0x10a8   :  { %11657 = vmatpush3.bf16.msra.mxu0 %v12143_v56 }
0x10a9   :  { %11658 = vmatprep.subr.bf16.mxu0 %v12928_v40 }
0x10ab   :  { %11641 = vmatmul.mubr.msk.bf16.gmra.mrb[60].mxu1 %vm6739_vm6, %v15149_v20  ;;  %v12144_v20 = vld [vmem:[#allocation22 + $0x18] sm:$0xff]  }
0x10ac   :  { %11644 = vmatprep.mubr.msk.bf16.mxu1 %vm12929_vm4, %v12928_v40  ;;  %11659 = vmatpush3.bf16.msra.mxu0 %v12144_v20 }
0x10ad   :  { %11660 = vmatprep.subr.bf16.mxu0 %v12928_v40 }
0x10b3   :  { %11645 = vmatmul.mubr.msk.bf16.gmra.mrb[64].mxu1 %vm6739_vm6, %v15156_v26  ;;  %v12145_v26 = vld [vmem:[#allocation22 + $0x20] sm:$0xff]  }
0x10b4   :  { %11648 = vmatprep.mubr.msk.bf16.mxu1 %vm12929_vm4, %v12928_v40  ;;  %11661 = vmatpush3.bf16.msra.mxu0 %v12145_v26 }
0x10b5   :  { %11662 = vmatprep.subr.bf16.mxu0 %v12928_v40 }
0x10bb   :  { %11649 = vmatmul.mubr.msk.bf16.gmra.mrb[68].mxu1 %vm6739_vm6, %v15163_v15  ;;  %v12146_v15 = vld [vmem:[#allocation22 + $0x28] sm:$0xff]  }
0x10bc   :  { %7560 = vmatprep.mubr.bf16.mxu1 %v15708_v4  ;;  %11663 = vmatpush3.bf16.msra.mxu0 %v12146_v15 }
0x10bd   :  { %11664 = vmatprep.subr.bf16.mxu0 %v12928_v40 }
0x10c0   :  { %11665 = vmatpush3.bf16.msra.mxu0 %v12147_v34 }
0x10c1   :  { %11666 = vmatprep.subr.bf16.mxu0 %v12928_v40 }
0x10c4   :  { %11667 = vmatpush3.bf16.msra.mxu0 %v12148_v12 }
0x116e   :  { %v7070_v14 = vpop.f32.mrb[52].mxu1 }
0x116f   :  { %v11634_v27 = vpop.f32.mrb[53].mxu1  ;;  %v7114_v1 = vmul.f32 %v10163_v37, %v7070_v14  ;;  %v12150_v14 = vld [vmem:[%s15710_s14 + $0x8] ss:$0 sps:$4 sm:$0x11]  }
0x1170   :  { %v7073_v48 = vpop.f32.mrb[54].mxu1  ;;  %v12160_v27 = vld [vmem:[%s15711_s0 + $0x30] ss:$8 sps:$4 sm:$0xff]  }
0x1171   :  { %v7121_v52 = vmul.f32 %v10164_v60, %v7073_v48  ;;  %v11635_v5 = vpop.f32.mrb[55].mxu1  ;;  %v12162_v60 = vld [vmem:[%s15711_s0 + $0x34] ss:$8 sps:$4 sm:$0xff]   ;;  %v12165_v48 = vld [vmem:[%s15711_s0 + $0x44] ss:$8 sps:$4 sm:$0xff]  }
0x1172   :  { %7534 = vmatprep.subr.bf16.mxu1 %v12162_v60  ;;  %v12166_v5 = vld [vmem:[%s15711_s0 + $0x50] ss:$8 sps:$4 sm:$0xff]  }
0x1173   :  { %v7171_v41 = vadd.f32 %v7121_v52, %v7114_v1  ;;  %7535 = vmatpush1.bf16.msra.mxu1 %v12160_v27  ;;  %v12163_v1 = vld [vmem:[%s15711_s0 + $0x40] ss:$8 sps:$4 sm:$0xff]   ;;  %v12168_v52 = vld [vmem:[%s15711_s0 + $0x54] ss:$8 sps:$4 sm:$0xff]  }
0x1174   :  { %7536 = vmatprep.subr.bf16.mxu1 %v12165_v48 }
0x1176   :  { %v7078_v17 = vpop.f32.mrb[56].mxu1 }
0x1177   :  { %v11638_v22 = vpop.f32.mrb[57].mxu1  ;;  %v7128_v40 = vmul.f32 %v10165_v13, %v7078_v17  ;;  %7537 = vmatpush1.bf16.msra.mxu1 %v12163_v1  ;;  %v12169_v13 = vld [vmem:[%s15711_s0 + $0x60] ss:$8 sps:$4 sm:$0xff]   ;;  %v12174_v17 = vld [vmem:[%s15711_s0 + $0x74] ss:$8 sps:$4 sm:$0xff]  }
0x1178   :  { %v7081_v49 = vpop.f32.mrb[58].mxu1  ;;  %7538 = vmatprep.subr.bf16.mxu1 %v12168_v52  ;;  %v12175_v22 = vld [vmem:[%s15712_s27] ss:$8 sps:$4 sm:$0xff]  }
0x1179   :  { %v7135_v57 = vmul.f32 %v10166_v44, %v7081_v49  ;;  %v11639_v43 = vpop.f32.mrb[59].mxu1  ;;  %v12172_v44 = vld [vmem:[%s15711_s0 + $0x70] ss:$8 sps:$4 sm:$0xff]   ;;  %v12177_v49 = vld [vmem:[%s15712_s27 + $0x4] ss:$8 sps:$4 sm:$0xff]  }
0x117a   :  { %v12183_v43 = vld [vmem:[%s15712_s27 + $0x24] ss:$8 sps:$4 sm:$0xff]  }
0x117b   :  { %v7172_v21 = vadd.f32 %v7135_v57, %v7128_v40  ;;  %7539 = vmatpush1.bf16.msra.mxu1 %v12166_v5  ;;  %v12180_v40 = vld [vmem:[%s15712_s27 + $0x14] ss:$8 sps:$4 sm:$0xff]   ;;  %v12178_v57 = vld [vmem:[%s15712_s27 + $0x10] ss:$8 sps:$4 sm:$0xff]  }
0x117d   :  { %v7175_v33 = vadd.f32 %v7172_v21, %v7171_v41  ;;  %v12171_v41 = vld [vmem:[%s15711_s0 + $0x64] ss:$8 sps:$4 sm:$0xff]   ;;  %v12181_v21 = vld [vmem:[%s15712_s27 + $0x20] ss:$8 sps:$4 sm:$0xff]  }
0x117e   :  { %v7086_v0 = vpop.f32.mrb[60].mxu1  ;;  %7540 = vmatprep.subr.bf16.mxu1 %v12171_v41  ;;  %v12219_v41 = vld [vmem:[%s15712_s27 + $0xe4] ss:$8 sps:$4 sm:$0xff]  }
0x117f   :  { %v11642_v32 = vpop.f32.mrb[61].mxu1  ;;  %v7142_v9 = vmul.f32 %v10167_v51, %v7086_v0  ;;  %7541 = vmatpush1.bf16.msra.mxu1 %v12169_v13  ;;  %v12184_v51 = vld [vmem:[%s15712_s27 + $0x30] ss:$8 sps:$4 sm:$0xff]   ;;  %v12189_v0 = vld [vmem:[%s15712_s27 + $0x44] ss:$8 sps:$4 sm:$0xff]  }
0x1180   :  { %v7089_v3 = vpop.f32.mrb[62].mxu1  ;;  %7542 = vmatprep.subr.bf16.mxu1 %v12174_v17  ;;  %v12192_v32 = vld [vmem:[%s15712_s27 + $0x54] ss:$8 sps:$4 sm:$0xff]   ;;  %v12217_v13 = vld [vmem:[%s15712_s27 + $0xe0] ss:$8 sps:$4 sm:$0xff]  }
0x1181   :  { %v7149_v31 = vmul.f32 %v10168_v46, %v7089_v3  ;;  %v11643_v39 = vpop.f32.mrb[63].mxu1  ;;  %v12187_v46 = vld [vmem:[%s15712_s27 + $0x40] ss:$8 sps:$4 sm:$0xff]   ;;  %v12190_v3 = vld [vmem:[%s15712_s27 + $0x50] ss:$8 sps:$4 sm:$0xff]  }
0x1182   :  { %v12198_v39 = vld [vmem:[%s15712_s27 + $0x74] ss:$8 sps:$4 sm:$0xff]  }
0x1183   :  { %v7173_v16 = vadd.f32 %v7149_v31, %v7142_v9  ;;  %7543 = vmatpush1.bf16.msra.mxu1 %v12172_v44  ;;  %v12195_v9 = vld [vmem:[%s15712_s27 + $0x64] ss:$8 sps:$4 sm:$0xff]   ;;  %v12193_v31 = vld [vmem:[%s15712_s27 + $0x60] ss:$8 sps:$4 sm:$0xff]   ;;  %v12222_v17 = vld [vmem:[%s15712_s27 + $0xf4] ss:$8 sps:$4 sm:$0xff]  }
0x1184   :  { %v12220_v44 = vld [vmem:[%s15712_s27 + $0xf0] ss:$8 sps:$4 sm:$0xff]  }
0x1186   :  { %v7094_v54 = vpop.f32.mrb[64].mxu1 }
0x1187   :  { %v11646_v29 = vpop.f32.mrb[65].mxu1  ;;  %v7156_v45 = vmul.f32 %v10169_v63, %v7094_v54  ;;  %v12201_v63 = vld [vmem:[%s15712_s27 + $0x84] ss:$8 sps:$4 sm:$0xff]   ;;  %v12199_v54 = vld [vmem:[%s15712_s27 + $0x80] ss:$8 sps:$4 sm:$0xff]  }
0x1188   :  { %v7097_v50 = vpop.f32.mrb[66].mxu1  ;;  %v12202_v29 = vld [vmem:[%s15712_s27 + $0x90] ss:$8 sps:$4 sm:$0xff]  }
0x1189   :  { %v7163_v28 = vmul.f32 %v10170_v47, %v7097_v50  ;;  %v11647_v8 = vpop.f32.mrb[67].mxu1  ;;  %v12204_v47 = vld [vmem:[%s15712_s27 + $0x94] ss:$8 sps:$4 sm:$0xff]   ;;  %v12207_v50 = vld [vmem:[%s15712_s27 + $0xa4] ss:$8 sps:$4 sm:$0xff]  }
0x118a   :  { %v12208_v8 = vld [vmem:[%s15712_s27 + $0xb0] ss:$8 sps:$4 sm:$0xff]  }
0x118b   :  { %v7174_v53 = vadd.f32 %v7163_v28, %v7156_v45  ;;  %v12205_v45 = vld [vmem:[%s15712_s27 + $0xa0] ss:$8 sps:$4 sm:$0xff]   ;;  %v12210_v28 = vld [vmem:[%s15712_s27 + $0xb4] ss:$8 sps:$4 sm:$0xff]  }
0x118d   :  { %v7176_v11 = vadd.f32 %v7174_v53, %v7173_v16  ;;  %v12196_v16 = vld [vmem:[%s15712_s27 + $0x70] ss:$8 sps:$4 sm:$0xff]   ;;  %v12213_v53 = vld [vmem:[%s15712_s27 + $0xc4] ss:$8 sps:$4 sm:$0xff]  }
0x118e   :  { %v7102_v6 = vpop.f32.mrb[68].mxu1 }
0x118f   :  { %v7170_v58 = vmul.f32 %v10171_v24, %v7102_v6  ;;  %v7177_v61 = vadd.f32 %v7176_v11, %v7175_v33  ;;  %v11650_v30 = vpop.f32.mrb[69].mxu1  ;;  %v12186_v33 = vld [vmem:[%s15712_s27 + $0x34] ss:$8 sps:$4 sm:$0xff]   ;;  %v12211_v24 = vld [vmem:[%s15712_s27 + $0xc0] ss:$8 sps:$4 sm:$0xff]  }
0x1190   :  { %v7105_v62 = vpop.f32.mrb[70].mxu1  ;;  %v12216_v11 = vld [vmem:[%s15712_s27 + $0xd4] ss:$8 sps:$4 sm:$0xff]   ;;  %v12214_v6 = vld [vmem:[%s15712_s27 + $0xd0] ss:$8 sps:$4 sm:$0xff]   ;;  %v7376_v30 = vlaneseq }
0x1191   :  { %v7178_v2 = vadd.f32 %v7177_v61, %v7170_v58  ;;  %v11651_v23 = vpop.f32.mrb[71].mxu1  ;;  %v12930_v58 = vmov 1983009808  }
0x1192   :  { %v7374_v61 = vunpack.c.l.s4 %v12930_v58 }
0x1193   :  { %v7179_v7 = vpack.c.bf16 %v7178_v2, %v7178_v2  ;;  %v15272_v2 = vshrl.u32 %v7376_v30, 7 }
0x1194   :  { %v7375_v62 = vunpack.c.0.s8 %v7374_v61 }
0x1195   :  { %11669 = vmatmul.mubr.bf16.vlgmr.msra.gmra.mrb[224].mxu0 %v7179_v7 }
0x1196   :  { %11674 = vmatprep.mubr.msk.bf16.mxu0 %vm6739_vm6, %v12149_v38  ;;  %v7378_v23 = vsub.s32 %v7375_v62, %v15272_v2 }
0x1268   :  { %v7280_v59 = vpop.f32.mrb[224].mxu0 }
0x1269   :  { %v7292_v56 = vmul.f32 %v10180_v19, %v7280_v59  ;;  %v11670_v20 = vpop.f32.mrb[225].mxu0 }
0x126a   :  { %v7283_v26 = vpop.f32.mrb[226].mxu0 }
0x126b   :  { %v7299_v15 = vadd.f32 %v10181_v42, %v7292_v56  ;;  %v11671_v34 = vpop.f32.mrb[227].mxu0 }
0x126d   :  { %v7300_v12 = vpack.c.bf16 %v7299_v15, %v7299_v15 }
0x126f   :  { %11806 = vmatprep.subr.msk.bf16.mxu0 %vm707_vm0, %v7300_v12  ;;  %v7319_v37 = vsel %vm707_vm0, %v7300_v12, 0 }
0x1270   :  { %11673 = vmatpush3.bf16.msra.mxu0 %v7319_v37 }
0x1271   :  { %7783 = vmatprep.subr.bf16.mxu0 %v12177_v49  ;;  %v12225_v49 = vld [vmem:[%s15713_s26 + $0x4] ss:$8 sps:$4 sm:$0xff]  }
0x1272   :  { %8066 = vmatprep.subr.bf16.mxu1 %v12225_v49  ;;  %v12294_v49 = vld [vmem:[%s15715_s1 + $0x74] ss:$8 sps:$4 sm:$0xff]  }
0x1273   :  { %11675 = vmatmul.mubr.msk.bf16.vlgmr.msra.gmra.mrb[228].mxu0 %vm6739_vm6, %v12150_v14 }
0x1274   :  { %7784 = vmatpush1.bf16.msra.mxu0 %v12175_v22  ;;  %v12223_v22 = vld [vmem:[%s15713_s26] ss:$8 sps:$4 sm:$0xff]  }
0x1275   :  { %7785 = vmatprep.subr.bf16.mxu0 %v12180_v40  ;;  %v12228_v40 = vld [vmem:[%s15713_s26 + $0x14] ss:$8 sps:$4 sm:$0xff]  }
0x1278   :  { %7786 = vmatpush1.bf16.msra.mxu0 %v12178_v57  ;;  %v12226_v57 = vld [vmem:[%s15713_s26 + $0x10] ss:$8 sps:$4 sm:$0xff]  }
0x1279   :  { %7787 = vmatprep.subr.bf16.mxu0 %v12183_v43  ;;  %v12231_v43 = vld [vmem:[%s15713_s26 + $0x24] ss:$8 sps:$4 sm:$0xff]  }
0x127c   :  { %7788 = vmatpush1.bf16.msra.mxu0 %v12181_v21  ;;  %v12229_v21 = vld [vmem:[%s15713_s26 + $0x20] ss:$8 sps:$4 sm:$0xff]  }
0x127d   :  { %7789 = vmatprep.subr.bf16.mxu0 %v12186_v33  ;;  %v12234_v33 = vld [vmem:[%s15713_s26 + $0x34] ss:$8 sps:$4 sm:$0xff]  }
0x1280   :  { %7790 = vmatpush1.bf16.msra.mxu0 %v12184_v51  ;;  %v12232_v51 = vld [vmem:[%s15713_s26 + $0x30] ss:$8 sps:$4 sm:$0xff]  }
0x1281   :  { %7791 = vmatprep.subr.bf16.mxu0 %v12189_v0  ;;  %v12237_v0 = vld [vmem:[%s15713_s26 + $0x44] ss:$8 sps:$4 sm:$0xff]  }
0x1284   :  { %7792 = vmatpush1.bf16.msra.mxu0 %v12187_v46  ;;  %v12235_v46 = vld [vmem:[%s15713_s26 + $0x40] ss:$8 sps:$4 sm:$0xff]  }
0x1285   :  { %7793 = vmatprep.subr.bf16.mxu0 %v12192_v32  ;;  %v12240_v32 = vld [vmem:[%s15713_s26 + $0x54] ss:$8 sps:$4 sm:$0xff]  }
0x1288   :  { %7794 = vmatpush1.bf16.msra.mxu0 %v12190_v3  ;;  %v12238_v3 = vld [vmem:[%s15713_s26 + $0x50] ss:$8 sps:$4 sm:$0xff]  }
0x1289   :  { %7795 = vmatprep.subr.bf16.mxu0 %v12195_v9  ;;  %v12243_v9 = vld [vmem:[%s15713_s26 + $0x64] ss:$8 sps:$4 sm:$0xff]  }
0x128c   :  { %7796 = vmatpush1.bf16.msra.mxu0 %v12193_v31  ;;  %v12241_v31 = vld [vmem:[%s15713_s26 + $0x60] ss:$8 sps:$4 sm:$0xff]  }
0x128d   :  { %7797 = vmatprep.subr.bf16.mxu0 %v12198_v39  ;;  %v12246_v39 = vld [vmem:[%s15713_s26 + $0x74] ss:$8 sps:$4 sm:$0xff]  }
0x1290   :  { %7798 = vmatpush1.bf16.msra.mxu0 %v12196_v16  ;;  %v12244_v16 = vld [vmem:[%s15713_s26 + $0x70] ss:$8 sps:$4 sm:$0xff]  }
0x1291   :  { %7799 = vmatprep.subr.bf16.mxu0 %v12201_v63  ;;  %v12249_v63 = vld [vmem:[%s15713_s26 + $0x84] ss:$8 sps:$4 sm:$0xff]  }
0x1294   :  { %7800 = vmatpush1.bf16.msra.mxu0 %v12199_v54  ;;  %v12247_v54 = vld [vmem:[%s15713_s26 + $0x80] ss:$8 sps:$4 sm:$0xff]  }
0x1295   :  { %7801 = vmatprep.subr.bf16.mxu0 %v12204_v47  ;;  %v12252_v47 = vld [vmem:[%s15713_s26 + $0x94] ss:$8 sps:$4 sm:$0xff]  }
0x1298   :  { %7802 = vmatpush1.bf16.msra.mxu0 %v12202_v29  ;;  %v12250_v29 = vld [vmem:[%s15713_s26 + $0x90] ss:$8 sps:$4 sm:$0xff]  }
0x1299   :  { %7803 = vmatprep.subr.bf16.mxu0 %v12207_v50  ;;  %v12255_v50 = vld [vmem:[%s15713_s26 + $0xa4] ss:$8 sps:$4 sm:$0xff]  }
0x129c   :  { %7804 = vmatpush1.bf16.msra.mxu0 %v12205_v45  ;;  %v12253_v45 = vld [vmem:[%s15713_s26 + $0xa0] ss:$8 sps:$4 sm:$0xff]  }
0x129d   :  { %7805 = vmatprep.subr.bf16.mxu0 %v12210_v28  ;;  %v12258_v28 = vld [vmem:[%s15713_s26 + $0xb4] ss:$8 sps:$4 sm:$0xff]  }
0x12a0   :  { %7806 = vmatpush1.bf16.msra.mxu0 %v12208_v8  ;;  %v12256_v8 = vld [vmem:[%s15713_s26 + $0xb0] ss:$8 sps:$4 sm:$0xff]  }
0x12a1   :  { %7807 = vmatprep.subr.bf16.mxu0 %v12213_v53  ;;  %v15304_v53 = vsub.s32 0, %v15272_v2 }
0x12a4   :  { %7808 = vmatpush1.bf16.msra.mxu0 %v12211_v24  ;;  %v15307_v24 = vsub.s32 1, %v15272_v2 }
0x12a5   :  { %7809 = vmatprep.subr.bf16.mxu0 %v12216_v11  ;;  %v7571_v11 = vld [vmem:[%s15714_s28] sm:$0x3] }
0x12a6   :  { %v7578_v61 = vrot.slane %v7571_v11, %v15304_v53 }
0x12a8   :  { %7810 = vmatpush1.bf16.msra.mxu0 %v12214_v6 }
0x12a9   :  { %7811 = vmatprep.subr.bf16.mxu0 %v12219_v41  ;;  %v12283_v41 = vld [vmem:[%s15715_s1 + $0x40] ss:$8 sps:$4 sm:$0xff]  }
0x12ac   :  { %7812 = vmatpush1.bf16.msra.mxu0 %v12217_v13  ;;  %v12288_v13 = vld [vmem:[%s15715_s1 + $0x54] ss:$8 sps:$4 sm:$0xff]  }
0x12ad   :  { %7813 = vmatprep.subr.bf16.mxu0 %v12222_v17  ;;  %v12286_v17 = vld [vmem:[%s15715_s1 + $0x50] ss:$8 sps:$4 sm:$0xff]  }
0x12b0   :  { %7814 = vmatpush1.bf16.msra.mxu0 %v12220_v44  ;;  %v12291_v44 = vld [vmem:[%s15715_s1 + $0x64] ss:$8 sps:$4 sm:$0xff]  }
0x1346   :  { %v11676_v7 = vpop.f32.mrb[228].mxu0 }
0x1347   :  { %v7355_v38 = vpop.f32.mrb[229].mxu0  ;;  %v7412_v27 = vrot.slane %v11676_v7, %v7378_v23 }
0x1348   :  { %v7372_v55 = vcombine.high %v7355_v38, %v7355_v38  ;;  %v7379_v35 = vrot.slane %v7355_v38, %v7378_v23  ;;  %v11677_v10 = vpop.f32.mrb[230].mxu0 }
0x1349   :  { %v7358_v25 = vpop.f32.mrb[231].mxu0 }
0x134a   :  { %v7386_v36 = vrot.slane %v7372_v55, %v7378_v23  ;;  %v7389_v18 = vcombine.high %v7358_v25, %v7358_v25  ;;  %v7396_v19 = vrot.slane %v7358_v25, %v7378_v23  ;;  %v7387_v42 = vcombine.high %v7379_v35, %v7379_v35 }
0x134c   :  { %v7388_v59 = vcombine.high %v7386_v36, %v7386_v36  ;;  %v7403_v56 = vrot.slane %v7389_v18, %v7378_v23  ;;  %v7404_v20 = vcombine.high %v7396_v19, %v7396_v19  ;;  %v7422_v34 = vmax.f32 %v7379_v35, %v7387_v42  ;;  %v12259_v42 = vld [vmem:[%s15713_s26 + $0xc0] ss:$8 sps:$4 sm:$0xff]  }
0x134d   :  { %v7582_v23 = vrot.slane %v7571_v11, %v15307_v24  ;;  %v7854_v11 = vld [vmem:[#allocation25] sm:$0x3] }
0x134e   :  { %v7423_v26 = vmax.f32 %v7386_v36, %v7388_v59  ;;  %v7405_v15 = vcombine.high %v7403_v56, %v7403_v56  ;;  %v7424_v12 = vmax.f32 %v7396_v19, %v7404_v20  ;;  %v12261_v19 = vld [vmem:[%s15713_s26 + $0xc4] ss:$8 sps:$4 sm:$0xff]   ;;  %v12264_v59 = vld [vmem:[%s15713_s26 + $0xd4] ss:$8 sps:$4 sm:$0xff]  }
0x134f   :  { %v12267_v20 = vld [vmem:[%s15713_s26 + $0xe4] ss:$8 sps:$4 sm:$0xff]  }
0x1350   :  { %v7425_v37 = vmax.f32 %v7403_v56, %v7405_v15  ;;  %v7426_v14 = vmax.f32 %v7422_v34, %v7423_v26  ;;  %v12262_v56 = vld [vmem:[%s15713_s26 + $0xd0] ss:$8 sps:$4 sm:$0xff]   ;;  %v12265_v26 = vld [vmem:[%s15713_s26 + $0xe0] ss:$8 sps:$4 sm:$0xff]   ;;  %v12270_v15 = vld [vmem:[%s15713_s26 + $0xf4] ss:$8 sps:$4 sm:$0xff]  }
0x1351   :  { %v12268_v34 = vld [vmem:[%s15713_s26 + $0xf0] ss:$8 sps:$4 sm:$0xff]  }
0x1352   :  { %v7427_v60 = vmax.f32 %v7424_v12, %v7425_v37  ;;  %v12271_v12 = vld [vmem:[%s15715_s1] ss:$8 sps:$4 sm:$0xff]   ;;  %v12273_v37 = vld [vmem:[%s15715_s1 + $0x4] ss:$8 sps:$4 sm:$0xff]  }
0x1353   :  { %8349 = vmatprep.subr.bf16.mxu0 %v12273_v37  ;;  %v12324_v37 = vld [vmem:[%s15717_s22 + $0x14] ss:$8 sps:$4 sm:$0xff]  }
0x1354   :  { %v7428_v48 = vmax.f32 %v7426_v14, %v7427_v60  ;;  %v12276_v14 = vld [vmem:[%s15715_s1 + $0x14] ss:$8 sps:$4 sm:$0xff]   ;;  %v12274_v60 = vld [vmem:[%s15715_s1 + $0x10] ss:$8 sps:$4 sm:$0xff]  }
0x1356   :  { %v7429_v1 = vmax.f32 %v7428_v48, %v7412_v27  ;;  %v12279_v27 = vld [vmem:[%s15715_s1 + $0x24] ss:$8 sps:$4 sm:$0xff]   ;;  %v12277_v48 = vld [vmem:[%s15715_s1 + $0x20] ss:$8 sps:$4 sm:$0xff]  }
0x1358   :  { %v7430_v52 = vmax.f32 %v7429_v1, 0.0  ;;  %v12282_v1 = vld [vmem:[%s15715_s1 + $0x34] ss:$8 sps:$4 sm:$0xff]  }
0x135a   :  { %v7431_v5 = vpack.c.bf16 %v7430_v52, %v7430_v52  ;;  %v12280_v52 = vld [vmem:[%s15715_s1 + $0x30] ss:$8 sps:$4 sm:$0xff]  }
0x135c   :  { %7561 = vmatmul.mubr.bf16.vlgmr.msra.gmra.mrb[72].mxu1 %v7431_v5  ;;  %v12285_v5 = vld [vmem:[%s15715_s1 + $0x44] ss:$8 sps:$4 sm:$0xff]  }
0x135d   :  { %8067 = vmatpush1.bf16.msra.mxu1 %v12223_v22  ;;  %v12289_v22 = vld [vmem:[%s15715_s1 + $0x60] ss:$8 sps:$4 sm:$0xff]  }
0x135e   :  { %8068 = vmatprep.subr.bf16.mxu1 %v12228_v40  ;;  %v12292_v40 = vld [vmem:[%s15715_s1 + $0x70] ss:$8 sps:$4 sm:$0xff]  }
0x1361   :  { %8069 = vmatpush1.bf16.msra.mxu1 %v12226_v57  ;;  %v12297_v57 = vld [vmem:[%s15715_s1 + $0x84] ss:$8 sps:$4 sm:$0xff]  }
0x1362   :  { %8070 = vmatprep.subr.bf16.mxu1 %v12231_v43  ;;  %v12295_v43 = vld [vmem:[%s15715_s1 + $0x80] ss:$8 sps:$4 sm:$0xff]  }
0x1365   :  { %8071 = vmatpush1.bf16.msra.mxu1 %v12229_v21  ;;  %v12300_v21 = vld [vmem:[%s15715_s1 + $0x94] ss:$8 sps:$4 sm:$0xff]  }
0x1366   :  { %8072 = vmatprep.subr.bf16.mxu1 %v12234_v33  ;;  %v12298_v33 = vld [vmem:[%s15715_s1 + $0x90] ss:$8 sps:$4 sm:$0xff]  }
0x1369   :  { %8073 = vmatpush1.bf16.msra.mxu1 %v12232_v51  ;;  %v12303_v51 = vld [vmem:[%s15715_s1 + $0xa4] ss:$8 sps:$4 sm:$0xff]  }
0x136a   :  { %8074 = vmatprep.subr.bf16.mxu1 %v12237_v0  ;;  %v12301_v0 = vld [vmem:[%s15715_s1 + $0xa0] ss:$8 sps:$4 sm:$0xff]  }
0x136d   :  { %8075 = vmatpush1.bf16.msra.mxu1 %v12235_v46  ;;  %v12306_v46 = vld [vmem:[%s15715_s1 + $0xb4] ss:$8 sps:$4 sm:$0xff]  }
0x136e   :  { %8076 = vmatprep.subr.bf16.mxu1 %v12240_v32  ;;  %v12304_v32 = vld [vmem:[%s15715_s1 + $0xb0] ss:$8 sps:$4 sm:$0xff]  }
0x1371   :  { %8077 = vmatpush1.bf16.msra.mxu1 %v12238_v3  ;;  %v7589_v3 = vld [vmem:[%s15716_s30] sm:$0x3] }
0x1372   :  { %8078 = vmatprep.subr.bf16.mxu1 %v12243_v9  ;;  %v7590_v9 = vld [vmem:[%s15716_s30 + $0x2] sm:$0x3] }
0x1375   :  { %8079 = vmatpush1.bf16.msra.mxu1 %v12241_v31  ;;  %v7828_v31 = vrot.slane %v7589_v3, %v15304_v53 }
0x1376   :  { %8080 = vmatprep.subr.bf16.mxu1 %v12246_v39  ;;  %v7832_v39 = vrot.slane %v7589_v3, %v15307_v24  ;;  %v7873_v3 = vld [vmem:[%s15718_s12 + $0x2] sm:$0x3] }
0x1379   :  { %8081 = vmatpush1.bf16.msra.mxu1 %v12244_v16  ;;  %v7841_v16 = vrot.slane %v7590_v9, %v15304_v53 }
0x137a   :  { %8082 = vmatprep.subr.bf16.mxu1 %v12249_v63 }
0x137d   :  { %8083 = vmatpush1.bf16.msra.mxu1 %v12247_v54  ;;  %v7845_v54 = vrot.slane %v7590_v9, %v15307_v24 }
0x137e   :  { %8084 = vmatprep.subr.bf16.mxu1 %v12252_v47 }
0x1381   :  { %8085 = vmatpush1.bf16.msra.mxu1 %v12250_v29 }
0x1382   :  { %8086 = vmatprep.subr.bf16.mxu1 %v12255_v50 }
0x1385   :  { %8087 = vmatpush1.bf16.msra.mxu1 %v12253_v45 }
0x1386   :  { %8088 = vmatprep.subr.bf16.mxu1 %v12258_v28 }
0x1389   :  { %8089 = vmatpush1.bf16.msra.mxu1 %v12256_v8 }
0x138a   :  { %8090 = vmatprep.subr.bf16.mxu1 %v12261_v19  ;;  %v12307_v19 = vld [vmem:[%s15715_s1 + $0xc0] ss:$8 sps:$4 sm:$0xff]  }
0x138d   :  { %8091 = vmatpush1.bf16.msra.mxu1 %v12259_v42  ;;  %v12312_v42 = vld [vmem:[%s15715_s1 + $0xd4] ss:$8 sps:$4 sm:$0xff]  }
0x138e   :  { %8092 = vmatprep.subr.bf16.mxu1 %v12264_v59  ;;  %v12310_v59 = vld [vmem:[%s15715_s1 + $0xd0] ss:$8 sps:$4 sm:$0xff]  }
0x1391   :  { %8093 = vmatpush1.bf16.msra.mxu1 %v12262_v56  ;;  %v12315_v56 = vld [vmem:[%s15715_s1 + $0xe4] ss:$8 sps:$4 sm:$0xff]  }
0x1392   :  { %8094 = vmatprep.subr.bf16.mxu1 %v12267_v20  ;;  %v12313_v20 = vld [vmem:[%s15715_s1 + $0xe0] ss:$8 sps:$4 sm:$0xff]  }
0x1395   :  { %8095 = vmatpush1.bf16.msra.mxu1 %v12265_v26  ;;  %v12318_v26 = vld [vmem:[%s15715_s1 + $0xf4] ss:$8 sps:$4 sm:$0xff]  }
0x1396   :  { %8096 = vmatprep.subr.bf16.mxu1 %v12270_v15  ;;  %v12316_v15 = vld [vmem:[%s15715_s1 + $0xf0] ss:$8 sps:$4 sm:$0xff]  }
0x1399   :  { %8097 = vmatpush1.bf16.msra.mxu1 %v12268_v34  ;;  %v12319_v34 = vld [vmem:[%s15717_s22] ss:$8 sps:$4 sm:$0xff]  }
0x142f   :  { %v7562_v6 = vpop.f32.mrb[72].mxu1 }
0x1430   :  { %v7569_v58 = vpack.c.bf16 %v7562_v6, %v7562_v6  ;;  %v7564_v30 = vpop.f32.mrb[73].mxu1 }
0x1431   :  { %v7570_v62 = vpack.c.bf16 %v7564_v30, %v7564_v30  ;;  %v7566_v7 = vpop.f32.mrb[74].mxu1 }
0x1432   :  { %v7572_v38 = vunpack.c.l.bf16 %v7569_v58  ;;  %v7567_v55 = vpop.f32.mrb[75].mxu1  ;;  %v7865_v7 = vrot.slane %v7854_v11, %v15307_v24 }
0x1433   :  { %v7573_v35 = vunpack.c.l.bf16 %v7570_v62  ;;  %v7861_v62 = vrot.slane %v7854_v11, %v15304_v53 }
0x1434   :  { %v7585_v10 = vmul.f32 %v7578_v61, %v7572_v38 }
0x1435   :  { %v7586_v25 = vmul.f32 %v7582_v23, %v7573_v35 }
0x1436   :  { %v7587_v18 = vpack.c.bf16 %v7585_v10, %v7585_v10 }
0x1437   :  { %v7588_v36 = vpack.c.bf16 %v7586_v25, %v7586_v25 }
0x1439   :  { %7815 = vmatprep.mubr.bf16.mxu0 %v7588_v36 }
0x143a   :  { %7816 = vmatmul.mubr.bf16.vlgmr.msra.gmra.mrb[232].mxu0 %v7587_v18  ;;  %v12309_v18 = vld [vmem:[%s15715_s1 + $0xc4] ss:$8 sps:$4 sm:$0xff]  }
0x143b   :  { %8350 = vmatpush1.bf16.msra.mxu0 %v12271_v12  ;;  %v12321_v12 = vld [vmem:[%s15717_s22 + $0x4] ss:$8 sps:$4 sm:$0xff]  }
0x143c   :  { %8351 = vmatprep.subr.bf16.mxu0 %v12276_v14  ;;  %8632 = vmatprep.subr.bf16.mxu1 %v12321_v12  ;;  %v12322_v14 = vld [vmem:[%s15717_s22 + $0x10] ss:$8 sps:$4 sm:$0xff]   ;;  %v12372_v12 = vld [vmem:[%s15720_s7 + $0xc] ss:$16 sps:$4 sm:$0xff]  }
0x143f   :  { %8352 = vmatpush1.bf16.msra.mxu0 %v12274_v60  ;;  %v12327_v60 = vld [vmem:[%s15717_s22 + $0x24] ss:$8 sps:$4 sm:$0xff]  }
0x1440   :  { %8353 = vmatprep.subr.bf16.mxu0 %v12279_v27  ;;  %v12325_v27 = vld [vmem:[%s15717_s22 + $0x20] ss:$8 sps:$4 sm:$0xff]  }
0x1443   :  { %8354 = vmatpush1.bf16.msra.mxu0 %v12277_v48  ;;  %v12330_v48 = vld [vmem:[%s15717_s22 + $0x34] ss:$8 sps:$4 sm:$0xff]  }
0x1444   :  { %8355 = vmatprep.subr.bf16.mxu0 %v12282_v1  ;;  %v12328_v1 = vld [vmem:[%s15717_s22 + $0x30] ss:$8 sps:$4 sm:$0xff]  }
0x1447   :  { %8356 = vmatpush1.bf16.msra.mxu0 %v12280_v52  ;;  %v12333_v52 = vld [vmem:[%s15717_s22 + $0x44] ss:$8 sps:$4 sm:$0xff]  }
0x1448   :  { %8357 = vmatprep.subr.bf16.mxu0 %v12285_v5  ;;  %v12331_v5 = vld [vmem:[%s15717_s22 + $0x40] ss:$8 sps:$4 sm:$0xff]  }
0x144b   :  { %8358 = vmatpush1.bf16.msra.mxu0 %v12283_v41  ;;  %v12336_v41 = vld [vmem:[%s15717_s22 + $0x54] ss:$8 sps:$4 sm:$0xff]  }
0x144c   :  { %8359 = vmatprep.subr.bf16.mxu0 %v12288_v13  ;;  %v12334_v13 = vld [vmem:[%s15717_s22 + $0x50] ss:$8 sps:$4 sm:$0xff]  }
0x144f   :  { %8360 = vmatpush1.bf16.msra.mxu0 %v12286_v17  ;;  %v12339_v17 = vld [vmem:[%s15717_s22 + $0x64] ss:$8 sps:$4 sm:$0xff]  }
0x1450   :  { %8361 = vmatprep.subr.bf16.mxu0 %v12291_v44  ;;  %v12337_v44 = vld [vmem:[%s15717_s22 + $0x60] ss:$8 sps:$4 sm:$0xff]  }
0x1453   :  { %8362 = vmatpush1.bf16.msra.mxu0 %v12289_v22  ;;  %v12342_v22 = vld [vmem:[%s15717_s22 + $0x74] ss:$8 sps:$4 sm:$0xff]  }
0x1454   :  { %8363 = vmatprep.subr.bf16.mxu0 %v12294_v49  ;;  %v12340_v49 = vld [vmem:[%s15717_s22 + $0x70] ss:$8 sps:$4 sm:$0xff]  }
0x1457   :  { %8364 = vmatpush1.bf16.msra.mxu0 %v12292_v40  ;;  %v12345_v40 = vld [vmem:[%s15717_s22 + $0x84] ss:$8 sps:$4 sm:$0xff]  }
0x1458   :  { %8365 = vmatprep.subr.bf16.mxu0 %v12297_v57  ;;  %v12343_v57 = vld [vmem:[%s15717_s22 + $0x80] ss:$8 sps:$4 sm:$0xff]  }
0x145b   :  { %8366 = vmatpush1.bf16.msra.mxu0 %v12295_v43  ;;  %v12348_v43 = vld [vmem:[%s15717_s22 + $0x94] ss:$8 sps:$4 sm:$0xff]  }
0x145c   :  { %8367 = vmatprep.subr.bf16.mxu0 %v12300_v21  ;;  %v12346_v21 = vld [vmem:[%s15717_s22 + $0x90] ss:$8 sps:$4 sm:$0xff]  }
0x145f   :  { %8368 = vmatpush1.bf16.msra.mxu0 %v12298_v33  ;;  %v12351_v33 = vld [vmem:[%s15717_s22 + $0xa4] ss:$8 sps:$4 sm:$0xff]  }
0x1460   :  { %8369 = vmatprep.subr.bf16.mxu0 %v12303_v51  ;;  %v12349_v51 = vld [vmem:[%s15717_s22 + $0xa0] ss:$8 sps:$4 sm:$0xff]  }
0x1463   :  { %8370 = vmatpush1.bf16.msra.mxu0 %v12301_v0  ;;  %v12354_v0 = vld [vmem:[%s15717_s22 + $0xb4] ss:$8 sps:$4 sm:$0xff]  }
0x1464   :  { %8371 = vmatprep.subr.bf16.mxu0 %v12306_v46  ;;  %v12352_v46 = vld [vmem:[%s15717_s22 + $0xb0] ss:$8 sps:$4 sm:$0xff]  }
0x1467   :  { %8372 = vmatpush1.bf16.msra.mxu0 %v12304_v32  ;;  %v7872_v32 = vld [vmem:[%s15718_s12] sm:$0x3] }
0x1468   :  { %8373 = vmatprep.subr.bf16.mxu0 %v12309_v18  ;;  %v8111_v9 = vrot.slane %v7872_v32, %v15304_v53  ;;  %v12355_v18 = vld [vmem:[%s15717_s22 + $0xc0] ss:$8 sps:$4 sm:$0xff]  }
0x146b   :  { %8374 = vmatpush1.bf16.msra.mxu0 %v12307_v19  ;;  %v12360_v19 = vld [vmem:[%s15717_s22 + $0xd4] ss:$8 sps:$4 sm:$0xff]  }
0x146c   :  { %8375 = vmatprep.subr.bf16.mxu0 %v12312_v42  ;;  %v12358_v42 = vld [vmem:[%s15717_s22 + $0xd0] ss:$8 sps:$4 sm:$0xff]  }
0x146f   :  { %8376 = vmatpush1.bf16.msra.mxu0 %v12310_v59  ;;  %v12363_v59 = vld [vmem:[%s15717_s22 + $0xe4] ss:$8 sps:$4 sm:$0xff]  }
0x1470   :  { %8377 = vmatprep.subr.bf16.mxu0 %v12315_v56  ;;  %v12361_v56 = vld [vmem:[%s15717_s22 + $0xe0] ss:$8 sps:$4 sm:$0xff]  }
0x1473   :  { %8378 = vmatpush1.bf16.msra.mxu0 %v12313_v20  ;;  %v12366_v20 = vld [vmem:[%s15717_s22 + $0xf4] ss:$8 sps:$4 sm:$0xff]  }
0x1474   :  { %8379 = vmatprep.subr.bf16.mxu0 %v12318_v26  ;;  %v12364_v26 = vld [vmem:[%s15717_s22 + $0xf0] ss:$8 sps:$4 sm:$0xff]  }
0x1477   :  { %8380 = vmatpush1.bf16.msra.mxu0 %v12316_v15  ;;  %v12367_v15 = vld [vmem:[%s15720_s7] ss:$16 sps:$4 sm:$0xff]  }
0x150d   :  { %v7817_v63 = vpop.f32.mrb[232].mxu0 }
0x150e   :  { %v7835_v47 = vmul.f32 %v7828_v31, %v7817_v63  ;;  %v7819_v29 = vpop.f32.mrb[233].mxu0  ;;  %v8115_v31 = vrot.slane %v7872_v32, %v15307_v24  ;;  %v8128_v63 = vrot.slane %v7873_v3, %v15307_v24  ;;  %v12441_v32 = vld [vmem:[%s15720_s7 + $0x184] ss:$16 sps:$4 sm:$0xff]  }
0x150f   :  { %v7836_v50 = vmul.f32 %v7832_v39, %v7819_v29  ;;  %v7821_v45 = vpop.f32.mrb[234].mxu0  ;;  %v8124_v39 = vrot.slane %v7873_v3, %v15304_v53  ;;  %v12439_v3 = vld [vmem:[%s15720_s7 + $0x180] ss:$16 sps:$4 sm:$0xff]  }
0x1510   :  { %v7848_v28 = vadd.f32 %v7841_v16, %v7835_v47  ;;  %v7822_v8 = vpop.f32.mrb[235].mxu0 }
0x1511   :  { %v7849_v6 = vadd.f32 %v7845_v54, %v7836_v50  ;;  %v8137_v8 = vld [vmem:[%s15719_s23] sm:$0x3] }
0x1512   :  { %v7850_v58 = vmax.f32 %v7848_v28, 0.0 }
0x1513   :  { %v7851_v61 = vmax.f32 %v7849_v6, 0.0 }
0x1514   :  { %v7852_v30 = vpack.c.bf16 %v7850_v58, %v7850_v58 }
0x1515   :  { %v7853_v23 = vpack.c.bf16 %v7851_v61, %v7851_v61 }
0x1516   :  { %v7855_v38 = vunpack.c.l.bf16 %v7852_v30  ;;  %v8144_v30 = vrot.slane %v8137_v8, %v15304_v53 }
0x1517   :  { %v7856_v55 = vunpack.c.l.bf16 %v7853_v23  ;;  %v8148_v23 = vrot.slane %v8137_v8, %v15307_v24 }
0x1518   :  { %v7868_v35 = vmul.f32 %v7861_v62, %v7855_v38 }
0x1519   :  { %v7869_v10 = vmul.f32 %v7865_v7, %v7856_v55 }
0x151a   :  { %v7870_v36 = vpack.c.bf16 %v7868_v35, %v7868_v35 }
0x151b   :  { %v7871_v25 = vpack.c.bf16 %v7869_v10, %v7869_v10 }
0x151d   :  { %8098 = vmatprep.mubr.bf16.mxu1 %v7871_v25 }
0x151e   :  { %8099 = vmatmul.mubr.bf16.vlgmr.msra.gmra.mrb[76].mxu1 %v7870_v36  ;;  %v12357_v36 = vld [vmem:[%s15717_s22 + $0xc4] ss:$8 sps:$4 sm:$0xff]  }
0x151f   :  { %8633 = vmatpush1.bf16.msra.mxu1 %v12319_v34  ;;  %v12369_v34 = vld [vmem:[%s15720_s7 + $0x4] ss:$16 sps:$4 sm:$0xff]  }
0x1520   :  { %8634 = vmatprep.subr.bf16.mxu1 %v12324_v37  ;;  %v12375_v37 = vld [vmem:[%s15720_s7 + $0x24] ss:$16 sps:$4 sm:$0xff]   ;;  %9089 = vmatprep.subr.bf16.mxu0 %v12369_v34  ;;  %v12390_v34 = vld [vmem:[%s15720_s7 + $0x6c] ss:$16 sps:$4 sm:$0xff]  }
0x1523   :  { %8635 = vmatpush1.bf16.msra.mxu1 %v12322_v14  ;;  %v12373_v14 = vld [vmem:[%s15720_s7 + $0x20] ss:$16 sps:$4 sm:$0xff]  }
0x1524   :  { %8636 = vmatprep.subr.bf16.mxu1 %v12327_v60  ;;  %v12381_v60 = vld [vmem:[%s15720_s7 + $0x44] ss:$16 sps:$4 sm:$0xff]  }
0x1527   :  { %8637 = vmatpush1.bf16.msra.mxu1 %v12325_v27  ;;  %v12379_v27 = vld [vmem:[%s15720_s7 + $0x40] ss:$16 sps:$4 sm:$0xff]  }
0x1528   :  { %8638 = vmatprep.subr.bf16.mxu1 %v12330_v48  ;;  %v12387_v48 = vld [vmem:[%s15720_s7 + $0x64] ss:$16 sps:$4 sm:$0xff]  }
0x152b   :  { %8639 = vmatpush1.bf16.msra.mxu1 %v12328_v1  ;;  %v12385_v1 = vld [vmem:[%s15720_s7 + $0x60] ss:$16 sps:$4 sm:$0xff]  }
0x152c   :  { %8640 = vmatprep.subr.bf16.mxu1 %v12333_v52  ;;  %v12393_v52 = vld [vmem:[%s15720_s7 + $0x84] ss:$16 sps:$4 sm:$0xff]  }
0x152f   :  { %8641 = vmatpush1.bf16.msra.mxu1 %v12331_v5  ;;  %v12391_v5 = vld [vmem:[%s15720_s7 + $0x80] ss:$16 sps:$4 sm:$0xff]  }
0x1530   :  { %8642 = vmatprep.subr.bf16.mxu1 %v12336_v41  ;;  %v12399_v41 = vld [vmem:[%s15720_s7 + $0xa4] ss:$16 sps:$4 sm:$0xff]  }
0x1533   :  { %8643 = vmatpush1.bf16.msra.mxu1 %v12334_v13  ;;  %v12397_v13 = vld [vmem:[%s15720_s7 + $0xa0] ss:$16 sps:$4 sm:$0xff]  }
0x1534   :  { %8644 = vmatprep.subr.bf16.mxu1 %v12339_v17  ;;  %v12405_v17 = vld [vmem:[%s15720_s7 + $0xc4] ss:$16 sps:$4 sm:$0xff]  }
0x1537   :  { %8645 = vmatpush1.bf16.msra.mxu1 %v12337_v44  ;;  %v12403_v44 = vld [vmem:[%s15720_s7 + $0xc0] ss:$16 sps:$4 sm:$0xff]  }
0x1538   :  { %8646 = vmatprep.subr.bf16.mxu1 %v12342_v22  ;;  %v12411_v22 = vld [vmem:[%s15720_s7 + $0xe4] ss:$16 sps:$4 sm:$0xff]  }
0x153b   :  { %8647 = vmatpush1.bf16.msra.mxu1 %v12340_v49  ;;  %v12409_v49 = vld [vmem:[%s15720_s7 + $0xe0] ss:$16 sps:$4 sm:$0xff]  }
0x153c   :  { %8648 = vmatprep.subr.bf16.mxu1 %v12345_v40  ;;  %v12417_v40 = vld [vmem:[%s15720_s7 + $0x104] ss:$16 sps:$4 sm:$0xff]  }
0x153f   :  { %8649 = vmatpush1.bf16.msra.mxu1 %v12343_v57  ;;  %v12415_v57 = vld [vmem:[%s15720_s7 + $0x100] ss:$16 sps:$4 sm:$0xff]  }
0x1540   :  { %8650 = vmatprep.subr.bf16.mxu1 %v12348_v43  ;;  %v12423_v43 = vld [vmem:[%s15720_s7 + $0x124] ss:$16 sps:$4 sm:$0xff]  }
0x1543   :  { %8651 = vmatpush1.bf16.msra.mxu1 %v12346_v21  ;;  %v12421_v21 = vld [vmem:[%s15720_s7 + $0x120] ss:$16 sps:$4 sm:$0xff]  }
0x1544   :  { %8652 = vmatprep.subr.bf16.mxu1 %v12351_v33  ;;  %v12429_v33 = vld [vmem:[%s15720_s7 + $0x144] ss:$16 sps:$4 sm:$0xff]  }
0x1547   :  { %8653 = vmatpush1.bf16.msra.mxu1 %v12349_v51  ;;  %v12427_v51 = vld [vmem:[%s15720_s7 + $0x140] ss:$16 sps:$4 sm:$0xff]  }
0x1548   :  { %8654 = vmatprep.subr.bf16.mxu1 %v12354_v0  ;;  %v12435_v0 = vld [vmem:[%s15720_s7 + $0x164] ss:$16 sps:$4 sm:$0xff]  }
0x154b   :  { %8655 = vmatpush1.bf16.msra.mxu1 %v12352_v46  ;;  %v12433_v46 = vld [vmem:[%s15720_s7 + $0x160] ss:$16 sps:$4 sm:$0xff]  }
0x154c   :  { %8656 = vmatprep.subr.bf16.mxu1 %v12357_v36 }
0x154f   :  { %8657 = vmatpush1.bf16.msra.mxu1 %v12355_v18 }
0x1550   :  { %8658 = vmatprep.subr.bf16.mxu1 %v12360_v19 }
0x1553   :  { %8659 = vmatpush1.bf16.msra.mxu1 %v12358_v42  ;;  %v12370_v42 = vld [vmem:[%s15720_s7 + $0x8] ss:$16 sps:$4 sm:$0xff]  }
0x1554   :  { %8660 = vmatprep.subr.bf16.mxu1 %v12363_v59 }
0x1557   :  { %8661 = vmatpush1.bf16.msra.mxu1 %v12361_v56  ;;  %v12378_v56 = vld [vmem:[%s15720_s7 + $0x2c] ss:$16 sps:$4 sm:$0xff]  }
0x1558   :  { %8662 = vmatprep.subr.bf16.mxu1 %v12366_v20  ;;  %v12376_v20 = vld [vmem:[%s15720_s7 + $0x28] ss:$16 sps:$4 sm:$0xff]  }
0x155b   :  { %8663 = vmatpush1.bf16.msra.mxu1 %v12364_v26  ;;  %v12384_v26 = vld [vmem:[%s15720_s7 + $0x4c] ss:$16 sps:$4 sm:$0xff]  }
0x155c   :  { %9130 = vmatprep.subr.bf16.mxu1 %v12372_v12  ;;  %v12388_v12 = vld [vmem:[%s15720_s7 + $0x68] ss:$16 sps:$4 sm:$0xff]  }
0x15f1   :  { %v8100_v16 = vpop.f32.mrb[76].mxu1 }
0x15f2   :  { %v8118_v54 = vmul.f32 %v8111_v9, %v8100_v16  ;;  %v8102_v47 = vpop.f32.mrb[77].mxu1  ;;  %v12447_v9 = vld [vmem:[%s15720_s7 + $0x1a4] ss:$16 sps:$4 sm:$0xff]   ;;  %v8156_v16 = vld [vmem:[%s15721_s24 + $0x2] sm:$0x3] }
0x15f3   :  { %v8119_v29 = vmul.f32 %v8115_v31, %v8102_v47  ;;  %v8104_v50 = vpop.f32.mrb[78].mxu1  ;;  %v12445_v31 = vld [vmem:[%s15720_s7 + $0x1a0] ss:$16 sps:$4 sm:$0xff]   ;;  %v8407_v47 = vrot.slane %v8156_v16, %v15304_v53 }
0x15f4   :  { %v8131_v45 = vadd.f32 %v8124_v39, %v8118_v54  ;;  %v8105_v28 = vpop.f32.mrb[79].mxu1  ;;  %v8155_v39 = vld [vmem:[%s15721_s24] sm:$0x3]  ;;  %v8411_v50 = vrot.slane %v8156_v16, %v15307_v24  ;;  %v12460_v16 = vld [vmem:[%s15720_s7 + $0x1e8] ss:$16 sps:$4 sm:$0xff]  }
0x15f5   :  { %v8132_v11 = vadd.f32 %v8128_v63, %v8119_v29  ;;  %v8394_v63 = vrot.slane %v8155_v39, %v15304_v53  ;;  %v8398_v54 = vrot.slane %v8155_v39, %v15307_v24  ;;  %v12457_v39 = vld [vmem:[%s15720_s7 + $0x1e0] ss:$16 sps:$4 sm:$0xff]  }
0x15f6   :  { %v8133_v6 = vpack.c.bf16 %v8131_v45, %v8131_v45 }
0x15f7   :  { %v8134_v58 = vpack.c.bf16 %v8132_v11, %v8132_v11 }
0x15f8   :  { %v8135_v61 = vmax.bf16 %v15708_v4, %v8133_v6 }
0x15f9   :  { %v8136_v62 = vmax.bf16 %v15708_v4, %v8134_v58 }
0x15fa   :  { %v8138_v7 = vunpack.c.l.bf16 %v8135_v61  ;;  %v8420_v61 = vld [vmem:[%s15722_s25] sm:$0x3] }
0x15fb   :  { %v8139_v38 = vunpack.c.l.bf16 %v8136_v62 }
0x15fc   :  { %v8151_v55 = vmul.f32 %v8144_v30, %v8138_v7 }
0x15fd   :  { %v8152_v35 = vmul.f32 %v8148_v23, %v8139_v38  ;;  %v8427_v38 = vrot.slane %v8420_v61, %v15304_v53 }
0x15fe   :  { %v8153_v25 = vpack.c.bf16 %v8151_v55, %v8151_v55 }
0x15ff   :  { %v8154_v10 = vpack.c.bf16 %v8152_v35, %v8152_v35  ;;  %v8431_v35 = vrot.slane %v8420_v61, %v15307_v24 }
0x1601   :  { %8381 = vmatprep.mubr.bf16.mxu0 %v8154_v10 }
0x1602   :  { %8382 = vmatmul.mubr.bf16.vlgmr.msra.gmra.mrb[236].mxu0 %v8153_v25 }
0x1603   :  { %9090 = vmatpush1.bf16.msra.mxu0 %v12367_v15  ;;  %v12382_v15 = vld [vmem:[%s15720_s7 + $0x48] ss:$16 sps:$4 sm:$0xff]  }
0x1604   :  { %9091 = vmatprep.subr.bf16.mxu0 %v12375_v37  ;;  %v12396_v37 = vld [vmem:[%s15720_s7 + $0x8c] ss:$16 sps:$4 sm:$0xff]  }
0x1607   :  { %9092 = vmatpush1.bf16.msra.mxu0 %v12373_v14  ;;  %v12394_v14 = vld [vmem:[%s15720_s7 + $0x88] ss:$16 sps:$4 sm:$0xff]  }
0x1608   :  { %9093 = vmatprep.subr.bf16.mxu0 %v12381_v60  ;;  %v12402_v60 = vld [vmem:[%s15720_s7 + $0xac] ss:$16 sps:$4 sm:$0xff]  }
0x160b   :  { %9094 = vmatpush1.bf16.msra.mxu0 %v12379_v27  ;;  %v12400_v27 = vld [vmem:[%s15720_s7 + $0xa8] ss:$16 sps:$4 sm:$0xff]  }
0x160c   :  { %9095 = vmatprep.subr.bf16.mxu0 %v12387_v48  ;;  %v12408_v48 = vld [vmem:[%s15720_s7 + $0xcc] ss:$16 sps:$4 sm:$0xff]  }
0x160f   :  { %9096 = vmatpush1.bf16.msra.mxu0 %v12385_v1  ;;  %v12406_v1 = vld [vmem:[%s15720_s7 + $0xc8] ss:$16 sps:$4 sm:$0xff]  }
0x1610   :  { %9097 = vmatprep.subr.bf16.mxu0 %v12393_v52  ;;  %v12414_v52 = vld [vmem:[%s15720_s7 + $0xec] ss:$16 sps:$4 sm:$0xff]  }
0x1613   :  { %9098 = vmatpush1.bf16.msra.mxu0 %v12391_v5  ;;  %v12412_v5 = vld [vmem:[%s15720_s7 + $0xe8] ss:$16 sps:$4 sm:$0xff]  }
0x1614   :  { %9099 = vmatprep.subr.bf16.mxu0 %v12399_v41  ;;  %v12420_v41 = vld [vmem:[%s15720_s7 + $0x10c] ss:$16 sps:$4 sm:$0xff]  }
0x1617   :  { %9100 = vmatpush1.bf16.msra.mxu0 %v12397_v13  ;;  %v12418_v13 = vld [vmem:[%s15720_s7 + $0x108] ss:$16 sps:$4 sm:$0xff]  }
0x1618   :  { %9101 = vmatprep.subr.bf16.mxu0 %v12405_v17  ;;  %v12426_v17 = vld [vmem:[%s15720_s7 + $0x12c] ss:$16 sps:$4 sm:$0xff]  }
0x161b   :  { %9102 = vmatpush1.bf16.msra.mxu0 %v12403_v44  ;;  %v12424_v44 = vld [vmem:[%s15720_s7 + $0x128] ss:$16 sps:$4 sm:$0xff]  }
0x161c   :  { %9103 = vmatprep.subr.bf16.mxu0 %v12411_v22  ;;  %v12432_v22 = vld [vmem:[%s15720_s7 + $0x14c] ss:$16 sps:$4 sm:$0xff]  }
0x161f   :  { %9104 = vmatpush1.bf16.msra.mxu0 %v12409_v49  ;;  %v12430_v49 = vld [vmem:[%s15720_s7 + $0x148] ss:$16 sps:$4 sm:$0xff]  }
0x1620   :  { %9105 = vmatprep.subr.bf16.mxu0 %v12417_v40  ;;  %v12438_v40 = vld [vmem:[%s15720_s7 + $0x16c] ss:$16 sps:$4 sm:$0xff]  }
0x1623   :  { %9106 = vmatpush1.bf16.msra.mxu0 %v12415_v57  ;;  %v12436_v57 = vld [vmem:[%s15720_s7 + $0x168] ss:$16 sps:$4 sm:$0xff]  }
0x1624   :  { %9107 = vmatprep.subr.bf16.mxu0 %v12423_v43  ;;  %v12444_v43 = vld [vmem:[%s15720_s7 + $0x18c] ss:$16 sps:$4 sm:$0xff]  }
0x1627   :  { %9108 = vmatpush1.bf16.msra.mxu0 %v12421_v21  ;;  %v12442_v21 = vld [vmem:[%s15720_s7 + $0x188] ss:$16 sps:$4 sm:$0xff]  }
0x1628   :  { %9109 = vmatprep.subr.bf16.mxu0 %v12429_v33  ;;  %v12450_v33 = vld [vmem:[%s15720_s7 + $0x1ac] ss:$16 sps:$4 sm:$0xff]  }
0x162b   :  { %9110 = vmatpush1.bf16.msra.mxu0 %v12427_v51  ;;  %v12448_v51 = vld [vmem:[%s15720_s7 + $0x1a8] ss:$16 sps:$4 sm:$0xff]  }
0x162c   :  { %9111 = vmatprep.subr.bf16.mxu0 %v12435_v0  ;;  %v12453_v0 = vld [vmem:[%s15720_s7 + $0x1c4] ss:$16 sps:$4 sm:$0xff]  }
0x162f   :  { %9112 = vmatpush1.bf16.msra.mxu0 %v12433_v46  ;;  %v12456_v46 = vld [vmem:[%s15720_s7 + $0x1cc] ss:$16 sps:$4 sm:$0xff]  }
0x1630   :  { %9113 = vmatprep.subr.bf16.mxu0 %v12441_v32  ;;  %v12451_v32 = vld [vmem:[%s15720_s7 + $0x1c0] ss:$16 sps:$4 sm:$0xff]  }
0x1633   :  { %9114 = vmatpush1.bf16.msra.mxu0 %v12439_v3  ;;  %v12454_v3 = vld [vmem:[%s15720_s7 + $0x1c8] ss:$16 sps:$4 sm:$0xff]  }
0x1634   :  { %9115 = vmatprep.subr.bf16.mxu0 %v12447_v9  ;;  %v12459_v9 = vld [vmem:[%s15720_s7 + $0x1e4] ss:$16 sps:$4 sm:$0xff]  }
0x1637   :  { %9116 = vmatpush1.bf16.msra.mxu0 %v12445_v31  ;;  %v12462_v31 = vld [vmem:[%s15720_s7 + $0x1ec] ss:$16 sps:$4 sm:$0xff]  }
0x1638   :  { %9117 = vmatprep.subr.bf16.mxu0 %v12453_v0  ;;  %v8704_v0 = vld [vmem:[%s13135_s5 + $0x4] sm:$0xf] }
0x163b   :  { %9118 = vmatpush1.bf16.msra.mxu0 %v12451_v32 }
0x163c   :  { %9119 = vmatprep.subr.bf16.mxu0 %v12459_v9 }
0x163f   :  { %9120 = vmatpush1.bf16.msra.mxu0 %v12457_v39 }
0x16d5   :  { %v8383_v29 = vpop.f32.mrb[236].mxu0 }
0x16d6   :  { %v8401_v45 = vmul.f32 %v8394_v63, %v8383_v29  ;;  %v8385_v28 = vpop.f32.mrb[237].mxu0  ;;  %v12463_v63 = vld [vmem:[%s13140_s21 + $0x40] sm:$0xff]  }
0x16d7   :  { %v8402_v8 = vmul.f32 %v8398_v54, %v8385_v28  ;;  %v8387_v11 = vpop.f32.mrb[238].mxu0  ;;  %v12464_v54 = vld [vmem:[%s13140_s21 + $0xc0] sm:$0xff]   ;;  %10782 = vmatprep.subr.bf16.mxu0 %v12463_v63 }
0x16d8   :  { %v8414_v6 = vadd.f32 %v8407_v47, %v8401_v45  ;;  %v8388_v58 = vpop.f32.mrb[239].mxu0  ;;  %v8438_v47 = vld [vmem:[%s15723_s2] sm:$0x3]  ;;  %v8439_v29 = vld [vmem:[%s15723_s2 + $0x2] sm:$0x3] }
0x16d9   :  { %v8415_v30 = vadd.f32 %v8411_v50, %v8402_v8  ;;  %v8677_v50 = vrot.slane %v8438_v47, %v15304_v53  ;;  %v8681_v45 = vrot.slane %v8438_v47, %v15307_v24  ;;  %v8690_v28 = vrot.slane %v8439_v29, %v15304_v53 }
0x16da   :  { %v8416_v62 = vmax.f32 %v8414_v6, 0.0  ;;  %v8694_v11 = vrot.slane %v8439_v29, %v15307_v24 }
0x16db   :  { %v8417_v23 = vmax.f32 %v8415_v30, 0.0 }
0x16dc   :  { %v8418_v7 = vpack.c.bf16 %v8416_v62, %v8416_v62 }
0x16dd   :  { %v8419_v55 = vpack.c.bf16 %v8417_v23, %v8417_v23 }
0x16de   :  { %v8421_v10 = vunpack.c.l.bf16 %v8418_v7 }
0x16df   :  { %v8422_v25 = vunpack.c.l.bf16 %v8419_v55 }
0x16e0   :  { %v8434_v36 = vmul.f32 %v8427_v38, %v8421_v10  ;;  %v12465_v10 = vld [vmem:[%s13140_s21] sm:$0xff]  }
0x16e1   :  { %v8435_v18 = vmul.f32 %v8431_v35, %v8422_v25  ;;  %v12466_v25 = vld [vmem:[%s13140_s21 + $0x80] sm:$0xff]  }
0x16e2   :  { %v8436_v59 = vpack.c.bf16 %v8434_v36, %v8434_v36 }
0x16e3   :  { %v8437_v19 = vpack.c.bf16 %v8435_v18, %v8435_v18  ;;  %v12467_v18 = vld [vmem:[%s13140_s21 + $0x48] sm:$0xff]  }
0x16e5   :  { %8664 = vmatprep.mubr.bf16.mxu1 %v8437_v19  ;;  %v12468_v19 = vld [vmem:[%s13140_s21 + $0xc8] sm:$0xff]  }
0x16e6   :  { %8665 = vmatmul.mubr.bf16.vlgmr.msra.gmra.mrb[80].mxu1 %v8436_v59  ;;  %v12470_v59 = vld [vmem:[%s13140_s21 + $0x88] sm:$0xff]  }
0x16e7   :  { %9131 = vmatpush1.bf16.msra.mxu1 %v12370_v42  ;;  %v12469_v42 = vld [vmem:[%s13140_s21 + $0x8] sm:$0xff]  }
0x16e8   :  { %9132 = vmatprep.subr.bf16.mxu1 %v12378_v56  ;;  %v12471_v56 = vld [vmem:[%s13140_s21 + $0x50] sm:$0xff]  }
0x16eb   :  { %9133 = vmatpush1.bf16.msra.mxu1 %v12376_v20  ;;  %v12473_v20 = vld [vmem:[%s13140_s21 + $0x10] sm:$0xff]  }
0x16ec   :  { %9134 = vmatprep.subr.bf16.mxu1 %v12384_v26  ;;  %v12474_v26 = vld [vmem:[%s13140_s21 + $0x90] sm:$0xff]  }
0x16ef   :  { %9135 = vmatpush1.bf16.msra.mxu1 %v12382_v15  ;;  %v12475_v15 = vld [vmem:[%s13140_s21 + $0x58] sm:$0xff]  }
0x16f0   :  { %9136 = vmatprep.subr.bf16.mxu1 %v12390_v34  ;;  %v12476_v34 = vld [vmem:[%s13140_s21 + $0xd8] sm:$0xff]  }
0x16f3   :  { %9137 = vmatpush1.bf16.msra.mxu1 %v12388_v12  ;;  %v12477_v12 = vld [vmem:[%s13140_s21 + $0x18] sm:$0xff]  }
0x16f4   :  { %9138 = vmatprep.subr.bf16.mxu1 %v12396_v37  ;;  %v12478_v37 = vld [vmem:[%s13140_s21 + $0x98] sm:$0xff]  }
0x16f7   :  { %9139 = vmatpush1.bf16.msra.mxu1 %v12394_v14  ;;  %v12479_v14 = vld [vmem:[%s13140_s21 + $0x60] sm:$0xff]  }
0x16f8   :  { %9140 = vmatprep.subr.bf16.mxu1 %v12402_v60  ;;  %v12480_v60 = vld [vmem:[%s13140_s21 + $0xe0] sm:$0xff]  }
0x16fb   :  { %9141 = vmatpush1.bf16.msra.mxu1 %v12400_v27  ;;  %v12481_v27 = vld [vmem:[%s13140_s21 + $0x20] sm:$0xff]  }
0x16fc   :  { %9142 = vmatprep.subr.bf16.mxu1 %v12408_v48  ;;  %v12482_v48 = vld [vmem:[%s13140_s21 + $0xa0] sm:$0xff]  }
0x16ff   :  { %9143 = vmatpush1.bf16.msra.mxu1 %v12406_v1  ;;  %v12483_v1 = vld [vmem:[%s13140_s21 + $0x68] sm:$0xff]  }
0x1700   :  { %9144 = vmatprep.subr.bf16.mxu1 %v12414_v52  ;;  %v12484_v52 = vld [vmem:[%s13140_s21 + $0xe8] sm:$0xff]  }
0x1703   :  { %9145 = vmatpush1.bf16.msra.mxu1 %v12412_v5  ;;  %v12485_v5 = vld [vmem:[%s13140_s21 + $0x28] sm:$0xff]  }
0x1704   :  { %9146 = vmatprep.subr.bf16.mxu1 %v12420_v41  ;;  %v12486_v41 = vld [vmem:[%s13140_s21 + $0xa8] sm:$0xff]  }
0x1707   :  { %9147 = vmatpush1.bf16.msra.mxu1 %v12418_v13  ;;  %v12487_v13 = vld [vmem:[%s13140_s21 + $0x70] sm:$0xff]  }
0x1708   :  { %9148 = vmatprep.subr.bf16.mxu1 %v12426_v17  ;;  %v12488_v17 = vld [vmem:[%s13140_s21 + $0xf0] sm:$0xff]  }
0x170b   :  { %9149 = vmatpush1.bf16.msra.mxu1 %v12424_v44  ;;  %v12489_v44 = vld [vmem:[%s13140_s21 + $0x30] sm:$0xff]  }
0x170c   :  { %9150 = vmatprep.subr.bf16.mxu1 %v12432_v22  ;;  %v12490_v22 = vld [vmem:[%s13140_s21 + $0xb0] sm:$0xff]  }
0x170f   :  { %9151 = vmatpush1.bf16.msra.mxu1 %v12430_v49  ;;  %v12491_v49 = vld [vmem:[%s13140_s21 + $0x78] sm:$0xff]  }
0x1710   :  { %9152 = vmatprep.subr.bf16.mxu1 %v12438_v40  ;;  %v12492_v40 = vld [vmem:[%s13140_s21 + $0xf8] sm:$0xff]  }
0x1713   :  { %9153 = vmatpush1.bf16.msra.mxu1 %v12436_v57  ;;  %v12493_v57 = vld [vmem:[%s13140_s21 + $0x38] sm:$0xff]  }
0x1714   :  { %9154 = vmatprep.subr.bf16.mxu1 %v12444_v43  ;;  %v12494_v43 = vld [vmem:[%s13140_s21 + $0xb8] sm:$0xff]  }
0x1717   :  { %9155 = vmatpush1.bf16.msra.mxu1 %v12442_v21  ;;  %v9182_v21 = vsub.s32 2, %v15272_v2 }
0x1718   :  { %9156 = vmatprep.subr.bf16.mxu1 %v12450_v33  ;;  %v8703_v33 = vld [vmem:[%s13135_s5] sm:$0xf]  ;;  %s12931_s5 = smov [#allocation26]  }
0x1719   :  { %v9183_v32 = vrot.slane %v8703_v33, %v9182_v21  ;;  %v9208_v39 = vrot.slane %v8704_v0, %v9182_v21 }
0x171b   :  { %9157 = vmatpush1.bf16.msra.mxu1 %v12448_v51  ;;  %v9186_v51 = vsub.s32 3, %v15272_v2 }
0x171c   :  { %9158 = vmatprep.subr.bf16.mxu1 %v12456_v46  ;;  %v9175_v46 = vrot.slane %v8703_v33, %v15304_v53 }
0x171d   :  { %v9187_v9 = vrot.slane %v8703_v33, %v9186_v51  ;;  %v9212_v47 = vrot.slane %v8704_v0, %v9186_v51 }
0x171f   :  { %9159 = vmatpush1.bf16.msra.mxu1 %v12454_v3  ;;  %v9179_v3 = vrot.slane %v8703_v33, %v15307_v24 }
0x1720   :  { %9160 = vmatprep.subr.bf16.mxu1 %v12462_v31  ;;  %v9200_v31 = vrot.slane %v8704_v0, %v15304_v53 }
0x1723   :  { %9161 = vmatpush1.bf16.msra.mxu1 %v12460_v16 }
0x1724   :  { %10804 = vmatprep.subr.bf16.mxu1 %v12464_v54  ;;  %v9204_v54 = vrot.slane %v8704_v0, %v15307_v24 }
0x17b9   :  { %v8666_v8 = vpop.f32.mrb[80].mxu1 }
0x17ba   :  { %v8684_v6 = vmul.f32 %v8677_v50, %v8666_v8  ;;  %v8668_v58 = vpop.f32.mrb[81].mxu1 }
0x17bb   :  { %v8685_v61 = vmul.f32 %v8681_v45, %v8668_v58  ;;  %v8670_v30 = vpop.f32.mrb[82].mxu1 }
0x17bc   :  { %v8697_v62 = vadd.f32 %v8690_v28, %v8684_v6  ;;  %v8671_v23 = vpop.f32.mrb[83].mxu1 }
0x17bd   :  { %v8698_v7 = vadd.f32 %v8694_v11, %v8685_v61 }
0x17be   :  { %v8699_v38 = vpack.c.bf16 %v8697_v62, %v8697_v62 }
0x17bf   :  { %v8700_v55 = vpack.c.bf16 %v8698_v7, %v8698_v7 }
0x17c0   :  { %v8701_v36 = vmax.bf16 %v15708_v4, %v8699_v38 }
0x17c1   :  { %v8702_v35 = vmax.bf16 %v15708_v4, %v8700_v55  ;;  %v12472_v4 = vld [vmem:[%s13140_s21 + $0xd0] sm:$0xff]   ;;  %s9589_s21 = sshll.u32 %s12931_s5, 4  ;;  %s9590_s21 = int_to_ptr.vmem [resolvable:$true] %s9589_s21 }
0x17c2   :  { %s12825_s3 = scalar_lea.vmem %s9590_s21, 32  ;;  %p12830_p9 = scmp.lt.s32.totalorder %s9590_s21, %s9590_s21 }
0x17c3   :  { %9121 = vmatprep.mubr.bf16.mxu0 %v8702_v35  ;;  %9162 = vmatprep.mubr.bf16.mxu1 %v8702_v35  ;;  %p12826_p8 = scmp.ne.s32.totalorder %s9590_s21, %s12825_s3  ;;  %p12831_p10 = scmp.lt.s32.totalorder %s12825_s3, %s12825_s3 }
0x17c4   :  { %9122 = vmatmul.mubr.bf16.vlgmr.msra.gmra.mrb[240].mxu0 %v8701_v36  ;;  %9163 = vmatmul.mubr.bf16.vlgmr.msra.gmra.mrb[84].mxu1 %v8701_v36 }
0x17c5   :  { %10783 = vmatpush3.bf16.msra.mxu0 %v12465_v10  ;;  %10805 = vmatpush3.bf16.msra.mxu1 %v12466_v25  ;;  %p12832_p11 = por %p12831_p10, %p12830_p9 }
0x17c6   :  { %10784 = vmatprep.subr.bf16.mxu0 %v12467_v18  ;;  %10806 = vmatprep.subr.bf16.mxu1 %v12468_v19 }
0x17c7   :  { %p12833_p12 = pnand %p12832_p11, %p12826_p8 }
0x17c9   :  { %10785 = vmatpush3.bf16.msra.mxu0 %v12469_v42  ;;  %10807 = vmatpush3.bf16.msra.mxu1 %v12470_v59 }
0x17ca   :  { %10786 = vmatprep.subr.bf16.mxu0 %v12471_v56  ;;  %10808 = vmatprep.subr.bf16.mxu1 %v12472_v4 }
0x17cd   :  { %10787 = vmatpush3.bf16.msra.mxu0 %v12473_v20  ;;  %10809 = vmatpush3.bf16.msra.mxu1 %v12474_v26 }
0x17ce   :  { %10788 = vmatprep.subr.bf16.mxu0 %v12475_v15  ;;  %10810 = vmatprep.subr.bf16.mxu1 %v12476_v34  ;;  %v10426_v15 = vld [vmem:[%s13145_s4] ss:$0 sm:$0xff] }
0x17d1   :  { %10789 = vmatpush3.bf16.msra.mxu0 %v12477_v12  ;;  %10811 = vmatpush3.bf16.msra.mxu1 %v12478_v37 }
0x17d2   :  { %10790 = vmatprep.subr.bf16.mxu0 %v12479_v14  ;;  %10812 = vmatprep.subr.bf16.mxu1 %v12480_v60  ;;  %v10427_v14 = vld [vmem:[%s13145_s4 + $0x1] ss:$0 sm:$0xff] }
0x17d5   :  { %10791 = vmatpush3.bf16.msra.mxu0 %v12481_v27  ;;  %10813 = vmatpush3.bf16.msra.mxu1 %v12482_v48 }
0x17d6   :  { %10792 = vmatprep.subr.bf16.mxu0 %v12483_v1  ;;  %10814 = vmatprep.subr.bf16.mxu1 %v12484_v52 }
0x17d9   :  { %10793 = vmatpush3.bf16.msra.mxu0 %v12485_v5  ;;  %10815 = vmatpush3.bf16.msra.mxu1 %v12486_v41 }
0x17da   :  { %10794 = vmatprep.subr.bf16.mxu0 %v12487_v13  ;;  %10816 = vmatprep.subr.bf16.mxu1 %v12488_v17 }
0x17dd   :  { %10795 = vmatpush3.bf16.msra.mxu0 %v12489_v44  ;;  %10817 = vmatpush3.bf16.msra.mxu1 %v12490_v22 }
0x17de   :  { %10796 = vmatprep.subr.bf16.mxu0 %v12491_v49  ;;  %10818 = vmatprep.subr.bf16.mxu1 %v12492_v40 }
0x17e1   :  { %10797 = vmatpush3.bf16.msra.mxu0 %v12493_v57  ;;  %10819 = vmatpush3.bf16.msra.mxu1 %v12494_v43 }
0x1897   :  { %v9123_v16 = vpop.f32.mrb[240].mxu0  ;;  %v9164_v63 = vpop.f32.mrb[84].mxu1 }
0x1898   :  { %v9192_v29 = vmul.f32 %v9175_v46, %v9123_v16  ;;  %v9194_v50 = vmul.f32 %v9183_v32, %v9164_v63  ;;  %v9125_v45 = vpop.f32.mrb[241].mxu0  ;;  %v9166_v28 = vpop.f32.mrb[85].mxu1 }
0x1899   :  { %v9193_v2 = vmul.f32 %v9179_v3, %v9125_v45  ;;  %v9195_v8 = vmul.f32 %v9187_v9, %v9166_v28  ;;  %v9127_v11 = vpop.f32.mrb[242].mxu0  ;;  %v9168_v6 = vpop.f32.mrb[86].mxu1 }
0x189a   :  { %v9217_v58 = vadd.f32 %v9200_v31, %v9192_v29  ;;  %v9219_v61 = vadd.f32 %v9208_v39, %v9194_v50  ;;  %v9128_v30 = vpop.f32.mrb[243].mxu0  ;;  %v9169_v62 = vpop.f32.mrb[87].mxu1 }
0x189b   :  { %v9218_v23 = vadd.f32 %v9204_v54, %v9193_v2  ;;  %v9220_v53 = vadd.f32 %v9212_v47, %v9195_v8 }
0x189c   :  { %v9221_v7 = vmax.f32 %v9217_v58, 0.0  ;;  %v9223_v38 = vmax.f32 %v9219_v61, 0.0 }
0x189d   :  { %v9222_v55 = vmax.f32 %v9218_v23, 0.0  ;;  %v9224_v35 = vmax.f32 %v9220_v53, 0.0 }
0x189e   :  { %v9225_v25 = vpack.c.bf16 %v9221_v7, %v9221_v7  ;;  %v9227_v36 = vpack.c.bf16 %v9223_v38, %v9223_v38 }
0x189f   :  { %v9226_v24 = vpack.c.bf16 %v9222_v55, %v9222_v55  ;;  %v9228_v10 = vpack.c.bf16 %v9224_v35, %v9224_v35 }
0x18a1   :  { %9519 = vmatprep.mubr.bf16.mxu0 %v9226_v24  ;;  %9559 = vmatprep.mubr.bf16.mxu1 %v9228_v10 }
0x18a2   :  { %9520 = vmatmul.mubr.bf16.vlgmr.msra.gmra.mrb[244].mxu0 %v9225_v25  ;;  %9560 = vmatmul.mubr.bf16.vlgmr.msra.gmra.mrb[88].mxu1 %v9227_v36 }
0x1975   :  { %v10798_v18 = vpop.f32.mrb[244].mxu0  ;;  %v10820_v19 = vpop.f32.mrb[88].mxu1 }
0x1976   :  { %v10799_v42 = vpop.f32.mrb[245].mxu0  ;;  %v10821_v59 = vpop.f32.mrb[89].mxu1 }
0x1977   :  { %v10800_v56 = vadd.f32 %v10799_v42, %v10798_v18  ;;  %v10822_v4 = vadd.f32 %v10821_v59, %v10820_v19  ;;  %v10801_v20 = vpop.f32.mrb[246].mxu0  ;;  %v10823_v26 = vpop.f32.mrb[90].mxu1 }
0x1978   :  { %v10802_v34 = vpop.f32.mrb[247].mxu0  ;;  %v10824_v12 = vpop.f32.mrb[91].mxu1 }
0x1979   :  { %v9562_v37 = vadd.f32 %v10822_v4, %v10800_v56 }
0x197b   :  { %v9573_v60 = vmul.f32 %v10426_v15, %v9562_v37 }
0x197d   :  { %v9580_v27 = vadd.f32 %v10427_v14, %v9573_v60 }
0x197f   :  { %9582 = vst.msk [vmem:[#allocation26] sm:$0x3] %vm9581_vm7, %v9580_v27 }
0x1980   :  { %12836 = shalt.err (!%p12833_p12)
}
0x1981   :  { %s12837_s9 = scalar_lea.hbm %s13150_s17, 32 }
0x1982   :  { %p12838_p13 = scmp.ne.s32.totalorder %s13150_s17, %s12837_s9  ;;  %p12841_p0 = scmp.lt.u32.totalorder %s12837_s9, %s13150_s17 }
0x1984   :  { %p12843_p1 = pnand %p12841_p0, %p12838_p13 }
0x1986   :  { %12846 = shalt.err (!%p12843_p1)
}
0x1987   :  { %9592 = dma.vmem_to_hbm [thread:$0]  %s9590_s21, 32, %s13150_s17, [#allocation4]  }
0x1988   :  { %12863 = dma.done.wait [#allocation4], 32  }
0x1989   :  { %12864 = vsyncadd [#allocation4], 4294967264 }
0x198a   :  { %9596 = vsyncpa [#allocation3], 1 }
0x198b   :  { %9597 = vsyncpa [#allocation6], 1 }
0x198c   :  { %9598 = vsyncpa [#allocation9], 1 }
0x198d   :  { %9599 = vsyncpa [#allocation12], 1 }
0x198e   :  { %9600 = vsyncpa [#allocation15], 1 }
0x198f   :  { %9601 = vsyncpa [#allocation18], 1 }
0x1990   :  { %9602 = vsyncpa [#allocation21], 1 }
0x1991   :  { %9603 = vsyncpa [#allocation24], 1 }
0x1992   :  { %9604 = vsyncpa [#allocation4], 1 }

</bundles_post_ra>
